<compile_context>
chip_gen: v6e
topology: v6e:2x2x1
jax: 0.10.0
libtpu: 0.0.40
codegen_flags: <defaults>
</compile_context>

<pallas_src>
import jax
import jax.numpy as jnp
from jax.experimental import pallas as pl
from jax.experimental.pallas import tpu as pltpu

GN_EPS = 1e-5
GN_GROUPS = 8
LEAKY_SLOPE = 0.2
# Safe explicit budget on v5e/v6e/v7x; raise toward 64-96 MiB on v5e/v6e if
# the whole-sample blocks grow with spatial size.
VMEM_LIMIT = 32 * 1024 * 1024


# ----------------------------- in-kernel helpers ----------------------------

def _im2col(read_patch, col_ref, H, W, Cin):
    """Build the (H*W, 9*Cin) im2col scratch from a VMEM-resident padded
    sample (no HBM im2col).  Column block k = 3*dy + dx."""
    for dy in range(3):
        for dx in range(3):
            k = dy * 3 + dx
            col_ref[:, k * Cin:(k + 1) * Cin] = (
                read_patch(dy, dx).reshape(H * W, Cin))


def _conv_gn(col_ref, w_ref, b_ref, g_ref, be_ref, gm_ref):
    """One big-K MXU matmul + bias, then the fused GroupNorm epilogue.
    Returns the normalized (H*W, Cout) f32 tile (scale*y + shift)."""
    acc = jnp.dot(col_ref[...], w_ref[...],
                  preferred_element_type=jnp.float32)          # (H*W, Cout) f32
    acc = acc + b_ref[...]                                     # conv bias
    # GroupNorm statistics: per-channel sums, then per-group mean / E[x^2]
    # broadcast back to channels via a tiny (1,C)@(C,C) pooling matmul.
    s = jnp.sum(acc, axis=0, keepdims=True)                    # (1, Cout)
    ss = jnp.sum(acc * acc, axis=0, keepdims=True)             # (1, Cout)
    mean_c = jnp.dot(s, gm_ref[...], preferred_element_type=jnp.float32)
    ex2_c = jnp.dot(ss, gm_ref[...], preferred_element_type=jnp.float32)
    var_c = ex2_c - mean_c * mean_c                            # biased, like torch
    inv_c = jax.lax.rsqrt(var_c + GN_EPS)
    scale = inv_c * g_ref[...]
    shift = be_ref[...] - mean_c * scale
    return acc * scale + shift


# ------------------- fused conv1 + GroupNorm + LeakyReLU --------------------

def conv3x3_gn_lrelu(x, w9, bias, gamma, beta, gmat):
    """Fused: 3x3 conv (s1, 'same') + bias + GroupNorm(8) + LeakyReLU(0.2).

    x:    (B, H, W, C) f32 NHWC (read once; cast to bf16 in-kernel).
    w9:   (9*C, C) bf16, rows ordered k = 3*dy + dx.
    Returns a zero-halo padded bf16 activation (B, H+2, W+2, C) that is
    directly usable as conv2's pre-padded input (no jnp.pad pass).
    """
    B, H, W, Cin = x.shape
    Cout = w9.shape[1]

    def kernel(x_ref, w_ref, b_ref, g_ref, be_ref, gm_ref, o_ref,
               col_ref, xpad_ref):
        # Zero-pad the sample inside VMEM (kills the wrapper-side jnp.pad).
        xpad_ref[...] = jnp.zeros_like(xpad_ref)
        xpad_ref[1:H + 1, 1:W + 1, :] = x_ref[0].astype(xpad_ref.dtype)
        _im2col(lambda dy, dx: xpad_ref[dy:dy + H, dx:dx + W, :],
                col_ref, H, W, Cin)
        v = _conv_gn(col_ref, w_ref, b_ref, g_ref, be_ref, gm_ref)
        v = jnp.where(v >= 0.0, v, LEAKY_SLOPE * v)            # LeakyReLU(0.2)
        # Emit the activation straight into the interior of a zero-halo padded
        # block so the second conv needs no padding pass.
        o_ref[...] = jnp.zeros_like(o_ref)
        o_ref[:, 1:H + 1, 1:W + 1, :] = (
            v.reshape(1, H, W, Cout).astype(o_ref.dtype))

    return pl.pallas_call(
        kernel,
        out_shape=jax.ShapeDtypeStruct((B, H + 2, W + 2, Cout), jnp.bfloat16),
        grid=(B,),
        in_specs=[pl.BlockSpec((1, H, W, Cin), lambda b: (b, 0, 0, 0)),
                  pl.BlockSpec((9 * Cin, Cout), lambda b: (0, 0)),
                  pl.BlockSpec((1, Cout), lambda b: (0, 0)),
                  pl.BlockSpec((1, Cout), lambda b: (0, 0)),
                  pl.BlockSpec((1, Cout), lambda b: (0, 0)),
                  pl.BlockSpec((Cout, Cout), lambda b: (0, 0))],
        out_specs=pl.BlockSpec((1, H + 2, W + 2, Cout), lambda b: (b, 0, 0, 0)),
        scratch_shapes=[pltpu.VMEM((H * W, 9 * Cin), jnp.bfloat16),
                        pltpu.VMEM((H + 2, W + 2, Cin), jnp.bfloat16)],
        compiler_params=pltpu.CompilerParams(
            dimension_semantics=("parallel",),
            vmem_limit_bytes=VMEM_LIMIT),
    )(x, w9, bias, gamma, beta, gmat)


# ---------------- fused conv2 + GroupNorm + residual add --------------------

def conv3x3_gn_residual(ap, x, w9, bias, gamma, beta, gmat):
    """Fused: 3x3 conv over the pre-padded bf16 activation + bias +
    GroupNorm(8) + residual add of the original f32 x.  Returns (B,H,W,C) f32."""
    B, Hp, Wp, Cin = ap.shape
    H, W = Hp - 2, Wp - 2
    Cout = w9.shape[1]

    def kernel(ap_ref, x_ref, w_ref, b_ref, g_ref, be_ref, gm_ref, o_ref,
               col_ref):
        _im2col(lambda dy, dx: ap_ref[0, dy:dy + H, dx:dx + W, :],
                col_ref, H, W, Cin)
        v = _conv_gn(col_ref, w_ref, b_ref, g_ref, be_ref, gm_ref)
        o_ref[...] = x_ref[...] + v.reshape(1, H, W, Cout)      # skip connection

    return pl.pallas_call(
        kernel,
        out_shape=jax.ShapeDtypeStruct((B, H, W, Cout), jnp.float32),
        grid=(B,),
        in_specs=[pl.BlockSpec((1, Hp, Wp, Cin), lambda b: (b, 0, 0, 0)),
                  pl.BlockSpec((1, H, W, Cout), lambda b: (b, 0, 0, 0)),
                  pl.BlockSpec((9 * Cin, Cout), lambda b: (0, 0)),
                  pl.BlockSpec((1, Cout), lambda b: (0, 0)),
                  pl.BlockSpec((1, Cout), lambda b: (0, 0)),
                  pl.BlockSpec((1, Cout), lambda b: (0, 0)),
                  pl.BlockSpec((Cout, Cout), lambda b: (0, 0))],
        out_specs=pl.BlockSpec((1, H, W, Cout), lambda b: (b, 0, 0, 0)),
        scratch_shapes=[pltpu.VMEM((H * W, 9 * Cin), jnp.bfloat16)],
        compiler_params=pltpu.CompilerParams(
            dimension_semantics=("parallel",),
            vmem_limit_bytes=VMEM_LIMIT),
    )(ap, x, w9, bias, gamma, beta, gmat)


# ------------------------------- glue helpers -------------------------------

def _to_w9(w_oihw):
    """PyTorch Conv2d weight (Cout, Cin, 3, 3) -> (9*Cin, Cout) bf16, rows
    ordered k = 3*dy + dx to match the kernel's im2col column order."""
    cout, cin = w_oihw.shape[0], w_oihw.shape[1]
    return jnp.transpose(w_oihw, (2, 3, 1, 0)).reshape(9 * cin, cout).astype(
        jnp.bfloat16)


def prepare_params(params, H, W):
    """One-time (outside jit) weight repack + GroupNorm pooling matrix, per the
    perf feedback (no per-call weight transpose/reshape/cast)."""
    C = params["w1"].shape[0]
    cpg = C // GN_GROUPS
    count = cpg * H * W
    gidx = jnp.arange(C) // cpg
    gmat = (gidx[:, None] == gidx[None, :]).astype(jnp.float32) / count
    as_row = lambda v: v.reshape(1, C).astype(jnp.float32)
    return {
        "w1": _to_w9(params["w1"]), "b1": as_row(params["b1"]),
        "g1": as_row(params["g1"]), "be1": as_row(params["be1"]),
        "w2": _to_w9(params["w2"]), "b2": as_row(params["b2"]),
        "g2": as_row(params["g2"]), "be2": as_row(params["be2"]),
        "gmat": gmat,
    }


def residual_block_forward_nhwc(prep, x):
    """NHWC forward: x + GN2(Conv2(LeakyReLU(GN1(Conv1(x))))). Two fused
    pallas_calls, no intermediate activation round-trips through HBM."""
    a1p = conv3x3_gn_lrelu(x, prep["w1"], prep["b1"], prep["g1"], prep["be1"],
                           prep["gmat"])
    return conv3x3_gn_residual(a1p, x, prep["w2"], prep["b2"], prep["g2"],
                               prep["be2"], prep["gmat"])


def residual_block_forward(params, x_nchw):
    """Spec-parity NCHW entry point (layout conversion at the boundary)."""
    H, W = x_nchw.shape[2], x_nchw.shape[3]
    prep = prepare_params(params, H, W)
    x = jnp.transpose(x_nchw, (0, 2, 3, 1)).astype(jnp.float32)
    out = residual_block_forward_nhwc(prep, x)
    return jnp.transpose(out, (0, 3, 1, 2))


# --------------------------- pure-JAX f32 reference -------------------------

def _ref_forward(params, x_nchw):
    def conv(h, w, b):
        y = jax.lax.conv_general_dilated(
            h, w, (1, 1), ((1, 1), (1, 1)),
            dimension_numbers=("NCHW", "OIHW", "NCHW"))
        return y + b[None, :, None, None]

    def gn(h, g, be):
        B, C, H, W = h.shape
        hr = h.reshape(B, GN_GROUPS, C // GN_GROUPS, H, W)
        mean = hr.mean(axis=(2, 3, 4), keepdims=True)
        var = hr.var(axis=(2, 3, 4), keepdims=True)
        hn = ((hr - mean) * jax.lax.rsqrt(var + GN_EPS)).reshape(B, C, H, W)
        return hn * g[None, :, None, None] + be[None, :, None, None]

    h = gn(conv(x_nchw, params["w1"], params["b1"]), params["g1"], params["be1"])
    h = jnp.where(h >= 0, h, LEAKY_SLOPE * h)
    h = gn(conv(h, params["w2"], params["b2"]), params["g2"], params["be2"])
    return x_nchw + h


def init_params(key, channels):
    ks = jax.random.split(key, 6)

    def rnd(k, shape, s=0.05):
        return s * jax.random.normal(k, shape, jnp.float32)

    return {
        "w1": rnd(ks[0], (channels, channels, 3, 3)),
        "b1": rnd(ks[1], (channels,)),
        "g1": 1.0 + 0.1 * jax.random.normal(ks[2], (channels,), jnp.float32),
        "be1": 0.1 * jax.random.normal(ks[3], (channels,), jnp.float32),
        "w2": rnd(ks[4], (channels, channels, 3, 3)),
        "b2": rnd(ks[5], (channels,)),
        "g2": jnp.ones((channels,), jnp.float32),
        "be2": jnp.zeros((channels,), jnp.float32),
    }


if __name__ == "__main__":
    # ResidualBlock(channels=128), batch=2, 16x16 spatial (channels must be a
    # multiple of 8 for GroupNorm(8); 128 keeps every block lane-dense).
    batch, channels, height, width = 2, 128, 16, 16

    key = jax.random.PRNGKey(0)
    kp, kx = jax.random.split(key)
    params = init_params(kp, channels)
    x = jax.random.normal(kx, (batch, channels, height, width), jnp.float32)

    # Layout work hoisted out of the jitted forward (perf feedback): weight
    # repack / pooling matrix once, NCHW<->NHWC once at the boundary.
    prep = prepare_params(params, height, width)
    fwd = jax.jit(residual_block_forward_nhwc)
    x_nhwc = jnp.transpose(x, (0, 2, 3, 1))
    out_nhwc = jax.block_until_ready(fwd(prep, x_nhwc))
    out = jnp.transpose(out_nhwc, (0, 3, 1, 2))

    assert out.shape == (batch, channels, height, width), out.shape
    assert bool(jnp.all(jnp.isfinite(out)))

    # Tolerance check vs the f32 reference (conv path runs bf16-in / f32-acc).
    ref = jax.block_until_ready(jax.jit(_ref_forward)(params, x))
    max_err = float(jnp.max(jnp.abs(out - ref)))
    assert max_err < 0.1, f"max abs err vs f32 reference: {max_err}"

    print("KERNEL_OK")
</pallas_src>

<mosaic_0001>
module attributes {stable_mosaic.version = 11 : i64} {
  func.func @kernel(%arg0: i32, %arg1: memref<1x16x16x128xf32, #tpu.memory_space<vmem>>, %arg2: memref<1152x128xbf16, #tpu.memory_space<vmem>>, %arg3: memref<1x128xf32, #tpu.memory_space<vmem>>, %arg4: memref<1x128xf32, #tpu.memory_space<vmem>>, %arg5: memref<1x128xf32, #tpu.memory_space<vmem>>, %arg6: memref<128x128xf32, #tpu.memory_space<vmem>>, %arg7: memref<1x18x18x128xbf16, #tpu.memory_space<vmem>>, %arg8: memref<256x1152xbf16, #tpu.memory_space<vmem>>, %arg9: memref<18x18x128xbf16, #tpu.memory_space<vmem>>) attributes {dimension_semantics = [#tpu.dimension_semantics<parallel>], iteration_bounds = array<i64: 2>, scalar_prefetch = 0 : i64, scratch_operands = 2 : i64, tpu.core_type = #tpu.core_type<tc>, window_params = [{transform_indices = @transform_0, window_bounds = array<i64: 1, 16, 16, 128>}, {pipeline_mode = #tpu.pipeline_mode<synchronous>, transform_indices = @transform_1, window_bounds = array<i64: 1152, 128>}, {pipeline_mode = #tpu.pipeline_mode<synchronous>, transform_indices = @transform_2, window_bounds = array<i64: 1, 128>}, {pipeline_mode = #tpu.pipeline_mode<synchronous>, transform_indices = @transform_3, window_bounds = array<i64: 1, 128>}, {pipeline_mode = #tpu.pipeline_mode<synchronous>, transform_indices = @transform_4, window_bounds = array<i64: 1, 128>}, {pipeline_mode = #tpu.pipeline_mode<synchronous>, transform_indices = @transform_5, window_bounds = array<i64: 128, 128>}, {transform_indices = @transform_6, window_bounds = array<i64: 1, 18, 18, 128>}]} {
    %cst = arith.constant 0.000000e+00 : bf16
    %0 = vector.broadcast %cst : bf16 to vector<18x18x128xbf16>
    %c0 = arith.constant 0 : index
    %c0_0 = arith.constant 0 : index
    %c0_1 = arith.constant 0 : index
    %1 = vector.load %arg9[%c0, %c0_0, %c0_1] : memref<18x18x128xbf16, #tpu.memory_space<vmem>>, vector<18x18x128xbf16>
    tpu.vector_store %arg9[%c0, %c0_0, %c0_1], %0 {strides = array<i32>} : memref<18x18x128xbf16, #tpu.memory_space<vmem>>, vector<18x18x128xbf16>,
    %c0_2 = arith.constant 0 : index
    %c0_3 = arith.constant 0 : index
    %c0_4 = arith.constant 0 : index
    %c0_5 = arith.constant 0 : index
    %2 = vector.load %arg1[%c0_2, %c0_3, %c0_4, %c0_5] : memref<1x16x16x128xf32, #tpu.memory_space<vmem>>, vector<1x16x16x128xf32>
    %3 = vector.shape_cast %2 : vector<1x16x16x128xf32> to vector<16x16x128xf32>
    %4 = arith.truncf %3 : vector<16x16x128xf32> to vector<16x16x128xbf16>
    %c1 = arith.constant 1 : index
    %c1_6 = arith.constant 1 : index
    %c0_7 = arith.constant 0 : index
    %5 = vector.load %arg9[%c1, %c1_6, %c0_7] : memref<18x18x128xbf16, #tpu.memory_space<vmem>>, vector<16x16x128xbf16>
    tpu.vector_store %arg9[%c1, %c1_6, %c0_7], %4 {strides = array<i32>} : memref<18x18x128xbf16, #tpu.memory_space<vmem>>, vector<16x16x128xbf16>,
    %c0_8 = arith.constant 0 : index
    %c0_9 = arith.constant 0 : index
    %c0_10 = arith.constant 0 : index
    %6 = vector.load %arg9[%c0_8, %c0_9, %c0_10] : memref<18x18x128xbf16, #tpu.memory_space<vmem>>, vector<16x16x128xbf16>
    %7 = vector.shape_cast %6 : vector<16x16x128xbf16> to vector<256x128xbf16>
    %c0_11 = arith.constant 0 : index
    %c0_12 = arith.constant 0 : index
    %8 = vector.load %arg8[%c0_11, %c0_12] : memref<256x1152xbf16, #tpu.memory_space<vmem>>, vector<256x128xbf16>
    tpu.vector_store %arg8[%c0_11, %c0_12], %7 {strides = array<i32>} : memref<256x1152xbf16, #tpu.memory_space<vmem>>, vector<256x128xbf16>,
    %c0_13 = arith.constant 0 : index
    %c1_14 = arith.constant 1 : index
    %c0_15 = arith.constant 0 : index
    %9 = vector.load %arg9[%c0_13, %c1_14, %c0_15] : memref<18x18x128xbf16, #tpu.memory_space<vmem>>, vector<16x16x128xbf16>
    %10 = vector.shape_cast %9 : vector<16x16x128xbf16> to vector<256x128xbf16>
    %c0_16 = arith.constant 0 : index
    %c128 = arith.constant 128 : index
    %11 = vector.load %arg8[%c0_16, %c128] : memref<256x1152xbf16, #tpu.memory_space<vmem>>, vector<256x128xbf16>
    tpu.vector_store %arg8[%c0_16, %c128], %10 {strides = array<i32>} : memref<256x1152xbf16, #tpu.memory_space<vmem>>, vector<256x128xbf16>,
    %c0_17 = arith.constant 0 : index
    %c2 = arith.constant 2 : index
    %c0_18 = arith.constant 0 : index
    %12 = vector.load %arg9[%c0_17, %c2, %c0_18] : memref<18x18x128xbf16, #tpu.memory_space<vmem>>, vector<16x16x128xbf16>
    %13 = vector.shape_cast %12 : vector<16x16x128xbf16> to vector<256x128xbf16>
    %c0_19 = arith.constant 0 : index
    %c256 = arith.constant 256 : index
    %14 = vector.load %arg8[%c0_19, %c256] : memref<256x1152xbf16, #tpu.memory_space<vmem>>, vector<256x128xbf16>
    tpu.vector_store %arg8[%c0_19, %c256], %13 {strides = array<i32>} : memref<256x1152xbf16, #tpu.memory_space<vmem>>, vector<256x128xbf16>,
    %c1_20 = arith.constant 1 : index
    %c0_21 = arith.constant 0 : index
    %c0_22 = arith.constant 0 : index
    %15 = vector.load %arg9[%c1_20, %c0_21, %c0_22] : memref<18x18x128xbf16, #tpu.memory_space<vmem>>, vector<16x16x128xbf16>
    %16 = vector.shape_cast %15 : vector<16x16x128xbf16> to vector<256x128xbf16>
    %c0_23 = arith.constant 0 : index
    %c384 = arith.constant 384 : index
    %17 = vector.load %arg8[%c0_23, %c384] : memref<256x1152xbf16, #tpu.memory_space<vmem>>, vector<256x128xbf16>
    tpu.vector_store %arg8[%c0_23, %c384], %16 {strides = array<i32>} : memref<256x1152xbf16, #tpu.memory_space<vmem>>, vector<256x128xbf16>,
    %c1_24 = arith.constant 1 : index
    %c1_25 = arith.constant 1 : index
    %c0_26 = arith.constant 0 : index
    %18 = vector.load %arg9[%c1_24, %c1_25, %c0_26] : memref<18x18x128xbf16, #tpu.memory_space<vmem>>, vector<16x16x128xbf16>
    %19 = vector.shape_cast %18 : vector<16x16x128xbf16> to vector<256x128xbf16>
    %c0_27 = arith.constant 0 : index
    %c512 = arith.constant 512 : index
    %20 = vector.load %arg8[%c0_27, %c512] : memref<256x1152xbf16, #tpu.memory_space<vmem>>, vector<256x128xbf16>
    tpu.vector_store %arg8[%c0_27, %c512], %19 {strides = array<i32>} : memref<256x1152xbf16, #tpu.memory_space<vmem>>, vector<256x128xbf16>,
    %c1_28 = arith.constant 1 : index
    %c2_29 = arith.constant 2 : index
    %c0_30 = arith.constant 0 : index
    %21 = vector.load %arg9[%c1_28, %c2_29, %c0_30] : memref<18x18x128xbf16, #tpu.memory_space<vmem>>, vector<16x16x128xbf16>
    %22 = vector.shape_cast %21 : vector<16x16x128xbf16> to vector<256x128xbf16>
    %c0_31 = arith.constant 0 : index
    %c640 = arith.constant 640 : index
    %23 = vector.load %arg8[%c0_31, %c640] : memref<256x1152xbf16, #tpu.memory_space<vmem>>, vector<256x128xbf16>
    tpu.vector_store %arg8[%c0_31, %c640], %22 {strides = array<i32>} : memref<256x1152xbf16, #tpu.memory_space<vmem>>, vector<256x128xbf16>,
    %c2_32 = arith.constant 2 : index
    %c0_33 = arith.constant 0 : index
    %c0_34 = arith.constant 0 : index
    %24 = vector.load %arg9[%c2_32, %c0_33, %c0_34] : memref<18x18x128xbf16, #tpu.memory_space<vmem>>, vector<16x16x128xbf16>
    %25 = vector.shape_cast %24 : vector<16x16x128xbf16> to vector<256x128xbf16>
    %c0_35 = arith.constant 0 : index
    %c768 = arith.constant 768 : index
    %26 = vector.load %arg8[%c0_35, %c768] : memref<256x1152xbf16, #tpu.memory_space<vmem>>, vector<256x128xbf16>
    tpu.vector_store %arg8[%c0_35, %c768], %25 {strides = array<i32>} : memref<256x1152xbf16, #tpu.memory_space<vmem>>, vector<256x128xbf16>,
    %c2_36 = arith.constant 2 : index
    %c1_37 = arith.constant 1 : index
    %c0_38 = arith.constant 0 : index
    %27 = vector.load %arg9[%c2_36, %c1_37, %c0_38] : memref<18x18x128xbf16, #tpu.memory_space<vmem>>, vector<16x16x128xbf16>
    %28 = vector.shape_cast %27 : vector<16x16x128xbf16> to vector<256x128xbf16>
    %c0_39 = arith.constant 0 : index
    %c896 = arith.constant 896 : index
    %29 = vector.load %arg8[%c0_39, %c896] : memref<256x1152xbf16, #tpu.memory_space<vmem>>, vector<256x128xbf16>
    tpu.vector_store %arg8[%c0_39, %c896], %28 {strides = array<i32>} : memref<256x1152xbf16, #tpu.memory_space<vmem>>, vector<256x128xbf16>,
    %c2_40 = arith.constant 2 : index
    %c2_41 = arith.constant 2 : index
    %c0_42 = arith.constant 0 : index
    %30 = vector.load %arg9[%c2_40, %c2_41, %c0_42] : memref<18x18x128xbf16, #tpu.memory_space<vmem>>, vector<16x16x128xbf16>
    %31 = vector.shape_cast %30 : vector<16x16x128xbf16> to vector<256x128xbf16>
    %c0_43 = arith.constant 0 : index
    %c1024 = arith.constant 1024 : index
    %32 = vector.load %arg8[%c0_43, %c1024] : memref<256x1152xbf16, #tpu.memory_space<vmem>>, vector<256x128xbf16>
    tpu.vector_store %arg8[%c0_43, %c1024], %31 {strides = array<i32>} : memref<256x1152xbf16, #tpu.memory_space<vmem>>, vector<256x128xbf16>,
    %c0_44 = arith.constant 0 : index
    %c0_45 = arith.constant 0 : index
    %33 = vector.load %arg8[%c0_44, %c0_45] : memref<256x1152xbf16, #tpu.memory_space<vmem>>, vector<256x1152xbf16>
    %c0_46 = arith.constant 0 : index
    %c0_47 = arith.constant 0 : index
    %34 = vector.load %arg2[%c0_46, %c0_47] : memref<1152x128xbf16, #tpu.memory_space<vmem>>, vector<1152x128xbf16>
    %cst_48 = arith.constant dense<0.000000e+00> : vector<256x128xf32>
    %35 = tpu.matmul %33, %34, %cst_48 {dimension_numbers = #tpu.dot_dimension_numbers<[1], [0], [0], [1], [0, 0, 1, 1], [], []>} : vector<256x1152xbf16>, vector<1152x128xbf16>, vector<256x128xf32> -> vector<256x128xf32>
    %c0_49 = arith.constant 0 : index
    %c0_50 = arith.constant 0 : index
    %36 = vector.load %arg3[%c0_49, %c0_50] : memref<1x128xf32, #tpu.memory_space<vmem>>, vector<1x128xf32>
    %37 = vector.broadcast %36 : vector<1x128xf32> to vector<256x128xf32>
    %38 = arith.addf %35, %37 : vector<256x128xf32>
    %cst_51 = arith.constant dense<0.000000e+00> : vector<128xf32>
    %39 = vector.multi_reduction <add>, %38, %cst_51 [0] : vector<256x128xf32> to vector<128xf32>
    %40 = vector.shape_cast %39 : vector<128xf32> to vector<1x128xf32>
    %41 = arith.mulf %38, %38 : vector<256x128xf32>
    %cst_52 = arith.constant dense<0.000000e+00> : vector<128xf32>
    %42 = vector.multi_reduction <add>, %41, %cst_52 [0] : vector<256x128xf32> to vector<128xf32>
    %43 = vector.shape_cast %42 : vector<128xf32> to vector<1x128xf32>
    %c0_53 = arith.constant 0 : index
    %c0_54 = arith.constant 0 : index
    %44 = vector.load %arg6[%c0_53, %c0_54] : memref<128x128xf32, #tpu.memory_space<vmem>>, vector<128x128xf32>
    %cst_55 = arith.constant dense<0.000000e+00> : vector<1x128xf32>
    %45 = tpu.matmul %40, %44, %cst_55 {dimension_numbers = #tpu.dot_dimension_numbers<[1], [0], [0], [1], [0, 0, 1, 1], [], []>} : vector<1x128xf32>, vector<128x128xf32>, vector<1x128xf32> -> vector<1x128xf32>
    %c0_56 = arith.constant 0 : index
    %c0_57 = arith.constant 0 : index
    %46 = vector.load %arg6[%c0_56, %c0_57] : memref<128x128xf32, #tpu.memory_space<vmem>>, vector<128x128xf32>
    %cst_58 = arith.constant dense<0.000000e+00> : vector<1x128xf32>
    %47 = tpu.matmul %43, %46, %cst_58 {dimension_numbers = #tpu.dot_dimension_numbers<[1], [0], [0], [1], [0, 0, 1, 1], [], []>} : vector<1x128xf32>, vector<128x128xf32>, vector<1x128xf32> -> vector<1x128xf32>
    %48 = arith.mulf %45, %45 : vector<1x128xf32>
    %49 = arith.subf %47, %48 : vector<1x128xf32>
    %cst_59 = arith.constant 9.99999974E-6 : f32
    %50 = vector.broadcast %cst_59 : f32 to vector<1x128xf32>
    %51 = arith.addf %49, %50 : vector<1x128xf32>
    %52 = math.rsqrt %51 : vector<1x128xf32>
    %c0_60 = arith.constant 0 : index
    %c0_61 = arith.constant 0 : index
    %53 = vector.load %arg4[%c0_60, %c0_61] : memref<1x128xf32, #tpu.memory_space<vmem>>, vector<1x128xf32>
    %54 = arith.mulf %52, %53 : vector<1x128xf32>
    %c0_62 = arith.constant 0 : index
    %c0_63 = arith.constant 0 : index
    %55 = vector.load %arg5[%c0_62, %c0_63] : memref<1x128xf32, #tpu.memory_space<vmem>>, vector<1x128xf32>
    %56 = arith.mulf %45, %54 : vector<1x128xf32>
    %57 = arith.subf %55, %56 : vector<1x128xf32>
    %58 = vector.broadcast %54 : vector<1x128xf32> to vector<256x128xf32>
    %59 = arith.mulf %38, %58 : vector<256x128xf32>
    %60 = vector.broadcast %57 : vector<1x128xf32> to vector<256x128xf32>
    %61 = arith.addf %59, %60 : vector<256x128xf32>
    %cst_64 = arith.constant 0.000000e+00 : f32
    %62 = vector.broadcast %cst_64 : f32 to vector<256x128xf32>
    %63 = arith.cmpf oge, %61, %62 : vector<256x128xf32>
    %cst_65 = arith.constant 2.000000e-01 : f32
    %64 = vector.broadcast %cst_65 : f32 to vector<256x128xf32>
    %65 = arith.mulf %64, %61 : vector<256x128xf32>
    %66 = arith.select %63, %61, %65 : vector<256x128xi1>, vector<256x128xf32>
    %cst_66 = arith.constant 0.000000e+00 : bf16
    %67 = vector.broadcast %cst_66 : bf16 to vector<1x18x18x128xbf16>
    %c0_67 = arith.constant 0 : index
    %c0_68 = arith.constant 0 : index
    %c0_69 = arith.constant 0 : index
    %c0_70 = arith.constant 0 : index
    %68 = vector.load %arg7[%c0_67, %c0_68, %c0_69, %c0_70] : memref<1x18x18x128xbf16, #tpu.memory_space<vmem>>, vector<1x18x18x128xbf16>
    tpu.vector_store %arg7[%c0_67, %c0_68, %c0_69, %c0_70], %67 {strides = array<i32>} : memref<1x18x18x128xbf16, #tpu.memory_space<vmem>>, vector<1x18x18x128xbf16>,
    %69 = vector.shape_cast %66 : vector<256x128xf32> to vector<1x16x16x128xf32>
    %70 = arith.truncf %69 : vector<1x16x16x128xf32> to vector<1x16x16x128xbf16>
    %c0_71 = arith.constant 0 : index
    %c1_72 = arith.constant 1 : index
    %c1_73 = arith.constant 1 : index
    %c0_74 = arith.constant 0 : index
    %71 = vector.load %arg7[%c0_71, %c1_72, %c1_73, %c0_74] : memref<1x18x18x128xbf16, #tpu.memory_space<vmem>>, vector<1x16x16x128xbf16>
    tpu.vector_store %arg7[%c0_71, %c1_72, %c1_73, %c0_74], %70 {strides = array<i32>} : memref<1x18x18x128xbf16, #tpu.memory_space<vmem>>, vector<1x16x16x128xbf16>,
    return
  }
  func.func @transform_0(%arg0: i32) -> (i32, i32, i32, i32) {
    %c0_i32 = arith.constant 0 : i32
    %c0_i32_0 = arith.constant 0 : i32
    %c0_i32_1 = arith.constant 0 : i32
    %c0_i32_2 = arith.constant 0 : i32
    return %arg0, %c0_i32, %c0_i32_0, %c0_i32_1 : i32, i32, i32, i32
  }
  func.func @transform_1(%arg0: i32) -> (i32, i32) {
    %c0_i32 = arith.constant 0 : i32
    %c0_i32_0 = arith.constant 0 : i32
    %c0_i32_1 = arith.constant 0 : i32
    return %c0_i32, %c0_i32_0 : i32, i32
  }
  func.func @transform_2(%arg0: i32) -> (i32, i32) {
    %c0_i32 = arith.constant 0 : i32
    %c0_i32_0 = arith.constant 0 : i32
    %c0_i32_1 = arith.constant 0 : i32
    return %c0_i32, %c0_i32_0 : i32, i32
  }
  func.func @transform_3(%arg0: i32) -> (i32, i32) {
    %c0_i32 = arith.constant 0 : i32
    %c0_i32_0 = arith.constant 0 : i32
    %c0_i32_1 = arith.constant 0 : i32
    return %c0_i32, %c0_i32_0 : i32, i32
  }
  func.func @transform_4(%arg0: i32) -> (i32, i32) {
    %c0_i32 = arith.constant 0 : i32
    %c0_i32_0 = arith.constant 0 : i32
    %c0_i32_1 = arith.constant 0 : i32
    return %c0_i32, %c0_i32_0 : i32, i32
  }
  func.func @transform_5(%arg0: i32) -> (i32, i32) {
    %c0_i32 = arith.constant 0 : i32
    %c0_i32_0 = arith.constant 0 : i32
    %c0_i32_1 = arith.constant 0 : i32
    return %c0_i32, %c0_i32_0 : i32, i32
  }
  func.func @transform_6(%arg0: i32) -> (i32, i32, i32, i32) {
    %c0_i32 = arith.constant 0 : i32
    %c0_i32_0 = arith.constant 0 : i32
    %c0_i32_1 = arith.constant 0 : i32
    %c0_i32_2 = arith.constant 0 : i32
    return %arg0, %c0_i32, %c0_i32_0, %c0_i32_1 : i32, i32, i32, i32
  }
}

module attributes {stable_mosaic.version = 11 : i64} {
  func.func @kernel(%arg0: i32, %arg1: memref<1x18x18x128xbf16, #tpu.memory_space<vmem>>, %arg2: memref<1x16x16x128xf32, #tpu.memory_space<vmem>>, %arg3: memref<1152x128xbf16, #tpu.memory_space<vmem>>, %arg4: memref<1x128xf32, #tpu.memory_space<vmem>>, %arg5: memref<1x128xf32, #tpu.memory_space<vmem>>, %arg6: memref<1x128xf32, #tpu.memory_space<vmem>>, %arg7: memref<128x128xf32, #tpu.memory_space<vmem>>, %arg8: memref<1x16x16x128xf32, #tpu.memory_space<vmem>>, %arg9: memref<256x1152xbf16, #tpu.memory_space<vmem>>) attributes {dimension_semantics = [#tpu.dimension_semantics<parallel>], iteration_bounds = array<i64: 2>, scalar_prefetch = 0 : i64, scratch_operands = 1 : i64, tpu.core_type = #tpu.core_type<tc>, window_params = [{transform_indices = @transform_0, window_bounds = array<i64: 1, 18, 18, 128>}, {transform_indices = @transform_1, window_bounds = array<i64: 1, 16, 16, 128>}, {pipeline_mode = #tpu.pipeline_mode<synchronous>, transform_indices = @transform_2, window_bounds = array<i64: 1152, 128>}, {pipeline_mode = #tpu.pipeline_mode<synchronous>, transform_indices = @transform_3, window_bounds = array<i64: 1, 128>}, {pipeline_mode = #tpu.pipeline_mode<synchronous>, transform_indices = @transform_4, window_bounds = array<i64: 1, 128>}, {pipeline_mode = #tpu.pipeline_mode<synchronous>, transform_indices = @transform_5, window_bounds = array<i64: 1, 128>}, {pipeline_mode = #tpu.pipeline_mode<synchronous>, transform_indices = @transform_6, window_bounds = array<i64: 128, 128>}, {transform_indices = @transform_7, window_bounds = array<i64: 1, 16, 16, 128>}]} {
    %c0 = arith.constant 0 : index
    %c0_0 = arith.constant 0 : index
    %c0_1 = arith.constant 0 : index
    %c0_2 = arith.constant 0 : index
    %0 = vector.load %arg1[%c0, %c0_0, %c0_1, %c0_2] : memref<1x18x18x128xbf16, #tpu.memory_space<vmem>>, vector<1x16x16x128xbf16>
    %1 = vector.shape_cast %0 : vector<1x16x16x128xbf16> to vector<16x16x128xbf16>
    %2 = vector.shape_cast %1 : vector<16x16x128xbf16> to vector<256x128xbf16>
    %c0_3 = arith.constant 0 : index
    %c0_4 = arith.constant 0 : index
    %3 = vector.load %arg9[%c0_3, %c0_4] : memref<256x1152xbf16, #tpu.memory_space<vmem>>, vector<256x128xbf16>
    tpu.vector_store %arg9[%c0_3, %c0_4], %2 {strides = array<i32>} : memref<256x1152xbf16, #tpu.memory_space<vmem>>, vector<256x128xbf16>,
    %c0_5 = arith.constant 0 : index
    %c0_6 = arith.constant 0 : index
    %c1 = arith.constant 1 : index
    %c0_7 = arith.constant 0 : index
    %4 = vector.load %arg1[%c0_5, %c0_6, %c1, %c0_7] : memref<1x18x18x128xbf16, #tpu.memory_space<vmem>>, vector<1x16x16x128xbf16>
    %5 = vector.shape_cast %4 : vector<1x16x16x128xbf16> to vector<16x16x128xbf16>
    %6 = vector.shape_cast %5 : vector<16x16x128xbf16> to vector<256x128xbf16>
    %c0_8 = arith.constant 0 : index
    %c128 = arith.constant 128 : index
    %7 = vector.load %arg9[%c0_8, %c128] : memref<256x1152xbf16, #tpu.memory_space<vmem>>, vector<256x128xbf16>
    tpu.vector_store %arg9[%c0_8, %c128], %6 {strides = array<i32>} : memref<256x1152xbf16, #tpu.memory_space<vmem>>, vector<256x128xbf16>,
    %c0_9 = arith.constant 0 : index
    %c0_10 = arith.constant 0 : index
    %c2 = arith.constant 2 : index
    %c0_11 = arith.constant 0 : index
    %8 = vector.load %arg1[%c0_9, %c0_10, %c2, %c0_11] : memref<1x18x18x128xbf16, #tpu.memory_space<vmem>>, vector<1x16x16x128xbf16>
    %9 = vector.shape_cast %8 : vector<1x16x16x128xbf16> to vector<16x16x128xbf16>
    %10 = vector.shape_cast %9 : vector<16x16x128xbf16> to vector<256x128xbf16>
    %c0_12 = arith.constant 0 : index
    %c256 = arith.constant 256 : index
    %11 = vector.load %arg9[%c0_12, %c256] : memref<256x1152xbf16, #tpu.memory_space<vmem>>, vector<256x128xbf16>
    tpu.vector_store %arg9[%c0_12, %c256], %10 {strides = array<i32>} : memref<256x1152xbf16, #tpu.memory_space<vmem>>, vector<256x128xbf16>,
    %c0_13 = arith.constant 0 : index
    %c1_14 = arith.constant 1 : index
    %c0_15 = arith.constant 0 : index
    %c0_16 = arith.constant 0 : index
    %12 = vector.load %arg1[%c0_13, %c1_14, %c0_15, %c0_16] : memref<1x18x18x128xbf16, #tpu.memory_space<vmem>>, vector<1x16x16x128xbf16>
    %13 = vector.shape_cast %12 : vector<1x16x16x128xbf16> to vector<16x16x128xbf16>
    %14 = vector.shape_cast %13 : vector<16x16x128xbf16> to vector<256x128xbf16>
    %c0_17 = arith.constant 0 : index
    %c384 = arith.constant 384 : index
    %15 = vector.load %arg9[%c0_17, %c384] : memref<256x1152xbf16, #tpu.memory_space<vmem>>, vector<256x128xbf16>
    tpu.vector_store %arg9[%c0_17, %c384], %14 {strides = array<i32>} : memref<256x1152xbf16, #tpu.memory_space<vmem>>, vector<256x128xbf16>,
    %c0_18 = arith.constant 0 : index
    %c1_19 = arith.constant 1 : index
    %c1_20 = arith.constant 1 : index
    %c0_21 = arith.constant 0 : index
    %16 = vector.load %arg1[%c0_18, %c1_19, %c1_20, %c0_21] : memref<1x18x18x128xbf16, #tpu.memory_space<vmem>>, vector<1x16x16x128xbf16>
    %17 = vector.shape_cast %16 : vector<1x16x16x128xbf16> to vector<16x16x128xbf16>
    %18 = vector.shape_cast %17 : vector<16x16x128xbf16> to vector<256x128xbf16>
    %c0_22 = arith.constant 0 : index
    %c512 = arith.constant 512 : index
    %19 = vector.load %arg9[%c0_22, %c512] : memref<256x1152xbf16, #tpu.memory_space<vmem>>, vector<256x128xbf16>
    tpu.vector_store %arg9[%c0_22, %c512], %18 {strides = array<i32>} : memref<256x1152xbf16, #tpu.memory_space<vmem>>, vector<256x128xbf16>,
    %c0_23 = arith.constant 0 : index
    %c1_24 = arith.constant 1 : index
    %c2_25 = arith.constant 2 : index
    %c0_26 = arith.constant 0 : index
    %20 = vector.load %arg1[%c0_23, %c1_24, %c2_25, %c0_26] : memref<1x18x18x128xbf16, #tpu.memory_space<vmem>>, vector<1x16x16x128xbf16>
    %21 = vector.shape_cast %20 : vector<1x16x16x128xbf16> to vector<16x16x128xbf16>
    %22 = vector.shape_cast %21 : vector<16x16x128xbf16> to vector<256x128xbf16>
    %c0_27 = arith.constant 0 : index
    %c640 = arith.constant 640 : index
    %23 = vector.load %arg9[%c0_27, %c640] : memref<256x1152xbf16, #tpu.memory_space<vmem>>, vector<256x128xbf16>
    tpu.vector_store %arg9[%c0_27, %c640], %22 {strides = array<i32>} : memref<256x1152xbf16, #tpu.memory_space<vmem>>, vector<256x128xbf16>,
    %c0_28 = arith.constant 0 : index
    %c2_29 = arith.constant 2 : index
    %c0_30 = arith.constant 0 : index
    %c0_31 = arith.constant 0 : index
    %24 = vector.load %arg1[%c0_28, %c2_29, %c0_30, %c0_31] : memref<1x18x18x128xbf16, #tpu.memory_space<vmem>>, vector<1x16x16x128xbf16>
    %25 = vector.shape_cast %24 : vector<1x16x16x128xbf16> to vector<16x16x128xbf16>
    %26 = vector.shape_cast %25 : vector<16x16x128xbf16> to vector<256x128xbf16>
    %c0_32 = arith.constant 0 : index
    %c768 = arith.constant 768 : index
    %27 = vector.load %arg9[%c0_32, %c768] : memref<256x1152xbf16, #tpu.memory_space<vmem>>, vector<256x128xbf16>
    tpu.vector_store %arg9[%c0_32, %c768], %26 {strides = array<i32>} : memref<256x1152xbf16, #tpu.memory_space<vmem>>, vector<256x128xbf16>,
    %c0_33 = arith.constant 0 : index
    %c2_34 = arith.constant 2 : index
    %c1_35 = arith.constant 1 : index
    %c0_36 = arith.constant 0 : index
    %28 = vector.load %arg1[%c0_33, %c2_34, %c1_35, %c0_36] : memref<1x18x18x128xbf16, #tpu.memory_space<vmem>>, vector<1x16x16x128xbf16>
    %29 = vector.shape_cast %28 : vector<1x16x16x128xbf16> to vector<16x16x128xbf16>
    %30 = vector.shape_cast %29 : vector<16x16x128xbf16> to vector<256x128xbf16>
    %c0_37 = arith.constant 0 : index
    %c896 = arith.constant 896 : index
    %31 = vector.load %arg9[%c0_37, %c896] : memref<256x1152xbf16, #tpu.memory_space<vmem>>, vector<256x128xbf16>
    tpu.vector_store %arg9[%c0_37, %c896], %30 {strides = array<i32>} : memref<256x1152xbf16, #tpu.memory_space<vmem>>, vector<256x128xbf16>,
    %c0_38 = arith.constant 0 : index
    %c2_39 = arith.constant 2 : index
    %c2_40 = arith.constant 2 : index
    %c0_41 = arith.constant 0 : index
    %32 = vector.load %arg1[%c0_38, %c2_39, %c2_40, %c0_41] : memref<1x18x18x128xbf16, #tpu.memory_space<vmem>>, vector<1x16x16x128xbf16>
    %33 = vector.shape_cast %32 : vector<1x16x16x128xbf16> to vector<16x16x128xbf16>
    %34 = vector.shape_cast %33 : vector<16x16x128xbf16> to vector<256x128xbf16>
    %c0_42 = arith.constant 0 : index
    %c1024 = arith.constant 1024 : index
    %35 = vector.load %arg9[%c0_42, %c1024] : memref<256x1152xbf16, #tpu.memory_space<vmem>>, vector<256x128xbf16>
    tpu.vector_store %arg9[%c0_42, %c1024], %34 {strides = array<i32>} : memref<256x1152xbf16, #tpu.memory_space<vmem>>, vector<256x128xbf16>,
    %c0_43 = arith.constant 0 : index
    %c0_44 = arith.constant 0 : index
    %36 = vector.load %arg9[%c0_43, %c0_44] : memref<256x1152xbf16, #tpu.memory_space<vmem>>, vector<256x1152xbf16>
    %c0_45 = arith.constant 0 : index
    %c0_46 = arith.constant 0 : index
    %37 = vector.load %arg3[%c0_45, %c0_46] : memref<1152x128xbf16, #tpu.memory_space<vmem>>, vector<1152x128xbf16>
    %cst = arith.constant dense<0.000000e+00> : vector<256x128xf32>
    %38 = tpu.matmul %36, %37, %cst {dimension_numbers = #tpu.dot_dimension_numbers<[1], [0], [0], [1], [0, 0, 1, 1], [], []>} : vector<256x1152xbf16>, vector<1152x128xbf16>, vector<256x128xf32> -> vector<256x128xf32>
    %c0_47 = arith.constant 0 : index
    %c0_48 = arith.constant 0 : index
    %39 = vector.load %arg4[%c0_47, %c0_48] : memref<1x128xf32, #tpu.memory_space<vmem>>, vector<1x128xf32>
    %40 = vector.broadcast %39 : vector<1x128xf32> to vector<256x128xf32>
    %41 = arith.addf %38, %40 : vector<256x128xf32>
    %cst_49 = arith.constant dense<0.000000e+00> : vector<128xf32>
    %42 = vector.multi_reduction <add>, %41, %cst_49 [0] : vector<256x128xf32> to vector<128xf32>
    %43 = vector.shape_cast %42 : vector<128xf32> to vector<1x128xf32>
    %44 = arith.mulf %41, %41 : vector<256x128xf32>
    %cst_50 = arith.constant dense<0.000000e+00> : vector<128xf32>
    %45 = vector.multi_reduction <add>, %44, %cst_50 [0] : vector<256x128xf32> to vector<128xf32>
    %46 = vector.shape_cast %45 : vector<128xf32> to vector<1x128xf32>
    %c0_51 = arith.constant 0 : index
    %c0_52 = arith.constant 0 : index
    %47 = vector.load %arg7[%c0_51, %c0_52] : memref<128x128xf32, #tpu.memory_space<vmem>>, vector<128x128xf32>
    %cst_53 = arith.constant dense<0.000000e+00> : vector<1x128xf32>
    %48 = tpu.matmul %43, %47, %cst_53 {dimension_numbers = #tpu.dot_dimension_numbers<[1], [0], [0], [1], [0, 0, 1, 1], [], []>} : vector<1x128xf32>, vector<128x128xf32>, vector<1x128xf32> -> vector<1x128xf32>
    %c0_54 = arith.constant 0 : index
    %c0_55 = arith.constant 0 : index
    %49 = vector.load %arg7[%c0_54, %c0_55] : memref<128x128xf32, #tpu.memory_space<vmem>>, vector<128x128xf32>
    %cst_56 = arith.constant dense<0.000000e+00> : vector<1x128xf32>
    %50 = tpu.matmul %46, %49, %cst_56 {dimension_numbers = #tpu.dot_dimension_numbers<[1], [0], [0], [1], [0, 0, 1, 1], [], []>} : vector<1x128xf32>, vector<128x128xf32>, vector<1x128xf32> -> vector<1x128xf32>
    %51 = arith.mulf %48, %48 : vector<1x128xf32>
    %52 = arith.subf %50, %51 : vector<1x128xf32>
    %cst_57 = arith.constant 9.99999974E-6 : f32
    %53 = vector.broadcast %cst_57 : f32 to vector<1x128xf32>
    %54 = arith.addf %52, %53 : vector<1x128xf32>
    %55 = math.rsqrt %54 : vector<1x128xf32>
    %c0_58 = arith.constant 0 : index
    %c0_59 = arith.constant 0 : index
    %56 = vector.load %arg5[%c0_58, %c0_59] : memref<1x128xf32, #tpu.memory_space<vmem>>, vector<1x128xf32>
    %57 = arith.mulf %55, %56 : vector<1x128xf32>
    %c0_60 = arith.constant 0 : index
    %c0_61 = arith.constant 0 : index
    %58 = vector.load %arg6[%c0_60, %c0_61] : memref<1x128xf32, #tpu.memory_space<vmem>>, vector<1x128xf32>
    %59 = arith.mulf %48, %57 : vector<1x128xf32>
    %60 = arith.subf %58, %59 : vector<1x128xf32>
    %61 = vector.broadcast %57 : vector<1x128xf32> to vector<256x128xf32>
    %62 = arith.mulf %41, %61 : vector<256x128xf32>
    %63 = vector.broadcast %60 : vector<1x128xf32> to vector<256x128xf32>
    %64 = arith.addf %62, %63 : vector<256x128xf32>
    %c0_62 = arith.constant 0 : index
    %c0_63 = arith.constant 0 : index
    %c0_64 = arith.constant 0 : index
    %c0_65 = arith.constant 0 : index
    %65 = vector.load %arg2[%c0_62, %c0_63, %c0_64, %c0_65] : memref<1x16x16x128xf32, #tpu.memory_space<vmem>>, vector<1x16x16x128xf32>
    %66 = vector.shape_cast %64 : vector<256x128xf32> to vector<1x16x16x128xf32>
    %67 = arith.addf %65, %66 : vector<1x16x16x128xf32>
    %c0_66 = arith.constant 0 : index
    %c0_67 = arith.constant 0 : index
    %c0_68 = arith.constant 0 : index
    %c0_69 = arith.constant 0 : index
    %68 = vector.load %arg8[%c0_66, %c0_67, %c0_68, %c0_69] : memref<1x16x16x128xf32, #tpu.memory_space<vmem>>, vector<1x16x16x128xf32>
    tpu.vector_store %arg8[%c0_66, %c0_67, %c0_68, %c0_69], %67 {strides = array<i32>} : memref<1x16x16x128xf32, #tpu.memory_space<vmem>>, vector<1x16x16x128xf32>,
    return
  }
  func.func @transform_0(%arg0: i32) -> (i32, i32, i32, i32) {
    %c0_i32 = arith.constant 0 : i32
    %c0_i32_0 = arith.constant 0 : i32
    %c0_i32_1 = arith.constant 0 : i32
    %c0_i32_2 = arith.constant 0 : i32
    return %arg0, %c0_i32, %c0_i32_0, %c0_i32_1 : i32, i32, i32, i32
  }
  func.func @transform_1(%arg0: i32) -> (i32, i32, i32, i32) {
    %c0_i32 = arith.constant 0 : i32
    %c0_i32_0 = arith.constant 0 : i32
    %c0_i32_1 = arith.constant 0 : i32
    %c0_i32_2 = arith.constant 0 : i32
    return %arg0, %c0_i32, %c0_i32_0, %c0_i32_1 : i32, i32, i32, i32
  }
  func.func @transform_2(%arg0: i32) -> (i32, i32) {
    %c0_i32 = arith.constant 0 : i32
    %c0_i32_0 = arith.constant 0 : i32
    %c0_i32_1 = arith.constant 0 : i32
    return %c0_i32, %c0_i32_0 : i32, i32
  }
  func.func @transform_3(%arg0: i32) -> (i32, i32) {
    %c0_i32 = arith.constant 0 : i32
    %c0_i32_0 = arith.constant 0 : i32
    %c0_i32_1 = arith.constant 0 : i32
    return %c0_i32, %c0_i32_0 : i32, i32
  }
  func.func @transform_4(%arg0: i32) -> (i32, i32) {
    %c0_i32 = arith.constant 0 : i32
    %c0_i32_0 = arith.constant 0 : i32
    %c0_i32_1 = arith.constant 0 : i32
    return %c0_i32, %c0_i32_0 : i32, i32
  }
  func.func @transform_5(%arg0: i32) -> (i32, i32) {
    %c0_i32 = arith.constant 0 : i32
    %c0_i32_0 = arith.constant 0 : i32
    %c0_i32_1 = arith.constant 0 : i32
    return %c0_i32, %c0_i32_0 : i32, i32
  }
  func.func @transform_6(%arg0: i32) -> (i32, i32) {
    %c0_i32 = arith.constant 0 : i32
    %c0_i32_0 = arith.constant 0 : i32
    %c0_i32_1 = arith.constant 0 : i32
    return %c0_i32, %c0_i32_0 : i32, i32
  }
  func.func @transform_7(%arg0: i32) -> (i32, i32, i32, i32) {
    %c0_i32 = arith.constant 0 : i32
    %c0_i32_0 = arith.constant 0 : i32
    %c0_i32_1 = arith.constant 0 : i32
    %c0_i32_2 = arith.constant 0 : i32
    return %arg0, %c0_i32, %c0_i32_0, %c0_i32_1 : i32, i32, i32, i32
  }
}

</mosaic_0001>

<bundles_post_ra>
// kernel: residual_block_forward_nhwc.3
= control target key start
LH: loop header
LB: loop body
LE: loop exit
PB: predicated region body
PF: predicated region fallthrough
CT: control target
= control target key end

     0   :  { %12 = vsyncpa [#allocation4], 0  ;;  %s9589_s0 = inlined_call_operand.vmem [shape: bf16[2,18,18,128], index: 0, kind: input, shape index: {}]   ;;  %s9590_s1 = inlined_call_operand.vmem [shape: f32[2,16,16,128], index: 1, kind: input, shape index: {}]   ;;  %s9591_s2 = inlined_call_operand.vmem [shape: bf16[1152,128], index: 2, kind: input, shape index: {}]   ;;  %s9592_s3 = inlined_call_operand.vmem [shape: f32[1,128], index: 3, kind: input, shape index: {}]   ;;  %s9593_s4 = inlined_call_operand.vmem [shape: f32[1,128], index: 4, kind: input, shape index: {}]   ;;  %s9594_s5 = inlined_call_operand.vmem [shape: f32[1,128], index: 5, kind: input, shape index: {}]   ;;  %s9595_s6 = inlined_call_operand.vmem [shape: f32[128,128], index: 6, kind: input, shape index: {}]   ;;  %s9596_s7 = inlined_call_operand.hbm [shape: f32[2,16,16,128], index: 7, kind: output, shape index: {}]  }
   0x1   :  { %14 = vsyncpa [#allocation4 + $0x1], 0  ;;  %s7210_s24 = smov 0   ;;  %s7212_s25 = smov 0  }
   0x2   :  { %s7214_s26 = smov 0   ;;  %s7216_s27 = smov 0  }
   0x3 LB: > { %s7231_s28 = sadd.s32 4294967295, %s7163_s27   ;;  %s5615_s29 = sadd.s32 4294967294, %s7163_s27   ;;  %s7163_s27 = sphi %s7216_s27, %s9746_s27   ;;  %s7159_s26 = sphi %s7214_s26, %s9745_s26   ;;  %s7155_s25 = sphi %s7212_s25, %s9744_s25   ;;  %s7151_s24 = sphi %s7210_s24, %s9743_s24  }
   0x4   : > { %s7235_s30 = sadd.s32 1, %s7163_s27   ;;  %s184_s8 = sadd.s32 1, %s7159_s26 }
   0x5   : > { %s181_s9 = ssub.s32 %s7163_s27, %s7235_s30  ;;  %p194_p0 = scmp.ne.s32.totalorder %s7159_s26, %s7155_s25 }
   0x6   : > { %p182_p1 = scmp.eq.s32.totalorder %s181_s9, 0  ;;  %p195_p2 = scmp.eq.s32.totalorder %s7231_s28, 1 }
   0x7   : > { %p200_p3 = scmp.ne.s32.totalorder %s7155_s25, %s7151_s24  ;;  %p201_p4 = scmp.eq.s32.totalorder %s5615_s29, 1 }
   0x8   : > { %s7246_s10 = scalar_select %p182_p1, %s7159_s26, %s184_s8  }
   0x9   : > { %p7248_p5 = por %p195_p2, %p194_p0  ;;  %p7252_p6 = por %p201_p4, %p200_p3 }
   0xa   : > { %p5618_p7 = scmp.ge.s32.totalorder %s7163_s27, 1  ;;  %p250_p8 = scmp.lt.s32.totalorder %s7163_s27, 3 }
   0xc   : > { %p251_p9 = pnand %p5618_p7, %p250_p8 }
   0xe   : > { %254 = sbr.rel (%p251_p9) target bundleno = 994 (0x3e2), region = 48 }
  0x13   : > { %v6819_v0 = vld [vmem:[%s9591_s2 + $0x78] sm:$0xff]   ;;  %v6823_v4 = vld [vmem:[%s9591_s2 + $0x70] sm:$0xff]   ;;  %v6827_v8 = vld [vmem:[%s9591_s2 + $0x68] sm:$0xff]   ;;  %p287_p10 = scmp.lt.s32.totalorder %s7231_s28, 1  ;;  %vm957_vm0 = vcmask 1042432   ;;  %vm958_vm1 = vcmask 1046532  }
  0x14   : > { %v6820_v1 = vld [vmem:[%s9591_s2 + $0x38] sm:$0xff]   ;;  %6151 = vmatprep.subr.bf16.mxu0 %v6819_v0  ;;  %v6824_v5 = vld [vmem:[%s9591_s2 + $0x30] sm:$0xff]   ;;  %v6828_v9 = vld [vmem:[%s9591_s2 + $0x28] sm:$0xff]   ;;  %vm410_vm2 = vsmask.f32 3328  ;;  %vm7166_vm6 = vmmov 0  }
  0x15   : > { %v6821_v2 = vld [vmem:[%s9591_s2 + $0xf8] sm:$0xff]   ;;  %6152 = vmatpush3.bf16.msra.mxu0 %v6820_v1  ;;  %v6825_v6 = vld [vmem:[%s9591_s2 + $0xf0] sm:$0xff]   ;;  %v6829_v10 = vld [vmem:[%s9591_s2 + $0xe8] sm:$0xff]   ;;  %s7323_s13 = scalar_select %p287_p10, %s7231_s28, 1  ;;  %vm411_vm3 = vsmask.f32 7440 }
  0x16   : > { %v6822_v3 = vld [vmem:[%s9591_s2 + $0xb8] sm:$0xff]   ;;  %6263 = vmatprep.subr.bf16.mxu1 %v6821_v2  ;;  %6153 = vmatprep.subr.bf16.mxu0 %v6823_v4  ;;  %v6826_v7 = vld [vmem:[%s9591_s2 + $0xb0] sm:$0xff]   ;;  %v6830_v11 = vld [vmem:[%s9591_s2 + $0xa8] sm:$0xff]   ;;  %s6150_s18 = sshll.u32 %s7231_s28, 12 }
  0x17   : > { %6264 = vmatpush3.bf16.msra.mxu1 %v6822_v3  ;;  %v6831_v12 = vld [vmem:[%s9591_s2 + $0x60] sm:$0xff]   ;;  %v6835_v16 = vld [vmem:[%s9591_s2 + $0x58] sm:$0xff]   ;;  %v6839_v20 = vld [vmem:[%s9591_s2 + $0x50] sm:$0xff]   ;;  %s6775_s22 = smul.u32 216, %s7323_s13  ;;  %s6149_s9 = sshll.u32 %s7323_s13, 8 }
  0x18   : > { %6265 = vmatprep.subr.bf16.mxu1 %v6825_v6  ;;  %v6832_v13 = vld [vmem:[%s9591_s2 + $0x20] sm:$0xff]   ;;  %v6836_v17 = vld [vmem:[%s9591_s2 + $0x18] sm:$0xff]   ;;  %v6840_v21 = vld [vmem:[%s9591_s2 + $0x10] sm:$0xff]   ;;  %s284_s13 = sand.u32 1, %s7155_s25   ;;  %s9369_s16 = scalar_lea.vmem %s9590_s1, %s6149_s9 }
  0x19   : > { %6154 = vmatpush3.bf16.msra.mxu0 %v6824_v5  ;;  %v6833_v14 = vld [vmem:[%s9591_s2 + $0xe0] sm:$0xff]   ;;  %v6837_v18 = vld [vmem:[%s9591_s2 + $0xd8] sm:$0xff]   ;;  %v6841_v22 = vld [vmem:[%s9591_s2 + $0xd0] sm:$0xff]   ;;  %s7353_s20 = scalar_lea.vmem %s9589_s0, %s6775_s22  ;;  %s9393_s17 = sshll.u32 %s284_s13, 8 }
  0x1a   : > { %6155 = vmatprep.subr.bf16.mxu0 %v6827_v8  ;;  %v6834_v15 = vld [vmem:[%s9591_s2 + $0xa0] sm:$0xff]   ;;  %v6838_v19 = vld [vmem:[%s9591_s2 + $0x98] sm:$0xff]   ;;  %v6842_v23 = vld [vmem:[%s9591_s2 + $0x90] sm:$0xff]   ;;  %s9531_s23 = scalar_lea.hbm %s9596_s7, %s6150_s18  ;;  %s9549_s29 = scalar_lea.sflag [#allocation4], %s284_s13 }
  0x1b   : > { %6266 = vmatpush3.bf16.msra.mxu1 %v6826_v7  ;;  %v6843_v24 = vld [vmem:[%s9591_s2 + $0x48] sm:$0xff]   ;;  %v6847_v28 = vld [vmem:[%s9591_s2 + $0x40] sm:$0xff]   ;;  %v6854_v45 = vld [vmem:[%s9591_s2 + $0x178] sm:$0xff]   ;;  %s7167_s22 = smov [#allocation3]  }
  0x1c   : > { %6267 = vmatprep.subr.bf16.mxu1 %v6829_v10  ;;  %v6844_v25 = vld [vmem:[%s9591_s2 + $0x8] sm:$0xff]   ;;  %v6848_v29 = vld [vmem:[%s9591_s2] sm:$0xff]   ;;  %vm7377_vm4 = vmor %vm957_vm0, %vm958_vm1  ;;  %s7107_s9 = sshll.u32 %s7167_s22, 4  ;;  %s7108_s9 = int_to_ptr.vmem [resolvable:$false] %s7107_s9 }
  0x1d   : > { %6156 = vmatpush3.bf16.msra.mxu0 %v6828_v9  ;;  %v6845_v26 = vld [vmem:[%s9591_s2 + $0xc8] sm:$0xff]   ;;  %v6849_v30 = vld [vmem:[%s9591_s2 + $0xc0] sm:$0xff]   ;;  %vm7383_vm5 = vmor %vm410_vm2, %vm411_vm3  ;;  %s7109_s14 = scalar_lea.vmem %s7108_s9, 8192 }
  0x1e   : > { %6157 = vmatprep.subr.bf16.mxu0 %v6831_v12  ;;  %v6846_v27 = vld [vmem:[%s9591_s2 + $0x88] sm:$0xff]   ;;  %v298_v31 = vld [vmem:[%s7353_s20] sm:$0xf]  ;;  %v299_v32 = vld [vmem:[%s7353_s20 + $0x4] sm:$0xf] }
  0x1f   : > { %6268 = vmatpush3.bf16.msra.mxu1 %v6830_v11  ;;  %v362_v33 = vld [vmem:[%s7353_s20] sm:$0xf]  ;;  %330 = vst [vmem:[#allocation2] sm:$0xf] %v298_v31  ;;  %331 = vst [vmem:[#allocation2 + $0x24] sm:$0xf] %v299_v32 }
  0x20   : > { %6269 = vmatprep.subr.bf16.mxu1 %v6833_v14  ;;  %v363_v34 = vld [vmem:[%s7353_s20 + $0x4] sm:$0xf]  ;;  %v364_v35 = vld [vmem:[%s7353_s20 + $0x8] sm:$0x1]  ;;  %v414_v36 = vshrl.u32 %v362_v33, 16  ;;  %v417_v37 = vshll.u32 %v362_v33, 16 }
  0x21   : > { %6158 = vmatpush3.bf16.msra.mxu0 %v6832_v13  ;;  %v423_v38 = vshll.u32 %v363_v34, 16  ;;  %v6853_v39 = vld [vmem:[%s9591_s2 + $0x80] sm:$0xff]   ;;  %v427_v40 = vshrl.u32 %v363_v34, 16  ;;  %v433_v41 = vshll.u32 %v364_v35, 16  ;;  %v863_v51 = vld [vmem:[%s7353_s20 + $0x8] sm:$0x1] }
  0x22   : > { %6159 = vmatprep.subr.bf16.mxu0 %v6835_v16  ;;  %v416_v42 = vrot.slane %v414_v36, 4  ;;  %v419_v43 = vrot.slane %v417_v37, 5  ;;  %v861_v47 = vld [vmem:[%s7353_s20] sm:$0xe]  ;;  %v862_v50 = vld [vmem:[%s7353_s20 + $0x4] sm:$0xf] }
  0x23   : > { %6270 = vmatpush3.bf16.msra.mxu1 %v6834_v15  ;;  %v425_v44 = vrot.slane %v423_v38, 5  ;;  %v429_v46 = vrot.slane %v427_v40, 4  ;;  %v435_v49 = vrot.slane %v433_v41, 5  ;;  %v5623_v53 = vrot.slane %v861_v47, 9  ;;  %v5639_v58 = vld [vmem:[%s7353_s20 + $0xc] sm:$0xf] }
  0x24   : > { %6271 = vmatprep.subr.bf16.mxu1 %v6837_v18  ;;  %v420_v48 = vor.u32 %v419_v43, %v416_v42  ;;  %v962_v56 = vrot.slane %v862_v50, 5  ;;  %v965_v57 = vrot.slane %v863_v51, 5  ;;  %v5640_v59 = vld [vmem:[%s7353_s20 + $0x10] sm:$0xf]  ;;  %1169 = vst [vmem:[#allocation2 + $0xc] sm:$0xf] %v5639_v58 }
  0x25   : > { %6160 = vmatpush3.bf16.msra.mxu0 %v6836_v17  ;;  %v430_v55 = vor.u32 %v429_v46, %v425_v44  ;;  %1170 = vst [vmem:[#allocation2 + $0x30] sm:$0xf] %v5640_v59  ;;  %v300_v0 = vld [vmem:[%s7353_s20 + $0xc] sm:$0xf]  ;;  %v301_v1 = vld [vmem:[%s7353_s20 + $0x10] sm:$0xf] }
  0x26   : > { %6161 = vmatprep.subr.bf16.mxu0 %v6839_v20  ;;  %v421_v60 = vrot.slane %v420_v48, 4  ;;  %v963_v62 = vsel %vm7377_vm4, %v5623_v53, %v962_v56  ;;  %v964_v63 = vrot.slane %v962_v56, 4  ;;  %332 = vst [vmem:[#allocation2 + $0x48] sm:$0xf] %v300_v0  ;;  %333 = vst [vmem:[#allocation2 + $0x6c] sm:$0xf] %v301_v1 }
  0x27   : > { %6272 = vmatpush3.bf16.msra.mxu1 %v6838_v19  ;;  %v431_v61 = vrot.slane %v430_v55, 4  ;;  %1104 = vst [vmem:[#allocation2 + $0x8] sm:$0xf] %v963_v62  ;;  %v365_v3 = vld [vmem:[%s7353_s20 + $0xc] sm:$0xf]  ;;  %v6858_v35 = vld [vmem:[%s9591_s2 + $0x138] sm:$0xff]  }
  0x28   : > { %6273 = vmatprep.subr.bf16.mxu1 %v6841_v22  ;;  %v426_v2 = vsel %vm7383_vm5, %v421_v60, %v425_v44  ;;  %v366_v4 = vld [vmem:[%s7353_s20 + $0x10] sm:$0xf]  ;;  %v367_v5 = vld [vmem:[%s7353_s20 + $0x14] sm:$0x1]  ;;  %v966_v7 = vsel %vm7377_vm4, %v964_v63, %v965_v57  ;;  %v438_v8 = vshrl.u32 %v365_v3, 16  ;;  %v441_v9 = vshll.u32 %v365_v3, 16 }
  0x29   : > { %6162 = vmatpush3.bf16.msra.mxu0 %v6840_v21  ;;  %v436_v6 = vsel %vm7383_vm5, %v431_v61, %v435_v49  ;;  %829 = vst [vmem:[#allocation2 + $0x4] sm:$0xf] %v426_v2  ;;  %v864_v10 = vld [vmem:[%s7353_s20 + $0xc] sm:$0xe]  ;;  %v865_v11 = vld [vmem:[%s7353_s20 + $0x10] sm:$0xf] }
  0x2a   : > { %6163 = vmatprep.subr.bf16.mxu0 %v6843_v24  ;;  %830 = vst [vmem:[#allocation2 + $0x28] sm:$0xf] %v436_v6  ;;  %1105 = vst [vmem:[#allocation2 + $0x2c] sm:$0xf] %v966_v7  ;;  %v447_v12 = vshll.u32 %v366_v4, 16  ;;  %v451_v13 = vshrl.u32 %v366_v4, 16 }
  0x2b   : > { %6274 = vmatpush3.bf16.msra.mxu1 %v6842_v23  ;;  %v457_v14 = vshll.u32 %v367_v5, 16  ;;  %v866_v15 = vld [vmem:[%s7353_s20 + $0x14] sm:$0x1]  ;;  %v5624_v16 = vrot.slane %v864_v10, 9  ;;  %v440_v17 = vrot.slane %v438_v8, 4  ;;  %v443_v18 = vrot.slane %v441_v9, 5 }
  0x2c   : > { %6275 = vmatprep.subr.bf16.mxu1 %v6845_v26  ;;  %v969_v19 = vrot.slane %v865_v11, 5  ;;  %v972_v20 = vrot.slane %v866_v15, 5  ;;  %v5641_v21 = vld [vmem:[%s7353_s20 + $0x18] sm:$0xf]  ;;  %v449_v22 = vrot.slane %v447_v12, 5  ;;  %v453_v23 = vrot.slane %v451_v13, 4 }
  0x2d   : > { %6164 = vmatpush3.bf16.msra.mxu0 %v6844_v25  ;;  %v5642_v24 = vld [vmem:[%s7353_s20 + $0x1c] sm:$0xf]  ;;  %1171 = vst [vmem:[#allocation2 + $0x54] sm:$0xf] %v5641_v21  ;;  %v444_v25 = vor.u32 %v443_v18, %v440_v17  ;;  %v459_v26 = vrot.slane %v457_v14, 5  ;;  %v6868_v44 = vld [vmem:[%s9591_s2 + $0x170] sm:$0xff]  }
  0x2e   : > { %6165 = vmatprep.subr.bf16.mxu0 %v6847_v28  ;;  %v971_v28 = vrot.slane %v969_v19, 4  ;;  %1172 = vst [vmem:[#allocation2 + $0x78] sm:$0xf] %v5642_v24  ;;  %v454_v31 = vor.u32 %v453_v23, %v449_v22  ;;  %v368_v32 = vld [vmem:[%s7353_s20 + $0x18] sm:$0xf]  ;;  %v6871_v57 = vld [vmem:[%s9591_s2 + $0x130] sm:$0xff]  }
  0x2f   : > { %6276 = vmatpush3.bf16.msra.mxu1 %v6846_v27  ;;  %v970_v27 = vsel %vm7377_vm4, %v5624_v16, %v969_v19  ;;  %v369_v33 = vld [vmem:[%s7353_s20 + $0x1c] sm:$0xf]  ;;  %v370_v34 = vld [vmem:[%s7353_s20 + $0x20] sm:$0x1]  ;;  %v445_v36 = vrot.slane %v444_v25, 4  ;;  %v462_v38 = vshrl.u32 %v368_v32, 16 }
  0x30   : > { %6277 = vmatprep.subr.bf16.mxu1 %v6849_v30  ;;  %v303_v30 = vld [vmem:[%s7353_s20 + $0x1c] sm:$0xf]  ;;  %1106 = vst [vmem:[#allocation2 + $0x50] sm:$0xf] %v970_v27  ;;  %v973_v37 = vsel %vm7377_vm4, %v971_v28, %v972_v20  ;;  %v455_v40 = vrot.slane %v454_v31, 4  ;;  %v471_v41 = vshll.u32 %v369_v33, 16 }
  0x31   : > { %6166 = vmatpush3.bf16.msra.mxu0 %v6848_v29  ;;  %v302_v29 = vld [vmem:[%s7353_s20 + $0x18] sm:$0xf]  ;;  %335 = vst [vmem:[#allocation2 + $0xb4] sm:$0xf] %v303_v30  ;;  %1107 = vst [vmem:[#allocation2 + $0x74] sm:$0xf] %v973_v37  ;;  %v450_v47 = vsel %vm7383_vm5, %v445_v36, %v449_v22 }
  0x32   : > { %6375 = vmatprep.subr.bf16.mxu0 %v6854_v45  ;;  %334 = vst [vmem:[#allocation2 + $0x90] sm:$0xf] %v302_v29  ;;  %v475_v42 = vshrl.u32 %v369_v33, 16  ;;  %v481_v43 = vshll.u32 %v370_v34, 16  ;;  %v6850_v45 = vld [vmem:[#allocation2] ss:$36 sps:$4 sm:$0xff]   ;;  %v460_v51 = vsel %vm7383_vm5, %v455_v40, %v459_v26 }
  0x33   : > { %6278 = vmatpush3.bf16.msra.mxu1 %v6853_v39  ;;  %v465_v39 = vshll.u32 %v368_v32, 16  ;;  %v6852_v46 = vld [vmem:[#allocation2 + $0x4] ss:$36 sps:$4 sm:$0xff]   ;;  %v464_v48 = vrot.slane %v462_v38, 4  ;;  %v6857_v50 = vld [vmem:[#allocation2 + $0xc] ss:$36 sps:$4 sm:$0xff]  }
  0x34   : > { %v6855_v49 = vld [vmem:[#allocation2 + $0x8] ss:$36 sps:$4 sm:$0xff]   ;;  %831 = vst [vmem:[#allocation2 + $0x4c] sm:$0xf] %v450_v47  ;;  %4313 = vmatprep.mubr.bf16.mxu0 %v6852_v46  ;;  %832 = vst [vmem:[#allocation2 + $0x70] sm:$0xf] %v460_v51  ;;  %4474 = vmatprep.mubr.bf16.mxu1 %v6857_v50 }
  0x35   : > { %v467_v53 = vrot.slane %v465_v39, 5  ;;  %v473_v55 = vrot.slane %v471_v41, 5  ;;  %v477_v56 = vrot.slane %v475_v42, 4  ;;  %4314 = vmatmul.mubr.bf16.vlgmr.msra.gmra.mxu0 %v6850_v45  ;;  %v867_v59 = vld [vmem:[%s7353_s20 + $0x18] sm:$0xe]  ;;  %v6882_v62 = vld [vmem:[%s9591_s2 + $0x168] sm:$0xff]  }
  0x36   : > { %v868_v60 = vld [vmem:[%s7353_s20 + $0x1c] sm:$0xf]  ;;  %v869_v61 = vld [vmem:[%s7353_s20 + $0x20] sm:$0x1]  ;;  %6376 = vmatpush3.bf16.msra.mxu0 %v6858_v35  ;;  %4475 = vmatmul.mubr.bf16.vlgmr.msra.gmra.mxu1 %v6855_v49  ;;  %v483_v0 = vrot.slane %v481_v43, 5  ;;  %v5625_v1 = vrot.slane %v867_v59, 9 }
  0x37   : > { %v468_v58 = vor.u32 %v467_v53, %v464_v48  ;;  %v478_v63 = vor.u32 %v477_v56, %v473_v55  ;;  %v976_v2 = vrot.slane %v868_v60, 5  ;;  %v5643_v3 = vld [vmem:[%s7353_s20 + $0x24] sm:$0xf]  ;;  %6377 = vmatprep.subr.bf16.mxu0 %v6868_v44  ;;  %v979_v5 = vrot.slane %v869_v61, 5  ;;  %v5644_v6 = vld [vmem:[%s7353_s20 + $0x28] sm:$0xf] }
  0x38   : > { %1173 = vst [vmem:[#allocation2 + $0x9c] sm:$0xf] %v5643_v3  ;;  %v6862_v7 = vld [vmem:[#allocation2 + $0x54] ss:$36 sps:$4 sm:$0xff]   ;;  %1174 = vst [vmem:[#allocation2 + $0xc0] sm:$0xf] %v5644_v6 }
  0x39   : > { %v469_v4 = vrot.slane %v468_v58, 4  ;;  %v6864_v8 = vld [vmem:[#allocation2 + $0x50] ss:$36 sps:$4 sm:$0xff]   ;;  %v479_v9 = vrot.slane %v478_v63, 4  ;;  %v977_v10 = vsel %vm7377_vm4, %v5625_v1, %v976_v2  ;;  %v978_v12 = vrot.slane %v976_v2, 4  ;;  %v6885_v14 = vld [vmem:[%s9591_s2 + $0x128] sm:$0xff]   ;;  %4482 = vmatprep.mubr.bf16.mxu1 %v6862_v7 }
  0x3a   : > { %1108 = vst [vmem:[#allocation2 + $0x98] sm:$0xf] %v977_v10  ;;  %v304_v13 = vld [vmem:[%s7353_s20 + $0x24] sm:$0xf]  ;;  %6378 = vmatpush3.bf16.msra.mxu0 %v6871_v57  ;;  %v305_v16 = vld [vmem:[%s7353_s20 + $0x28] sm:$0xf] }
  0x3b   : > { %v474_v11 = vsel %vm7383_vm5, %v469_v4, %v473_v55  ;;  %v484_v15 = vsel %vm7383_vm5, %v479_v9, %v483_v0  ;;  %336 = vst [vmem:[#allocation2 + $0xd8] sm:$0xf] %v304_v13  ;;  %v371_v17 = vld [vmem:[%s7353_s20 + $0x24] sm:$0xf]  ;;  %v6859_v19 = vld [vmem:[#allocation2 + $0x4c] ss:$36 sps:$4 sm:$0xff]   ;;  %v980_v21 = vsel %vm7377_vm4, %v978_v12, %v979_v5  ;;  %6379 = vmatprep.subr.bf16.mxu0 %v6882_v62 }
  0x3c   : > { %833 = vst [vmem:[#allocation2 + $0x94] sm:$0xf] %v474_v11  ;;  %v6896_v18 = vld [vmem:[%s9591_s2 + $0x160] sm:$0xff]   ;;  %v6861_v20 = vld [vmem:[#allocation2 + $0x48] ss:$36 sps:$4 sm:$0xff]   ;;  %v486_v22 = vshrl.u32 %v371_v17, 16  ;;  %4321 = vmatprep.mubr.bf16.mxu0 %v6859_v19 }
  0x3d   : > { %834 = vst [vmem:[#allocation2 + $0xb8] sm:$0xf] %v484_v15  ;;  %337 = vst [vmem:[#allocation2 + $0xfc] sm:$0xf] %v305_v16  ;;  %v372_v23 = vld [vmem:[%s7353_s20 + $0x28] sm:$0xf]  ;;  %4322 = vmatmul.mubr.bf16.gmra.mxu0 %v6861_v20 }
  0x3e   : > { %1109 = vst [vmem:[#allocation2 + $0xbc] sm:$0xf] %v980_v21  ;;  %v373_v24 = vld [vmem:[%s7353_s20 + $0x2c] sm:$0x1]  ;;  %v489_v25 = vshll.u32 %v371_v17, 16  ;;  %v6911_v26 = vld [vmem:[%s9591_s2 + $0x1f8] sm:$0xff]   ;;  %4483 = vmatmul.mubr.bf16.gmra.mxu1 %v6864_v8  ;;  %6380 = vmatpush3.bf16.msra.mxu0 %v6885_v14 }
  0x3f   : > { %v488_v27 = vrot.slane %v486_v22, 4  ;;  %v495_v28 = vshll.u32 %v372_v23, 16  ;;  %v499_v29 = vshrl.u32 %v372_v23, 16  ;;  %v505_v30 = vshll.u32 %v373_v24, 16  ;;  %v870_v31 = vld [vmem:[%s7353_s20 + $0x24] sm:$0xe]  ;;  %6487 = vmatprep.subr.bf16.mxu1 %v6911_v26  ;;  %6381 = vmatprep.subr.bf16.mxu0 %v6896_v18 }
  0x40   : > { %v6899_v32 = vld [vmem:[%s9591_s2 + $0x120] sm:$0xff]   ;;  %v491_v33 = vrot.slane %v489_v25, 5  ;;  %v871_v34 = vld [vmem:[%s7353_s20 + $0x28] sm:$0xf]  ;;  %v872_v35 = vld [vmem:[%s7353_s20 + $0x2c] sm:$0x1] }
  0x41   : > { %v5626_v36 = vrot.slane %v870_v31, 9  ;;  %v6910_v37 = vld [vmem:[%s9591_s2 + $0x158] sm:$0xff]   ;;  %v497_v38 = vrot.slane %v495_v28, 5  ;;  %v501_v39 = vrot.slane %v499_v29, 4  ;;  %v507_v40 = vrot.slane %v505_v30, 5 }
  0x42   : > { %v983_v41 = vrot.slane %v871_v34, 5  ;;  %v5645_v42 = vld [vmem:[%s7353_s20 + $0x30] sm:$0xf]  ;;  %v492_v43 = vor.u32 %v491_v33, %v488_v27  ;;  %v986_v44 = vrot.slane %v872_v35, 5  ;;  %v5646_v45 = vld [vmem:[%s7353_s20 + $0x34] sm:$0xf]  ;;  %6382 = vmatpush3.bf16.msra.mxu0 %v6899_v32 }
  0x43   : > { %1175 = vst [vmem:[#allocation2 + $0xe4] sm:$0xf] %v5645_v42  ;;  %v306_v46 = vld [vmem:[%s7353_s20 + $0x30] sm:$0xf]  ;;  %v502_v47 = vor.u32 %v501_v39, %v497_v38  ;;  %1176 = vst [vmem:[#allocation2 + $0x108] sm:$0xf] %v5646_v45  ;;  %6383 = vmatprep.subr.bf16.mxu0 %v6910_v37 }
  0x44   : > { %v984_v48 = vsel %vm7377_vm4, %v5626_v36, %v983_v41  ;;  %v985_v49 = vrot.slane %v983_v41, 4  ;;  %v307_v50 = vld [vmem:[%s7353_s20 + $0x34] sm:$0xf]  ;;  %338 = vst [vmem:[#allocation2 + $0x120] sm:$0xf] %v306_v46  ;;  %v493_v56 = vrot.slane %v492_v43, 4 }
  0x45   : > { %v374_v51 = vld [vmem:[%s7353_s20 + $0x30] sm:$0xf]  ;;  %v6865_v53 = vld [vmem:[#allocation2 + $0x94] ss:$36 sps:$4 sm:$0xff]   ;;  %1110 = vst [vmem:[#allocation2 + $0xe0] sm:$0xf] %v984_v48 }
  0x46   : > { %v6867_v55 = vld [vmem:[#allocation2 + $0x90] ss:$36 sps:$4 sm:$0xff]   ;;  %339 = vst [vmem:[#allocation2 + $0x144] sm:$0xf] %v307_v50  ;;  %v6869_v57 = vld [vmem:[#allocation2 + $0x9c] ss:$36 sps:$4 sm:$0xff]   ;;  %v987_v60 = vsel %vm7377_vm4, %v985_v49, %v986_v44  ;;  %4329 = vmatprep.mubr.bf16.mxu0 %v6865_v53  ;;  %v498_v61 = vsel %vm7383_vm5, %v493_v56, %v497_v38 }
  0x47   : > { %v6872_v58 = vld [vmem:[#allocation2 + $0x98] ss:$36 sps:$4 sm:$0xff]   ;;  %v503_v59 = vrot.slane %v502_v47, 4  ;;  %1111 = vst [vmem:[#allocation2 + $0x104] sm:$0xf] %v987_v60  ;;  %v510_v0 = vshrl.u32 %v374_v51, 16  ;;  %4490 = vmatprep.mubr.bf16.mxu1 %v6869_v57  ;;  %4330 = vmatmul.mubr.bf16.gmra.mxu0 %v6867_v55 }
  0x48   : > { %v375_v62 = vld [vmem:[%s7353_s20 + $0x34] sm:$0xf]  ;;  %v376_v63 = vld [vmem:[%s7353_s20 + $0x38] sm:$0x1]  ;;  %v513_v1 = vshll.u32 %v374_v51, 16  ;;  %4491 = vmatmul.mubr.bf16.gmra.mxu1 %v6872_v58 }
  0x49   : > { %v508_v2 = vsel %vm7383_vm5, %v503_v59, %v507_v40  ;;  %835 = vst [vmem:[#allocation2 + $0xdc] sm:$0xf] %v498_v61  ;;  %v519_v3 = vshll.u32 %v375_v62, 16  ;;  %v523_v4 = vshrl.u32 %v375_v62, 16  ;;  %v529_v5 = vshll.u32 %v376_v63, 16  ;;  %v6914_v6 = vld [vmem:[%s9591_s2 + $0x118] sm:$0xff]  }
  0x4a   : > { %836 = vst [vmem:[#allocation2 + $0x100] sm:$0xf] %v508_v2  ;;  %v512_v7 = vrot.slane %v510_v0, 4  ;;  %v515_v8 = vrot.slane %v513_v1, 5  ;;  %v873_v9 = vld [vmem:[%s7353_s20 + $0x30] sm:$0xe]  ;;  %6384 = vmatpush3.bf16.msra.mxu0 %v6914_v6 }
  0x4b   : > { %v521_v10 = vrot.slane %v519_v3, 5  ;;  %v525_v11 = vrot.slane %v523_v4, 4  ;;  %v531_v12 = vrot.slane %v529_v5, 5  ;;  %v874_v13 = vld [vmem:[%s7353_s20 + $0x34] sm:$0xf]  ;;  %v5627_v14 = vrot.slane %v873_v9, 9 }
  0x4c   : > { %v516_v15 = vor.u32 %v515_v8, %v512_v7  ;;  %v875_v16 = vld [vmem:[%s7353_s20 + $0x38] sm:$0x1]  ;;  %v990_v17 = vrot.slane %v874_v13, 5  ;;  %v5647_v18 = vld [vmem:[%s7353_s20 + $0x3c] sm:$0xf]  ;;  %v6926_v41 = vld [vmem:[%s9591_s2 + $0x150] sm:$0xff]  }
  0x4d   : > { %v6915_v19 = vld [vmem:[%s9591_s2 + $0x1b8] sm:$0xff]   ;;  %v526_v20 = vor.u32 %v525_v11, %v521_v10  ;;  %v993_v21 = vrot.slane %v875_v16, 5  ;;  %v5648_v22 = vld [vmem:[%s7353_s20 + $0x40] sm:$0xf]  ;;  %1177 = vst [vmem:[#allocation2 + $0x12c] sm:$0xf] %v5647_v18  ;;  %6385 = vmatprep.subr.bf16.mxu0 %v6926_v41 }
  0x4e   : > { %v517_v23 = vrot.slane %v516_v15, 4  ;;  %v991_v24 = vsel %vm7377_vm4, %v5627_v14, %v990_v17  ;;  %v992_v25 = vrot.slane %v990_v17, 4  ;;  %1178 = vst [vmem:[#allocation2 + $0x150] sm:$0xf] %v5648_v22  ;;  %v308_v26 = vld [vmem:[%s7353_s20 + $0x3c] sm:$0xf]  ;;  %6488 = vmatpush3.bf16.msra.mxu1 %v6915_v19 }
  0x4f   : > { %v6876_v27 = vld [vmem:[#allocation2 + $0xe4] ss:$36 sps:$4 sm:$0xff]   ;;  %v527_v29 = vrot.slane %v526_v20, 4  ;;  %1112 = vst [vmem:[#allocation2 + $0x128] sm:$0xf] %v991_v24  ;;  %v6927_v3 = vld [vmem:[%s9591_s2 + $0x1f0] sm:$0xff]  }
  0x50   : > { %v6878_v28 = vld [vmem:[#allocation2 + $0xe0] ss:$36 sps:$4 sm:$0xff]   ;;  %340 = vst [vmem:[#allocation2 + $0x168] sm:$0xf] %v308_v26  ;;  %v522_v30 = vsel %vm7383_vm5, %v517_v23, %v521_v10  ;;  %v994_v31 = vsel %vm7377_vm4, %v992_v25, %v993_v21  ;;  %v377_v33 = vld [vmem:[%s7353_s20 + $0x3c] sm:$0xf]  ;;  %4498 = vmatprep.mubr.bf16.mxu1 %v6876_v27  ;;  %6489 = vmatprep.subr.bf16.mxu1 %v6927_v3 }
  0x51   : > { %v309_v32 = vld [vmem:[%s7353_s20 + $0x40] sm:$0xf]  ;;  %v6875_v35 = vld [vmem:[#allocation2 + $0xd8] ss:$36 sps:$4 sm:$0xff]   ;;  %v532_v36 = vsel %vm7383_vm5, %v527_v29, %v531_v12  ;;  %837 = vst [vmem:[#allocation2 + $0x124] sm:$0xf] %v522_v30  ;;  %4499 = vmatmul.mubr.bf16.gmra.mxu1 %v6878_v28 }
  0x52   : > { %v6873_v34 = vld [vmem:[#allocation2 + $0xdc] ss:$36 sps:$4 sm:$0xff]   ;;  %1113 = vst [vmem:[#allocation2 + $0x14c] sm:$0xf] %v994_v31  ;;  %341 = vst [vmem:[#allocation2 + $0x18c] sm:$0xf] %v309_v32 }
  0x53   : > { %v534_v37 = vshrl.u32 %v377_v33, 16  ;;  %838 = vst [vmem:[#allocation2 + $0x148] sm:$0xf] %v532_v36  ;;  %v378_v38 = vld [vmem:[%s7353_s20 + $0x40] sm:$0xf]  ;;  %v537_v40 = vshll.u32 %v377_v33, 16  ;;  %4337 = vmatprep.mubr.bf16.mxu0 %v6873_v34 }
  0x54   : > { %v379_v39 = vld [vmem:[%s7353_s20 + $0x44] sm:$0x1]  ;;  %v543_v43 = vshll.u32 %v378_v38, 16  ;;  %v547_v44 = vshrl.u32 %v378_v38, 16  ;;  %v876_v46 = vld [vmem:[%s7353_s20 + $0x3c] sm:$0xe]  ;;  %4338 = vmatmul.mubr.bf16.gmra.mxu0 %v6875_v35 }
  0x55   : > { %v536_v42 = vrot.slane %v534_v37, 4  ;;  %v553_v45 = vshll.u32 %v379_v39, 16  ;;  %v539_v47 = vrot.slane %v537_v40, 5  ;;  %v877_v48 = vld [vmem:[%s7353_s20 + $0x40] sm:$0xf]  ;;  %v5628_v50 = vrot.slane %v876_v46, 9 }
  0x56   : > { %v878_v49 = vld [vmem:[%s7353_s20 + $0x44] sm:$0x1]  ;;  %v545_v51 = vrot.slane %v543_v43, 5  ;;  %v549_v53 = vrot.slane %v547_v44, 4  ;;  %v997_v56 = vrot.slane %v877_v48, 5  ;;  %v6930_v19 = vld [vmem:[%s9591_s2 + $0x110] sm:$0xff]  }
  0x57   : > { %v555_v55 = vrot.slane %v553_v45, 5  ;;  %v5649_v57 = vld [vmem:[%s7353_s20 + $0x48] sm:$0xf]  ;;  %v540_v58 = vor.u32 %v539_v47, %v536_v42  ;;  %v1000_v59 = vrot.slane %v878_v49, 5  ;;  %v5650_v60 = vld [vmem:[%s7353_s20 + $0x4c] sm:$0xf]  ;;  %6386 = vmatpush3.bf16.msra.mxu0 %v6930_v19 }
  0x58   : > { %1179 = vst [vmem:[#allocation2 + $0x174] sm:$0xf] %v5649_v57  ;;  %v310_v61 = vld [vmem:[%s7353_s20 + $0x48] sm:$0xf]  ;;  %v550_v62 = vor.u32 %v549_v53, %v545_v51  ;;  %v998_v63 = vsel %vm7377_vm4, %v5628_v50, %v997_v56  ;;  %v999_v0 = vrot.slane %v997_v56, 4  ;;  %v6931_v39 = vld [vmem:[%s9591_s2 + $0x1b0] sm:$0xff]  }
  0x59   : > { %1180 = vst [vmem:[#allocation2 + $0x198] sm:$0xf] %v5650_v60  ;;  %v311_v1 = vld [vmem:[%s7353_s20 + $0x4c] sm:$0xf]  ;;  %342 = vst [vmem:[#allocation2 + $0x1b0] sm:$0xf] %v310_v61  ;;  %6490 = vmatpush3.bf16.msra.mxu1 %v6931_v39 }
  0x5a   : > { %v380_v2 = vld [vmem:[%s7353_s20 + $0x48] sm:$0xf]  ;;  %v6883_v4 = vld [vmem:[#allocation2 + $0x12c] ss:$36 sps:$4 sm:$0xff]   ;;  %v541_v5 = vrot.slane %v540_v58, 4  ;;  %v551_v9 = vrot.slane %v550_v62, 4  ;;  %v1001_v10 = vsel %vm7377_vm4, %v999_v0, %v1000_v59 }
  0x5b   : > { %1114 = vst [vmem:[#allocation2 + $0x170] sm:$0xf] %v998_v63  ;;  %343 = vst [vmem:[#allocation2 + $0x1d4] sm:$0xf] %v311_v1  ;;  %v558_v6 = vshrl.u32 %v380_v2, 16  ;;  %4506 = vmatprep.mubr.bf16.mxu1 %v6883_v4  ;;  %v561_v17 = vshll.u32 %v380_v2, 16 }
  0x5c   : > { %v6879_v7 = vld [vmem:[#allocation2 + $0x124] ss:$36 sps:$4 sm:$0xff]   ;;  %v546_v12 = vsel %vm7383_vm5, %v541_v5, %v545_v51  ;;  %1115 = vst [vmem:[#allocation2 + $0x194] sm:$0xf] %v1001_v10  ;;  %v381_v13 = vld [vmem:[%s7353_s20 + $0x4c] sm:$0xf]  ;;  %v556_v15 = vsel %vm7383_vm5, %v551_v9, %v555_v55 }
  0x5d   : > { %v6881_v8 = vld [vmem:[#allocation2 + $0x120] ss:$36 sps:$4 sm:$0xff]   ;;  %v6886_v11 = vld [vmem:[#allocation2 + $0x128] ss:$36 sps:$4 sm:$0xff]   ;;  %v382_v14 = vld [vmem:[%s7353_s20 + $0x50] sm:$0x1]  ;;  %4345 = vmatprep.mubr.bf16.mxu0 %v6879_v7 }
  0x5e   : > { %839 = vst [vmem:[#allocation2 + $0x16c] sm:$0xf] %v546_v12  ;;  %v560_v16 = vrot.slane %v558_v6, 4  ;;  %v567_v18 = vshll.u32 %v381_v13, 16  ;;  %4346 = vmatmul.mubr.bf16.gmra.mxu0 %v6881_v8  ;;  %4507 = vmatmul.mubr.bf16.gmra.mxu1 %v6886_v11  ;;  %840 = vst [vmem:[#allocation2 + $0x190] sm:$0xf] %v556_v15 }
  0x5f   : > { %v571_v20 = vshrl.u32 %v381_v13, 16  ;;  %v577_v21 = vshll.u32 %v382_v14, 16  ;;  %v879_v22 = vld [vmem:[%s7353_s20 + $0x48] sm:$0xe]  ;;  %v563_v23 = vrot.slane %v561_v17, 5 }
  0x60   : > { %v569_v24 = vrot.slane %v567_v18, 5  ;;  %v880_v25 = vld [vmem:[%s7353_s20 + $0x4c] sm:$0xf]  ;;  %v881_v26 = vld [vmem:[%s7353_s20 + $0x50] sm:$0x1]  ;;  %v5629_v29 = vrot.slane %v879_v22, 9 }
  0x61   : > { %v573_v27 = vrot.slane %v571_v20, 4  ;;  %v579_v28 = vrot.slane %v577_v21, 5  ;;  %v1004_v30 = vrot.slane %v880_v25, 5  ;;  %v5651_v31 = vld [vmem:[%s7353_s20 + $0x54] sm:$0xf]  ;;  %v564_v32 = vor.u32 %v563_v23, %v560_v16  ;;  %v6942_v57 = vld [vmem:[%s9591_s2 + $0x148] sm:$0xff]  }
  0x62   : > { %v1007_v33 = vrot.slane %v881_v26, 5  ;;  %v5652_v34 = vld [vmem:[%s7353_s20 + $0x58] sm:$0xf]  ;;  %1181 = vst [vmem:[#allocation2 + $0x1bc] sm:$0xf] %v5651_v31  ;;  %6387 = vmatprep.subr.bf16.mxu0 %v6942_v57  ;;  %v6943_v17 = vld [vmem:[%s9591_s2 + $0x1e8] sm:$0xff]  }
  0x63   : > { %v574_v35 = vor.u32 %v573_v27, %v569_v24  ;;  %v1005_v36 = vsel %vm7377_vm4, %v5629_v29, %v1004_v30  ;;  %v1006_v37 = vrot.slane %v1004_v30, 4  ;;  %1182 = vst [vmem:[#allocation2 + $0x1e0] sm:$0xf] %v5652_v34  ;;  %v312_v38 = vld [vmem:[%s7353_s20 + $0x54] sm:$0xf]  ;;  %v565_v42 = vrot.slane %v564_v32, 4  ;;  %6491 = vmatprep.subr.bf16.mxu1 %v6943_v17 }
  0x64   : > { %v6890_v40 = vld [vmem:[#allocation2 + $0x174] ss:$36 sps:$4 sm:$0xff]   ;;  %1116 = vst [vmem:[#allocation2 + $0x1b8] sm:$0xf] %v1005_v36  ;;  %344 = vst [vmem:[#allocation2 + $0x1f8] sm:$0xf] %v312_v38 }
  0x65   : > { %v6892_v41 = vld [vmem:[#allocation2 + $0x170] ss:$36 sps:$4 sm:$0xff]   ;;  %v575_v43 = vrot.slane %v574_v35, 4  ;;  %v1008_v44 = vsel %vm7377_vm4, %v1006_v37, %v1007_v33  ;;  %v313_v45 = vld [vmem:[%s7353_s20 + $0x58] sm:$0xf]  ;;  %4514 = vmatprep.mubr.bf16.mxu1 %v6890_v40  ;;  %v570_v49 = vsel %vm7383_vm5, %v565_v42, %v569_v24  ;;  %v6946_v33 = vld [vmem:[%s9591_s2 + $0x108] sm:$0xff]  }
  0x66   : > { %v383_v46 = vld [vmem:[%s7353_s20 + $0x54] sm:$0xf]  ;;  %v6887_v47 = vld [vmem:[#allocation2 + $0x16c] ss:$36 sps:$4 sm:$0xff]   ;;  %1117 = vst [vmem:[#allocation2 + $0x1dc] sm:$0xf] %v1008_v44  ;;  %4515 = vmatmul.mubr.bf16.gmra.mxu1 %v6892_v41  ;;  %6388 = vmatpush3.bf16.msra.mxu0 %v6946_v33 }
  0x67   : > { %v6889_v48 = vld [vmem:[#allocation2 + $0x168] ss:$36 sps:$4 sm:$0xff]   ;;  %345 = vst [vmem:[#allocation2 + $0x21c] sm:$0xf] %v313_v45  ;;  %v582_v50 = vshrl.u32 %v383_v46, 16  ;;  %v580_v51 = vsel %vm7383_vm5, %v575_v43, %v579_v28  ;;  %v585_v56 = vshll.u32 %v383_v46, 16  ;;  %4353 = vmatprep.mubr.bf16.mxu0 %v6887_v47 }
  0x68   : > { %841 = vst [vmem:[#allocation2 + $0x1b4] sm:$0xf] %v570_v49  ;;  %v384_v53 = vld [vmem:[%s7353_s20 + $0x58] sm:$0xf]  ;;  %v385_v55 = vld [vmem:[%s7353_s20 + $0x5c] sm:$0x1]  ;;  %4354 = vmatmul.mubr.bf16.gmra.mxu0 %v6889_v48 }
  0x69   : > { %842 = vst [vmem:[#allocation2 + $0x1d8] sm:$0xf] %v580_v51  ;;  %v584_v58 = vrot.slane %v582_v50, 4  ;;  %v591_v59 = vshll.u32 %v384_v53, 16  ;;  %v595_v60 = vshrl.u32 %v384_v53, 16  ;;  %v601_v61 = vshll.u32 %v385_v55, 16 }
  0x6a   : > { %v882_v62 = vld [vmem:[%s7353_s20 + $0x54] sm:$0xe]  ;;  %v587_v63 = vrot.slane %v585_v56, 5  ;;  %v883_v0 = vld [vmem:[%s7353_s20 + $0x58] sm:$0xf]  ;;  %v6947_v39 = vld [vmem:[%s9591_s2 + $0x1a8] sm:$0xff]  }
  0x6b   : > { %v884_v1 = vld [vmem:[%s7353_s20 + $0x5c] sm:$0x1]  ;;  %v5630_v2 = vrot.slane %v882_v62, 9  ;;  %v593_v3 = vrot.slane %v591_v59, 5  ;;  %v597_v4 = vrot.slane %v595_v60, 4  ;;  %v603_v5 = vrot.slane %v601_v61, 5  ;;  %6492 = vmatpush3.bf16.msra.mxu1 %v6947_v39 }
  0x6c   : > { %v1011_v6 = vrot.slane %v883_v0, 5  ;;  %v5653_v7 = vld [vmem:[%s7353_s20 + $0x60] sm:$0xf]  ;;  %v588_v8 = vor.u32 %v587_v63, %v584_v58  ;;  %v1014_v9 = vrot.slane %v884_v1, 5  ;;  %v5654_v10 = vld [vmem:[%s7353_s20 + $0x64] sm:$0xf] }
  0x6d   : > { %1183 = vst [vmem:[#allocation2 + $0x204] sm:$0xf] %v5653_v7  ;;  %v314_v11 = vld [vmem:[%s7353_s20 + $0x60] sm:$0xf]  ;;  %v598_v12 = vor.u32 %v597_v4, %v593_v3  ;;  %1184 = vst [vmem:[#allocation2 + $0x228] sm:$0xf] %v5654_v10 }
  0x6e   : > { %v1012_v13 = vsel %vm7377_vm4, %v5630_v2, %v1011_v6  ;;  %v1013_v14 = vrot.slane %v1011_v6, 4  ;;  %v315_v15 = vld [vmem:[%s7353_s20 + $0x64] sm:$0xf]  ;;  %346 = vst [vmem:[#allocation2 + $0x240] sm:$0xf] %v314_v11  ;;  %v589_v20 = vrot.slane %v588_v8, 4 }
  0x6f   : > { %v386_v16 = vld [vmem:[%s7353_s20 + $0x60] sm:$0xf]  ;;  %v6900_v19 = vld [vmem:[#allocation2 + $0x1b8] ss:$36 sps:$4 sm:$0xff]   ;;  %1118 = vst [vmem:[#allocation2 + $0x200] sm:$0xf] %v1012_v13 }
  0x70   : > { %v6897_v18 = vld [vmem:[#allocation2 + $0x1bc] ss:$36 sps:$4 sm:$0xff]   ;;  %347 = vst [vmem:[#allocation2 + $0x264] sm:$0xf] %v315_v15  ;;  %v599_v21 = vrot.slane %v598_v12, 4  ;;  %v1015_v22 = vsel %vm7377_vm4, %v1013_v14, %v1014_v9  ;;  %v594_v27 = vsel %vm7383_vm5, %v589_v20, %v593_v3  ;;  %v606_v28 = vshrl.u32 %v386_v16, 16 }
  0x71   : > { %v387_v23 = vld [vmem:[%s7353_s20 + $0x64] sm:$0xf]  ;;  %v388_v24 = vld [vmem:[%s7353_s20 + $0x68] sm:$0x1]  ;;  %v6893_v25 = vld [vmem:[#allocation2 + $0x1b4] ss:$36 sps:$4 sm:$0xff]   ;;  %4522 = vmatprep.mubr.bf16.mxu1 %v6897_v18 }
  0x72   : > { %v6895_v26 = vld [vmem:[#allocation2 + $0x1b0] ss:$36 sps:$4 sm:$0xff]   ;;  %1119 = vst [vmem:[#allocation2 + $0x224] sm:$0xf] %v1015_v22  ;;  %4523 = vmatmul.mubr.bf16.gmra.mxu1 %v6900_v19  ;;  %v604_v29 = vsel %vm7383_vm5, %v599_v21, %v603_v5  ;;  %843 = vst [vmem:[#allocation2 + $0x1fc] sm:$0xf] %v594_v27  ;;  %4361 = vmatprep.mubr.bf16.mxu0 %v6893_v25 }
  0x73   : > { %v609_v30 = vshll.u32 %v386_v16, 16  ;;  %v615_v31 = vshll.u32 %v387_v23, 16  ;;  %v619_v32 = vshrl.u32 %v387_v23, 16  ;;  %844 = vst [vmem:[#allocation2 + $0x220] sm:$0xf] %v604_v29  ;;  %v608_v34 = vrot.slane %v606_v28, 4  ;;  %4362 = vmatmul.mubr.bf16.gmra.mxu0 %v6895_v26 }
  0x74   : > { %v625_v35 = vshll.u32 %v388_v24, 16  ;;  %v885_v41 = vld [vmem:[%s7353_s20 + $0x60] sm:$0xe]  ;;  %v886_v42 = vld [vmem:[%s7353_s20 + $0x64] sm:$0xf]  ;;  %v6965_v15 = vld [vmem:[%s9591_s2 + $0x1d8] sm:$0xff]  }
  0x75   : > { %v611_v36 = vrot.slane %v609_v30, 5  ;;  %v617_v37 = vrot.slane %v615_v31, 5  ;;  %v621_v38 = vrot.slane %v619_v32, 4  ;;  %v6955_v43 = vld [vmem:[%s9591_s2 + $0x1e0] sm:$0xff]   ;;  %v887_v46 = vld [vmem:[%s7353_s20 + $0x68] sm:$0x1] }
  0x76   : > { %v627_v40 = vrot.slane %v625_v35, 5  ;;  %v5631_v47 = vrot.slane %v885_v41, 9  ;;  %v1018_v48 = vrot.slane %v886_v42, 5  ;;  %v6958_v49 = vld [vmem:[%s9591_s2 + $0x1a0] sm:$0xff]   ;;  %v1021_v50 = vrot.slane %v887_v46, 5  ;;  %6493 = vmatprep.subr.bf16.mxu1 %v6955_v43  ;;  %v6966_v23 = vld [vmem:[%s9591_s2 + $0x198] sm:$0xff]  }
  0x77   : > { %v612_v44 = vor.u32 %v611_v36, %v608_v34  ;;  %v622_v45 = vor.u32 %v621_v38, %v617_v37  ;;  %v5655_v51 = vld [vmem:[%s7353_s20 + $0x6c] sm:$0xf]  ;;  %v5656_v53 = vld [vmem:[%s7353_s20 + $0x70] sm:$0xf]  ;;  %v6960_v55 = vld [vmem:[%s9591_s2 + $0x140] sm:$0xff]   ;;  %6494 = vmatpush3.bf16.msra.mxu1 %v6958_v49 }
  0x78   : > { %v6904_v56 = vld [vmem:[#allocation2 + $0x204] ss:$36 sps:$4 sm:$0xff]   ;;  %v1019_v59 = vsel %vm7377_vm4, %v5631_v47, %v1018_v48  ;;  %1185 = vst [vmem:[#allocation2 + $0x24c] sm:$0xf] %v5655_v51  ;;  %1186 = vst [vmem:[#allocation2 + $0x270] sm:$0xf] %v5656_v53  ;;  %6389 = vmatprep.subr.bf16.mxu0 %v6960_v55  ;;  %6495 = vmatprep.subr.bf16.mxu1 %v6965_v15 }
  0x79   : > { %v6906_v57 = vld [vmem:[#allocation2 + $0x200] ss:$36 sps:$4 sm:$0xff]   ;;  %v613_v58 = vrot.slane %v612_v44, 4  ;;  %v623_v60 = vrot.slane %v622_v45, 4  ;;  %v1020_v61 = vrot.slane %v1018_v48, 4  ;;  %4530 = vmatprep.mubr.bf16.mxu1 %v6904_v56  ;;  %v6967_v44 = vld [vmem:[%s9591_s2 + $0x1d0] sm:$0xff]  }
  0x7a   : > { %1120 = vst [vmem:[#allocation2 + $0x248] sm:$0xf] %v1019_v59  ;;  %v6963_v62 = vld [vmem:[%s9591_s2 + $0x100] sm:$0xff]   ;;  %v6903_v0 = vld [vmem:[#allocation2 + $0x1f8] ss:$36 sps:$4 sm:$0xff]   ;;  %4531 = vmatmul.mubr.bf16.gmra.mxu1 %v6906_v57  ;;  %v6975_v59 = vld [vmem:[%s9591_s2 + $0x1c8] sm:$0xff]  }
  0x7b   : > { %v6901_v63 = vld [vmem:[#allocation2 + $0x1fc] ss:$36 sps:$4 sm:$0xff]   ;;  %v618_v1 = vsel %vm7383_vm5, %v613_v58, %v617_v37  ;;  %v628_v2 = vsel %vm7383_vm5, %v623_v60, %v627_v40  ;;  %v1022_v3 = vsel %vm7377_vm4, %v1020_v61, %v1021_v50  ;;  %6390 = vmatpush3.bf16.msra.mxu0 %v6963_v62  ;;  %v316_v4 = vld [vmem:[%s7353_s20 + $0x6c] sm:$0xf]  ;;  %v317_v5 = vld [vmem:[%s7353_s20 + $0x70] sm:$0xf]  ;;  %6496 = vmatpush3.bf16.msra.mxu1 %v6966_v23 }
  0x7c   : > { %845 = vst [vmem:[#allocation2 + $0x244] sm:$0xf] %v618_v1  ;;  %4369 = vmatprep.mubr.bf16.mxu0 %v6901_v63  ;;  %846 = vst [vmem:[#allocation2 + $0x268] sm:$0xf] %v628_v2  ;;  %v389_v6 = vld [vmem:[%s7353_s20 + $0x6c] sm:$0xf]  ;;  %6497 = vmatprep.subr.bf16.mxu1 %v6967_v44 }
  0x7d   : > { %1121 = vst [vmem:[#allocation2 + $0x26c] sm:$0xf] %v1022_v3  ;;  %4370 = vmatmul.mubr.bf16.gmra.mxu0 %v6903_v0  ;;  %348 = vst [vmem:[#allocation2 + $0x288] sm:$0xf] %v316_v4  ;;  %v390_v7 = vld [vmem:[%s7353_s20 + $0x70] sm:$0xf] }
  0x7e   : > { %349 = vst [vmem:[#allocation2 + $0x2ac] sm:$0xf] %v317_v5  ;;  %v391_v8 = vld [vmem:[%s7353_s20 + $0x74] sm:$0x1]  ;;  %v630_v9 = vshrl.u32 %v389_v6, 16  ;;  %v633_v10 = vshll.u32 %v389_v6, 16 }
  0x7f   : > { %v639_v11 = vshll.u32 %v390_v7, 16  ;;  %v643_v12 = vshrl.u32 %v390_v7, 16  ;;  %v649_v13 = vshll.u32 %v391_v8, 16  ;;  %v888_v14 = vld [vmem:[%s7353_s20 + $0x6c] sm:$0xe]  ;;  %v6970_v50 = vld [vmem:[%s9591_s2 + $0x190] sm:$0xff]  }
  0x80   : > { %v632_v16 = vrot.slane %v630_v9, 4  ;;  %v635_v17 = vrot.slane %v633_v10, 5  ;;  %v889_v18 = vld [vmem:[%s7353_s20 + $0x70] sm:$0xf]  ;;  %v890_v19 = vld [vmem:[%s7353_s20 + $0x74] sm:$0x1]  ;;  %6498 = vmatpush3.bf16.msra.mxu1 %v6970_v50 }
  0x81   : > { %v641_v20 = vrot.slane %v639_v11, 5  ;;  %v645_v21 = vrot.slane %v643_v12, 4  ;;  %v5632_v22 = vrot.slane %v888_v14, 9  ;;  %v651_v25 = vrot.slane %v649_v13, 5  ;;  %v5657_v27 = vld [vmem:[%s7353_s20 + $0x78] sm:$0xf]  ;;  %6499 = vmatprep.subr.bf16.mxu1 %v6975_v59 }
  0x82   : > { %v636_v24 = vor.u32 %v635_v17, %v632_v16  ;;  %v1025_v26 = vrot.slane %v889_v18, 5  ;;  %v5658_v28 = vld [vmem:[%s7353_s20 + $0x7c] sm:$0xf]  ;;  %v1028_v30 = vrot.slane %v890_v19, 5  ;;  %1187 = vst [vmem:[#allocation2 + $0x294] sm:$0xf] %v5657_v27 }
  0x83   : > { %v646_v29 = vor.u32 %v645_v21, %v641_v20  ;;  %1188 = vst [vmem:[#allocation2 + $0x2b8] sm:$0xf] %v5658_v28  ;;  %v318_v31 = vld [vmem:[%s7353_s20 + $0x78] sm:$0xf]  ;;  %v319_v32 = vld [vmem:[%s7353_s20 + $0x7c] sm:$0xf] }
  0x84   : > { %v6907_v33 = vld [vmem:[#allocation2 + $0x244] ss:$36 sps:$4 sm:$0xff]   ;;  %v637_v35 = vrot.slane %v636_v24, 4  ;;  %v1026_v36 = vsel %vm7377_vm4, %v5632_v22, %v1025_v26  ;;  %350 = vst [vmem:[#allocation2 + $0x2d0] sm:$0xf] %v318_v31  ;;  %v1027_v41 = vrot.slane %v1025_v26, 4 }
  0x85   : > { %v6909_v34 = vld [vmem:[#allocation2 + $0x240] ss:$36 sps:$4 sm:$0xff]   ;;  %351 = vst [vmem:[#allocation2 + $0x2f4] sm:$0xf] %v319_v32  ;;  %v6912_v37 = vld [vmem:[#allocation2 + $0x24c] ss:$36 sps:$4 sm:$0xff]   ;;  %4377 = vmatprep.mubr.bf16.mxu0 %v6907_v33 }
  0x86   : > { %v6916_v38 = vld [vmem:[#allocation2 + $0x248] ss:$36 sps:$4 sm:$0xff]   ;;  %v647_v39 = vrot.slane %v646_v29, 4  ;;  %1122 = vst [vmem:[#allocation2 + $0x290] sm:$0xf] %v1026_v36  ;;  %v642_v40 = vsel %vm7383_vm5, %v637_v35, %v641_v20  ;;  %4378 = vmatmul.mubr.bf16.gmra.mxu0 %v6909_v34  ;;  %4538 = vmatprep.mubr.bf16.mxu1 %v6912_v37  ;;  %v1029_v51 = vsel %vm7377_vm4, %v1027_v41, %v1028_v30  ;;  %v6977_v8 = vld [vmem:[%s9591_s2 + $0x1c0] sm:$0xff]  }
  0x87   : > { %v392_v42 = vld [vmem:[%s7353_s20 + $0x78] sm:$0xf]  ;;  %v393_v43 = vld [vmem:[%s7353_s20 + $0x7c] sm:$0xf]  ;;  %847 = vst [vmem:[#allocation2 + $0x28c] sm:$0xf] %v642_v40  ;;  %4539 = vmatmul.mubr.bf16.gmra.mxu1 %v6916_v38 }
  0x88   : > { %v652_v45 = vsel %vm7383_vm5, %v647_v39, %v651_v25  ;;  %v394_v46 = vld [vmem:[%s7353_s20 + $0x80] sm:$0x1]  ;;  %v654_v47 = vshrl.u32 %v392_v42, 16  ;;  %v657_v48 = vshll.u32 %v392_v42, 16  ;;  %v663_v49 = vshll.u32 %v393_v43, 16  ;;  %v6976_v3 = vld [vmem:[%s9591_s2 + $0x188] sm:$0xff]  }
  0x89   : > { %848 = vst [vmem:[#allocation2 + $0x2b0] sm:$0xf] %v652_v45  ;;  %v667_v53 = vshrl.u32 %v393_v43, 16  ;;  %v673_v55 = vshll.u32 %v394_v46, 16  ;;  %1123 = vst [vmem:[#allocation2 + $0x2b4] sm:$0xf] %v1029_v51  ;;  %6500 = vmatpush3.bf16.msra.mxu1 %v6976_v3 }
  0x8a   : > { %v656_v56 = vrot.slane %v654_v47, 4  ;;  %v659_v57 = vrot.slane %v657_v48, 5  ;;  %v665_v58 = vrot.slane %v663_v49, 5  ;;  %v891_v62 = vld [vmem:[%s7353_s20 + $0x78] sm:$0xe]  ;;  %v6981_v11 = vld [vmem:[%s9591_s2 + $0x180] sm:$0xff]   ;;  %6501 = vmatprep.subr.bf16.mxu1 %v6977_v8 }
  0x8b   : > { %v669_v60 = vrot.slane %v667_v53, 4  ;;  %v675_v61 = vrot.slane %v673_v55, 5  ;;  %v892_v0 = vld [vmem:[%s7353_s20 + $0x7c] sm:$0xf]  ;;  %v893_v1 = vld [vmem:[%s7353_s20 + $0x80] sm:$0x1] }
  0x8c   : > { %v660_v63 = vor.u32 %v659_v57, %v656_v56  ;;  %v5633_v2 = vrot.slane %v891_v62, 9  ;;  %v1032_v5 = vrot.slane %v892_v0, 5  ;;  %v1035_v6 = vrot.slane %v893_v1, 5  ;;  %v5659_v7 = vld [vmem:[%s7353_s20 + $0x84] sm:$0xf]  ;;  %v7667_v15 = vld [vmem:[%s9591_s2 + $0x238] sm:$0xff]  }
  0x8d   : > { %v670_v4 = vor.u32 %v669_v60, %v665_v58  ;;  %v5660_v10 = vld [vmem:[%s7353_s20 + $0x88] sm:$0xf]  ;;  %1189 = vst [vmem:[#allocation2 + $0x2dc] sm:$0xf] %v5659_v7  ;;  %v6920_v19 = vld [vmem:[#allocation2 + $0x294] ss:$36 sps:$4 sm:$0xff]   ;;  %6657 = vmatprep.subr.bf16.mxu0 %v7667_v15  ;;  %6502 = vmatpush3.bf16.msra.mxu1 %v6981_v11 }
  0x8e   : > { %v661_v9 = vrot.slane %v660_v63, 4  ;;  %v1033_v13 = vsel %vm7377_vm4, %v5633_v2, %v1032_v5  ;;  %v1034_v14 = vrot.slane %v1032_v5, 4  ;;  %1190 = vst [vmem:[#allocation2 + $0x300] sm:$0xf] %v5660_v10  ;;  %v6919_v17 = vld [vmem:[#allocation2 + $0x288] ss:$36 sps:$4 sm:$0xff]   ;;  %4546 = vmatprep.mubr.bf16.mxu1 %v6920_v19 }
  0x8f   : > { %v671_v12 = vrot.slane %v670_v4, 4  ;;  %1124 = vst [vmem:[#allocation2 + $0x2d8] sm:$0xf] %v1033_v13  ;;  %v320_v23 = vld [vmem:[%s7353_s20 + $0x84] sm:$0xf] }
  0x90   : > { %v6917_v16 = vld [vmem:[#allocation2 + $0x28c] ss:$36 sps:$4 sm:$0xff]   ;;  %v666_v18 = vsel %vm7383_vm5, %v661_v9, %v665_v58  ;;  %v1036_v22 = vsel %vm7377_vm4, %v1034_v14, %v1035_v6  ;;  %v321_v24 = vld [vmem:[%s7353_s20 + $0x88] sm:$0xf]  ;;  %352 = vst [vmem:[#allocation2 + $0x318] sm:$0xf] %v320_v23 }
  0x91   : > { %v6922_v20 = vld [vmem:[#allocation2 + $0x290] ss:$36 sps:$4 sm:$0xff]   ;;  %v676_v21 = vsel %vm7383_vm5, %v671_v12, %v675_v61  ;;  %849 = vst [vmem:[#allocation2 + $0x2d4] sm:$0xf] %v666_v18  ;;  %4385 = vmatprep.mubr.bf16.mxu0 %v6917_v16  ;;  %1125 = vst [vmem:[#allocation2 + $0x2fc] sm:$0xf] %v1036_v22 }
  0x92   : > { %850 = vst [vmem:[#allocation2 + $0x2f8] sm:$0xf] %v676_v21  ;;  %4386 = vmatmul.mubr.bf16.gmra.mxu0 %v6919_v17  ;;  %v395_v25 = vld [vmem:[%s7353_s20 + $0x84] sm:$0xf]  ;;  %v396_v26 = vld [vmem:[%s7353_s20 + $0x88] sm:$0xf]  ;;  %4547 = vmatmul.mubr.bf16.gmra.mxu1 %v6922_v20 }
  0x93   : > { %353 = vst [vmem:[#allocation2 + $0x33c] sm:$0xf] %v321_v24  ;;  %v397_v27 = vld [vmem:[%s7353_s20 + $0x8c] sm:$0x1]  ;;  %v678_v28 = vshrl.u32 %v395_v25, 16  ;;  %v681_v29 = vshll.u32 %v395_v25, 16 }
  0x94   : > { %v687_v30 = vshll.u32 %v396_v26, 16  ;;  %v691_v31 = vshrl.u32 %v396_v26, 16  ;;  %v697_v32 = vshll.u32 %v397_v27, 16  ;;  %v894_v33 = vld [vmem:[%s7353_s20 + $0x84] sm:$0xe] }
  0x95   : > { %v895_v34 = vld [vmem:[%s7353_s20 + $0x88] sm:$0xf]  ;;  %v680_v35 = vrot.slane %v678_v28, 4  ;;  %v683_v36 = vrot.slane %v681_v29, 5  ;;  %v896_v39 = vld [vmem:[%s7353_s20 + $0x8c] sm:$0x1] }
  0x96   : > { %v689_v37 = vrot.slane %v687_v30, 5  ;;  %v693_v38 = vrot.slane %v691_v31, 4  ;;  %v5634_v40 = vrot.slane %v894_v33, 9  ;;  %v1039_v41 = vrot.slane %v895_v34, 5  ;;  %v5661_v46 = vld [vmem:[%s7353_s20 + $0x90] sm:$0xf] }
  0x97   : > { %v1042_v42 = vrot.slane %v896_v39, 5  ;;  %v684_v43 = vor.u32 %v683_v36, %v680_v35  ;;  %v699_v45 = vrot.slane %v697_v32, 5  ;;  %v5662_v47 = vld [vmem:[%s7353_s20 + $0x94] sm:$0xf]  ;;  %1191 = vst [vmem:[#allocation2 + $0x324] sm:$0xf] %v5661_v46 }
  0x98   : > { %v694_v44 = vor.u32 %v693_v38, %v689_v37  ;;  %v6925_v49 = vld [vmem:[#allocation2 + $0x2d0] ss:$36 sps:$4 sm:$0xff]   ;;  %v1040_v50 = vsel %vm7377_vm4, %v5634_v40, %v1039_v41  ;;  %v1041_v51 = vrot.slane %v1039_v41, 4  ;;  %1192 = vst [vmem:[#allocation2 + $0x348] sm:$0xf] %v5662_v47 }
  0x99   : > { %v6923_v48 = vld [vmem:[#allocation2 + $0x2d4] ss:$36 sps:$4 sm:$0xff]   ;;  %v6928_v53 = vld [vmem:[#allocation2 + $0x2dc] ss:$36 sps:$4 sm:$0xff]   ;;  %v685_v56 = vrot.slane %v684_v43, 4 }
  0x9a   : > { %v6932_v55 = vld [vmem:[#allocation2 + $0x2d8] ss:$36 sps:$4 sm:$0xff]   ;;  %1126 = vst [vmem:[#allocation2 + $0x320] sm:$0xf] %v1040_v50  ;;  %4393 = vmatprep.mubr.bf16.mxu0 %v6923_v48  ;;  %v695_v57 = vrot.slane %v694_v44, 4  ;;  %v1043_v58 = vsel %vm7377_vm4, %v1041_v51, %v1042_v42  ;;  %4554 = vmatprep.mubr.bf16.mxu1 %v6928_v53 }
  0x9b   : > { %v322_v59 = vld [vmem:[%s7353_s20 + $0x90] sm:$0xf]  ;;  %v323_v60 = vld [vmem:[%s7353_s20 + $0x94] sm:$0xf]  ;;  %4394 = vmatmul.mubr.bf16.gmra.mxu0 %v6925_v49  ;;  %v690_v61 = vsel %vm7383_vm5, %v685_v56, %v689_v37  ;;  %1127 = vst [vmem:[#allocation2 + $0x344] sm:$0xf] %v1043_v58  ;;  %4555 = vmatmul.mubr.bf16.gmra.mxu1 %v6932_v55 }
  0x9c   : > { %354 = vst [vmem:[#allocation2 + $0x360] sm:$0xf] %v322_v59  ;;  %355 = vst [vmem:[#allocation2 + $0x384] sm:$0xf] %v323_v60  ;;  %v398_v62 = vld [vmem:[%s7353_s20 + $0x90] sm:$0xf]  ;;  %v700_v1 = vsel %vm7383_vm5, %v695_v57, %v699_v45 }
  0x9d   : > { %v399_v63 = vld [vmem:[%s7353_s20 + $0x94] sm:$0xf]  ;;  %v400_v0 = vld [vmem:[%s7353_s20 + $0x98] sm:$0x1]  ;;  %851 = vst [vmem:[#allocation2 + $0x31c] sm:$0xf] %v690_v61 }
  0x9e   : > { %v702_v2 = vshrl.u32 %v398_v62, 16  ;;  %v705_v3 = vshll.u32 %v398_v62, 16  ;;  %v711_v4 = vshll.u32 %v399_v63, 16  ;;  %852 = vst [vmem:[#allocation2 + $0x340] sm:$0xf] %v700_v1  ;;  %v715_v5 = vshrl.u32 %v399_v63, 16 }
  0x9f   : > { %v721_v6 = vshll.u32 %v400_v0, 16  ;;  %v897_v11 = vld [vmem:[%s7353_s20 + $0x90] sm:$0xe]  ;;  %v898_v12 = vld [vmem:[%s7353_s20 + $0x94] sm:$0xf] }
  0xa0   : > { %v704_v7 = vrot.slane %v702_v2, 4  ;;  %v707_v8 = vrot.slane %v705_v3, 5  ;;  %v713_v9 = vrot.slane %v711_v4, 5  ;;  %v717_v10 = vrot.slane %v715_v5, 4  ;;  %v899_v14 = vld [vmem:[%s7353_s20 + $0x98] sm:$0x1] }
  0xa1   : > { %v5635_v16 = vrot.slane %v897_v11, 9  ;;  %v1046_v17 = vrot.slane %v898_v12, 5  ;;  %v723_v19 = vrot.slane %v721_v6, 5  ;;  %v1049_v20 = vrot.slane %v899_v14, 5  ;;  %v5663_v21 = vld [vmem:[%s7353_s20 + $0x9c] sm:$0xf] }
  0xa2   : > { %v708_v13 = vor.u32 %v707_v8, %v704_v7  ;;  %v718_v18 = vor.u32 %v717_v10, %v713_v9  ;;  %v5664_v22 = vld [vmem:[%s7353_s20 + $0xa0] sm:$0xf]  ;;  %v6936_v23 = vld [vmem:[#allocation2 + $0x324] ss:$36 sps:$4 sm:$0xff]   ;;  %1193 = vst [vmem:[#allocation2 + $0x36c] sm:$0xf] %v5663_v21 }
  0xa3   : > { %v6938_v24 = vld [vmem:[#allocation2 + $0x320] ss:$36 sps:$4 sm:$0xff]   ;;  %v1047_v26 = vsel %vm7377_vm4, %v5635_v16, %v1046_v17  ;;  %1194 = vst [vmem:[#allocation2 + $0x390] sm:$0xf] %v5664_v22  ;;  %v1048_v28 = vrot.slane %v1046_v17, 4  ;;  %4562 = vmatprep.mubr.bf16.mxu1 %v6936_v23 }
  0xa4   : > { %v709_v25 = vrot.slane %v708_v13, 4  ;;  %v719_v27 = vrot.slane %v718_v18, 4  ;;  %1128 = vst [vmem:[#allocation2 + $0x368] sm:$0xf] %v1047_v26  ;;  %v6935_v30 = vld [vmem:[#allocation2 + $0x318] ss:$36 sps:$4 sm:$0xff]   ;;  %4563 = vmatmul.mubr.bf16.gmra.mxu1 %v6938_v24 }
  0xa5   : > { %v6933_v29 = vld [vmem:[#allocation2 + $0x31c] ss:$36 sps:$4 sm:$0xff]   ;;  %v1050_v33 = vsel %vm7377_vm4, %v1048_v28, %v1049_v20  ;;  %v403_v38 = vld [vmem:[%s7353_s20 + $0xa4] sm:$0x1]  ;;  %v5665_v57 = vld [vmem:[%s7353_s20 + $0xa8] sm:$0xf] }
  0xa6   : > { %v714_v31 = vsel %vm7383_vm5, %v709_v25, %v713_v9  ;;  %v724_v32 = vsel %vm7383_vm5, %v719_v27, %v723_v19  ;;  %4401 = vmatprep.mubr.bf16.mxu0 %v6933_v29  ;;  %1129 = vst [vmem:[#allocation2 + $0x38c] sm:$0xf] %v1050_v33  ;;  %v324_v34 = vld [vmem:[%s7353_s20 + $0x9c] sm:$0xf]  ;;  %v325_v35 = vld [vmem:[%s7353_s20 + $0xa0] sm:$0xf] }
  0xa7   : > { %853 = vst [vmem:[#allocation2 + $0x364] sm:$0xf] %v714_v31  ;;  %854 = vst [vmem:[#allocation2 + $0x388] sm:$0xf] %v724_v32  ;;  %v401_v36 = vld [vmem:[%s7353_s20 + $0x9c] sm:$0xf]  ;;  %4402 = vmatmul.mubr.bf16.gmra.mxu0 %v6935_v30 }
  0xa8   : > { %356 = vst [vmem:[#allocation2 + $0x3a8] sm:$0xf] %v324_v34  ;;  %357 = vst [vmem:[#allocation2 + $0x3cc] sm:$0xf] %v325_v35  ;;  %v402_v37 = vld [vmem:[%s7353_s20 + $0xa0] sm:$0xf] }
  0xa9   : > { %v726_v39 = vshrl.u32 %v401_v36, 16  ;;  %v729_v40 = vshll.u32 %v401_v36, 16  ;;  %v735_v41 = vshll.u32 %v402_v37, 16  ;;  %v739_v42 = vshrl.u32 %v402_v37, 16  ;;  %v900_v44 = vld [vmem:[%s7353_s20 + $0x9c] sm:$0xe] }
  0xaa   : > { %v745_v43 = vshll.u32 %v403_v38, 16  ;;  %v901_v47 = vld [vmem:[%s7353_s20 + $0xa0] sm:$0xf]  ;;  %v902_v48 = vld [vmem:[%s7353_s20 + $0xa4] sm:$0x1]  ;;  %v5636_v51 = vrot.slane %v900_v44, 9 }
  0xab   : > { %v728_v45 = vrot.slane %v726_v39, 4  ;;  %v731_v46 = vrot.slane %v729_v40, 5  ;;  %v737_v49 = vrot.slane %v735_v41, 5  ;;  %v741_v50 = vrot.slane %v739_v42, 4  ;;  %v5666_v58 = vld [vmem:[%s7353_s20 + $0xac] sm:$0xf] }
  0xac   : > { %v747_v55 = vrot.slane %v745_v43, 5  ;;  %v1053_v56 = vrot.slane %v901_v47, 5  ;;  %v1056_v60 = vrot.slane %v902_v48, 5  ;;  %1195 = vst [vmem:[#allocation2 + $0x3b4] sm:$0xf] %v5665_v57 }
  0xad   : > { %v732_v53 = vor.u32 %v731_v46, %v728_v45  ;;  %v742_v59 = vor.u32 %v741_v50, %v737_v49  ;;  %1196 = vst [vmem:[#allocation2 + $0x3d8] sm:$0xf] %v5666_v58  ;;  %v6941_v62 = vld [vmem:[#allocation2 + $0x360] ss:$36 sps:$4 sm:$0xff]   ;;  %v6944_v1 = vld [vmem:[#allocation2 + $0x36c] ss:$36 sps:$4 sm:$0xff]  }
  0xae   : > { %v6939_v61 = vld [vmem:[#allocation2 + $0x364] ss:$36 sps:$4 sm:$0xff]   ;;  %v1054_v0 = vsel %vm7377_vm4, %v5636_v51, %v1053_v56  ;;  %v1055_v5 = vrot.slane %v1053_v56, 4  ;;  %v327_v7 = vld [vmem:[%s7353_s20 + $0xac] sm:$0xf]  ;;  %4570 = vmatprep.mubr.bf16.mxu1 %v6944_v1 }
  0xaf   : > { %v733_v63 = vrot.slane %v732_v53, 4  ;;  %v6948_v2 = vld [vmem:[#allocation2 + $0x368] ss:$36 sps:$4 sm:$0xff]   ;;  %v743_v3 = vrot.slane %v742_v59, 4  ;;  %1130 = vst [vmem:[#allocation2 + $0x3b0] sm:$0xf] %v1054_v0  ;;  %4409 = vmatprep.mubr.bf16.mxu0 %v6939_v61 }
  0xb0   : > { %v326_v6 = vld [vmem:[%s7353_s20 + $0xa8] sm:$0xf]  ;;  %4410 = vmatmul.mubr.bf16.gmra.mxu0 %v6941_v62  ;;  %359 = vst [vmem:[#allocation2 + $0x414] sm:$0xf] %v327_v7  ;;  %v405_v10 = vld [vmem:[%s7353_s20 + $0xac] sm:$0xf]  ;;  %4571 = vmatmul.mubr.bf16.gmra.mxu1 %v6948_v2  ;;  %v1057_v12 = vsel %vm7377_vm4, %v1055_v5, %v1056_v60 }
  0xb1   : > { %v738_v4 = vsel %vm7383_vm5, %v733_v63, %v737_v49  ;;  %v748_v8 = vsel %vm7383_vm5, %v743_v3, %v747_v55  ;;  %358 = vst [vmem:[#allocation2 + $0x3f0] sm:$0xf] %v326_v6  ;;  %v404_v9 = vld [vmem:[%s7353_s20 + $0xa8] sm:$0xf]  ;;  %v406_v11 = vld [vmem:[%s7353_s20 + $0xb0] sm:$0x1] }
  0xb2   : > { %855 = vst [vmem:[#allocation2 + $0x3ac] sm:$0xf] %v738_v4  ;;  %856 = vst [vmem:[#allocation2 + $0x3d0] sm:$0xf] %v748_v8  ;;  %v750_v13 = vshrl.u32 %v404_v9, 16  ;;  %v753_v14 = vshll.u32 %v404_v9, 16 }
  0xb3   : > { %v759_v16 = vshll.u32 %v405_v10, 16  ;;  %1131 = vst [vmem:[#allocation2 + $0x3d4] sm:$0xf] %v1057_v12  ;;  %v763_v17 = vshrl.u32 %v405_v10, 16  ;;  %v769_v18 = vshll.u32 %v406_v11, 16 }
  0xb4   : > { %v752_v19 = vrot.slane %v750_v13, 4  ;;  %v755_v20 = vrot.slane %v753_v14, 5  ;;  %v903_v23 = vld [vmem:[%s7353_s20 + $0xa8] sm:$0xe]  ;;  %v904_v24 = vld [vmem:[%s7353_s20 + $0xac] sm:$0xf] }
  0xb5   : > { %v761_v21 = vrot.slane %v759_v16, 5  ;;  %v765_v22 = vrot.slane %v763_v17, 4  ;;  %v905_v26 = vld [vmem:[%s7353_s20 + $0xb0] sm:$0x1]  ;;  %v5637_v27 = vrot.slane %v903_v23, 9  ;;  %v1060_v28 = vrot.slane %v904_v24, 5 }
  0xb6   : > { %v756_v25 = vor.u32 %v755_v20, %v752_v19  ;;  %v771_v30 = vrot.slane %v769_v18, 5  ;;  %v1063_v31 = vrot.slane %v905_v26, 5  ;;  %v5667_v32 = vld [vmem:[%s7353_s20 + $0xb4] sm:$0xf]  ;;  %v5668_v33 = vld [vmem:[%s7353_s20 + $0xb8] sm:$0xf] }
  0xb7   : > { %v766_v29 = vor.u32 %v765_v22, %v761_v21  ;;  %v1061_v35 = vsel %vm7377_vm4, %v5637_v27, %v1060_v28  ;;  %v1062_v36 = vrot.slane %v1060_v28, 4  ;;  %1197 = vst [vmem:[#allocation2 + $0x3fc] sm:$0xf] %v5667_v32  ;;  %1198 = vst [vmem:[#allocation2 + $0x420] sm:$0xf] %v5668_v33 }
  0xb8   : > { %v757_v34 = vrot.slane %v756_v25, 4  ;;  %v6951_v38 = vld [vmem:[#allocation2 + $0x3a8] ss:$36 sps:$4 sm:$0xff]   ;;  %1132 = vst [vmem:[#allocation2 + $0x3f8] sm:$0xf] %v1061_v35 }
  0xb9   : > { %v6949_v37 = vld [vmem:[#allocation2 + $0x3ac] ss:$36 sps:$4 sm:$0xff]   ;;  %v767_v39 = vrot.slane %v766_v29, 4  ;;  %v6952_v40 = vld [vmem:[#allocation2 + $0x3b4] ss:$36 sps:$4 sm:$0xff]   ;;  %v1064_v43 = vsel %vm7377_vm4, %v1062_v36, %v1063_v31 }
  0xba   : > { %v6954_v41 = vld [vmem:[#allocation2 + $0x3b0] ss:$36 sps:$4 sm:$0xff]   ;;  %v762_v42 = vsel %vm7383_vm5, %v757_v34, %v761_v21  ;;  %4417 = vmatprep.mubr.bf16.mxu0 %v6949_v37  ;;  %1133 = vst [vmem:[#allocation2 + $0x41c] sm:$0xf] %v1064_v43  ;;  %4578 = vmatprep.mubr.bf16.mxu1 %v6952_v40  ;;  %v329_v46 = vld [vmem:[%s7353_s20 + $0xb8] sm:$0xf] }
  0xbb   : > { %v772_v44 = vsel %vm7383_vm5, %v767_v39, %v771_v30  ;;  %857 = vst [vmem:[#allocation2 + $0x3f4] sm:$0xf] %v762_v42  ;;  %4418 = vmatmul.mubr.bf16.gmra.mxu0 %v6951_v38  ;;  %4579 = vmatmul.mubr.bf16.gmra.mxu1 %v6954_v41  ;;  %v328_v45 = vld [vmem:[%s7353_s20 + $0xb4] sm:$0xf]  ;;  %361 = vst [vmem:[#allocation2 + $0x45c] sm:$0xf] %v329_v46 }
  0xbc   : > { %858 = vst [vmem:[#allocation2 + $0x418] sm:$0xf] %v772_v44  ;;  %360 = vst [vmem:[#allocation2 + $0x438] sm:$0xf] %v328_v45  ;;  %v407_v47 = vld [vmem:[%s7353_s20 + $0xb4] sm:$0xf] }
  0xbd   : > { %v408_v48 = vld [vmem:[%s7353_s20 + $0xb8] sm:$0xf]  ;;  %v409_v49 = vld [vmem:[%s7353_s20 + $0xbc] sm:$0x1]  ;;  %v774_v50 = vshrl.u32 %v407_v47, 16  ;;  %v777_v51 = vshll.u32 %v407_v47, 16 }
  0xbe   : > { %v783_v53 = vshll.u32 %v408_v48, 16  ;;  %v787_v55 = vshrl.u32 %v408_v48, 16  ;;  %v793_v56 = vshll.u32 %v409_v49, 16  ;;  %v906_v57 = vld [vmem:[%s7353_s20 + $0xb4] sm:$0xe] }
  0xbf   : > { %v776_v58 = vrot.slane %v774_v50, 4  ;;  %v779_v59 = vrot.slane %v777_v51, 5  ;;  %v907_v62 = vld [vmem:[%s7353_s20 + $0xb8] sm:$0xf]  ;;  %v6961_v63 = vld [vmem:[#allocation2 + $0x3fc] ss:$36 sps:$4 sm:$0xff]  }
  0xc0   : > { %v785_v60 = vrot.slane %v783_v53, 5  ;;  %v789_v61 = vrot.slane %v787_v55, 4  ;;  %v795_v0 = vrot.slane %v793_v56, 5  ;;  %v5638_v1 = vrot.slane %v906_v57, 9  ;;  %v6959_v3 = vld [vmem:[#allocation2 + $0x3f0] ss:$36 sps:$4 sm:$0xff]   ;;  %4586 = vmatprep.mubr.bf16.mxu1 %v6961_v63 }
  0xc1   : > { %v780_v4 = vor.u32 %v779_v59, %v776_v58  ;;  %v1067_v6 = vrot.slane %v907_v62, 5  ;;  %v6964_v7 = vld [vmem:[#allocation2 + $0x3f8] ss:$36 sps:$4 sm:$0xff]   ;;  %v5669_v9 = vld [vmem:[%s7353_s20 + $0xc0] sm:$0xf] }
  0xc2   : > { %v790_v5 = vor.u32 %v789_v61, %v785_v60  ;;  %v908_v8 = vld [vmem:[%s7353_s20 + $0xbc] sm:$0x1]  ;;  %v5670_v14 = vld [vmem:[%s7353_s20 + $0xc4] sm:$0xf]  ;;  %1199 = vst [vmem:[#allocation2 + $0x444] sm:$0xf] %v5669_v9 }
  0xc3   : > { %v6956_v2 = vld [vmem:[#allocation2 + $0x3f4] ss:$36 sps:$4 sm:$0xff]   ;;  %v781_v10 = vrot.slane %v780_v4, 4  ;;  %v1068_v12 = vsel %vm7377_vm4, %v5638_v1, %v1067_v6  ;;  %v1069_v13 = vrot.slane %v1067_v6, 4  ;;  %4587 = vmatmul.mubr.bf16.gmra.mxu1 %v6964_v7  ;;  %v1070_v16 = vrot.slane %v908_v8, 5 }
  0xc4   : > { %4425 = vmatprep.mubr.bf16.mxu0 %v6956_v2  ;;  %v791_v11 = vrot.slane %v790_v5, 4  ;;  %1134 = vst [vmem:[#allocation2 + $0x440] sm:$0xf] %v1068_v12  ;;  %1200 = vst [vmem:[#allocation2 + $0x468] sm:$0xf] %v5670_v14 }
  0xc5   : > { %4426 = vmatmul.mubr.bf16.gmra.mxu0 %v6959_v3  ;;  %v786_v17 = vsel %vm7383_vm5, %v781_v10, %v785_v60  ;;  %v1071_v19 = vsel %vm7377_vm4, %v1069_v13, %v1070_v16  ;;  %v5671_v20 = vld [vmem:[%s7353_s20 + $0xc] sm:$0xf]  ;;  %v5672_v21 = vld [vmem:[%s7353_s20 + $0x10] sm:$0xf]  ;;  %v5673_v22 = vld [vmem:[%s7353_s20 + $0x14] sm:$0x1] }
  0xc6   : > { %v796_v18 = vsel %vm7383_vm5, %v791_v11, %v795_v0  ;;  %859 = vst [vmem:[#allocation2 + $0x43c] sm:$0xf] %v786_v17  ;;  %1135 = vst [vmem:[#allocation2 + $0x464] sm:$0xf] %v1071_v19  ;;  %v1250_v23 = vshrl.u32 %v5671_v20, 16  ;;  %v1253_v24 = vshll.u32 %v5671_v20, 16 }
  0xc7   : > { %860 = vst [vmem:[#allocation2 + $0x460] sm:$0xf] %v796_v18  ;;  %v1259_v25 = vshll.u32 %v5672_v21, 16  ;;  %v1263_v26 = vshrl.u32 %v5672_v21, 16  ;;  %v1269_v27 = vshll.u32 %v5673_v22, 16 }
  0xc8   : > { %v5719_v28 = vld [vmem:[%s7353_s20 + $0xc] sm:$0xe]  ;;  %v5720_v29 = vld [vmem:[%s7353_s20 + $0x10] sm:$0xf]  ;;  %v1252_v30 = vrot.slane %v1250_v23, 4  ;;  %v1255_v31 = vrot.slane %v1253_v24, 5 }
  0xc9   : > { %v1261_v32 = vrot.slane %v1259_v25, 5  ;;  %v1265_v33 = vrot.slane %v1263_v26, 4  ;;  %v5721_v34 = vld [vmem:[%s7353_s20 + $0x14] sm:$0x1]  ;;  %v5767_v35 = vrot.slane %v5719_v28, 9  ;;  %v1795_v36 = vrot.slane %v5720_v29, 5 }
  0xca   : > { %v1798_v37 = vrot.slane %v5721_v34, 5  ;;  %v1256_v38 = vor.u32 %v1255_v31, %v1252_v30  ;;  %v1271_v40 = vrot.slane %v1269_v27, 5  ;;  %v5783_v43 = vld [vmem:[%s7353_s20 + $0x18] sm:$0xf]  ;;  %v5784_v55 = vld [vmem:[%s7353_s20 + $0x1c] sm:$0xf] }
  0xcb   : > { %v1266_v39 = vor.u32 %v1265_v33, %v1261_v32  ;;  %v1796_v41 = vsel %vm7377_vm4, %v5767_v35, %v1795_v36  ;;  %v1797_v42 = vrot.slane %v1795_v36, 4  ;;  %2002 = vst [vmem:[#allocation2 + $0x18] sm:$0xf] %v5783_v43  ;;  %v6971_v47 = vld [vmem:[#allocation2 + $0x438] ss:$36 sps:$4 sm:$0xff]  }
  0xcc   : > { %v1257_v45 = vrot.slane %v1256_v38, 4  ;;  %1937 = vst [vmem:[#allocation2 + $0x14] sm:$0xf] %v1796_v41  ;;  %v6972_v48 = vld [vmem:[#allocation2 + $0x444] ss:$36 sps:$4 sm:$0xff]  }
  0xcd   : > { %v1267_v46 = vrot.slane %v1266_v39, 4  ;;  %v1799_v49 = vsel %vm7377_vm4, %v1797_v42, %v1798_v37  ;;  %v6974_v50 = vld [vmem:[#allocation2 + $0x440] ss:$36 sps:$4 sm:$0xff]   ;;  %v5815_v56 = vld [vmem:[%s7353_s20 + $0x18] sm:$0xf]  ;;  %4594 = vmatprep.mubr.bf16.mxu1 %v6972_v48  ;;  %v6995_v39 = vld [vmem:[%s9591_s2 + $0x230] sm:$0xff]  }
  0xce   : > { %v6968_v44 = vld [vmem:[#allocation2 + $0x43c] ss:$36 sps:$4 sm:$0xff]   ;;  %v1262_v51 = vsel %vm7383_vm5, %v1257_v45, %v1261_v32  ;;  %1938 = vst [vmem:[#allocation2 + $0x38] sm:$0xf] %v1799_v49  ;;  %2003 = vst [vmem:[#allocation2 + $0x3c] sm:$0xf] %v5784_v55  ;;  %4595 = vmatmul.mubr.bf16.gmra.mxu1 %v6974_v50 }
  0xcf   : > { %4433 = vmatprep.mubr.bf16.mxu0 %v6968_v44  ;;  %v1272_v53 = vsel %vm7383_vm5, %v1267_v46, %v1271_v40  ;;  %1665 = vst [vmem:[#allocation2 + $0x10] sm:$0xf] %v1262_v51  ;;  %v5816_v57 = vld [vmem:[%s7353_s20 + $0x1c] sm:$0xf]  ;;  %v5817_v58 = vld [vmem:[%s7353_s20 + $0x20] sm:$0x1] }
  0xd0   : > { %4434 = vmatmul.mubr.bf16.gmra.mxu0 %v6971_v47  ;;  %1666 = vst [vmem:[#allocation2 + $0x34] sm:$0xf] %v1272_v53  ;;  %v2083_v59 = vshrl.u32 %v5815_v56, 16  ;;  %v2086_v60 = vshll.u32 %v5815_v56, 16  ;;  %v2092_v61 = vshll.u32 %v5816_v57, 16  ;;  %v2096_v62 = vshrl.u32 %v5816_v57, 16 }
  0xd1   : > { %v2102_v63 = vshll.u32 %v5817_v58, 16  ;;  %v5674_v0 = vld [vmem:[%s7353_s20 + $0x18] sm:$0xf]  ;;  %v5675_v3 = vld [vmem:[%s7353_s20 + $0x1c] sm:$0xf]  ;;  %v7008_v58 = vld [vmem:[%s9591_s2 + $0x228] sm:$0xff]  }
  0xd2   : > { %v2085_v1 = vrot.slane %v2083_v59, 4  ;;  %v2088_v2 = vrot.slane %v2086_v60, 5  ;;  %v5676_v4 = vld [vmem:[%s7353_s20 + $0x20] sm:$0x1]  ;;  %v2094_v5 = vrot.slane %v2092_v61, 5  ;;  %v2098_v6 = vrot.slane %v2096_v62, 4 }
  0xd3   : > { %v2104_v7 = vrot.slane %v2102_v63, 5  ;;  %v1274_v8 = vshrl.u32 %v5674_v0, 16  ;;  %v5722_v9 = vld [vmem:[%s7353_s20 + $0x18] sm:$0xe]  ;;  %v1277_v11 = vshll.u32 %v5674_v0, 16  ;;  %v1283_v12 = vshll.u32 %v5675_v3, 16 }
  0xd4   : > { %v2089_v10 = vor.u32 %v2088_v2, %v2085_v1  ;;  %v1287_v13 = vshrl.u32 %v5675_v3, 16  ;;  %v5723_v14 = vld [vmem:[%s7353_s20 + $0x1c] sm:$0xf]  ;;  %v2099_v16 = vor.u32 %v2098_v6, %v2094_v5  ;;  %v1293_v18 = vshll.u32 %v5676_v4, 16  ;;  %v5724_v19 = vld [vmem:[%s7353_s20 + $0x20] sm:$0x1] }
  0xd5   : > { %v1276_v17 = vrot.slane %v1274_v8, 4  ;;  %v5768_v20 = vrot.slane %v5722_v9, 9  ;;  %v1279_v22 = vrot.slane %v1277_v11, 5  ;;  %v1285_v23 = vrot.slane %v1283_v12, 5  ;;  %v5785_v25 = vld [vmem:[%s7353_s20 + $0x24] sm:$0xf] }
  0xd6   : > { %v2090_v21 = vrot.slane %v2089_v10, 4  ;;  %v1289_v24 = vrot.slane %v1287_v13, 4  ;;  %v2100_v27 = vrot.slane %v2099_v16, 4  ;;  %v1295_v28 = vrot.slane %v1293_v18, 5  ;;  %2004 = vst [vmem:[#allocation2 + $0x60] sm:$0xf] %v5785_v25 }
  0xd7   : > { %v6978_v26 = vld [vmem:[#allocation2 + $0x10] ss:$36 sps:$4 sm:$0xff]   ;;  %v1280_v31 = vor.u32 %v1279_v22, %v1276_v17  ;;  %v1802_v33 = vrot.slane %v5723_v14, 5  ;;  %v5786_v34 = vld [vmem:[%s7353_s20 + $0x28] sm:$0xf]  ;;  %v1805_v36 = vrot.slane %v5724_v19, 5 }
  0xd8   : > { %v6980_v29 = vld [vmem:[#allocation2 + $0x14] ss:$36 sps:$4 sm:$0xff]   ;;  %v2095_v30 = vsel %vm7383_vm5, %v2090_v21, %v2094_v5  ;;  %v1290_v32 = vor.u32 %v1289_v24, %v1285_v23  ;;  %v2105_v35 = vsel %vm7383_vm5, %v2100_v27, %v2104_v7  ;;  %2005 = vst [vmem:[#allocation2 + $0x84] sm:$0xf] %v5786_v34  ;;  %v5818_v37 = vld [vmem:[%s7353_s20 + $0x24] sm:$0xf] }
  0xd9   : > { %2498 = vst [vmem:[#allocation2 + $0x1c] sm:$0xf] %v2095_v30  ;;  %v5819_v38 = vld [vmem:[%s7353_s20 + $0x28] sm:$0xf]  ;;  %4635 = vmatprep.mubr.bf16.mxu0 %v6980_v29  ;;  %2499 = vst [vmem:[#allocation2 + $0x40] sm:$0xf] %v2105_v35  ;;  %v1803_v42 = vsel %vm7377_vm4, %v5768_v20, %v1802_v33 }
  0xda   : > { %v1281_v40 = vrot.slane %v1280_v31, 4  ;;  %v1291_v41 = vrot.slane %v1290_v32, 4  ;;  %v1804_v43 = vrot.slane %v1802_v33, 4  ;;  %v5820_v44 = vld [vmem:[%s7353_s20 + $0x2c] sm:$0x1]  ;;  %4636 = vmatmul.mubr.bf16.vlgmr.msra.gmra.mxu0 %v6978_v26  ;;  %v2107_v45 = vshrl.u32 %v5818_v37, 16 }
  0xdb   : > { %1939 = vst [vmem:[#allocation2 + $0x5c] sm:$0xf] %v1803_v42  ;;  %v2110_v46 = vshll.u32 %v5818_v37, 16  ;;  %v2116_v47 = vshll.u32 %v5819_v38, 16  ;;  %v2120_v48 = vshrl.u32 %v5819_v38, 16  ;;  %6658 = vmatpush3.bf16.msra.mxu0 %v7667_v15  ;;  %v2126_v55 = vshll.u32 %v5820_v44, 16 }
  0xdc   : > { %v5677_v49 = vld [vmem:[%s7353_s20 + $0x24] sm:$0xf]  ;;  %v1286_v50 = vsel %vm7383_vm5, %v1281_v40, %v1285_v23  ;;  %v1296_v51 = vsel %vm7383_vm5, %v1291_v41, %v1295_v28  ;;  %v1806_v53 = vsel %vm7377_vm4, %v1804_v43, %v1805_v36  ;;  %v5678_v56 = vld [vmem:[%s7353_s20 + $0x28] sm:$0xf]  ;;  %v5679_v57 = vld [vmem:[%s7353_s20 + $0x2c] sm:$0x1]  ;;  %6659 = vmatprep.subr.bf16.mxu0 %v6995_v39 }
  0xdd   : > { %1667 = vst [vmem:[#allocation2 + $0x58] sm:$0xf] %v1286_v50  ;;  %1668 = vst [vmem:[#allocation2 + $0x7c] sm:$0xf] %v1296_v51  ;;  %v2109_v15 = vrot.slane %v2107_v45, 4  ;;  %v2112_v59 = vrot.slane %v2110_v46, 5 }
  0xde   : > { %1940 = vst [vmem:[#allocation2 + $0x80] sm:$0xf] %v1806_v53  ;;  %v2118_v60 = vrot.slane %v2116_v47, 5  ;;  %v2122_v61 = vrot.slane %v2120_v48, 4  ;;  %v5725_v62 = vld [vmem:[%s7353_s20 + $0x24] sm:$0xe] }
  0xdf   : > { %v2128_v63 = vrot.slane %v2126_v55, 5  ;;  %v1298_v0 = vshrl.u32 %v5677_v49, 16  ;;  %v1301_v1 = vshll.u32 %v5677_v49, 16  ;;  %v1307_v2 = vshll.u32 %v5678_v56, 16  ;;  %v5726_v3 = vld [vmem:[%s7353_s20 + $0x28] sm:$0xf]  ;;  %6660 = vmatpush3.bf16.msra.mxu0 %v6995_v39 }
  0xe0   : > { %v2113_v4 = vor.u32 %v2112_v59, %v2109_v15  ;;  %v2123_v5 = vor.u32 %v2122_v61, %v2118_v60  ;;  %v1311_v6 = vshrl.u32 %v5678_v56, 16  ;;  %v1317_v7 = vshll.u32 %v5679_v57, 16  ;;  %v5727_v8 = vld [vmem:[%s7353_s20 + $0x2c] sm:$0x1]  ;;  %v7021_v13 = vld [vmem:[%s9591_s2 + $0x220] sm:$0xff]   ;;  %6661 = vmatprep.subr.bf16.mxu0 %v7008_v58  ;;  %v7034_v35 = vld [vmem:[%s9591_s2 + $0x218] sm:$0xff]  }
  0xe1   : > { %v1300_v9 = vrot.slane %v1298_v0, 4  ;;  %v1303_v10 = vrot.slane %v1301_v1, 5  ;;  %v1309_v11 = vrot.slane %v1307_v2, 5  ;;  %v5769_v12 = vrot.slane %v5725_v62, 9  ;;  %v6983_v14 = vld [vmem:[#allocation2 + $0x18] ss:$36 sps:$4 sm:$0xff]  }
  0xe2   : > { %v6985_v16 = vld [vmem:[#allocation2 + $0x1c] ss:$36 sps:$4 sm:$0xff]   ;;  %v2114_v17 = vrot.slane %v2113_v4, 4  ;;  %v2124_v18 = vrot.slane %v2123_v5, 4  ;;  %v1313_v20 = vrot.slane %v1311_v6, 4  ;;  %v1809_v22 = vrot.slane %v5726_v3, 5 }
  0xe3   : > { %v1304_v19 = vor.u32 %v1303_v10, %v1300_v9  ;;  %4796 = vmatprep.mubr.bf16.mxu1 %v6985_v16  ;;  %v1812_v23 = vrot.slane %v5727_v8, 5  ;;  %v5787_v24 = vld [vmem:[%s7353_s20 + $0x30] sm:$0xf]  ;;  %v5788_v25 = vld [vmem:[%s7353_s20 + $0x34] sm:$0xf]  ;;  %v1319_v30 = vrot.slane %v1317_v7, 5  ;;  %6662 = vmatpush3.bf16.msra.mxu0 %v7008_v58 }
  0xe4   : > { %v2119_v21 = vsel %vm7383_vm5, %v2114_v17, %v2118_v60  ;;  %4797 = vmatmul.mubr.bf16.vlgmr.msra.gmra.mxu1 %v6983_v14  ;;  %v2129_v27 = vsel %vm7383_vm5, %v2124_v18, %v2128_v63  ;;  %v1314_v29 = vor.u32 %v1313_v20, %v1309_v11  ;;  %2006 = vst [vmem:[#allocation2 + $0xa8] sm:$0xf] %v5787_v24  ;;  %2007 = vst [vmem:[#allocation2 + $0xcc] sm:$0xf] %v5788_v25  ;;  %v6988_v31 = vld [vmem:[#allocation2 + $0x58] ss:$36 sps:$4 sm:$0xff]  }
  0xe5   : > { %v6986_v26 = vld [vmem:[#allocation2 + $0x5c] ss:$36 sps:$4 sm:$0xff]   ;;  %2500 = vst [vmem:[#allocation2 + $0x64] sm:$0xf] %v2119_v21  ;;  %v1305_v28 = vrot.slane %v1304_v19, 4  ;;  %v1810_v32 = vsel %vm7377_vm4, %v5769_v12, %v1809_v22  ;;  %v1811_v33 = vrot.slane %v1809_v22, 4  ;;  %6663 = vmatprep.subr.bf16.mxu0 %v7021_v13 }
  0xe6   : > { %2501 = vst [vmem:[#allocation2 + $0x88] sm:$0xf] %v2129_v27  ;;  %v5821_v34 = vld [vmem:[%s7353_s20 + $0x30] sm:$0xf]  ;;  %4643 = vmatprep.mubr.bf16.mxu0 %v6986_v26  ;;  %v1315_v37 = vrot.slane %v1314_v29, 4  ;;  %v7060_v4 = vld [vmem:[%s9591_s2 + $0x208] sm:$0xff]  }
  0xe7   : > { %v1310_v36 = vsel %vm7383_vm5, %v1305_v28, %v1309_v11  ;;  %1941 = vst [vmem:[#allocation2 + $0xa4] sm:$0xf] %v1810_v32  ;;  %v5822_v38 = vld [vmem:[%s7353_s20 + $0x34] sm:$0xf]  ;;  %v5823_v39 = vld [vmem:[%s7353_s20 + $0x38] sm:$0x1]  ;;  %4644 = vmatmul.mubr.bf16.gmra.mxu0 %v6988_v31  ;;  %v1813_v41 = vsel %vm7377_vm4, %v1811_v33, %v1812_v23 }
  0xe8   : > { %v2131_v40 = vshrl.u32 %v5821_v34, 16  ;;  %1669 = vst [vmem:[#allocation2 + $0xa0] sm:$0xf] %v1310_v36  ;;  %v2134_v42 = vshll.u32 %v5821_v34, 16  ;;  %v2140_v43 = vshll.u32 %v5822_v38, 16  ;;  %v2144_v44 = vshrl.u32 %v5822_v38, 16  ;;  %6664 = vmatpush3.bf16.msra.mxu0 %v7021_v13 }
  0xe9   : > { %v5680_v45 = vld [vmem:[%s7353_s20 + $0x30] sm:$0xf]  ;;  %v1320_v47 = vsel %vm7383_vm5, %v1315_v37, %v1319_v30  ;;  %1942 = vst [vmem:[#allocation2 + $0xc8] sm:$0xf] %v1813_v41  ;;  %v2150_v49 = vshll.u32 %v5823_v39, 16  ;;  %6665 = vmatprep.subr.bf16.mxu0 %v7034_v35 }
  0xea   : > { %v7047_v46 = vld [vmem:[%s9591_s2 + $0x210] sm:$0xff]   ;;  %v2133_v48 = vrot.slane %v2131_v40, 4  ;;  %v5682_v51 = vld [vmem:[%s7353_s20 + $0x38] sm:$0x1]  ;;  %1670 = vst [vmem:[#allocation2 + $0xc4] sm:$0xf] %v1320_v47 }
  0xeb   : > { %v5681_v50 = vld [vmem:[%s7353_s20 + $0x34] sm:$0xf]  ;;  %v2136_v53 = vrot.slane %v2134_v42, 5  ;;  %v2142_v55 = vrot.slane %v2140_v43, 5  ;;  %v2146_v56 = vrot.slane %v2144_v44, 4  ;;  %v1322_v57 = vshrl.u32 %v5680_v45, 16 }
  0xec   : > { %v5728_v58 = vld [vmem:[%s7353_s20 + $0x30] sm:$0xe]  ;;  %v2152_v15 = vrot.slane %v2150_v49, 5  ;;  %v1325_v59 = vshll.u32 %v5680_v45, 16  ;;  %v1331_v60 = vshll.u32 %v5681_v50, 16  ;;  %v1335_v61 = vshrl.u32 %v5681_v50, 16  ;;  %6666 = vmatpush3.bf16.msra.mxu0 %v7034_v35 }
  0xed   : > { %v5729_v62 = vld [vmem:[%s7353_s20 + $0x34] sm:$0xf]  ;;  %v2137_v63 = vor.u32 %v2136_v53, %v2133_v48  ;;  %v2147_v0 = vor.u32 %v2146_v56, %v2142_v55  ;;  %v1324_v1 = vrot.slane %v1322_v57, 4  ;;  %v1341_v2 = vshll.u32 %v5682_v51, 16  ;;  %v5730_v3 = vld [vmem:[%s7353_s20 + $0x38] sm:$0x1]  ;;  %6667 = vmatprep.subr.bf16.mxu0 %v7047_v46 }
  0xee   : > { %v6989_v5 = vld [vmem:[#allocation2 + $0x64] ss:$36 sps:$4 sm:$0xff]   ;;  %v1327_v7 = vrot.slane %v1325_v59, 5  ;;  %v1333_v10 = vrot.slane %v1331_v60, 5  ;;  %v1337_v11 = vrot.slane %v1335_v61, 4  ;;  %v5770_v16 = vrot.slane %v5728_v58, 9 }
  0xef   : > { %v6991_v6 = vld [vmem:[#allocation2 + $0x60] ss:$36 sps:$4 sm:$0xff]   ;;  %v2138_v8 = vrot.slane %v2137_v63, 4  ;;  %v2148_v9 = vrot.slane %v2147_v0, 4  ;;  %v5789_v12 = vld [vmem:[%s7353_s20 + $0x3c] sm:$0xf]  ;;  %4804 = vmatprep.mubr.bf16.mxu1 %v6989_v5 }
  0xf0   : > { %v1328_v13 = vor.u32 %v1327_v7, %v1324_v1  ;;  %v1343_v14 = vrot.slane %v1341_v2, 5  ;;  %v1816_v17 = vrot.slane %v5729_v62, 5  ;;  %v5790_v18 = vld [vmem:[%s7353_s20 + $0x40] sm:$0xf]  ;;  %2008 = vst [vmem:[#allocation2 + $0xf0] sm:$0xf] %v5789_v12  ;;  %4805 = vmatmul.mubr.bf16.gmra.mxu1 %v6991_v6  ;;  %v1338_v21 = vor.u32 %v1337_v11, %v1333_v10  ;;  %6668 = vmatpush3.bf16.msra.mxu0 %v7047_v46 }
  0xf1   : > { %v2143_v19 = vsel %vm7383_vm5, %v2138_v8, %v2142_v55  ;;  %v2153_v20 = vsel %vm7383_vm5, %v2148_v9, %v2152_v15  ;;  %v1819_v22 = vrot.slane %v5730_v3, 5  ;;  %2009 = vst [vmem:[#allocation2 + $0x114] sm:$0xf] %v5790_v18  ;;  %v5824_v23 = vld [vmem:[%s7353_s20 + $0x3c] sm:$0xf]  ;;  %6669 = vmatprep.subr.bf16.mxu0 %v7060_v4 }
  0xf2   : > { %v5825_v24 = vld [vmem:[%s7353_s20 + $0x40] sm:$0xf]  ;;  %v6992_v25 = vld [vmem:[#allocation2 + $0xa4] ss:$36 sps:$4 sm:$0xff]   ;;  %2502 = vst [vmem:[#allocation2 + $0xac] sm:$0xf] %v2143_v19  ;;  %v1817_v28 = vsel %vm7377_vm4, %v5770_v16, %v1816_v17 }
  0xf3   : > { %v6994_v26 = vld [vmem:[#allocation2 + $0xa0] ss:$36 sps:$4 sm:$0xff]   ;;  %2503 = vst [vmem:[#allocation2 + $0xd0] sm:$0xf] %v2153_v20  ;;  %v1329_v27 = vrot.slane %v1328_v13, 4  ;;  %v1339_v29 = vrot.slane %v1338_v21, 4  ;;  %4651 = vmatprep.mubr.bf16.mxu0 %v6992_v25 }
  0xf4   : > { %v1818_v30 = vrot.slane %v1816_v17, 4  ;;  %1943 = vst [vmem:[#allocation2 + $0xec] sm:$0xf] %v1817_v28  ;;  %v5826_v31 = vld [vmem:[%s7353_s20 + $0x44] sm:$0x1]  ;;  %v2155_v32 = vshrl.u32 %v5824_v23, 16  ;;  %4652 = vmatmul.mubr.bf16.gmra.mxu0 %v6994_v26 }
  0xf5   : > { %v2158_v33 = vshll.u32 %v5824_v23, 16  ;;  %v1334_v34 = vsel %vm7383_vm5, %v1329_v27, %v1333_v10  ;;  %v2164_v35 = vshll.u32 %v5825_v24, 16  ;;  %v2168_v36 = vshrl.u32 %v5825_v24, 16  ;;  %v5683_v38 = vld [vmem:[%s7353_s20 + $0x3c] sm:$0xf]  ;;  %6670 = vmatpush3.bf16.msra.mxu0 %v7060_v4  ;;  %v7073_v27 = vld [vmem:[%s9591_s2 + $0x200] sm:$0xff]  }
  0xf6   : > { %v2174_v37 = vshll.u32 %v5826_v31, 16  ;;  %v1344_v39 = vsel %vm7383_vm5, %v1339_v29, %v1343_v14  ;;  %1671 = vst [vmem:[#allocation2 + $0xe8] sm:$0xf] %v1334_v34  ;;  %v1820_v40 = vsel %vm7377_vm4, %v1818_v30, %v1819_v22  ;;  %v2157_v41 = vrot.slane %v2155_v32, 4  ;;  %v5684_v43 = vld [vmem:[%s7353_s20 + $0x40] sm:$0xf]  ;;  %v6167_v34 = vpop.f32.mrf.mxu0  ;;  %6671 = vmatprep.subr.bf16.mxu0 %v7073_v27 }
  0xf7   : > { %v2160_v42 = vrot.slane %v2158_v33, 5  ;;  %v5685_v44 = vld [vmem:[%s7353_s20 + $0x44] sm:$0x1]  ;;  %1672 = vst [vmem:[#allocation2 + $0x10c] sm:$0xf] %v1344_v39  ;;  %v2166_v45 = vrot.slane %v2164_v35, 5 }
  0xf8   : > { %1944 = vst [vmem:[#allocation2 + $0x110] sm:$0xf] %v1820_v40  ;;  %v2170_v46 = vrot.slane %v2168_v36, 4  ;;  %v2176_v47 = vrot.slane %v2174_v37, 5  ;;  %v1346_v48 = vshrl.u32 %v5683_v38, 16  ;;  %v1349_v51 = vshll.u32 %v5683_v38, 16  ;;  %v6279_v40 = vpop.f32.mrf.mxu1 }
  0xf9   : > { %v5731_v49 = vld [vmem:[%s7353_s20 + $0x3c] sm:$0xe]  ;;  %v2161_v50 = vor.u32 %v2160_v42, %v2157_v41  ;;  %v1355_v53 = vshll.u32 %v5684_v43, 16  ;;  %v1359_v55 = vshrl.u32 %v5684_v43, 16  ;;  %v5732_v56 = vld [vmem:[%s7353_s20 + $0x40] sm:$0xf]  ;;  %6672 = vmatpush3.bf16.msra.mxu0 %v7073_v27 }
  0xfa   : > { %v2171_v57 = vor.u32 %v2170_v46, %v2166_v45  ;;  %v1348_v58 = vrot.slane %v1346_v48, 4  ;;  %v1365_v15 = vshll.u32 %v5685_v44, 16  ;;  %v5733_v59 = vld [vmem:[%s7353_s20 + $0x44] sm:$0x1]  ;;  %v5771_v60 = vrot.slane %v5731_v49, 9  ;;  %v6168_v46 = vpop.f32.mrf.mxu0 }
  0xfb   : > { %v6996_v61 = vld [vmem:[#allocation2 + $0xac] ss:$36 sps:$4 sm:$0xff]   ;;  %v2162_v62 = vrot.slane %v2161_v50, 4  ;;  %v1351_v63 = vrot.slane %v1349_v51, 5  ;;  %v1357_v2 = vrot.slane %v1355_v53, 5  ;;  %v1361_v3 = vrot.slane %v1359_v55, 4  ;;  %v6280_v53 = vpop.f32.mrf.mxu1 }
  0xfc   : > { %v6998_v0 = vld [vmem:[#allocation2 + $0xa8] ss:$36 sps:$4 sm:$0xff]   ;;  %v2172_v1 = vrot.slane %v2171_v57, 4  ;;  %4812 = vmatprep.mubr.bf16.mxu1 %v6996_v61  ;;  %v1367_v6 = vrot.slane %v1365_v15, 5  ;;  %v1823_v7 = vrot.slane %v5732_v56, 5  ;;  %v1826_v10 = vrot.slane %v5733_v59, 5  ;;  %v7906_v59 = vpop.f32.mrf.mxu0 }
  0xfd   : > { %v2167_v4 = vsel %vm7383_vm5, %v2162_v62, %v2166_v45  ;;  %v1352_v5 = vor.u32 %v1351_v63, %v1348_v58  ;;  %4813 = vmatmul.mubr.bf16.gmra.mxu1 %v6998_v0  ;;  %v1362_v9 = vor.u32 %v1361_v3, %v1357_v2  ;;  %v5791_v11 = vld [vmem:[%s7353_s20 + $0x48] sm:$0xf]  ;;  %v5792_v12 = vld [vmem:[%s7353_s20 + $0x4c] sm:$0xf]  ;;  %v5829_v23 = vld [vmem:[%s7353_s20 + $0x50] sm:$0x1]  ;;  %v7904_v15 = vadd.f32 %v6168_v46, %v6167_v34 }
  0xfe   : > { %v2177_v8 = vsel %vm7383_vm5, %v2172_v1, %v2176_v47  ;;  %2504 = vst [vmem:[#allocation2 + $0xf4] sm:$0xf] %v2167_v4  ;;  %v7001_v14 = vld [vmem:[#allocation2 + $0xe8] ss:$36 sps:$4 sm:$0xff]   ;;  %v1824_v17 = vsel %vm7377_vm4, %v5771_v60, %v1823_v7  ;;  %2010 = vst [vmem:[#allocation2 + $0x138] sm:$0xf] %v5791_v11  ;;  %v7908_v60 = vadd.f32 %v6280_v53, %v6279_v40 }
  0xff   : > { %v6999_v13 = vld [vmem:[#allocation2 + $0xec] ss:$36 sps:$4 sm:$0xff]   ;;  %2505 = vst [vmem:[#allocation2 + $0x118] sm:$0xf] %v2177_v8  ;;  %v1353_v16 = vrot.slane %v1352_v5, 4  ;;  %v1363_v18 = vrot.slane %v1362_v9, 4  ;;  %v7914_v8 = vpop.f32.mrf.mxu0 }
 0x100   : > { %2011 = vst [vmem:[#allocation2 + $0x15c] sm:$0xf] %v5792_v12  ;;  %v1825_v19 = vrot.slane %v1823_v7, 4  ;;  %1945 = vst [vmem:[#allocation2 + $0x134] sm:$0xf] %v1824_v17  ;;  %4659 = vmatprep.mubr.bf16.mxu0 %v6999_v13  ;;  %v2198_v31 = vshll.u32 %v5829_v23, 16 }
 0x101   : > { %v5827_v20 = vld [vmem:[%s7353_s20 + $0x48] sm:$0xf]  ;;  %v5828_v21 = vld [vmem:[%s7353_s20 + $0x4c] sm:$0xf]  ;;  %v1358_v22 = vsel %vm7383_vm5, %v1353_v16, %v1357_v2  ;;  %4660 = vmatmul.mubr.bf16.gmra.mxu0 %v7001_v14  ;;  %v1368_v28 = vsel %vm7383_vm5, %v1363_v18, %v1367_v6  ;;  %v5688_v38 = vld [vmem:[%s7353_s20 + $0x50] sm:$0x1]  ;;  %v7911_v2 = vpop.f32.mrf.mxu1 }
 0x102   : > { %v2179_v24 = vshrl.u32 %v5827_v20, 16  ;;  %v2182_v25 = vshll.u32 %v5827_v20, 16  ;;  %v2188_v26 = vshll.u32 %v5828_v21, 16  ;;  %1673 = vst [vmem:[#allocation2 + $0x130] sm:$0xf] %v1358_v22  ;;  %v1827_v29 = vsel %vm7377_vm4, %v1825_v19, %v1826_v10 }
 0x103   : > { %v2192_v30 = vshrl.u32 %v5828_v21, 16  ;;  %v5686_v32 = vld [vmem:[%s7353_s20 + $0x48] sm:$0xf]  ;;  %v5687_v33 = vld [vmem:[%s7353_s20 + $0x4c] sm:$0xf]  ;;  %v2200_v42 = vrot.slane %v2198_v31, 5  ;;  %v7920_v14 = vpop.f32.mrf.mxu1 }
 0x104   : > { %1674 = vst [vmem:[#allocation2 + $0x154] sm:$0xf] %v1368_v28  ;;  %1946 = vst [vmem:[#allocation2 + $0x158] sm:$0xf] %v1827_v29  ;;  %v2181_v35 = vrot.slane %v2179_v24, 4  ;;  %v2184_v36 = vrot.slane %v2182_v25, 5  ;;  %v6173_v25 = vpop.f32.mrf.mxu0 }
 0x105   : > { %v2190_v37 = vrot.slane %v2188_v26, 5  ;;  %v1370_v39 = vshrl.u32 %v5686_v32, 16  ;;  %v2194_v41 = vrot.slane %v2192_v30, 4  ;;  %v1373_v43 = vshll.u32 %v5686_v32, 16  ;;  %v5734_v45 = vld [vmem:[%s7353_s20 + $0x48] sm:$0xe]  ;;  %v6285_v26 = vpop.f32.mrf.mxu1 }
 0x106   : > { %v1379_v44 = vshll.u32 %v5687_v33, 16  ;;  %v2185_v47 = vor.u32 %v2184_v36, %v2181_v35  ;;  %v1383_v49 = vshrl.u32 %v5687_v33, 16  ;;  %v1389_v50 = vshll.u32 %v5688_v38, 16  ;;  %v5735_v51 = vld [vmem:[%s7353_s20 + $0x4c] sm:$0xf]  ;;  %v6174_v38 = vpop.f32.mrf.mxu0 }
 0x107   : > { %v1372_v48 = vrot.slane %v1370_v39, 4  ;;  %v7002_v55 = vld [vmem:[#allocation2 + $0xf4] ss:$36 sps:$4 sm:$0xff]   ;;  %v2195_v57 = vor.u32 %v2194_v41, %v2190_v37  ;;  %v1375_v58 = vrot.slane %v1373_v43, 5  ;;  %v5736_v1 = vld [vmem:[%s7353_s20 + $0x50] sm:$0x1]  ;;  %v6286_v39 = vpop.f32.mrf.mxu1 }
 0x108   : > { %v7004_v56 = vld [vmem:[#allocation2 + $0xf0] ss:$36 sps:$4 sm:$0xff]   ;;  %v2186_v61 = vrot.slane %v2185_v47, 4  ;;  %v1381_v62 = vrot.slane %v1379_v44, 5  ;;  %v1385_v63 = vrot.slane %v1383_v49, 4  ;;  %v1391_v0 = vrot.slane %v1389_v50, 5  ;;  %4820 = vmatprep.mubr.bf16.mxu1 %v7002_v55  ;;  %v7939_v50 = vpop.f32.mrf.mxu0 }
 0x109   : > { %v2196_v3 = vrot.slane %v2195_v57, 4  ;;  %v1376_v4 = vor.u32 %v1375_v58, %v1372_v48  ;;  %v5772_v5 = vrot.slane %v5734_v45, 9  ;;  %v1830_v6 = vrot.slane %v5735_v51, 5  ;;  %v5793_v7 = vld [vmem:[%s7353_s20 + $0x54] sm:$0xf]  ;;  %4821 = vmatmul.mubr.bf16.gmra.mxu1 %v7004_v56  ;;  %v7941_v51 = vpop.f32.mrf.mxu1 }
 0x10a   : > { %v2191_v9 = vsel %vm7383_vm5, %v2186_v61, %v2190_v37  ;;  %v1386_v10 = vor.u32 %v1385_v63, %v1381_v62  ;;  %v1833_v11 = vrot.slane %v5736_v1, 5  ;;  %v5794_v12 = vld [vmem:[%s7353_s20 + $0x58] sm:$0xf]  ;;  %2012 = vst [vmem:[#allocation2 + $0x180] sm:$0xf] %v5793_v7  ;;  %v7944_v1 = vpop.f32.mrf.mxu0  ;;  %v7948_v7 = vadd.f32 %v6174_v38, %v6173_v25 }
 0x10b   : > { %v5830_v13 = vld [vmem:[%s7353_s20 + $0x54] sm:$0xf]  ;;  %v2201_v18 = vsel %vm7383_vm5, %v2196_v3, %v2200_v42  ;;  %2506 = vst [vmem:[#allocation2 + $0x13c] sm:$0xf] %v2191_v9  ;;  %v1377_v19 = vrot.slane %v1376_v4, 4  ;;  %v1831_v20 = vsel %vm7377_vm4, %v5772_v5, %v1830_v6  ;;  %v1832_v22 = vrot.slane %v1830_v6, 4  ;;  %v7946_v3 = vpop.f32.mrf.mxu1 }
 0x10c   : > { %v7005_v16 = vld [vmem:[#allocation2 + $0x134] ss:$36 sps:$4 sm:$0xff]   ;;  %2013 = vst [vmem:[#allocation2 + $0x1a4] sm:$0xf] %v5794_v12  ;;  %2507 = vst [vmem:[#allocation2 + $0x160] sm:$0xf] %v2201_v18  ;;  %v7950_v9 = vadd.f32 %v6286_v39, %v6285_v26 }
 0x10d   : > { %v7007_v17 = vld [vmem:[#allocation2 + $0x130] ss:$36 sps:$4 sm:$0xff]   ;;  %v1387_v21 = vrot.slane %v1386_v10, 4  ;;  %1947 = vst [vmem:[#allocation2 + $0x17c] sm:$0xf] %v1831_v20  ;;  %4667 = vmatprep.mubr.bf16.mxu0 %v7005_v16  ;;  %v1382_v27 = vsel %vm7383_vm5, %v1377_v19, %v1381_v62  ;;  %v2203_v28 = vshrl.u32 %v5830_v13, 16  ;;  %v1834_v33 = vsel %vm7377_vm4, %v1832_v22, %v1833_v11  ;;  %v6291_v16 = vpop.f32.mrf.mxu1 }
 0x10e   : > { %v5831_v23 = vld [vmem:[%s7353_s20 + $0x58] sm:$0xf]  ;;  %v5832_v24 = vld [vmem:[%s7353_s20 + $0x5c] sm:$0x1]  ;;  %v2206_v29 = vshll.u32 %v5830_v13, 16  ;;  %4668 = vmatmul.mubr.bf16.gmra.mxu0 %v7007_v17  ;;  %v6179_v13 = vpop.f32.mrf.mxu0 }
 0x10f   : > { %v2212_v30 = vshll.u32 %v5831_v23, 16  ;;  %v5689_v31 = vld [vmem:[%s7353_s20 + $0x54] sm:$0xf]  ;;  %v1392_v32 = vsel %vm7383_vm5, %v1387_v21, %v1391_v0  ;;  %1675 = vst [vmem:[#allocation2 + $0x178] sm:$0xf] %v1382_v27  ;;  %v2216_v34 = vshrl.u32 %v5831_v23, 16 }
 0x110   : > { %v2222_v35 = vshll.u32 %v5832_v24, 16  ;;  %v5690_v36 = vld [vmem:[%s7353_s20 + $0x58] sm:$0xf]  ;;  %v5691_v37 = vld [vmem:[%s7353_s20 + $0x5c] sm:$0x1]  ;;  %v2205_v40 = vrot.slane %v2203_v28, 4  ;;  %v6180_v27 = vpop.f32.mrf.mxu0  ;;  %v6292_v28 = vpop.f32.mrf.mxu1 }
 0x111   : > { %1676 = vst [vmem:[#allocation2 + $0x19c] sm:$0xf] %v1392_v32  ;;  %1948 = vst [vmem:[#allocation2 + $0x1a0] sm:$0xf] %v1834_v33  ;;  %v2208_v41 = vrot.slane %v2206_v29, 5  ;;  %v2214_v42 = vrot.slane %v2212_v30, 5  ;;  %v7961_v33 = vadd.f32 %v6180_v27, %v6179_v13 }
 0x112   : > { %v1394_v43 = vshrl.u32 %v5689_v31, 16  ;;  %v5737_v44 = vld [vmem:[%s7353_s20 + $0x54] sm:$0xe]  ;;  %v2218_v45 = vrot.slane %v2216_v34, 4  ;;  %v2224_v46 = vrot.slane %v2222_v35, 5  ;;  %v1397_v47 = vshll.u32 %v5689_v31, 16 }
 0x113   : > { %v1403_v48 = vshll.u32 %v5690_v36, 16  ;;  %v5738_v49 = vld [vmem:[%s7353_s20 + $0x58] sm:$0xf]  ;;  %v2209_v53 = vor.u32 %v2208_v41, %v2205_v40  ;;  %v1407_v56 = vshrl.u32 %v5690_v36, 16  ;;  %v1413_v57 = vshll.u32 %v5691_v37, 16  ;;  %v7969_v40 = vpop.f32.mrf.mxu0  ;;  %v7971_v41 = vpop.f32.mrf.mxu1 }
 0x114   : > { %v1396_v55 = vrot.slane %v1394_v43, 4  ;;  %v5739_v58 = vld [vmem:[%s7353_s20 + $0x5c] sm:$0x1]  ;;  %v2219_v61 = vor.u32 %v2218_v45, %v2214_v42  ;;  %v1399_v62 = vrot.slane %v1397_v47, 5  ;;  %v5773_v0 = vrot.slane %v5737_v44, 9 }
 0x115   : > { %v1405_v63 = vrot.slane %v1403_v48, 5  ;;  %v7009_v4 = vld [vmem:[#allocation2 + $0x13c] ss:$36 sps:$4 sm:$0xff]   ;;  %v2210_v6 = vrot.slane %v2209_v53, 4  ;;  %v1409_v12 = vrot.slane %v1407_v56, 4  ;;  %v1415_v18 = vrot.slane %v1413_v57, 5  ;;  %v7984_v57 = vpop.f32.mrf.mxu0 }
 0x116   : > { %v7011_v5 = vld [vmem:[#allocation2 + $0x138] ss:$36 sps:$4 sm:$0xff]   ;;  %v2220_v10 = vrot.slane %v2219_v61, 4  ;;  %v1400_v11 = vor.u32 %v1399_v62, %v1396_v55  ;;  %4828 = vmatprep.mubr.bf16.mxu1 %v7009_v4  ;;  %v1837_v19 = vrot.slane %v5738_v49, 5  ;;  %v1840_v20 = vrot.slane %v5739_v58, 5  ;;  %v7986_v58 = vpop.f32.mrf.mxu1 }
 0x117   : > { %v2215_v17 = vsel %vm7383_vm5, %v2210_v6, %v2214_v42  ;;  %v5795_v21 = vld [vmem:[%s7353_s20 + $0x60] sm:$0xf]  ;;  %4829 = vmatmul.mubr.bf16.gmra.mxu1 %v7011_v5  ;;  %v1410_v26 = vor.u32 %v1409_v12, %v1405_v63  ;;  %v5796_v31 = vld [vmem:[%s7353_s20 + $0x64] sm:$0xf]  ;;  %v7963_v34 = vadd.f32 %v6292_v28, %v6291_v16  ;;  %v5835_v38 = vld [vmem:[%s7353_s20 + $0x68] sm:$0x1]  ;;  %v7982_v56 = vadd.f32 %v7914_v8, %v7906_v59 }
 0x118   : > { %v7012_v22 = vld [vmem:[#allocation2 + $0x17c] ss:$36 sps:$4 sm:$0xff]   ;;  %v2225_v24 = vsel %vm7383_vm5, %v2220_v10, %v2224_v46  ;;  %2508 = vst [vmem:[#allocation2 + $0x184] sm:$0xf] %v2215_v17  ;;  %v1401_v25 = vrot.slane %v1400_v11, 4  ;;  %v1838_v29 = vsel %vm7377_vm4, %v5773_v0, %v1837_v19  ;;  %v1839_v30 = vrot.slane %v1837_v19, 4  ;;  %v6297_v13 = vpop.f32.mrf.mxu1 }
 0x119   : > { %v7014_v23 = vld [vmem:[#allocation2 + $0x178] ss:$36 sps:$4 sm:$0xff]   ;;  %2014 = vst [vmem:[#allocation2 + $0x1c8] sm:$0xf] %v5795_v21  ;;  %2509 = vst [vmem:[#allocation2 + $0x1a8] sm:$0xf] %v2225_v24  ;;  %4675 = vmatprep.mubr.bf16.mxu0 %v7012_v22  ;;  %v7993_v22 = vadd.f32 %v7920_v14, %v7911_v2  ;;  %v8001_v24 = vadd.f32 %v7946_v3, %v7941_v51 }
 0x11a   : > { %v5833_v32 = vld [vmem:[%s7353_s20 + $0x60] sm:$0xf]  ;;  %v1406_v35 = vsel %vm7383_vm5, %v1401_v25, %v1405_v63  ;;  %v1411_v36 = vrot.slane %v1410_v26, 4  ;;  %1949 = vst [vmem:[#allocation2 + $0x1c4] sm:$0xf] %v1838_v29  ;;  %4676 = vmatmul.mubr.bf16.gmra.mxu0 %v7014_v23  ;;  %v1841_v42 = vsel %vm7377_vm4, %v1839_v30, %v1840_v20  ;;  %v2246_v49 = vshll.u32 %v5835_v38, 16  ;;  %v6185_v25 = vpop.f32.mrf.mxu0  ;;  %v6298_v26 = vpop.f32.mrf.mxu1 }
 0x11b   : > { %2015 = vst [vmem:[#allocation2 + $0x1ec] sm:$0xf] %v5796_v31  ;;  %v5834_v37 = vld [vmem:[%s7353_s20 + $0x64] sm:$0xf]  ;;  %v2227_v39 = vshrl.u32 %v5833_v32, 16  ;;  %v2230_v43 = vshll.u32 %v5833_v32, 16  ;;  %v7997_v23 = vadd.f32 %v7944_v1, %v7939_v50 }
 0x11c   : > { %1677 = vst [vmem:[#allocation2 + $0x1c0] sm:$0xf] %v1406_v35  ;;  %v2236_v44 = vshll.u32 %v5834_v37, 16  ;;  %v2240_v45 = vshrl.u32 %v5834_v37, 16  ;;  %v5692_v46 = vld [vmem:[%s7353_s20 + $0x60] sm:$0xf]  ;;  %v1416_v47 = vsel %vm7383_vm5, %v1411_v36, %v1415_v18  ;;  %v6186_v1 = vpop.f32.mrf.mxu0  ;;  %v8005_v36 = vpop.f32.mrf.mxu1 }
 0x11d   : > { %1950 = vst [vmem:[#allocation2 + $0x1e8] sm:$0xf] %v1841_v42  ;;  %v2229_v48 = vrot.slane %v2227_v39, 4  ;;  %v5693_v53 = vld [vmem:[%s7353_s20 + $0x64] sm:$0xf]  ;;  %v2232_v61 = vrot.slane %v2230_v43, 5 }
 0x11e   : > { %v5694_v55 = vld [vmem:[%s7353_s20 + $0x68] sm:$0x1]  ;;  %1678 = vst [vmem:[#allocation2 + $0x1e4] sm:$0xf] %v1416_v47  ;;  %v2238_v62 = vrot.slane %v2236_v44, 5  ;;  %v2242_v63 = vrot.slane %v2240_v45, 4  ;;  %v8015_v47 = vadd.f32 %v6186_v1, %v6185_v25 }
 0x11f   : > { %v1418_v0 = vshrl.u32 %v5692_v46, 16  ;;  %v5740_v4 = vld [vmem:[%s7353_s20 + $0x60] sm:$0xe]  ;;  %v2248_v5 = vrot.slane %v2246_v49, 5  ;;  %v1421_v6 = vshll.u32 %v5692_v46, 16  ;;  %v1427_v10 = vshll.u32 %v5693_v53, 16 }
 0x120   : > { %v1431_v11 = vshrl.u32 %v5693_v53, 16  ;;  %v5741_v12 = vld [vmem:[%s7353_s20 + $0x64] sm:$0xf]  ;;  %v2233_v16 = vor.u32 %v2232_v61, %v2229_v48  ;;  %v2243_v59 = vor.u32 %v2242_v63, %v2238_v62  ;;  %v1437_v17 = vshll.u32 %v5694_v55, 16  ;;  %v5742_v18 = vld [vmem:[%s7353_s20 + $0x68] sm:$0x1]  ;;  %v6188_v48 = vpop.f32.mrf.mxu0  ;;  %v8019_v53 = vpop.f32.mrf.mxu1 }
 0x121   : > { %v1420_v8 = vrot.slane %v1418_v0, 4  ;;  %v7015_v19 = vld [vmem:[#allocation2 + $0x184] ss:$36 sps:$4 sm:$0xff]   ;;  %v1423_v21 = vrot.slane %v1421_v6, 5  ;;  %v1429_v29 = vrot.slane %v1427_v10, 5  ;;  %v5774_v32 = vrot.slane %v5740_v4, 9 }
 0x122   : > { %v7017_v20 = vld [vmem:[#allocation2 + $0x180] ss:$36 sps:$4 sm:$0xff]   ;;  %v2234_v27 = vrot.slane %v2233_v16, 4  ;;  %v2244_v28 = vrot.slane %v2243_v59, 4  ;;  %v1433_v30 = vrot.slane %v1431_v11, 4  ;;  %4836 = vmatprep.mubr.bf16.mxu1 %v7015_v19  ;;  %v1439_v14 = vrot.slane %v1437_v17, 5 }
 0x123   : > { %v5797_v31 = vld [vmem:[%s7353_s20 + $0x6c] sm:$0xf]  ;;  %v1424_v2 = vor.u32 %v1423_v21, %v1420_v8  ;;  %v1844_v35 = vrot.slane %v5741_v12, 5  ;;  %v5798_v50 = vld [vmem:[%s7353_s20 + $0x70] sm:$0xf]  ;;  %4837 = vmatmul.mubr.bf16.gmra.mxu1 %v7017_v20  ;;  %v1847_v38 = vrot.slane %v5742_v18, 5  ;;  %v8017_v49 = vadd.f32 %v6298_v26, %v6297_v13  ;;  %v6189_v12 = vpop.f32.mrf.mxu0 }
 0x124   : > { %2016 = vst [vmem:[#allocation2 + $0x210] sm:$0xf] %v5797_v31  ;;  %v2239_v51 = vsel %vm7383_vm5, %v2234_v27, %v2238_v62  ;;  %v2249_v3 = vsel %vm7383_vm5, %v2244_v28, %v2248_v5  ;;  %v1434_v37 = vor.u32 %v1433_v30, %v1429_v29  ;;  %2017 = vst [vmem:[#allocation2 + $0x234] sm:$0xf] %v5798_v50  ;;  %v5836_v39 = vld [vmem:[%s7353_s20 + $0x6c] sm:$0xf]  ;;  %v6303_v28 = vpop.f32.mrf.mxu1 }
 0x125   : > { %v5837_v42 = vld [vmem:[%s7353_s20 + $0x70] sm:$0xf]  ;;  %v7018_v43 = vld [vmem:[#allocation2 + $0x1c4] ss:$36 sps:$4 sm:$0xff]   ;;  %2510 = vst [vmem:[#allocation2 + $0x1cc] sm:$0xf] %v2239_v51  ;;  %v1845_v46 = vsel %vm7377_vm4, %v5774_v32, %v1844_v35  ;;  %v6191_v27 = vpop.f32.mrf.mxu0 }
 0x126   : > { %v7020_v44 = vld [vmem:[#allocation2 + $0x1c0] ss:$36 sps:$4 sm:$0xff]   ;;  %2511 = vst [vmem:[#allocation2 + $0x1f0] sm:$0xf] %v2249_v3  ;;  %v1425_v45 = vrot.slane %v1424_v2, 4  ;;  %v1435_v55 = vrot.slane %v1434_v37, 4  ;;  %4683 = vmatprep.mubr.bf16.mxu0 %v7018_v43  ;;  %v6304_v37 = vpop.f32.mrf.mxu1  ;;  %v8036_v43 = vadd.f32 %v7984_v57, %v7969_v40 }
 0x127   : > { %v1846_v61 = vrot.slane %v1844_v35, 4  ;;  %1951 = vst [vmem:[#allocation2 + $0x20c] sm:$0xf] %v1845_v46  ;;  %v5838_v62 = vld [vmem:[%s7353_s20 + $0x74] sm:$0x1]  ;;  %v2251_v63 = vshrl.u32 %v5836_v39, 16  ;;  %4684 = vmatmul.mubr.bf16.gmra.mxu0 %v7020_v44  ;;  %v6192_v3 = vpop.f32.mrf.mxu0  ;;  %v8040_v44 = vadd.f32 %v7986_v58, %v7971_v41 }
 0x128   : > { %v2254_v0 = vshll.u32 %v5836_v39, 16  ;;  %v1430_v4 = vsel %vm7383_vm5, %v1425_v45, %v1429_v29  ;;  %v2260_v5 = vshll.u32 %v5837_v42, 16  ;;  %v2264_v6 = vshrl.u32 %v5837_v42, 16  ;;  %v5695_v11 = vld [vmem:[%s7353_s20 + $0x6c] sm:$0xf] }
 0x129   : > { %v2270_v10 = vshll.u32 %v5838_v62, 16  ;;  %v1440_v13 = vsel %vm7383_vm5, %v1435_v55, %v1439_v14  ;;  %1679 = vst [vmem:[#allocation2 + $0x208] sm:$0xf] %v1430_v4  ;;  %v1848_v16 = vsel %vm7377_vm4, %v1846_v61, %v1847_v38  ;;  %v2253_v59 = vrot.slane %v2251_v63, 4  ;;  %v5696_v17 = vld [vmem:[%s7353_s20 + $0x70] sm:$0xf]  ;;  %v6194_v63 = vpop.f32.mrf.mxu0 }
 0x12a   : > { %v2256_v8 = vrot.slane %v2254_v0, 5  ;;  %v5697_v18 = vld [vmem:[%s7353_s20 + $0x74] sm:$0x1]  ;;  %1680 = vst [vmem:[#allocation2 + $0x22c] sm:$0xf] %v1440_v13  ;;  %v2262_v19 = vrot.slane %v2260_v5, 5  ;;  %v8042_v62 = vadd.f32 %v6189_v12, %v6188_v48  ;;  %v6306_v0 = vpop.f32.mrf.mxu1  ;;  %v8050_v48 = vadd.f32 %v6192_v3, %v6191_v27 }
 0x12b   : > { %1952 = vst [vmem:[#allocation2 + $0x230] sm:$0xf] %v1848_v16  ;;  %v2266_v20 = vrot.slane %v2264_v6, 4  ;;  %v2272_v21 = vrot.slane %v2270_v10, 5  ;;  %v1442_v25 = vshrl.u32 %v5695_v11, 16  ;;  %v1445_v30 = vshll.u32 %v5695_v11, 16  ;;  %v6195_v12 = vpop.f32.mrf.mxu0 }
 0x12c   : > { %v5743_v26 = vld [vmem:[%s7353_s20 + $0x6c] sm:$0xe]  ;;  %v2257_v29 = vor.u32 %v2256_v8, %v2253_v59  ;;  %v1451_v31 = vshll.u32 %v5696_v17, 16  ;;  %v1455_v2 = vshrl.u32 %v5696_v17, 16  ;;  %v5744_v14 = vld [vmem:[%s7353_s20 + $0x70] sm:$0xf]  ;;  %v6307_v13 = vpop.f32.mrf.mxu1  ;;  %v8062_v27 = vadd.f32 %v6195_v12, %v6194_v63 }
 0x12d   : > { %v2267_v32 = vor.u32 %v2266_v20, %v2262_v19  ;;  %v1444_v35 = vrot.slane %v1442_v25, 4  ;;  %v1461_v50 = vshll.u32 %v5697_v18, 16  ;;  %v5745_v1 = vld [vmem:[%s7353_s20 + $0x74] sm:$0x1]  ;;  %v5775_v51 = vrot.slane %v5743_v26, 9  ;;  %v8081_v3 = vpop.f32.mrf.mxu0 }
 0x12e   : > { %v7022_v38 = vld [vmem:[#allocation2 + $0x1cc] ss:$36 sps:$4 sm:$0xff]   ;;  %v2258_v39 = vrot.slane %v2257_v29, 4  ;;  %v1447_v42 = vrot.slane %v1445_v30, 5  ;;  %v1453_v55 = vrot.slane %v1451_v31, 5  ;;  %v1457_v61 = vrot.slane %v1455_v2, 4  ;;  %v8066_v30 = vpop.f32.mrf.mxu1 }
 0x12f   : > { %v7024_v45 = vld [vmem:[#allocation2 + $0x1c8] ss:$36 sps:$4 sm:$0xff]   ;;  %v2268_v46 = vrot.slane %v2267_v32, 4  ;;  %4844 = vmatprep.mubr.bf16.mxu1 %v7022_v38  ;;  %v1463_v57 = vrot.slane %v1461_v50, 5  ;;  %v1851_v5 = vrot.slane %v5744_v14, 5  ;;  %v1854_v6 = vrot.slane %v5745_v1, 5 }
 0x130   : > { %v2263_v4 = vsel %vm7383_vm5, %v2258_v39, %v2262_v19  ;;  %v1448_v40 = vor.u32 %v1447_v42, %v1444_v35  ;;  %4845 = vmatmul.mubr.bf16.gmra.mxu1 %v7024_v45  ;;  %v1458_v58 = vor.u32 %v1457_v61, %v1453_v55  ;;  %v5799_v10 = vld [vmem:[%s7353_s20 + $0x78] sm:$0xf]  ;;  %v5800_v11 = vld [vmem:[%s7353_s20 + $0x7c] sm:$0xf]  ;;  %v8056_v18 = vadd.f32 %v8019_v53, %v8005_v36  ;;  %v5841_v36 = vld [vmem:[%s7353_s20 + $0x80] sm:$0x1] }
 0x131   : > { %v2273_v41 = vsel %vm7383_vm5, %v2268_v46, %v2272_v21  ;;  %2512 = vst [vmem:[#allocation2 + $0x214] sm:$0xf] %v2263_v4  ;;  %v7027_v59 = vld [vmem:[#allocation2 + $0x208] ss:$36 sps:$4 sm:$0xff]   ;;  %v1852_v17 = vsel %vm7377_vm4, %v5775_v51, %v1851_v5  ;;  %2018 = vst [vmem:[#allocation2 + $0x258] sm:$0xf] %v5799_v10  ;;  %v8058_v19 = vadd.f32 %v6304_v37, %v6303_v28  ;;  %v8083_v37 = vpop.f32.mrf.mxu1 }
 0x132   : > { %v7025_v16 = vld [vmem:[#allocation2 + $0x20c] ss:$36 sps:$4 sm:$0xff]   ;;  %2513 = vst [vmem:[#allocation2 + $0x238] sm:$0xf] %v2273_v41  ;;  %v1449_v8 = vrot.slane %v1448_v40, 4  ;;  %v1459_v20 = vrot.slane %v1458_v58, 4  ;;  %v8064_v29 = vadd.f32 %v6307_v13, %v6306_v0  ;;  %v8091_v40 = vpop.f32.mrf.mxu0 }
 0x133   : > { %2019 = vst [vmem:[#allocation2 + $0x27c] sm:$0xf] %v5800_v11  ;;  %v1853_v21 = vrot.slane %v1851_v5, 4  ;;  %1953 = vst [vmem:[#allocation2 + $0x254] sm:$0xf] %v1852_v17  ;;  %4691 = vmatprep.mubr.bf16.mxu0 %v7025_v16  ;;  %v2294_v50 = vshll.u32 %v5841_v36, 16 }
 0x134   : > { %v5839_v25 = vld [vmem:[%s7353_s20 + $0x78] sm:$0xf]  ;;  %v5840_v26 = vld [vmem:[%s7353_s20 + $0x7c] sm:$0xf]  ;;  %v1454_v31 = vsel %vm7383_vm5, %v1449_v8, %v1453_v55  ;;  %4692 = vmatmul.mubr.bf16.gmra.mxu0 %v7027_v59  ;;  %v1464_v14 = vsel %vm7383_vm5, %v1459_v20, %v1463_v57  ;;  %v8078_v1 = vld [vmem:[%s9592_s3] ss:$0 sm:$0xff]  ;;  %v8093_v57 = vpop.f32.mrf.mxu1  ;;  %v8104_v59 = vpop.f32.mrf.mxu0 }
 0x135   : > { %v2275_v53 = vshrl.u32 %v5839_v25, 16  ;;  %v2278_v28 = vshll.u32 %v5839_v25, 16  ;;  %v2284_v2 = vshll.u32 %v5840_v26, 16  ;;  %1681 = vst [vmem:[#allocation2 + $0x250] sm:$0xf] %v1454_v31  ;;  %v1855_v32 = vsel %vm7377_vm4, %v1853_v21, %v1854_v6 }
 0x136   : > { %v2288_v35 = vshrl.u32 %v5840_v26, 16  ;;  %v5698_v51 = vld [vmem:[%s7353_s20 + $0x78] sm:$0xf]  ;;  %1682 = vst [vmem:[#allocation2 + $0x274] sm:$0xf] %v1464_v14  ;;  %v4316_v45 = vadd.f32 %v7904_v15, %v8078_v1  ;;  %v2296_v61 = vrot.slane %v2294_v50, 5  ;;  %v4319_v63 = vadd.f32 %v7982_v56, %v8078_v1  ;;  %v8106_v8 = vpop.f32.mrf.mxu1 }
 0x137   : > { %1954 = vst [vmem:[#allocation2 + $0x278] sm:$0xf] %v1855_v32  ;;  %v2277_v38 = vrot.slane %v2275_v53, 4  ;;  %v2280_v39 = vrot.slane %v2278_v28, 5  ;;  %v2286_v42 = vrot.slane %v2284_v2, 5  ;;  %v1466_v4 = vshrl.u32 %v5698_v51, 16  ;;  %v8110_v28 = vpop.f32.mrf.mxu0 }
 0x138   : > { %v5699_v46 = vld [vmem:[%s7353_s20 + $0x7c] sm:$0xf]  ;;  %v2290_v55 = vrot.slane %v2288_v35, 4  ;;  %v5700_v0 = vld [vmem:[%s7353_s20 + $0x80] sm:$0x1]  ;;  %v8096_v41 = vadd.f32 %v7908_v60, %v4316_v45  ;;  %v1469_v58 = vshll.u32 %v5698_v51, 16  ;;  %v8100_v56 = vadd.f32 %v7993_v22, %v4319_v63  ;;  %v8115_v50 = vpop.f32.mrf.mxu1 }
 0x139   : > { %v2281_v5 = vor.u32 %v2280_v39, %v2277_v38  ;;  %v1475_v6 = vshll.u32 %v5699_v46, 16  ;;  %v5746_v15 = vld [vmem:[%s7353_s20 + $0x78] sm:$0xe]  ;;  %v7030_v11 = vld [vmem:[#allocation2 + $0x210] ss:$36 sps:$4 sm:$0xff]   ;;  %v1468_v13 = vrot.slane %v1466_v4, 4  ;;  %v4324_v16 = vadd.f32 %v7948_v7, %v8078_v1 }
 0x13a   : > { %v7028_v10 = vld [vmem:[#allocation2 + $0x214] ss:$36 sps:$4 sm:$0xff]   ;;  %v2291_v12 = vor.u32 %v2290_v55, %v2286_v42  ;;  %9621 = vst [vmem:[#allocation6_spill] sm:$0xff] %v8100_v56  ;;  %v1471_v17 = vrot.slane %v1469_v58, 5  ;;  %v1479_v21 = vshrl.u32 %v5699_v46, 16  ;;  %v1485_v31 = vshll.u32 %v5700_v0, 16  ;;  %v8128_v58 = vpop.f32.mrf.mxu0 }
 0x13b   : > { %v2282_v60 = vrot.slane %v2281_v5, 4  ;;  %v1477_v20 = vrot.slane %v1475_v6, 5  ;;  %v5747_v25 = vld [vmem:[%s7353_s20 + $0x7c] sm:$0xf]  ;;  %4852 = vmatprep.mubr.bf16.mxu1 %v7028_v10  ;;  %v5748_v36 = vld [vmem:[%s7353_s20 + $0x80] sm:$0x1]  ;;  %v8130_v6 = vpop.f32.mrf.mxu1 }
 0x13c   : > { %v2292_v26 = vrot.slane %v2291_v12, 4  ;;  %v5776_v53 = vrot.slane %v5746_v15, 9  ;;  %v1858_v22 = vrot.slane %v5747_v25, 5  ;;  %4853 = vmatmul.mubr.bf16.gmra.mxu1 %v7030_v11  ;;  %v1472_v2 = vor.u32 %v1471_v17, %v1468_v13  ;;  %v5801_v35 = vld [vmem:[%s7353_s20 + $0x84] sm:$0xf] }
 0x13d   : > { %v2287_v7 = vsel %vm7383_vm5, %v2282_v60, %v2286_v42  ;;  %v1481_v14 = vrot.slane %v1479_v21, 4  ;;  %v1861_v32 = vrot.slane %v5748_v36, 5  ;;  %v7033_v38 = vld [vmem:[#allocation2 + $0x250] ss:$36 sps:$4 sm:$0xff]   ;;  %v1487_v45 = vrot.slane %v1485_v31, 5  ;;  %v8146_v31 = vpop.f32.mrf.mxu1 }
 0x13e   : > { %v7031_v51 = vld [vmem:[#allocation2 + $0x254] ss:$36 sps:$4 sm:$0xff]   ;;  %v2297_v39 = vsel %vm7383_vm5, %v2292_v26, %v2296_v61  ;;  %2514 = vst [vmem:[#allocation2 + $0x25c] sm:$0xf] %v2287_v7  ;;  %v1859_v46 = vsel %vm7377_vm4, %v5776_v53, %v1858_v22  ;;  %2020 = vst [vmem:[#allocation2 + $0x2a0] sm:$0xf] %v5801_v35  ;;  %v8122_v42 = vadd.f32 %v7950_v9, %v4324_v16  ;;  %v8144_v26 = vpop.f32.mrf.mxu0 }
 0x13f   : > { %2515 = vst [vmem:[#allocation2 + $0x280] sm:$0xf] %v2297_v39  ;;  %v1473_v55 = vrot.slane %v1472_v2, 4  ;;  %v1482_v63 = vor.u32 %v1481_v14, %v1477_v20  ;;  %v1860_v0 = vrot.slane %v1858_v22, 4  ;;  %1955 = vst [vmem:[#allocation2 + $0x29c] sm:$0xf] %v1859_v46  ;;  %v4327_v61 = vadd.f32 %v7997_v23, %v8078_v1  ;;  %4699 = vmatprep.mubr.bf16.mxu0 %v7031_v51  ;;  %v8154_v51 = vpop.f32.mrf.mxu1 }
 0x140   : > { %9622 = vst [vmem:[#allocation7_spill] sm:$0xff] %v8122_v42  ;;  %v5802_v4 = vld [vmem:[%s7353_s20 + $0x88] sm:$0xf]  ;;  %v5842_v5 = vld [vmem:[%s7353_s20 + $0x84] sm:$0xf]  ;;  %v4332_v12 = vadd.f32 %v7961_v33, %v8078_v1  ;;  %v4335_v13 = vadd.f32 %v8036_v43, %v8078_v1  ;;  %4700 = vmatmul.mubr.bf16.gmra.mxu0 %v7033_v38  ;;  %v8152_v35 = vpop.f32.mrf.mxu0 }
 0x141   : > { %2021 = vst [vmem:[#allocation2 + $0x2c4] sm:$0xf] %v5802_v4  ;;  %v5843_v9 = vld [vmem:[%s7353_s20 + $0x88] sm:$0xf]  ;;  %v5844_v15 = vld [vmem:[%s7353_s20 + $0x8c] sm:$0x1]  ;;  %v1478_v23 = vsel %vm7383_vm5, %v1473_v55, %v1477_v20  ;;  %v1862_v60 = vsel %vm7377_vm4, %v1860_v0, %v1861_v32 }
 0x142   : > { %v2299_v10 = vshrl.u32 %v5842_v5, 16  ;;  %v2302_v11 = vshll.u32 %v5842_v5, 16  ;;  %v1483_v16 = vrot.slane %v1482_v63, 4  ;;  %v2308_v17 = vshll.u32 %v5843_v9, 16  ;;  %v5701_v21 = vld [vmem:[%s7353_s20 + $0x84] sm:$0xf] }
 0x143   : > { %v5702_v25 = vld [vmem:[%s7353_s20 + $0x88] sm:$0xf]  ;;  %1683 = vst [vmem:[#allocation2 + $0x298] sm:$0xf] %v1478_v23  ;;  %1956 = vst [vmem:[#allocation2 + $0x2c0] sm:$0xf] %v1862_v60  ;;  %v8163_v60 = vadd.f32 %v7963_v34, %v4332_v12 }
 0x144   : > { %v2301_v33 = vrot.slane %v2299_v10, 4  ;;  %v2304_v43 = vrot.slane %v2302_v11, 5  ;;  %v2312_v36 = vshrl.u32 %v5843_v9, 16  ;;  %v2318_v53 = vshll.u32 %v5844_v15, 16  ;;  %v5703_v20 = vld [vmem:[%s7353_s20 + $0x8c] sm:$0x1] }
 0x145   : > { %v1488_v22 = vsel %vm7383_vm5, %v1483_v16, %v1487_v45  ;;  %v2310_v7 = vrot.slane %v2308_v17, 5  ;;  %v1490_v2 = vshrl.u32 %v5701_v21, 16  ;;  %v1493_v14 = vshll.u32 %v5701_v21, 16  ;;  %v5749_v32 = vld [vmem:[%s7353_s20 + $0x84] sm:$0xe]  ;;  %v8157_v45 = vpop.f32.mrf.mxu0  ;;  %9624 = vst [vmem:[#allocation9_spill] sm:$0xff] %v8163_v60  ;;  %v8165_v17 = vpop.f32.mrf.mxu1 }
 0x146   : > { %1684 = vst [vmem:[#allocation2 + $0x2bc] sm:$0xf] %v1488_v22  ;;  %v2305_v38 = vor.u32 %v2304_v43, %v2301_v33  ;;  %v2314_v39 = vrot.slane %v2312_v36, 4  ;;  %v2320_v46 = vrot.slane %v2318_v53, 5  ;;  %v1499_v55 = vshll.u32 %v5702_v25, 16 }
 0x147   : > { %v5750_v63 = vld [vmem:[%s7353_s20 + $0x88] sm:$0xf]  ;;  %v1492_v0 = vrot.slane %v1490_v2, 4  ;;  %v1495_v4 = vrot.slane %v1493_v14, 5  ;;  %v1503_v5 = vshrl.u32 %v5702_v25, 16  ;;  %v1509_v9 = vshll.u32 %v5703_v20, 16  ;;  %v8172_v34 = vpop.f32.mrf.mxu1 }
 0x148   : > { %v7035_v15 = vld [vmem:[#allocation2 + $0x25c] ss:$36 sps:$4 sm:$0xff]   ;;  %v2306_v11 = vrot.slane %v2305_v38, 4  ;;  %v2315_v23 = vor.u32 %v2314_v39, %v2310_v7  ;;  %v8160_v16 = vadd.f32 %v8001_v24, %v4327_v61  ;;  %v1501_v33 = vrot.slane %v1499_v55, 5  ;;  %v5751_v25 = vld [vmem:[%s7353_s20 + $0x8c] sm:$0x1]  ;;  %v8170_v61 = vpop.f32.mrf.mxu0 }
 0x149   : > { %v7037_v10 = vld [vmem:[#allocation2 + $0x258] ss:$36 sps:$4 sm:$0xff]   ;;  %v1496_v21 = vor.u32 %v1495_v4, %v1492_v0  ;;  %v1505_v43 = vrot.slane %v1503_v5, 4  ;;  %v1511_v36 = vrot.slane %v1509_v9, 5  ;;  %4860 = vmatprep.mubr.bf16.mxu1 %v7035_v15  ;;  %v5777_v22 = vrot.slane %v5749_v32, 9  ;;  %v8187_v5 = vpop.f32.mrf.mxu1 }
 0x14a   : > { %9623 = vst [vmem:[#allocation8_spill] sm:$0xff] %v8160_v16  ;;  %v2311_v53 = vsel %vm7383_vm5, %v2306_v11, %v2310_v7  ;;  %v2316_v20 = vrot.slane %v2315_v23, 4  ;;  %v1865_v24 = vrot.slane %v5750_v63, 5  ;;  %4861 = vmatmul.mubr.bf16.gmra.mxu1 %v7037_v10  ;;  %v1868_v14 = vrot.slane %v5751_v25, 5  ;;  %v5803_v55 = vld [vmem:[%s7353_s20 + $0x90] sm:$0xf]  ;;  %v8185_v4 = vpop.f32.mrf.mxu0 }
 0x14b   : > { %2516 = vst [vmem:[#allocation2 + $0x2a4] sm:$0xf] %v2311_v53  ;;  %v1497_v12 = vrot.slane %v1496_v21, 4  ;;  %v1506_v2 = vor.u32 %v1505_v43, %v1501_v33  ;;  %v8175_v38 = vadd.f32 %v8040_v44, %v4335_v13  ;;  %v5804_v63 = vld [vmem:[%s7353_s20 + $0x94] sm:$0xf]  ;;  %v4340_v0 = vadd.f32 %v8015_v47, %v8078_v1 }
 0x14c   : > { %v2321_v39 = vsel %vm7383_vm5, %v2316_v20, %v2320_v46  ;;  %v1866_v7 = vsel %vm7377_vm4, %v5777_v22, %v1865_v24  ;;  %v1867_v32 = vrot.slane %v1865_v24, 4  ;;  %v7038_v44 = vld [vmem:[#allocation2 + $0x29c] ss:$36 sps:$4 sm:$0xff]   ;;  %2022 = vst [vmem:[#allocation2 + $0x2e8] sm:$0xf] %v5803_v55  ;;  %v4343_v15 = vadd.f32 %v8042_v62, %v8078_v1 }
 0x14d   : > { %9625 = vst [vmem:[#allocation10_spill] sm:$0xff] %v8175_v38  ;;  %v7040_v13 = vld [vmem:[#allocation2 + $0x298] ss:$36 sps:$4 sm:$0xff]   ;;  %2517 = vst [vmem:[#allocation2 + $0x2c8] sm:$0xf] %v2321_v39  ;;  %v1502_v46 = vsel %vm7383_vm5, %v1497_v12, %v1501_v33  ;;  %v1507_v9 = vrot.slane %v1506_v2, 4  ;;  %v4348_v47 = vadd.f32 %v8050_v48, %v8078_v1  ;;  %v8201_v33 = vadd.f32 %v8017_v49, %v4340_v0  ;;  %v8207_v48 = vpop.f32.mrf.mxu0 }
 0x14e   : > { %1957 = vst [vmem:[#allocation2 + $0x2e4] sm:$0xf] %v1866_v7  ;;  %2023 = vst [vmem:[#allocation2 + $0x30c] sm:$0xf] %v5804_v63  ;;  %v1869_v10 = vsel %vm7377_vm4, %v1867_v32, %v1868_v14  ;;  %v5845_v11 = vld [vmem:[%s7353_s20 + $0x90] sm:$0xf]  ;;  %v4351_v43 = vadd.f32 %v8062_v27, %v8078_v1  ;;  %v6199_v62 = vadd.f32 %v8091_v40, %v8081_v3  ;;  %4707 = vmatprep.mubr.bf16.mxu0 %v7038_v44  ;;  %v8222_v14 = vpop.f32.mrf.mxu1 }
 0x14f   : > { %1685 = vst [vmem:[#allocation2 + $0x2e0] sm:$0xf] %v1502_v46  ;;  %v5846_v23 = vld [vmem:[%s7353_s20 + $0x94] sm:$0xf]  ;;  %v5847_v21 = vld [vmem:[%s7353_s20 + $0x98] sm:$0x1]  ;;  %v1512_v25 = vsel %vm7383_vm5, %v1507_v9, %v1511_v36  ;;  %4708 = vmatmul.mubr.bf16.gmra.mxu0 %v7040_v13  ;;  %v8215_v3 = vadd.f32 %v8056_v18, %v4343_v15  ;;  %v8218_v40 = vadd.f32 %v8058_v19, %v4348_v47  ;;  %v8220_v36 = vpop.f32.mrf.mxu0 }
 0x150   : > { %9626 = vst [vmem:[#allocation11_spill] sm:$0xff] %v8201_v33  ;;  %1958 = vst [vmem:[#allocation2 + $0x308] sm:$0xf] %v1869_v10  ;;  %v2323_v53 = vshrl.u32 %v5845_v11, 16  ;;  %v2326_v20 = vshll.u32 %v5845_v11, 16  ;;  %v2332_v22 = vshll.u32 %v5846_v23, 16 }
 0x151   : > { %v5704_v49 = vld [vmem:[%s7353_s20 + $0x90] sm:$0xf]  ;;  %1686 = vst [vmem:[#allocation2 + $0x304] sm:$0xf] %v1512_v25  ;;  %v2336_v24 = vshrl.u32 %v5846_v23, 16  ;;  %v2342_v12 = vshll.u32 %v5847_v21, 16  ;;  %v8226_v47 = vpop.f32.mrf.mxu0 }
 0x152   : > { %v5705_v27 = vld [vmem:[%s7353_s20 + $0x94] sm:$0xf]  ;;  %v5706_v2 = vld [vmem:[%s7353_s20 + $0x98] sm:$0x1]  ;;  %9627 = vst [vmem:[#allocation12_spill] sm:$0xff] %v8215_v3  ;;  %9628 = vst [vmem:[#allocation13_spill] sm:$0xff] %v8218_v40 }
 0x153   : > { %v2325_v39 = vrot.slane %v2323_v53, 4  ;;  %v2328_v7 = vrot.slane %v2326_v20, 5  ;;  %v2334_v32 = vrot.slane %v2332_v22, 5  ;;  %v1514_v55 = vshrl.u32 %v5704_v49, 16  ;;  %v5752_v63 = vld [vmem:[%s7353_s20 + $0x90] sm:$0xe]  ;;  %v8232_v22 = vpop.f32.mrf.mxu1 }
 0x154   : > { %v2338_v0 = vrot.slane %v2336_v24, 4  ;;  %v2344_v44 = vrot.slane %v2342_v12, 5  ;;  %v1517_v13 = vshll.u32 %v5704_v49, 16  ;;  %v1523_v46 = vshll.u32 %v5705_v27, 16  ;;  %v5753_v19 = vld [vmem:[%s7353_s20 + $0x94] sm:$0xf] }
 0x155   : > { %v2329_v9 = vor.u32 %v2328_v7, %v2325_v39  ;;  %v1516_v18 = vrot.slane %v1514_v55, 4  ;;  %v1527_v15 = vshrl.u32 %v5705_v27, 16  ;;  %v1533_v10 = vshll.u32 %v5706_v2, 16  ;;  %v7041_v11 = vld [vmem:[#allocation2 + $0x2a4] ss:$36 sps:$4 sm:$0xff]   ;;  %v8234_v2 = vpop.f32.mrf.mxu0 }
 0x156   : > { %v7043_v23 = vld [vmem:[#allocation2 + $0x2a0] ss:$36 sps:$4 sm:$0xff]   ;;  %v2339_v21 = vor.u32 %v2338_v0, %v2334_v32  ;;  %v1519_v25 = vrot.slane %v1517_v13, 5  ;;  %v8229_v53 = vadd.f32 %v8064_v29, %v4351_v43  ;;  %v4356_v20 = vadd.f32 %v6199_v62, %v8078_v1  ;;  %4868 = vmatprep.mubr.bf16.mxu1 %v7041_v11  ;;  %v5754_v55 = vld [vmem:[%s7353_s20 + $0x98] sm:$0x1]  ;;  %v8237_v29 = vpop.f32.mrf.mxu1 }
 0x157   : > { %v2330_v49 = vrot.slane %v2329_v9, 4  ;;  %v1525_v24 = vrot.slane %v1523_v46, 5  ;;  %v1529_v12 = vrot.slane %v1527_v15, 4  ;;  %v1535_v27 = vrot.slane %v1533_v10, 5  ;;  %4869 = vmatmul.mubr.bf16.gmra.mxu1 %v7043_v23  ;;  %v7044_v43 = vld [vmem:[#allocation2 + $0x2e4] ss:$36 sps:$4 sm:$0xff]  }
 0x158   : > { %9629 = vst [vmem:[#allocation14_spill] sm:$0xff] %v8229_v53  ;;  %v2340_v39 = vrot.slane %v2339_v21, 4  ;;  %v1520_v7 = vor.u32 %v1519_v25, %v1516_v18  ;;  %v5778_v40 = vrot.slane %v5752_v63, 9  ;;  %v1872_v0 = vrot.slane %v5753_v19, 5  ;;  %v7046_v62 = vld [vmem:[#allocation2 + $0x2e0] ss:$36 sps:$4 sm:$0xff]   ;;  %v8243_v18 = vpop.f32.mrf.mxu0  ;;  %v8251_v21 = vpop.f32.mrf.mxu1  ;;  %4715 = vmatprep.mubr.bf16.mxu0 %v7044_v43 }
 0x159   : > { %v2335_v13 = vsel %vm7383_vm5, %v2330_v49, %v2334_v32  ;;  %v1530_v46 = vor.u32 %v1529_v12, %v1525_v24  ;;  %v1875_v9 = vrot.slane %v5754_v55, 5  ;;  %v6311_v15 = vadd.f32 %v8083_v37, %v8066_v30  ;;  %v5805_v23 = vld [vmem:[%s7353_s20 + $0x9c] sm:$0xf]  ;;  %v5806_v32 = vld [vmem:[%s7353_s20 + $0xa0] sm:$0xf]  ;;  %4716 = vmatmul.mubr.bf16.gmra.mxu0 %v7046_v62 }
 0x15a   : > { %v2345_v63 = vsel %vm7383_vm5, %v2340_v39, %v2344_v44  ;;  %2518 = vst [vmem:[#allocation2 + $0x2ec] sm:$0xf] %v2335_v13  ;;  %v1521_v10 = vrot.slane %v1520_v7, 4  ;;  %v1873_v19 = vsel %vm7377_vm4, %v5778_v40, %v1872_v0  ;;  %v1874_v11 = vrot.slane %v1872_v0, 4  ;;  %2024 = vst [vmem:[#allocation2 + $0x330] sm:$0xf] %v5805_v23  ;;  %v8267_v43 = vpop.f32.mrf.mxu0  ;;  %v8272_v62 = vpop.f32.mrf.mxu1 }
 0x15b   : > { %2519 = vst [vmem:[#allocation2 + $0x310] sm:$0xf] %v2345_v63  ;;  %v1531_v30 = vrot.slane %v1530_v46, 4  ;;  %1959 = vst [vmem:[#allocation2 + $0x32c] sm:$0xf] %v1873_v19  ;;  %v8255_v25 = vadd.f32 %v6311_v15, %v4356_v20  ;;  %v6202_v40 = vadd.f32 %v8110_v28, %v8104_v59  ;;  %v6314_v49 = vadd.f32 %v8106_v8, %v8093_v57 }
 0x15c   : > { %2025 = vst [vmem:[#allocation2 + $0x354] sm:$0xf] %v5806_v32  ;;  %v5848_v37 = vld [vmem:[%s7353_s20 + $0x9c] sm:$0xf]  ;;  %v5849_v44 = vld [vmem:[%s7353_s20 + $0xa0] sm:$0xf]  ;;  %v1526_v12 = vsel %vm7383_vm5, %v1521_v10, %v1525_v24  ;;  %v1876_v39 = vsel %vm7377_vm4, %v1874_v11, %v1875_v9  ;;  %v8280_v53 = vpop.f32.mrf.mxu1 }
 0x15d   : > { %9630 = vst [vmem:[#allocation15_spill] sm:$0xff] %v8255_v25  ;;  %v5850_v7 = vld [vmem:[%s7353_s20 + $0xa4] sm:$0x1]  ;;  %v2347_v55 = vshrl.u32 %v5848_v37, 16  ;;  %v2350_v0 = vshll.u32 %v5848_v37, 16  ;;  %v1536_v59 = vsel %vm7383_vm5, %v1531_v30, %v1535_v27  ;;  %v2356_v57 = vshll.u32 %v5849_v44, 16 }
 0x15e   : > { %v5707_v20 = vld [vmem:[%s7353_s20 + $0x9c] sm:$0xf]  ;;  %1687 = vst [vmem:[#allocation2 + $0x328] sm:$0xf] %v1526_v12  ;;  %1960 = vst [vmem:[#allocation2 + $0x350] sm:$0xf] %v1876_v39  ;;  %v8277_v39 = vpop.f32.mrf.mxu0  ;;  %v4359_v3 = vadd.f32 %v6202_v40, %v8078_v1 }
 0x15f   : > { %v2360_v8 = vshrl.u32 %v5849_v44, 16  ;;  %v2366_v28 = vshll.u32 %v5850_v7, 16  ;;  %v5708_v24 = vld [vmem:[%s7353_s20 + $0xa0] sm:$0xf]  ;;  %1688 = vst [vmem:[#allocation2 + $0x34c] sm:$0xf] %v1536_v59 }
 0x160   : > { %v2349_v13 = vrot.slane %v2347_v55, 4  ;;  %v2352_v46 = vrot.slane %v2350_v0, 5  ;;  %v5709_v9 = vld [vmem:[%s7353_s20 + $0xa4] sm:$0x1]  ;;  %v1538_v15 = vshrl.u32 %v5707_v20, 16  ;;  %v1541_v63 = vshll.u32 %v5707_v20, 16 }
 0x161   : > { %v2358_v10 = vrot.slane %v2356_v57, 5  ;;  %v2362_v19 = vrot.slane %v2360_v8, 4  ;;  %v2368_v27 = vrot.slane %v2366_v28, 5  ;;  %v1547_v11 = vshll.u32 %v5708_v24, 16  ;;  %v5755_v23 = vld [vmem:[%s7353_s20 + $0x9c] sm:$0xe] }
 0x162   : > { %v2353_v32 = vor.u32 %v2352_v46, %v2349_v13  ;;  %v1540_v30 = vrot.slane %v1538_v15, 4  ;;  %v1543_v37 = vrot.slane %v1541_v63, 5  ;;  %v1551_v44 = vshrl.u32 %v5708_v24, 16  ;;  %v5756_v12 = vld [vmem:[%s7353_s20 + $0xa0] sm:$0xf]  ;;  %v8285_v24 = vpop.f32.mrf.mxu0 }
 0x163   : > { %v2363_v7 = vor.u32 %v2362_v19, %v2358_v10  ;;  %v1549_v59 = vrot.slane %v1547_v11, 5  ;;  %v1557_v55 = vshll.u32 %v5709_v9, 16  ;;  %v5757_v0 = vld [vmem:[%s7353_s20 + $0xa4] sm:$0x1]  ;;  %v5779_v25 = vrot.slane %v5755_v23, 9  ;;  %v8287_v9 = vpop.f32.mrf.mxu1 }
 0x164   : > { %v7048_v20 = vld [vmem:[#allocation2 + $0x2ec] ss:$36 sps:$4 sm:$0xff]   ;;  %v2354_v8 = vrot.slane %v2353_v32, 4  ;;  %v1544_v28 = vor.u32 %v1543_v37, %v1540_v30  ;;  %v6205_v13 = vadd.f32 %v8144_v26, %v8128_v58  ;;  %v1553_v15 = vrot.slane %v1551_v44, 4  ;;  %v8293_v58 = vpop.f32.mrf.mxu0  ;;  %v5874_v54 = vld [vmem:[%s7353_s20 + $0x44] sm:$0x1] }
 0x165   : > { %v7050_v57 = vld [vmem:[#allocation2 + $0x2e8] ss:$36 sps:$4 sm:$0xff]   ;;  %v2364_v46 = vrot.slane %v2363_v7, 4  ;;  %v1559_v63 = vrot.slane %v1557_v55, 5  ;;  %v1879_v19 = vrot.slane %v5756_v12, 5  ;;  %4876 = vmatprep.mubr.bf16.mxu1 %v7048_v20  ;;  %v1882_v32 = vrot.slane %v5757_v0, 5  ;;  %v8299_v7 = vpop.f32.mrf.mxu1 }
 0x166   : > { %v2359_v11 = vsel %vm7383_vm5, %v2354_v8, %v2358_v10  ;;  %v1545_v23 = vrot.slane %v1544_v28, 4  ;;  %v8291_v40 = vadd.f32 %v6314_v49, %v4359_v3  ;;  %4877 = vmatmul.mubr.bf16.gmra.mxu1 %v7050_v57  ;;  %v7051_v26 = vld [vmem:[#allocation2 + $0x32c] ss:$36 sps:$4 sm:$0xff]   ;;  %v1554_v44 = vor.u32 %v1553_v15, %v1549_v59  ;;  %v5807_v49 = vld [vmem:[%s7353_s20 + $0xa8] sm:$0xf]  ;;  %v8311_v57 = vpop.f32.mrf.mxu0 }
 0x167   : > { %v7053_v30 = vld [vmem:[#allocation2 + $0x328] ss:$36 sps:$4 sm:$0xff]   ;;  %v2369_v37 = vsel %vm7383_vm5, %v2364_v46, %v2368_v27  ;;  %2520 = vst [vmem:[#allocation2 + $0x334] sm:$0xf] %v2359_v11  ;;  %v1880_v10 = vsel %vm7377_vm4, %v5779_v25, %v1879_v19  ;;  %v1881_v12 = vrot.slane %v1879_v19, 4  ;;  %v4364_v27 = vadd.f32 %v6205_v13, %v8078_v1  ;;  %4723 = vmatprep.mubr.bf16.mxu0 %v7051_v26 }
 0x168   : > { %9631 = vst [vmem:[#allocation16_spill] sm:$0xff] %v8291_v40  ;;  %2521 = vst [vmem:[#allocation2 + $0x358] sm:$0xf] %v2369_v37  ;;  %v1550_v3 = vsel %vm7383_vm5, %v1545_v23, %v1549_v59  ;;  %v5808_v55 = vld [vmem:[%s7353_s20 + $0xac] sm:$0xf]  ;;  %v6317_v20 = vadd.f32 %v8130_v6, %v8115_v50  ;;  %v6208_v25 = vadd.f32 %v8157_v45, %v8152_v35  ;;  %v1555_v8 = vrot.slane %v1554_v44, 4  ;;  %v8319_v6 = vpop.f32.mrf.mxu1 }
 0x169   : > { %1961 = vst [vmem:[#allocation2 + $0x374] sm:$0xf] %v1880_v10  ;;  %v5851_v0 = vld [vmem:[%s7353_s20 + $0xa8] sm:$0xf]  ;;  %1689 = vst [vmem:[#allocation2 + $0x370] sm:$0xf] %v1550_v3  ;;  %v1883_v59 = vsel %vm7377_vm4, %v1881_v12, %v1882_v32  ;;  %v6320_v50 = vadd.f32 %v8154_v51, %v8146_v31  ;;  %4724 = vmatmul.mubr.bf16.gmra.mxu0 %v7053_v30  ;;  %v8328_v31 = vpop.f32.mrf.mxu0 }
 0x16a   : > { %2026 = vst [vmem:[#allocation2 + $0x378] sm:$0xf] %v5807_v49  ;;  %2027 = vst [vmem:[#allocation2 + $0x39c] sm:$0xf] %v5808_v55  ;;  %v5852_v28 = vld [vmem:[%s7353_s20 + $0xac] sm:$0xf]  ;;  %v1560_v23 = vsel %vm7383_vm5, %v1555_v8, %v1559_v63  ;;  %v8326_v10 = vadd.f32 %v6317_v20, %v4364_v27  ;;  %v8331_v55 = vpop.f32.mrf.mxu1 }
 0x16b   : > { %v5853_v13 = vld [vmem:[%s7353_s20 + $0xb0] sm:$0x1]  ;;  %v2371_v46 = vshrl.u32 %v5851_v0, 16  ;;  %1962 = vst [vmem:[#allocation2 + $0x398] sm:$0xf] %v1883_v59  ;;  %v2374_v35 = vshll.u32 %v5851_v0, 16 }
 0x16c   : > { %v2380_v45 = vshll.u32 %v5852_v28, 16  ;;  %v2384_v15 = vshrl.u32 %v5852_v28, 16  ;;  %v2390_v19 = vshll.u32 %v5853_v13, 16  ;;  %v5710_v11 = vld [vmem:[%s7353_s20 + $0xa8] sm:$0xf]  ;;  %9632 = vst [vmem:[#allocation17_spill] sm:$0xff] %v8326_v10  ;;  %v8334_v13 = vpop.f32.mrf.mxu0  ;;  %v8337_v40 = vpop.f32.mrf.mxu1 }
 0x16d   : > { %v2373_v32 = vrot.slane %v2371_v46, 4  ;;  %v5711_v26 = vld [vmem:[%s7353_s20 + $0xac] sm:$0xf]  ;;  %v5712_v37 = vld [vmem:[%s7353_s20 + $0xb0] sm:$0x1]  ;;  %v1562_v44 = vshrl.u32 %v5710_v11, 16 }
 0x16e   : > { %1690 = vst [vmem:[#allocation2 + $0x394] sm:$0xf] %v1560_v23  ;;  %v2376_v51 = vrot.slane %v2374_v35, 5  ;;  %v2382_v30 = vrot.slane %v2380_v45, 5  ;;  %v2386_v12 = vrot.slane %v2384_v15, 4  ;;  %v2392_v3 = vrot.slane %v2390_v19, 5 }
 0x16f   : > { %v5758_v49 = vld [vmem:[%s7353_s20 + $0xa8] sm:$0xe]  ;;  %v1564_v0 = vrot.slane %v1562_v44, 4  ;;  %v1565_v63 = vshll.u32 %v5710_v11, 16  ;;  %v1571_v8 = vshll.u32 %v5711_v26, 16  ;;  %v1575_v59 = vshrl.u32 %v5711_v26, 16 }
 0x170   : > { %v5759_v28 = vld [vmem:[%s7353_s20 + $0xac] sm:$0xf]  ;;  %v2377_v27 = vor.u32 %v2376_v51, %v2373_v32  ;;  %v2387_v20 = vor.u32 %v2386_v12, %v2382_v30  ;;  %v1581_v46 = vshll.u32 %v5712_v37, 16  ;;  %v5760_v10 = vld [vmem:[%s7353_s20 + $0xb0] sm:$0x1]  ;;  %v5780_v23 = vrot.slane %v5758_v49, 9  ;;  %v8346_v32 = vpop.f32.mrf.mxu0  ;;  %v8348_v49 = vpop.f32.mrf.mxu1 }
 0x171   : > { %v7054_v35 = vld [vmem:[#allocation2 + $0x334] ss:$36 sps:$4 sm:$0xff]   ;;  %v1567_v15 = vrot.slane %v1565_v63, 5  ;;  %v4367_v19 = vadd.f32 %v6208_v25, %v8078_v1  ;;  %v6211_v11 = vadd.f32 %v8185_v4, %v8170_v61  ;;  %v8344_v26 = vadd.f32 %v8172_v34, %v8165_v17  ;;  %v5814_v56 = vld [vmem:[%s7353_s20 + $0xd0] sm:$0xf] }
 0x172   : > { %v7056_v45 = vld [vmem:[#allocation2 + $0x330] ss:$36 sps:$4 sm:$0xff]   ;;  %v2378_v37 = vrot.slane %v2377_v27, 4  ;;  %v2388_v44 = vrot.slane %v2387_v20, 4  ;;  %v1573_v51 = vrot.slane %v1571_v8, 5  ;;  %v1577_v12 = vrot.slane %v1575_v59, 4  ;;  %4884 = vmatprep.mubr.bf16.mxu1 %v7054_v35 }
 0x173   : > { %v1568_v25 = vor.u32 %v1567_v15, %v1564_v0  ;;  %v1583_v63 = vrot.slane %v1581_v46, 5  ;;  %v1886_v33 = vrot.slane %v5759_v28, 5  ;;  %v1889_v61 = vrot.slane %v5760_v10, 5  ;;  %v5809_v4 = vld [vmem:[%s7353_s20 + $0xb4] sm:$0xf]  ;;  %4885 = vmatmul.mubr.bf16.gmra.mxu1 %v7056_v45  ;;  %v8360_v0 = vpop.f32.mrf.mxu1  ;;  %v8367_v45 = vpop.f32.mrf.mxu0 }
 0x174   : > { %v2383_v17 = vsel %vm7383_vm5, %v2378_v37, %v2382_v30  ;;  %v2393_v34 = vsel %vm7383_vm5, %v2388_v44, %v2392_v3  ;;  %v1578_v27 = vor.u32 %v1577_v12, %v1573_v51  ;;  %v5810_v20 = vld [vmem:[%s7353_s20 + $0xb8] sm:$0xf]  ;;  %2028 = vst [vmem:[#allocation2 + $0x3c0] sm:$0xf] %v5809_v4  ;;  %v5854_v8 = vld [vmem:[%s7353_s20 + $0xb4] sm:$0xf]  ;;  %v8358_v38 = vadd.f32 %v6320_v50, %v4367_v19 }
 0x175   : > { %v5855_v59 = vld [vmem:[%s7353_s20 + $0xb8] sm:$0xf]  ;;  %v7057_v28 = vld [vmem:[#allocation2 + $0x370] ss:$36 sps:$4 sm:$0xff]   ;;  %2522 = vst [vmem:[#allocation2 + $0x37c] sm:$0xf] %v2383_v17  ;;  %v1887_v30 = vsel %vm7377_vm4, %v5780_v23, %v1886_v33  ;;  %v4372_v3 = vadd.f32 %v6211_v11, %v8078_v1  ;;  %v6214_v35 = vadd.f32 %v8220_v36, %v8207_v48  ;;  %v8373_v48 = vpop.f32.mrf.mxu1 }
 0x176   : > { %9633 = vst [vmem:[#allocation18_spill] sm:$0xff] %v8358_v38  ;;  %v7059_v10 = vld [vmem:[#allocation2 + $0x374] ss:$36 sps:$4 sm:$0xff]   ;;  %2523 = vst [vmem:[#allocation2 + $0x3a0] sm:$0xf] %v2393_v34  ;;  %v1569_v46 = vrot.slane %v1568_v25, 4 }
 0x177   : > { %2029 = vst [vmem:[#allocation2 + $0x3e4] sm:$0xf] %v5810_v20  ;;  %v1579_v50 = vrot.slane %v1578_v27, 4  ;;  %v1888_v15 = vrot.slane %v1886_v33, 4  ;;  %1963 = vst [vmem:[#allocation2 + $0x3bc] sm:$0xf] %v1887_v30  ;;  %4731 = vmatprep.mubr.bf16.mxu0 %v7059_v10  ;;  %v8393_v16 = vadd.f32 %v8344_v26, %v4372_v3 }
 0x178   : > { %v5856_v19 = vld [vmem:[%s7353_s20 + $0xbc] sm:$0x1]  ;;  %v2395_v37 = vshrl.u32 %v5854_v8, 16  ;;  %v2398_v44 = vshll.u32 %v5854_v8, 16  ;;  %v1574_v23 = vsel %vm7383_vm5, %v1569_v46, %v1573_v51  ;;  %v2404_v12 = vshll.u32 %v5855_v59, 16  ;;  %4732 = vmatmul.mubr.bf16.gmra.mxu0 %v7057_v28  ;;  %v8382_v46 = vpop.f32.mrf.mxu0 }
 0x179   : > { %v2408_v25 = vshrl.u32 %v5855_v59, 16  ;;  %v2414_v11 = vshll.u32 %v5856_v19, 16  ;;  %v5713_v4 = vld [vmem:[%s7353_s20 + $0xb4] sm:$0xf]  ;;  %v1584_v33 = vsel %vm7383_vm5, %v1579_v50, %v1583_v63  ;;  %1691 = vst [vmem:[#allocation2 + $0x3b8] sm:$0xf] %v1574_v23  ;;  %v1890_v36 = vsel %vm7377_vm4, %v1888_v15, %v1889_v61  ;;  %v8384_v63 = vpop.f32.mrf.mxu1 }
 0x17a   : > { %v2397_v17 = vrot.slane %v2395_v37, 4  ;;  %v2400_v34 = vrot.slane %v2398_v44, 5  ;;  %v5714_v27 = vld [vmem:[%s7353_s20 + $0xb8] sm:$0xf]  ;;  %v5715_v51 = vld [vmem:[%s7353_s20 + $0xbc] sm:$0x1]  ;;  %v8388_v38 = vpop.f32.mrf.mxu0 }
 0x17b   : > { %1692 = vst [vmem:[#allocation2 + $0x3dc] sm:$0xf] %v1584_v33  ;;  %1964 = vst [vmem:[#allocation2 + $0x3e0] sm:$0xf] %v1890_v36  ;;  %v2406_v20 = vrot.slane %v2404_v12, 5  ;;  %v2410_v8 = vrot.slane %v2408_v25, 4  ;;  %v8390_v12 = vpop.f32.mrf.mxu1 }
 0x17c   : > { %v2416_v59 = vrot.slane %v2414_v11, 5  ;;  %v1586_v10 = vshrl.u32 %v5713_v4, 16  ;;  %v5761_v28 = vld [vmem:[%s7353_s20 + $0xb4] sm:$0xe]  ;;  %v2401_v30 = vor.u32 %v2400_v34, %v2397_v17  ;;  %v1589_v50 = vshll.u32 %v5713_v4, 16  ;;  %9634 = vst [vmem:[#allocation19_spill] sm:$0xff] %v8393_v16 }
 0x17d   : > { %v1595_v61 = vshll.u32 %v5714_v27, 16  ;;  %v1599_v15 = vshrl.u32 %v5714_v27, 16  ;;  %v5762_v19 = vld [vmem:[%s7353_s20 + $0xb8] sm:$0xf]  ;;  %v2411_v37 = vor.u32 %v2410_v8, %v2406_v20  ;;  %v1605_v23 = vshll.u32 %v5715_v51, 16 }
 0x17e   : > { %v1588_v44 = vrot.slane %v1586_v10, 4  ;;  %v5763_v33 = vld [vmem:[%s7353_s20 + $0xbc] sm:$0x1]  ;;  %v5781_v36 = vrot.slane %v5761_v28, 9  ;;  %v2402_v11 = vrot.slane %v2401_v30, 4  ;;  %v1591_v60 = vrot.slane %v1589_v50, 5  ;;  %v8396_v10 = vpop.f32.mrf.mxu0 }
 0x17f   : > { %v7061_v25 = vld [vmem:[#allocation2 + $0x378] ss:$36 sps:$4 sm:$0xff]   ;;  %v4375_v4 = vadd.f32 %v6214_v35, %v8078_v1  ;;  %v2412_v34 = vrot.slane %v2411_v37, 4  ;;  %v1597_v27 = vrot.slane %v1595_v61, 5  ;;  %v1601_v51 = vrot.slane %v1599_v15, 4 }
 0x180   : > { %v7063_v17 = vld [vmem:[#allocation2 + $0x37c] ss:$36 sps:$4 sm:$0xff]   ;;  %v1607_v8 = vrot.slane %v1605_v23, 5  ;;  %v2407_v28 = vsel %vm7383_vm5, %v2402_v11, %v2406_v20  ;;  %v1592_v42 = vor.u32 %v1591_v60, %v1588_v44  ;;  %v1893_v30 = vrot.slane %v5762_v19, 5  ;;  %v5812_v16 = vld [vmem:[%s7353_s20 + $0xc4] sm:$0xf]  ;;  %v8408_v37 = vpop.f32.mrf.mxu0  ;;  %v8410_v60 = vpop.f32.mrf.mxu1 }
 0x181   : > { %v1896_v50 = vrot.slane %v5763_v33, 5  ;;  %4892 = vmatprep.mubr.bf16.mxu1 %v7063_v17  ;;  %v2417_v26 = vsel %vm7383_vm5, %v2412_v34, %v2416_v59  ;;  %2524 = vst [vmem:[#allocation2 + $0x3c4] sm:$0xf] %v2407_v28  ;;  %v1602_v3 = vor.u32 %v1601_v51, %v1597_v27  ;;  %v5811_v35 = vld [vmem:[%s7353_s20 + $0xc0] sm:$0xf]  ;;  %v6326_v61 = vadd.f32 %v8222_v14, %v8187_v5 }
 0x182   : > { %v6217_v15 = vadd.f32 %v8234_v2, %v8226_v47  ;;  %4893 = vmatmul.mubr.bf16.gmra.mxu1 %v7061_v25  ;;  %v7064_v20 = vld [vmem:[#allocation2 + $0x3b8] ss:$36 sps:$4 sm:$0xff]   ;;  %2525 = vst [vmem:[#allocation2 + $0x3e8] sm:$0xf] %v2417_v26  ;;  %v1593_v59 = vrot.slane %v1592_v42, 4  ;;  %v1894_v44 = vsel %vm7377_vm4, %v5781_v36, %v1893_v30  ;;  %v6329_v5 = vadd.f32 %v8237_v29, %v8232_v22  ;;  %v8434_v51 = vpop.f32.mrf.mxu1 }
 0x183   : > { %v7066_v19 = vld [vmem:[#allocation2 + $0x3bc] ss:$36 sps:$4 sm:$0xff]   ;;  %2030 = vst [vmem:[#allocation2 + $0x408] sm:$0xf] %v5811_v35  ;;  %2031 = vst [vmem:[#allocation2 + $0x42c] sm:$0xf] %v5812_v16  ;;  %v6220_v14 = vadd.f32 %v8267_v43, %v8243_v18  ;;  %v8420_v25 = vadd.f32 %v6326_v61, %v4375_v4  ;;  %v8426_v18 = vpop.f32.mrf.mxu0 }
 0x184   : > { %v1603_v47 = vrot.slane %v1602_v3, 4  ;;  %v1895_v2 = vrot.slane %v1893_v30, 4  ;;  %1965 = vst [vmem:[#allocation2 + $0x404] sm:$0xf] %v1894_v44  ;;  %v5857_v23 = vld [vmem:[%s7353_s20 + $0xc0] sm:$0xf]  ;;  %v4380_v42 = vadd.f32 %v6217_v15, %v8078_v1  ;;  %4739 = vmatprep.mubr.bf16.mxu0 %v7066_v19  ;;  %v1598_v16 = vsel %vm7383_vm5, %v1593_v59, %v1597_v27  ;;  %v8440_v59 = vpop.f32.mrf.mxu1 }
 0x185   : > { %v5858_v33 = vld [vmem:[%s7353_s20 + $0xc4] sm:$0xf]  ;;  %9635 = vst [vmem:[#allocation20_spill] sm:$0xff] %v8420_v25  ;;  %v5859_v36 = vld [vmem:[%s7353_s20 + $0xc8] sm:$0x1]  ;;  %v2419_v22 = vshrl.u32 %v5857_v23, 16  ;;  %4740 = vmatmul.mubr.bf16.gmra.mxu0 %v7064_v20 }
 0x186   : > { %v2422_v29 = vshll.u32 %v5857_v23, 16  ;;  %v2428_v11 = vshll.u32 %v5858_v33, 16  ;;  %v1608_v43 = vsel %vm7383_vm5, %v1603_v47, %v1607_v8  ;;  %1693 = vst [vmem:[#allocation2 + $0x400] sm:$0xf] %v1598_v16  ;;  %v1897_v4 = vsel %vm7377_vm4, %v1895_v2, %v1896_v50  ;;  %v5716_v34 = vld [vmem:[%s7353_s20 + $0xc0] sm:$0xf]  ;;  %v8437_v8 = vpop.f32.mrf.mxu0 }
 0x187   : > { %v2432_v1 = vshrl.u32 %v5858_v33, 16  ;;  %v2438_v17 = vshll.u32 %v5859_v36, 16  ;;  %v5717_v27 = vld [vmem:[%s7353_s20 + $0xc4] sm:$0xf]  ;;  %1694 = vst [vmem:[#allocation2 + $0x424] sm:$0xf] %v1608_v43  ;;  %v8445_v43 = vadd.f32 %v6329_v5, %v4380_v42 }
 0x188   : > { %1966 = vst [vmem:[#allocation2 + $0x428] sm:$0xf] %v1897_v4  ;;  %v2421_v28 = vrot.slane %v2419_v22, 4  ;;  %v2424_v30 = vrot.slane %v2422_v29, 5  ;;  %v2430_v26 = vrot.slane %v2428_v11, 5  ;;  %v1610_v35 = vshrl.u32 %v5716_v34, 16  ;;  %v8443_v16 = vpop.f32.mrf.mxu0 }
 0x189   : > { %v5718_v3 = vld [vmem:[%s7353_s20 + $0xc8] sm:$0x1]  ;;  %v2434_v61 = vrot.slane %v2432_v1, 4  ;;  %v2440_v15 = vrot.slane %v2438_v17, 5  ;;  %v1613_v50 = vshll.u32 %v5716_v34, 16  ;;  %v1619_v20 = vshll.u32 %v5717_v27, 16  ;;  %v8453_v17 = vpop.f32.mrf.mxu1 }
 0x18a   : > { %v5764_v19 = vld [vmem:[%s7353_s20 + $0xc0] sm:$0xe]  ;;  %v2425_v44 = vor.u32 %v2424_v30, %v2421_v28  ;;  %v1612_v47 = vrot.slane %v1610_v35, 4  ;;  %v1623_v2 = vshrl.u32 %v5717_v27, 16  ;;  %v1629_v23 = vshll.u32 %v5718_v3, 16  ;;  %9636 = vst [vmem:[#allocation21_spill] sm:$0xff] %v8445_v43  ;;  %v8457_v43 = vpop.f32.mrf.mxu0 }
 0x18b   : > { %v5765_v33 = vld [vmem:[%s7353_s20 + $0xc4] sm:$0xf]  ;;  %v2435_v29 = vor.u32 %v2434_v61, %v2430_v26  ;;  %v1615_v11 = vrot.slane %v1613_v50, 5  ;;  %v8450_v4 = vld [vmem:[%s9592_s3] ss:$0 sm:$0xff]  ;;  %v1621_v27 = vrot.slane %v1619_v20, 5 }
 0x18c   : > { %v7067_v36 = vld [vmem:[#allocation2 + $0x3c0] ss:$36 sps:$4 sm:$0xff]   ;;  %v4383_v1 = vadd.f32 %v8450_v4, %v6220_v14  ;;  %v2426_v34 = vrot.slane %v2425_v44, 4  ;;  %v1625_v28 = vrot.slane %v1623_v2, 4  ;;  %v1631_v30 = vrot.slane %v1629_v23, 5 }
 0x18d   : > { %v7069_v22 = vld [vmem:[#allocation2 + $0x3c4] ss:$36 sps:$4 sm:$0xff]   ;;  %v2436_v35 = vrot.slane %v2435_v29, 4  ;;  %v1616_v5 = vor.u32 %v1615_v11, %v1612_v47  ;;  %v5782_v42 = vrot.slane %v5764_v19, 9  ;;  %v1900_v61 = vrot.slane %v5765_v33, 5  ;;  %v8465_v47 = vpop.f32.mrf.mxu1 }
 0x18e   : > { %v5766_v3 = vld [vmem:[%s7353_s20 + $0xc8] sm:$0x1]  ;;  %4900 = vmatprep.mubr.bf16.mxu1 %v7069_v22  ;;  %v5813_v50 = vld [vmem:[%s7353_s20 + $0xcc] sm:$0xf]  ;;  %v2431_v14 = vsel %vm7383_vm5, %v2426_v34, %v2430_v26  ;;  %v1626_v25 = vor.u32 %v1625_v28, %v1621_v27  ;;  %v6332_v2 = vadd.f32 %v8272_v62, %v8251_v21  ;;  %v7070_v19 = vld [vmem:[#allocation2 + $0x400] ss:$36 sps:$4 sm:$0xff]   ;;  %v6223_v22 = vadd.f32 %v8285_v24, %v8277_v39 }
 0x18f   : > { %4901 = vmatmul.mubr.bf16.gmra.mxu1 %v7067_v36  ;;  %v1903_v44 = vrot.slane %v5766_v3, 5  ;;  %2032 = vst [vmem:[#allocation2 + $0x450] sm:$0xf] %v5813_v50  ;;  %v5860_v20 = vld [vmem:[%s7353_s20 + $0xcc] sm:$0xf]  ;;  %v2441_v33 = vsel %vm7383_vm5, %v2436_v35, %v2440_v15  ;;  %v1617_v36 = vrot.slane %v1616_v5, 4  ;;  %v1901_v26 = vsel %vm7377_vm4, %v5782_v42, %v1900_v61  ;;  %v8490_v42 = vpop.f32.mrf.mxu1 }
 0x190   : > { %v7072_v23 = vld [vmem:[#allocation2 + $0x404] ss:$36 sps:$4 sm:$0xff]   ;;  %2526 = vst [vmem:[#allocation2 + $0x40c] sm:$0xf] %v2431_v14  ;;  %2033 = vst [vmem:[#allocation2 + $0x474] sm:$0xf] %v5814_v56  ;;  %v8475_v34 = vadd.f32 %v6332_v2, %v4383_v1  ;;  %v6335_v15 = vadd.f32 %v8287_v9, %v8280_v53 }
 0x191   : > { %2527 = vst [vmem:[#allocation2 + $0x430] sm:$0xf] %v2441_v33  ;;  %v1627_v29 = vrot.slane %v1626_v25, 4  ;;  %v1902_v21 = vrot.slane %v1900_v61, 4  ;;  %1967 = vst [vmem:[#allocation2 + $0x44c] sm:$0xf] %v1901_v26  ;;  %4747 = vmatprep.mubr.bf16.mxu0 %v7072_v23  ;;  %v1622_v56 = vsel %vm7383_vm5, %v1617_v36, %v1621_v27  ;;  %v8482_v25 = vpop.f32.mrf.mxu0  ;;  %v8496_v26 = vpop.f32.mrf.mxu1 }
 0x192   : > { %v5861_v62 = vld [vmem:[%s7353_s20 + $0xd0] sm:$0xf]  ;;  %v5862_v11 = vld [vmem:[%s7353_s20 + $0xd4] sm:$0x1]  ;;  %v2443_v28 = vshrl.u32 %v5860_v20, 16  ;;  %v2446_v3 = vshll.u32 %v5860_v20, 16  ;;  %4748 = vmatmul.mubr.bf16.gmra.mxu0 %v7070_v19 }
 0x193   : > { %v2452_v39 = vshll.u32 %v5861_v62, 16  ;;  %v5863_v24 = vld [vmem:[%s7353_s20 + $0x18] sm:$0xe]  ;;  %v1632_v1 = vsel %vm7383_vm5, %v1627_v29, %v1631_v30  ;;  %1695 = vst [vmem:[#allocation2 + $0x448] sm:$0xf] %v1622_v56  ;;  %v1904_v35 = vsel %vm7377_vm4, %v1902_v21, %v1903_v44  ;;  %v2456_v53 = vshrl.u32 %v5861_v62, 16  ;;  %v8493_v2 = vpop.f32.mrf.mxu0 }
 0x194   : > { %v2462_v9 = vshll.u32 %v5862_v11, 16  ;;  %v5864_v5 = vld [vmem:[%s7353_s20 + $0x1c] sm:$0xf]  ;;  %v5865_v27 = vld [vmem:[%s7353_s20 + $0x20] sm:$0x1]  ;;  %v2445_v61 = vrot.slane %v2443_v28, 4  ;;  %v4388_v28 = vadd.f32 %v8450_v4, %v6223_v22 }
 0x195   : > { %1696 = vst [vmem:[#allocation2 + $0x46c] sm:$0xf] %v1632_v1  ;;  %1968 = vst [vmem:[#allocation2 + $0x470] sm:$0xf] %v1904_v35  ;;  %v2448_v50 = vrot.slane %v2446_v3, 5  ;;  %v2454_v14 = vrot.slane %v2452_v39, 5  ;;  %v8501_v3 = vpop.f32.mrf.mxu0 }
 0x196   : > { %v5911_v20 = vrot.slane %v5863_v24, 9  ;;  %v5866_v30 = vld [vmem:[%s7353_s20 + $0x24] sm:$0xe]  ;;  %v2458_v19 = vrot.slane %v2456_v53, 4  ;;  %v2464_v44 = vrot.slane %v2462_v9, 5  ;;  %v2628_v23 = vrot.slane %v5864_v5, 5  ;;  %v8506_v9 = vpop.f32.mrf.mxu1 }
 0x197   : > { %v2631_v33 = vrot.slane %v5865_v27, 5  ;;  %v5867_v36 = vld [vmem:[%s7353_s20 + $0x28] sm:$0xf]  ;;  %v2449_v29 = vor.u32 %v2448_v50, %v2445_v61  ;;  %v5868_v21 = vld [vmem:[%s7353_s20 + $0x2c] sm:$0x1]  ;;  %v5912_v62 = vrot.slane %v5866_v30, 9  ;;  %v8510_v22 = vadd.f32 %v6335_v15, %v4388_v28 }
 0x198   : > { %v2635_v11 = vrot.slane %v5867_v36, 5  ;;  %v5869_v56 = vld [vmem:[%s7353_s20 + $0x30] sm:$0xe]  ;;  %v2459_v39 = vor.u32 %v2458_v19, %v2454_v14  ;;  %v2629_v24 = vsel %vm7377_vm4, %v5911_v20, %v2628_v23  ;;  %v2630_v1 = vrot.slane %v2628_v23, 4  ;;  %v5870_v53 = vld [vmem:[%s7353_s20 + $0x34] sm:$0xf]  ;;  %v8514_v20 = vpop.f32.mrf.mxu0 }
 0x199   : > { %v2638_v35 = vrot.slane %v5868_v21, 5  ;;  %v7074_v5 = vld [vmem:[#allocation2 + $0x408] ss:$36 sps:$4 sm:$0xff]   ;;  %v2450_v61 = vrot.slane %v2449_v29, 4  ;;  %2770 = vst [vmem:[#allocation2 + $0x20] sm:$0xf] %v2629_v24  ;;  %v6226_v30 = vadd.f32 %v8311_v57, %v8293_v58  ;;  %v8519_v24 = vpop.f32.mrf.mxu1 }
 0x19a   : > { %v7076_v27 = vld [vmem:[#allocation2 + $0x40c] ss:$36 sps:$4 sm:$0xff]   ;;  %v2636_v50 = vsel %vm7377_vm4, %v5912_v62, %v2635_v11  ;;  %v2460_v19 = vrot.slane %v2459_v39, 4  ;;  %v2632_v23 = vsel %vm7377_vm4, %v2630_v1, %v2631_v33  ;;  %v2637_v36 = vrot.slane %v2635_v11, 4  ;;  %v5871_v21 = vld [vmem:[%s7353_s20 + $0x38] sm:$0x1] }
 0x19b   : > { %2772 = vst [vmem:[#allocation2 + $0x68] sm:$0xf] %v2636_v50  ;;  %v5913_v29 = vrot.slane %v5869_v56, 9  ;;  %4908 = vmatprep.mubr.bf16.mxu1 %v7076_v27  ;;  %v2455_v15 = vsel %vm7383_vm5, %v2450_v61, %v2454_v14  ;;  %2771 = vst [vmem:[#allocation2 + $0x44] sm:$0xf] %v2632_v23  ;;  %v2642_v62 = vrot.slane %v5870_v53, 5  ;;  %v4391_v28 = vadd.f32 %v8450_v4, %v6226_v30  ;;  %v8539_v61 = vpop.f32.mrf.mxu0 }
 0x19c   : > { %v2645_v58 = vrot.slane %v5871_v21, 5  ;;  %v5872_v57 = vld [vmem:[%s7353_s20 + $0x3c] sm:$0xe]  ;;  %4909 = vmatmul.mubr.bf16.gmra.mxu1 %v7074_v5  ;;  %v7077_v33 = vld [vmem:[#allocation2 + $0x448] ss:$36 sps:$4 sm:$0xff]   ;;  %v2465_v56 = vsel %vm7383_vm5, %v2460_v19, %v2464_v44  ;;  %v2639_v39 = vsel %vm7377_vm4, %v2637_v36, %v2638_v35  ;;  %v6338_v14 = vadd.f32 %v8319_v6, %v8299_v7  ;;  %v8541_v7 = vpop.f32.mrf.mxu1 }
 0x19d   : > { %v7079_v11 = vld [vmem:[#allocation2 + $0x44c] ss:$36 sps:$4 sm:$0xff]   ;;  %2528 = vst [vmem:[#allocation2 + $0x454] sm:$0xf] %v2455_v15  ;;  %v5914_v1 = vrot.slane %v5872_v57, 9  ;;  %v2643_v53 = vsel %vm7377_vm4, %v5913_v29, %v2642_v62  ;;  %v2644_v5 = vrot.slane %v2642_v62, 4  ;;  %v6229_v44 = vadd.f32 %v8334_v13, %v8328_v31  ;;  %v8554_v15 = vpop.f32.mrf.mxu0 }
 0x19e   : > { %2529 = vst [vmem:[#allocation2 + $0x478] sm:$0xf] %v2465_v56  ;;  %2773 = vst [vmem:[#allocation2 + $0x8c] sm:$0xf] %v2639_v39  ;;  %v5873_v27 = vld [vmem:[%s7353_s20 + $0x40] sm:$0xf]  ;;  %v6341_v35 = vadd.f32 %v8337_v40, %v8331_v55  ;;  %4755 = vmatprep.mubr.bf16.mxu0 %v7079_v11  ;;  %v8545_v23 = vadd.f32 %v6338_v14, %v4391_v28  ;;  %v6232_v31 = vadd.f32 %v8367_v45, %v8346_v32  ;;  %v8556_v62 = vpop.f32.mrf.mxu1 }
 0x19f   : > { %2774 = vst [vmem:[#allocation2 + $0xb0] sm:$0xf] %v2643_v53  ;;  %v2649_v6 = vrot.slane %v5873_v27, 5  ;;  %v2652_v50 = vrot.slane %v5874_v54, 5  ;;  %v5875_v30 = vld [vmem:[%s7353_s20 + $0x48] sm:$0xe]  ;;  %4756 = vmatmul.mubr.bf16.gmra.mxu0 %v7077_v33  ;;  %v2646_v40 = vsel %vm7377_vm4, %v2644_v5, %v2645_v58  ;;  %v4396_v29 = vadd.f32 %v8450_v4, %v6229_v44  ;;  %v8567_v53 = vpop.f32.mrf.mxu0 }
 0x1a0   : > { %v5876_v19 = vld [vmem:[%s7353_s20 + $0x4c] sm:$0xf]  ;;  %v5877_v55 = vld [vmem:[%s7353_s20 + $0x50] sm:$0x1]  ;;  %v5915_v13 = vrot.slane %v5875_v30, 9  ;;  %v4399_v58 = vadd.f32 %v8450_v4, %v6232_v31  ;;  %v6344_v44 = vadd.f32 %v8360_v0, %v8348_v49  ;;  %v6235_v31 = vadd.f32 %v8388_v38, %v8382_v46 }
 0x1a1   : > { %v2656_v36 = vrot.slane %v5876_v19, 5  ;;  %v5878_v21 = vld [vmem:[%s7353_s20 + $0x54] sm:$0xe]  ;;  %2775 = vst [vmem:[#allocation2 + $0xd4] sm:$0xf] %v2646_v40  ;;  %v2650_v57 = vsel %vm7377_vm4, %v5914_v1, %v2649_v6  ;;  %v2651_v32 = vrot.slane %v2649_v6, 4  ;;  %v8565_v14 = vadd.f32 %v6341_v35, %v4396_v29  ;;  %v8573_v6 = vpop.f32.mrf.mxu1 }
 0x1a2   : > { %v2659_v45 = vrot.slane %v5877_v55, 5  ;;  %v5879_v28 = vld [vmem:[%s7353_s20 + $0x58] sm:$0xf]  ;;  %2776 = vst [vmem:[#allocation2 + $0xf8] sm:$0xf] %v2650_v57  ;;  %v5916_v39 = vrot.slane %v5878_v21, 9  ;;  %v6238_v40 = vadd.f32 %v8408_v37, %v8396_v10  ;;  %v6350_v38 = vadd.f32 %v8410_v60, %v8390_v12  ;;  %v8597_v21 = vpop.f32.mrf.mxu0 }
 0x1a3   : > { %v2657_v33 = vsel %vm7377_vm4, %v5915_v13, %v2656_v36  ;;  %v2658_v11 = vrot.slane %v2656_v36, 4  ;;  %v5880_v56 = vld [vmem:[%s7353_s20 + $0x5c] sm:$0x1]  ;;  %v7083_v5 = vld [vmem:[#allocation2 + $0x20] ss:$36 sps:$4 sm:$0xff]   ;;  %v2653_v1 = vsel %vm7377_vm4, %v2651_v32, %v2652_v50  ;;  %v2663_v27 = vrot.slane %v5879_v28, 5  ;;  %v6367_v28 = vpop.f32.mrf.mxu1 }
 0x1a4   : > { %2778 = vst [vmem:[#allocation2 + $0x140] sm:$0xf] %v2657_v33  ;;  %v2666_v54 = vrot.slane %v5880_v56, 5  ;;  %2777 = vst [vmem:[#allocation2 + $0x11c] sm:$0xf] %v2653_v1  ;;  %v6347_v50 = vadd.f32 %v8384_v63, %v8373_v48  ;;  %6673 = vmatprep.mubr.bf16.mxu0 %v7083_v5  ;;  %v8587_v36 = vadd.f32 %v6344_v44, %v4399_v58  ;;  %v6257_v44 = vpop.f32.mrf.mxu0 }
 0x1a5   : > { %v2660_v30 = vsel %vm7377_vm4, %v2658_v11, %v2659_v45  ;;  %v5881_v35 = vld [vmem:[%s7353_s20 + $0x60] sm:$0xe]  ;;  %v5882_v19 = vld [vmem:[%s7353_s20 + $0x64] sm:$0xf]  ;;  %v7080_v55 = vld [vmem:[#allocation2 + $0x450] ss:$36 sps:$4 sm:$0xff]   ;;  %v2664_v49 = vsel %vm7377_vm4, %v5916_v39, %v2663_v27  ;;  %v4404_v48 = vadd.f32 %v8450_v4, %v6235_v31  ;;  %v4407_v63 = vadd.f32 %v8450_v4, %v6238_v40 }
 0x1a6   : > { %v7082_v13 = vld [vmem:[#allocation2 + $0x454] ss:$36 sps:$4 sm:$0xff]   ;;  %2779 = vst [vmem:[#allocation2 + $0x164] sm:$0xf] %v2660_v30  ;;  %v2665_v0 = vrot.slane %v2663_v27, 4  ;;  %v6241_v10 = vadd.f32 %v8437_v8, %v8426_v18  ;;  %v6353_v37 = vadd.f32 %v8440_v59, %v8434_v51  ;;  %v5917_v12 = vrot.slane %v5881_v35, 9  ;;  %v6258_v40 = vpop.f32.mrf.mxu0 }
 0x1a7   : > { %v7084_v46 = vld [vmem:[#allocation2 + $0x68] ss:$36 sps:$4 sm:$0xff]   ;;  %2780 = vst [vmem:[#allocation2 + $0x188] sm:$0xf] %v2664_v49  ;;  %4916 = vmatprep.mubr.bf16.mxu1 %v7082_v13  ;;  %v2670_v60 = vrot.slane %v5882_v19, 5  ;;  %v6244_v45 = vadd.f32 %v8457_v43, %v8443_v16  ;;  %v8605_v59 = vadd.f32 %v6347_v50, %v4404_v48  ;;  %v8607_v58 = vadd.f32 %v6350_v38, %v4407_v63 }
 0x1a8   : > { %v2667_v29 = vsel %vm7377_vm4, %v2665_v0, %v2666_v54  ;;  %v5883_v57 = vld [vmem:[%s7353_s20 + $0x68] sm:$0x1]  ;;  %v5884_v32 = vld [vmem:[%s7353_s20 + $0x6c] sm:$0xe]  ;;  %4917 = vmatmul.mubr.bf16.gmra.mxu1 %v7080_v55  ;;  %6674 = vmatmul.mubr.bf16.vlgmr.msra.gmra.mxu0 %v7084_v46  ;;  %v7085_v18 = vld [vmem:[#allocation2 + $0xb0] ss:$36 sps:$4 sm:$0xff]   ;;  %v4412_v39 = vadd.f32 %v8450_v4, %v6241_v10  ;;  %v6356_v1 = vadd.f32 %v8465_v47, %v8453_v17  ;;  %v6369_v17 = vpop.f32.mrf.mxu1 }
 0x1a9   : > { %2781 = vst [vmem:[#allocation2 + $0x1ac] sm:$0xf] %v2667_v29  ;;  %v2673_v51 = vrot.slane %v5883_v57, 5  ;;  %v5918_v8 = vrot.slane %v5884_v32, 9  ;;  %v2671_v33 = vsel %vm7377_vm4, %v5917_v12, %v2670_v60  ;;  %v2672_v11 = vrot.slane %v2670_v60, 4  ;;  %6677 = vmatprep.mubr.bf16.mxu0 %v7085_v18  ;;  %v6260_v57 = vpop.f32.mrf.mxu0 }
 0x1aa   : > { %v5885_v56 = vld [vmem:[%s7353_s20 + $0x70] sm:$0xf]  ;;  %v4415_v16 = vadd.f32 %v8450_v4, %v6244_v45  ;;  %2782 = vst [vmem:[#allocation2 + $0x1d0] sm:$0xf] %v2671_v33  ;;  %v5886_v43 = vld [vmem:[%s7353_s20 + $0x74] sm:$0x1]  ;;  %v6247_v27 = vadd.f32 %v8493_v2, %v8482_v25  ;;  %v6359_v54 = vadd.f32 %v8496_v26, %v8490_v42  ;;  %v8623_v31 = vadd.f32 %v6353_v37, %v4412_v39  ;;  %v6370_v38 = vpop.f32.mrf.mxu1 }
 0x1ab   : > { %v2677_v5 = vrot.slane %v5885_v56, 5  ;;  %v7086_v30 = vld [vmem:[#allocation2 + $0xf8] ss:$36 sps:$4 sm:$0xff]   ;;  %v2674_v35 = vsel %vm7377_vm4, %v2672_v11, %v2673_v51  ;;  %v2680_v19 = vrot.slane %v5886_v43, 5  ;;  %v6250_v50 = vadd.f32 %v8514_v20, %v8501_v3  ;;  %v5889_v48 = vld [vmem:[%s7353_s20 + $0x80] sm:$0x1]  ;;  %v6261_v39 = vpop.f32.mrf.mxu0 }
 0x1ac   : > { %2783 = vst [vmem:[#allocation2 + $0x1f4] sm:$0xf] %v2674_v35  ;;  %v8629_v2 = vadd.f32 %v6356_v1, %v4415_v16  ;;  %v4420_v26 = vadd.f32 %v8450_v4, %v6247_v27  ;;  %v5887_v55 = vld [vmem:[%s7353_s20 + $0x78] sm:$0xe]  ;;  %v5888_v13 = vld [vmem:[%s7353_s20 + $0x7c] sm:$0xf]  ;;  %v6362_v3 = vadd.f32 %v8519_v24, %v8506_v9  ;;  %v6253_v20 = vadd.f32 %v8554_v15, %v8539_v61  ;;  %v6372_v15 = vpop.f32.mrf.mxu1 }
 0x1ad   : > { %v7087_v47 = vld [vmem:[#allocation2 + $0x140] ss:$36 sps:$4 sm:$0xff]   ;;  %v2678_v25 = vsel %vm7377_vm4, %v5918_v8, %v2677_v5  ;;  %v2679_v42 = vrot.slane %v2677_v5, 4  ;;  %v4423_v49 = vadd.f32 %v8450_v4, %v6250_v50  ;;  %v6365_v0 = vadd.f32 %v8556_v62, %v8541_v7  ;;  %v5891_v60 = vld [vmem:[%s7353_s20 + $0x88] sm:$0xf] }
 0x1ae   : > { %2784 = vst [vmem:[#allocation2 + $0x218] sm:$0xf] %v2678_v25  ;;  %v5919_v63 = vrot.slane %v5887_v55, 9  ;;  %v2684_v10 = vrot.slane %v5888_v13, 5  ;;  %v5890_v37 = vld [vmem:[%s7353_s20 + $0x84] sm:$0xe]  ;;  %v8645_v29 = vadd.f32 %v6359_v54, %v4420_v26  ;;  %v4428_v7 = vadd.f32 %v8450_v4, %v6253_v20  ;;  %v6373_v16 = vpop.f32.mrf.mxu1 }
 0x1af   : > { %v2681_v46 = vsel %vm7377_vm4, %v2679_v42, %v2680_v19  ;;  %v2687_v9 = vrot.slane %v5889_v48, 5  ;;  %v5920_v24 = vrot.slane %v5890_v37, 9  ;;  %v8647_v61 = vadd.f32 %v6362_v3, %v4423_v49  ;;  %v5892_v32 = vld [vmem:[%s7353_s20 + $0x8c] sm:$0x1]  ;;  %v5893_v33 = vld [vmem:[%s7353_s20 + $0x90] sm:$0xe]  ;;  %v6391_v3 = vpop.f32.mrf.mxu0 }
 0x1b0   : > { %2785 = vst [vmem:[#allocation2 + $0x23c] sm:$0xf] %v2681_v46  ;;  %6678 = vmatmul.mubr.bf16.gmra.mxu0 %v7086_v30  ;;  %v2685_v62 = vsel %vm7377_vm4, %v5919_v63, %v2684_v10  ;;  %v2686_v12 = vrot.slane %v2684_v10, 4  ;;  %v6256_v45 = vadd.f32 %v8597_v21, %v8567_v53  ;;  %v6368_v18 = vadd.f32 %v6367_v28, %v8573_v6  ;;  %v7088_v43 = vld [vmem:[#allocation2 + $0x188] ss:$36 sps:$4 sm:$0xff]  }
 0x1b1   : > { %6681 = vmatprep.mubr.bf16.mxu0 %v7087_v47  ;;  %2786 = vst [vmem:[#allocation2 + $0x260] sm:$0xf] %v2685_v62  ;;  %v2691_v51 = vrot.slane %v5891_v60, 5  ;;  %v2694_v8 = vrot.slane %v5892_v32, 5  ;;  %v8658_v11 = vadd.f32 %v6365_v0, %v4428_v7  ;;  %v6259_v56 = vadd.f32 %v6258_v40, %v6257_v44  ;;  %v5894_v1 = vld [vmem:[%s7353_s20 + $0x94] sm:$0xf] }
 0x1b2   : > { %v2688_v5 = vsel %vm7377_vm4, %v2686_v12, %v2687_v9  ;;  %v5895_v27 = vld [vmem:[%s7353_s20 + $0x98] sm:$0x1]  ;;  %v5921_v53 = vrot.slane %v5893_v33, 9  ;;  %v4431_v6 = vadd.f32 %v8450_v4, %v6256_v45  ;;  %v6371_v21 = vadd.f32 %v6370_v38, %v6369_v17  ;;  %v5896_v50 = vld [vmem:[%s7353_s20 + $0x9c] sm:$0xe] }
 0x1b3   : > { %v7089_v28 = vld [vmem:[#allocation2 + $0x1d0] ss:$36 sps:$4 sm:$0xff]   ;;  %2787 = vst [vmem:[#allocation2 + $0x284] sm:$0xf] %v2688_v5  ;;  %v2692_v54 = vsel %vm7377_vm4, %v5920_v24, %v2691_v51  ;;  %v2693_v44 = vrot.slane %v2691_v51, 4  ;;  %v2698_v30 = vrot.slane %v5894_v1, 5  ;;  %v4436_v35 = vadd.f32 %v8450_v4, %v6259_v56 }
 0x1b4   : > { %2788 = vst [vmem:[#allocation2 + $0x2a8] sm:$0xf] %v2692_v54  ;;  %v2701_v19 = vrot.slane %v5895_v27, 5  ;;  %v8669_v47 = vadd.f32 %v6368_v18, %v4431_v6  ;;  %v6262_v25 = vadd.f32 %v6261_v39, %v6260_v57  ;;  %v6374_v42 = vadd.f32 %v6373_v16, %v6372_v15  ;;  %v5897_v55 = vld [vmem:[%s7353_s20 + $0xa0] sm:$0xf]  ;;  %v6392_v57 = vpop.f32.mrf.mxu0 }
 0x1b5   : > { %v2695_v17 = vsel %vm7377_vm4, %v2693_v44, %v2694_v8  ;;  %v2699_v26 = vsel %vm7377_vm4, %v5921_v53, %v2698_v30  ;;  %v2700_v40 = vrot.slane %v2698_v30, 4  ;;  %v5898_v13 = vld [vmem:[%s7353_s20 + $0xa4] sm:$0x1]  ;;  %v5922_v49 = vrot.slane %v5896_v50, 9  ;;  %v5899_v63 = vld [vmem:[%s7353_s20 + $0xa8] sm:$0xe] }
 0x1b6   : > { %2789 = vst [vmem:[#allocation2 + $0x2cc] sm:$0xf] %v2695_v17  ;;  %2790 = vst [vmem:[#allocation2 + $0x2f0] sm:$0xf] %v2699_v26  ;;  %v2705_v20 = vrot.slane %v5897_v55, 5  ;;  %v2708_v0 = vrot.slane %v5898_v13, 5  ;;  %v8677_v38 = vadd.f32 %v6371_v21, %v4436_v35  ;;  %v4439_v46 = vadd.f32 %v8450_v4, %v6262_v25  ;;  %v6394_v18 = vpop.f32.mrf.mxu0  ;;  %v6503_v25 = vpop.f32.mrf.mxu1 }
 0x1b7   : > { %v2702_v48 = vsel %vm7377_vm4, %v2700_v40, %v2701_v19  ;;  %v5900_v10 = vld [vmem:[%s7353_s20 + $0xac] sm:$0xf]  ;;  %v5901_v37 = vld [vmem:[%s7353_s20 + $0xb0] sm:$0x1]  ;;  %v5923_v7 = vrot.slane %v5899_v63, 9  ;;  %v5207_v4 = vld [vmem:[%s9595_s6 + $0x78] sm:$0xff]  ;;  %v6393_v45 = vadd.f32 %v6392_v57, %v6391_v3 }
 0x1b8   : > { %6682 = vmatmul.mubr.bf16.gmra.mxu0 %v7088_v43  ;;  %2791 = vst [vmem:[#allocation2 + $0x314] sm:$0xf] %v2702_v48  ;;  %v2706_v9 = vsel %vm7377_vm4, %v5922_v49, %v2705_v20  ;;  %v2707_v24 = vrot.slane %v2705_v20, 4  ;;  %v2712_v15 = vrot.slane %v5900_v10, 5  ;;  %v2715_v62 = vrot.slane %v5901_v37, 5  ;;  %v6395_v27 = vpop.f32.mrf.mxu0  ;;  %v8715_v26 = vld [vmem:[%s9595_s6 + $0x70] sm:$0xff]  ;;  %v6504_v20 = vpop.f32.mrf.mxu1 }
 0x1b9   : > { %6685 = vmatprep.mubr.bf16.mxu0 %v7089_v28  ;;  %2792 = vst [vmem:[#allocation2 + $0x338] sm:$0xf] %v2706_v9  ;;  %v5902_v12 = vld [vmem:[%s7353_s20 + $0xb4] sm:$0xe]  ;;  %v5903_v60 = vld [vmem:[%s7353_s20 + $0xb8] sm:$0xf]  ;;  %v8692_v32 = vadd.f32 %v6374_v42, %v4439_v46  ;;  %v4638_v1 = vadd.f32 %v6393_v45, %v8096_v41  ;;  %v6396_v54 = vadd.f32 %v6395_v27, %v6394_v18 }
 0x1ba   : > { %v7090_v51 = vld [vmem:[#allocation2 + $0x218] ss:$36 sps:$4 sm:$0xff]   ;;  %v2709_v8 = vsel %vm7377_vm4, %v2707_v24, %v2708_v0  ;;  %v2713_v33 = vsel %vm7377_vm4, %v5923_v7, %v2712_v15  ;;  %v2714_v56 = vrot.slane %v2712_v15, 4  ;;  %v5924_v39 = vrot.slane %v5902_v12, 9  ;;  %v5905_v21 = vld [vmem:[%s7353_s20 + $0xc0] sm:$0xe]  ;;  %v6397_v10 = vpop.f32.mrf.mxu0  ;;  %v8728_v57 = vpop.f32.mrf.mxu1 }
 0x1bb   : > { %v9599_v16 = vmov 0.0   ;;  %2793 = vst [vmem:[#allocation2 + $0x35c] sm:$0xf] %v2709_v8  ;;  %2794 = vst [vmem:[#allocation2 + $0x380] sm:$0xf] %v2713_v33  ;;  %v2719_v5 = vrot.slane %v5903_v60, 5  ;;  %v6505_v63 = vadd.f32 %v6504_v20, %v6503_v25 }
 0x1bc   : > { %6705 = vmatprep.subr.mxu1 %v9599_v16  ;;  %v5904_v43 = vld [vmem:[%s7353_s20 + $0xbc] sm:$0x1]  ;;  %v2716_v53 = vsel %vm7377_vm4, %v2714_v56, %v2715_v62  ;;  %v5906_v28 = vld [vmem:[%s7353_s20 + $0xc4] sm:$0xf]  ;;  %v5907_v41 = vld [vmem:[%s7353_s20 + $0xc8] sm:$0x1]  ;;  %v6398_v7 = vpop.f32.mrf.mxu0  ;;  %v8734_v18 = vpop.f32.mrf.mxu1 }
 0x1bd   : > { %6706 = vmatpush3.msra.mxu1 %v5207_v4  ;;  %v2722_v6 = vrot.slane %v5904_v43, 5  ;;  %v7091_v44 = vld [vmem:[#allocation2 + $0x260] ss:$36 sps:$4 sm:$0xff]   ;;  %2795 = vst [vmem:[#allocation2 + $0x3a4] sm:$0xf] %v2716_v53  ;;  %v2720_v30 = vsel %vm7377_vm4, %v5924_v39, %v2719_v5  ;;  %v2721_v35 = vrot.slane %v2719_v5, 4  ;;  %v8730_v15 = vadd.f32 %v6505_v63, %v4638_v1 }
 0x1be   : > { %6707 = vmatprep.subr.mxu1 %v9599_v16  ;;  %2796 = vst [vmem:[#allocation2 + $0x3c8] sm:$0xf] %v2720_v30  ;;  %v5925_v19 = vrot.slane %v5905_v21, 9  ;;  %v2726_v50 = vrot.slane %v5906_v28, 5  ;;  %v9637_v42 = vld [vmem:[#allocation6_spill] sm:$0xff]  ;;  %v2729_v40 = vrot.slane %v5907_v41, 5  ;;  %v6399_v62 = vadd.f32 %v6398_v7, %v6397_v10  ;;  %v8741_v5 = vpop.f32.mrf.mxu1 }
 0x1bf   : > { %v8710_v17 = vadd.f32 %v6396_v54, %v9637_v42  ;;  %9638 = vst [vmem:[#allocation6_spill] sm:$0xff] %v8715_v26  ;;  %6708 = vmatpush3.msra.mxu1 %v8715_v26  ;;  %v2723_v55 = vsel %vm7377_vm4, %v2721_v35, %v2722_v6  ;;  %v5908_v3 = vld [vmem:[%s7353_s20 + $0xcc] sm:$0xe]  ;;  %v5909_v0 = vld [vmem:[%s7353_s20 + $0xd0] sm:$0xf]  ;;  %v9644_v20 = vld [vmem:[#allocation10_spill] sm:$0xff] }
 0x1c0   : > { %6686 = vmatmul.mubr.bf16.gmra.mxu0 %v7090_v51  ;;  %v2727_v13 = vsel %vm7377_vm4, %v5925_v19, %v2726_v50  ;;  %v2728_v49 = vrot.slane %v2726_v50, 4  ;;  %6709 = vmatprep.subr.mxu1 %v9599_v16  ;;  %2797 = vst [vmem:[#allocation2 + $0x3ec] sm:$0xf] %v2723_v55  ;;  %v5910_v46 = vld [vmem:[%s7353_s20 + $0xd4] sm:$0x1]  ;;  %v5926_v48 = vrot.slane %v5908_v3, 9  ;;  %v6400_v51 = vpop.f32.mrf.mxu0  ;;  %v8751_v6 = vpop.f32.mrf.mxu1 }
 0x1c1   : > { %6689 = vmatprep.mubr.bf16.mxu0 %v7091_v44  ;;  %2798 = vst [vmem:[#allocation2 + $0x410] sm:$0xf] %v2727_v13  ;;  %v2733_v9 = vrot.slane %v5909_v0, 5  ;;  %v2736_v24 = vrot.slane %v5910_v46, 5  ;;  %v7092_v4 = vld [vmem:[#allocation2 + $0x2a8] ss:$36 sps:$4 sm:$0xff]  }
 0x1c2   : > { %v2730_v37 = vsel %vm7377_vm4, %v2728_v49, %v2729_v40  ;;  %v7093_v12 = vld [vmem:[#allocation2 + $0x2f0] ss:$36 sps:$4 sm:$0xff]   ;;  %v9639_v8 = vld [vmem:[#allocation7_spill] sm:$0xff]  ;;  %v6401_v39 = vpop.f32.mrf.mxu0  ;;  %v7094_v52 = vld [vmem:[#allocation2 + $0x338] ss:$36 sps:$4 sm:$0xff]   ;;  %v8755_v28 = vpop.f32.mrf.mxu1  ;;  %s9474_s20 = scalar_lea.vmem [#allocation3], %s9393_s17 }
 0x1c3   : > { %2799 = vst [vmem:[#allocation2 + $0x434] sm:$0xf] %v2730_v37  ;;  %v2734_v60 = vsel %vm7377_vm4, %v5926_v48, %v2733_v9  ;;  %v2735_v45 = vrot.slane %v2733_v9, 4  ;;  %v8737_v33 = vadd.f32 %v6399_v62, %v9639_v8  ;;  %v6402_v43 = vadd.f32 %v6401_v39, %v6400_v51  ;;  %v9640_v1 = vld [vmem:[#allocation8_spill] sm:$0xff]  ;;  %v8749_v53 = vld [vmem:[%s9595_s6 + $0x68] sm:$0xff]  ;;  %v9642_v19 = vld [vmem:[#allocation9_spill] sm:$0xff] }
 0x1c4   : > { %2800 = vst [vmem:[#allocation2 + $0x458] sm:$0xf] %v2734_v60  ;;  %9641 = vst [vmem:[#allocation7_spill] sm:$0xff] %v8749_v53  ;;  %6710 = vmatpush3.msra.mxu1 %v8749_v53  ;;  %v7095_v21 = vld [vmem:[#allocation2 + $0x380] ss:$36 sps:$4 sm:$0xff]   ;;  %v6403_v54 = vpop.f32.mrf.mxu0  ;;  %v8757_v30 = vpop.f32.mrf.mxu1  ;;  %v9645_v7 = vld [vmem:[#allocation11_spill] sm:$0xff] }
 0x1c5   : > { %v2737_v56 = vsel %vm7377_vm4, %v2735_v45, %v2736_v24  ;;  %v8744_v27 = vadd.f32 %v6402_v43, %v9640_v1  ;;  %6711 = vmatprep.subr.mxu1 %v9599_v16  ;;  %v8767_v13 = vld [vmem:[%s9595_s6 + $0x60] sm:$0xff]  ;;  %v8788_v45 = vld [vmem:[%s9595_s6 + $0x58] sm:$0xff]  ;;  %v9647_v8 = vld [vmem:[#allocation12_spill] sm:$0xff]  ;;  %s5541_s19 = sshll.u32 %s9474_s20, 4  ;;  %s9533_s19 = int_to_ptr.vmem [resolvable:$true] %s5541_s19 }
 0x1c6   : > { %2801 = vst [vmem:[#allocation2 + $0x47c] sm:$0xf] %v2737_v56  ;;  %v6404_v44 = vpop.f32.mrf.mxu0  ;;  %v8762_v40 = vpop.f32.mrf.mxu1  ;;  %9643 = vst [vmem:[#allocation8_spill] sm:$0xff] %v8767_v13  ;;  %6712 = vmatpush3.msra.mxu1 %v8767_v13  ;;  %v9663_v53 = vld [vmem:[#allocation19_spill] sm:$0xff]  ;;  %s7103_s8 = scalar_lea.vmem %s9533_s19, 4096  ;;  %p7110_p0 = scmp.lt.s32.totalorder %s9533_s19, %s7108_s9 }
 0x1c7   : > { %v6405_v35 = vadd.f32 %v6404_v44, %v6403_v54  ;;  %v7096_v42 = vld [vmem:[#allocation2 + $0x3c8] ss:$36 sps:$4 sm:$0xff]   ;;  %6713 = vmatprep.subr.mxu1 %v9599_v16  ;;  %9646 = vst [vmem:[#allocation9_spill] sm:$0xff] %v8788_v45  ;;  %v9648_v44 = vld [vmem:[#allocation13_spill] sm:$0xff]  ;;  %p7104_p11 = scmp.ne.s32.totalorder %s9533_s19, %s7103_s8  ;;  %p7111_p1 = scmp.lt.s32.totalorder %s7109_s14, %s7103_s8 }
 0x1c8   : > { %6690 = vmatmul.mubr.bf16.gmra.mxu0 %v7092_v4  ;;  %v6406_v41 = vpop.f32.mrf.mxu0  ;;  %v8770_v3 = vpop.f32.mrf.mxu1  ;;  %6714 = vmatpush3.msra.mxu1 %v8788_v45  ;;  %v9661_v45 = vmov 0.0  }
 0x1c9   : > { %6693 = vmatprep.mubr.bf16.mxu0 %v7093_v12  ;;  %v8760_v50 = vadd.f32 %v6405_v35, %v9642_v19  ;;  %6715 = vmatprep.subr.mxu1 %v9599_v16  ;;  %p7105_p12 = pnand %p7104_p11, %p7248_p5  ;;  %p7112_p2 = por %p7111_p1, %p7110_p0 }
 0x1ca   : > { %v6407_v25 = vpop.f32.mrf.mxu0  ;;  %v7097_v49 = vld [vmem:[#allocation2 + $0x410] ss:$36 sps:$4 sm:$0xff]   ;;  %v8776_v46 = vpop.f32.mrf.mxu1  ;;  %6737 = vmatprep.mubr.msk.f32.mxu1 %vm7166_vm6, %v9661_v45 }
 0x1cb   : > { %v6408_v55 = vadd.f32 %v6407_v25, %v6406_v41  ;;  %p7106_p13 = pneg %p7105_p12 }
 0x1cc   : > { %v6409_v48 = vpop.f32.mrf.mxu0  ;;  %v8778_v10 = vpop.f32.mrf.mxu1 }
 0x1cd   : > { %v8773_v0 = vadd.f32 %v6408_v55, %v9644_v20  ;;  %v7098_v9 = vld [vmem:[#allocation2 + $0x458] ss:$36 sps:$4 sm:$0xff]   ;;  %v9650_v55 = vld [vmem:[#allocation14_spill] sm:$0xff]  ;;  %p7113_p3 = pnand %p7112_p2, %p7106_p13 }
 0x1ce   : > { %v6410_v63 = vpop.f32.mrf.mxu0  ;;  %v8783_v12 = vpop.f32.mrf.mxu1 }
 0x1cf   : > { %v6411_v37 = vadd.f32 %v6410_v63, %v6409_v48 }
 0x1d0   : > { %6694 = vmatmul.mubr.bf16.gmra.mxu0 %v7094_v52  ;;  %v6412_v24 = vpop.f32.mrf.mxu0  ;;  %v8790_v51 = vpop.f32.mrf.mxu1 }
 0x1d1   : > { %6697 = vmatprep.mubr.bf16.mxu0 %v7095_v21  ;;  %v8781_v4 = vadd.f32 %v6411_v37, %v9645_v7  ;;  %v8823_v37 = vld [vmem:[%s9595_s6 + $0x48] sm:$0xff] }
 0x1d2   : > { %v6413_v62 = vpop.f32.mrf.mxu0  ;;  %v8797_v39 = vpop.f32.mrf.mxu1  ;;  %9651 = vst [vmem:[#allocation11_spill] sm:$0xff] %v8823_v37 }
 0x1d3   : > { %v6414_v60 = vadd.f32 %v6413_v62, %v6412_v24 }
 0x1d4   : > { %v6415_v43 = vpop.f32.mrf.mxu0  ;;  %v8799_v21 = vpop.f32.mrf.mxu1 }
 0x1d5   : > { %v8793_v56 = vadd.f32 %v6414_v60, %v9647_v8  ;;  %v9652_v60 = vld [vmem:[#allocation15_spill] sm:$0xff] }
 0x1d6   : > { %v6416_v1 = vpop.f32.mrf.mxu0 }
 0x1d7   : > { %v6417_v52 = vadd.f32 %v6416_v1, %v6415_v43  ;;  %v8804_v25 = vpop.f32.mrf.mxu1 }
 0x1d8   : > { %6698 = vmatmul.mubr.bf16.gmra.mxu0 %v7096_v42  ;;  %v6418_v54 = vpop.f32.mrf.mxu0  ;;  %v8809_v42 = vld [vmem:[%s9595_s6 + $0x50] sm:$0xff] }
 0x1d9   : > { %6701 = vmatprep.mubr.bf16.mxu0 %v7097_v49  ;;  %v8802_v35 = vadd.f32 %v6417_v52, %v9648_v44  ;;  %9649 = vst [vmem:[#allocation10_spill] sm:$0xff] %v8809_v42  ;;  %6716 = vmatpush3.msra.mxu1 %v8809_v42  ;;  %v8815_v20 = vpop.f32.mrf.mxu1  ;;  %v8856_v42 = vld [vmem:[%s9595_s6 + $0x38] sm:$0xff] }
 0x1da   : > { %v6419_v41 = vpop.f32.mrf.mxu0  ;;  %6717 = vmatprep.subr.mxu1 %v9599_v16  ;;  %9658 = vst [vmem:[#allocation15_spill] sm:$0xff] %v8856_v42 }
 0x1db   : > { %v6420_v19 = vadd.f32 %v6419_v41, %v6418_v54  ;;  %v8818_v63 = vpop.f32.mrf.mxu1  ;;  %6718 = vmatpush3.msra.mxu1 %v8823_v37  ;;  %v9653_v54 = vld [vmem:[#allocation16_spill] sm:$0xff] }
 0x1dc   : > { %v6421_v48 = vpop.f32.mrf.mxu0  ;;  %6719 = vmatprep.subr.mxu1 %v9599_v16 }
 0x1dd   : > { %v8812_v49 = vadd.f32 %v6420_v19, %v9650_v55  ;;  %v8827_v7 = vpop.f32.mrf.mxu1  ;;  %v8842_v19 = vld [vmem:[%s9595_s6 + $0x40] sm:$0xff] }
 0x1de   : > { %9655 = vst [vmem:[#allocation13_spill] sm:$0xff] %v8842_v19  ;;  %6720 = vmatpush3.msra.mxu1 %v8842_v19 }
 0x1df   : > { %6721 = vmatprep.subr.mxu1 %v9599_v16  ;;  %v9659_v16 = vld [vmem:[#allocation18_spill] sm:$0xff] }
 0x1e0   : > { %6702 = vmatmul.mubr.bf16.gmra.mxu0 %v7098_v9  ;;  %v6422_v9 = vpop.f32.mrf.mxu0  ;;  %6722 = vmatpush3.msra.mxu1 %v8856_v42 }
 0x1e1   : > { %v6423_v24 = vadd.f32 %v6422_v9, %v6421_v48  ;;  %6723 = vmatprep.subr.mxu1 %v9661_v45 }
 0x1e2   : > { %v6424_v62 = vpop.f32.mrf.mxu0 }
 0x1e3   : > { %v8830_v8 = vadd.f32 %v6423_v24, %v9652_v60  ;;  %v8832_v52 = vpop.f32.mrf.mxu1  ;;  %v9656_v60 = vld [vmem:[#allocation17_spill] sm:$0xff] }
 0x1e4   : > { %v6425_v43 = vpop.f32.mrf.mxu0 }
 0x1e5   : > { %v6426_v1 = vadd.f32 %v6425_v43, %v6424_v62  ;;  %v8837_v41 = vpop.f32.mrf.mxu1 }
 0x1e7   : > { %v8835_v44 = vadd.f32 %v6426_v1, %v9653_v54  ;;  %v6427_v55 = vpop.f32.mrf.mxu0  ;;  %v8846_v9 = vpop.f32.mrf.mxu1 }
 0x1e9   : > { %9654 = vst [vmem:[#allocation12_spill] sm:$0xff] %v8835_v44  ;;  %v6428_v48 = vpop.f32.mrf.mxu0  ;;  %v8851_v54 = vpop.f32.mrf.mxu1  ;;  %v8887_v44 = vld [vmem:[%s9595_s6 + $0x28] sm:$0xff] }
 0x1ea   : > { %v6429_v24 = vadd.f32 %v6428_v48, %v6427_v55  ;;  %9668 = vst [vmem:[#allocation22_spill] sm:$0xff] %v8887_v44 }
 0x1eb   : > { %v6430_v62 = vpop.f32.mrf.mxu0 }
 0x1ec   : > { %v8849_v43 = vadd.f32 %v6429_v24, %v9656_v60 }
 0x1ed   : > { %v6431_v1 = vpop.f32.mrf.mxu0 }
 0x1ee   : > { %9657 = vst [vmem:[#allocation14_spill] sm:$0xff] %v8849_v43  ;;  %v6432_v37 = vadd.f32 %v6431_v1, %v6430_v62  ;;  %v8870_v1 = vld [vmem:[%s9595_s6 + $0x30] sm:$0xff] }
 0x1ef   : > { %9662 = vst [vmem:[#allocation17_spill] sm:$0xff] %v8870_v1  ;;  %6724 = vmatpush3.msra.mxu1 %v8870_v1  ;;  %v9669_v1 = vld [vmem:[#allocation21_spill] sm:$0xff] }
 0x1f0   : > { %v8860_v19 = vadd.f32 %v6432_v37, %v9659_v16  ;;  %v8863_v55 = vpop.f32.mrf.mxu1  ;;  %6725 = vmatprep.subr.mxu1 %v9661_v45 }
 0x1f1   : > { %6726 = vmatpush3.msra.mxu1 %v8887_v44  ;;  %v8904_v44 = vld [vmem:[%s9595_s6 + $0x20] sm:$0xff] }
 0x1f2   : > { %9660 = vst [vmem:[#allocation16_spill] sm:$0xff] %v8860_v19  ;;  %v8865_v13 = vpop.f32.mrf.mxu1  ;;  %6727 = vmatprep.subr.mxu1 %v9661_v45  ;;  %9673 = vst [vmem:[#allocation25_spill] sm:$0xff] %v8904_v44 }
 0x1f3   : > { %6728 = vmatpush3.msra.mxu1 %v8904_v44 }
 0x1f4   : > { %v6433_v48 = vpop.f32.mrf.mxu0  ;;  %v8877_v26 = vpop.f32.mrf.mxu1  ;;  %6729 = vmatprep.subr.mxu1 %v9661_v45 }
 0x1f6   : > { %v6434_v24 = vpop.f32.mrf.mxu0  ;;  %v8882_v43 = vpop.f32.mrf.mxu1 }
 0x1f7   : > { %v6435_v60 = vadd.f32 %v6434_v24, %v6433_v48  ;;  %v9665_v48 = vld [vmem:[#allocation20_spill] sm:$0xff] }
 0x1f8   : > { %v6436_v62 = vpop.f32.mrf.mxu0  ;;  %9667 = vst [vmem:[#allocation20_spill] sm:$0xff] %v8882_v43 }
 0x1f9   : > { %v8873_v42 = vadd.f32 %v6435_v60, %v9663_v53 }
 0x1fa   : > { %v6437_v16 = vpop.f32.mrf.mxu0 }
 0x1fb   : > { %9664 = vst [vmem:[#allocation18_spill] sm:$0xff] %v8873_v42  ;;  %v6438_v37 = vadd.f32 %v6437_v16, %v6436_v62 }
 0x1fc   : > { %v8891_v16 = vpop.f32.mrf.mxu1 }
 0x1fd   : > { %v8880_v24 = vadd.f32 %v6438_v37, %v9665_v48 }
 0x1fe   : > { %v8896_v42 = vpop.f32.mrf.mxu1 }
 0x1ff   : > { %9666 = vst [vmem:[#allocation19_spill] sm:$0xff] %v8880_v24  ;;  %9671 = vst [vmem:[#allocation23_spill] sm:$0xff] %v8896_v42 }
 0x200   : > { %v6439_v19 = vpop.f32.mrf.mxu0 }
 0x202   : > { %v6440_v53 = vpop.f32.mrf.mxu0 }
 0x203   : > { %v6441_v60 = vadd.f32 %v6440_v53, %v6439_v19  ;;  %v8908_v19 = vpop.f32.mrf.mxu1 }
 0x204   : > { %v6442_v62 = vpop.f32.mrf.mxu0  ;;  %9674 = vst [vmem:[#allocation26_spill] sm:$0xff] %v8908_v19 }
 0x205   : > { %v8894_v37 = vadd.f32 %v6441_v60, %v9669_v1 }
 0x206   : > { %v6443_v48 = vpop.f32.mrf.mxu0 }
 0x207   : > { %9670 = vst [vmem:[#allocation21_spill] sm:$0xff] %v8894_v37  ;;  %v6444_v24 = vadd.f32 %v6443_v48, %v6442_v62  ;;  %v8910_v62 = vpop.f32.mrf.mxu1 }
 0x208   : > { %9675 = vst [vmem:[#allocation27_spill] sm:$0xff] %v8910_v62 }
 0x209   : > { %v8899_v43 = vadd.f32 %v6444_v24, %v8475_v34  ;;  %v8915_v34 = vld [vmem:[%s9595_s6 + $0x18] sm:$0xff] }
 0x20a   : > { %9676 = vst [vmem:[#allocation28_spill] sm:$0xff] %v8915_v34  ;;  %6730 = vmatpush3.msra.mxu1 %v8915_v34  ;;  %v8922_v37 = vpop.f32.mrf.mxu1 }
 0x20b   : > { %9672 = vst [vmem:[#allocation24_spill] sm:$0xff] %v8899_v43  ;;  %6731 = vmatprep.subr.mxu1 %v9661_v45  ;;  %9678 = vst [vmem:[#allocation30_spill] sm:$0xff] %v8922_v37 }
 0x20c   : > { %v8927_v62 = vpop.f32.mrf.mxu1 }
 0x20d   : > { %9680 = vst [vmem:[#allocation32_spill] sm:$0xff] %v8927_v62 }
 0x20f   : > { %v6445_v1 = vpop.f32.mrf.mxu0 }
 0x211   : > { %v6446_v53 = vpop.f32.mrf.mxu0 }
 0x212   : > { %v6447_v60 = vadd.f32 %v6446_v53, %v6445_v1 }
 0x213   : > { %v6448_v48 = vpop.f32.mrf.mxu0 }
 0x214   : > { %v8918_v24 = vadd.f32 %v6447_v60, %v8510_v22  ;;  %v8932_v22 = vld [vmem:[%s9595_s6 + $0x10] sm:$0xff] }
 0x215   : > { %v6449_v44 = vpop.f32.mrf.mxu0  ;;  %9681 = vst [vmem:[#allocation33_spill] sm:$0xff] %v8932_v22  ;;  %6732 = vmatpush3.msra.mxu1 %v8932_v22 }
 0x216   : > { %9677 = vst [vmem:[#allocation29_spill] sm:$0xff] %v8918_v24  ;;  %v6450_v43 = vadd.f32 %v6449_v44, %v6448_v48  ;;  %6733 = vmatprep.subr.mxu1 %v9661_v45 }
 0x218   : > { %v8925_v1 = vadd.f32 %v6450_v43, %v8545_v23  ;;  %v8939_v23 = vpop.f32.mrf.mxu1 }
 0x219   : > { %v6451_v53 = vpop.f32.mrf.mxu0 }
 0x21a   : > { %9679 = vst [vmem:[#allocation31_spill] sm:$0xff] %v8925_v1  ;;  %v8944_v24 = vpop.f32.mrf.mxu1 }
 0x21b   : > { %v6452_v19 = vpop.f32.mrf.mxu0 }
 0x21c   : > { %v6453_v60 = vadd.f32 %v6452_v19, %v6451_v53  ;;  %v8946_v37 = vpop.f32.mrf.mxu1 }
 0x21d   : > { %v6454_v34 = vpop.f32.mrf.mxu0 }
 0x21e   : > { %v8937_v44 = vadd.f32 %v6453_v60, %v8565_v14  ;;  %v8951_v14 = vpop.f32.mrf.mxu1 }
 0x21f   : > { %v6455_v43 = vpop.f32.mrf.mxu0 }
 0x220   : > { %9682 = vst [vmem:[#allocation34_spill] sm:$0xff] %v8937_v44  ;;  %v6456_v48 = vadd.f32 %v6455_v43, %v6454_v34  ;;  %v8956_v34 = vld [vmem:[%s9595_s6 + $0x8] sm:$0xff] }
 0x221   : > { %9685 = vst [vmem:[#allocation37_spill] sm:$0xff] %v8956_v34  ;;  %6734 = vmatpush3.msra.mxu1 %v8956_v34 }
 0x222   : > { %v8942_v1 = vadd.f32 %v6456_v48, %v8587_v36  ;;  %v8961_v36 = vld [vmem:[%s9595_s6] sm:$0xff]  ;;  %6735 = vmatprep.subr.mxu1 %v9661_v45 }
 0x223   : > { %9686 = vst [vmem:[#allocation38_spill] sm:$0xff] %v8961_v36  ;;  %6736 = vmatpush3.msra.mxu1 %v8961_v36 }
 0x224   : > { %9683 = vst [vmem:[#allocation35_spill] sm:$0xff] %v8942_v1  ;;  %6740 = vmatprep.subr.mxu1 %v9661_v45 }
 0x229   : > { %v6457_v62 = vpop.f32.mrf.mxu0 }
 0x22b   : > { %v6458_v19 = vpop.f32.mrf.mxu0 }
 0x22c   : > { %v6459_v53 = vadd.f32 %v6458_v19, %v6457_v62  ;;  %v8971_v62 = vpop.f32.mrf.mxu1 }
 0x22d   : > { %v6460_v22 = vpop.f32.mrf.mxu0  ;;  %9688 = vst [vmem:[#allocation40_spill] sm:$0xff] %v8971_v62 }
 0x22e   : > { %v8949_v42 = vadd.f32 %v6459_v53, %v8605_v59  ;;  %v8974_v19 = vpop.f32.mrf.mxu1 }
 0x22f   : > { %v6461_v60 = vpop.f32.mrf.mxu0  ;;  %9689 = vst [vmem:[#allocation41_spill] sm:$0xff] %v8974_v19 }
 0x230   : > { %9684 = vst [vmem:[#allocation36_spill] sm:$0xff] %v8949_v42  ;;  %v6462_v43 = vadd.f32 %v6461_v60, %v6460_v22  ;;  %v8979_v1 = vpop.f32.mrf.mxu1 }
 0x232   : > { %v8968_v59 = vadd.f32 %v6462_v43, %v8607_v58  ;;  %v8984_v36 = vpop.f32.mrf.mxu1 }
 0x234   : > { %9687 = vst [vmem:[#allocation39_spill] sm:$0xff] %v8968_v59  ;;  %v8986_v44 = vpop.f32.mrf.mxu1 }
 0x235   : > { %9692 = vst [vmem:[#allocation44_spill] sm:$0xff] %v8986_v44 }
 0x238   : > { %v6463_v48 = vpop.f32.mrf.mxu0 }
 0x23a   : > { %v6464_v22 = vpop.f32.mrf.mxu0 }
 0x23b   : > { %v6465_v53 = vadd.f32 %v6464_v22, %v6463_v48  ;;  %v8991_v22 = vpop.f32.mrf.mxu1 }
 0x23c   : > { %v6466_v60 = vpop.f32.mrf.mxu0 }
 0x23d   : > { %v8977_v34 = vadd.f32 %v6465_v53, %v8623_v31 }
 0x23e   : > { %v6467_v42 = vpop.f32.mrf.mxu0 }
 0x23f   : > { %9690 = vst [vmem:[#allocation42_spill] sm:$0xff] %v8977_v34  ;;  %v6468_v58 = vadd.f32 %v6467_v42, %v6466_v60 }
 0x241   : > { %v8982_v43 = vadd.f32 %v6468_v58, %v8629_v2  ;;  %v8996_v2 = vpop.f32.mrf.mxu1 }
 0x243   : > { %9691 = vst [vmem:[#allocation43_spill] sm:$0xff] %v8982_v43  ;;  %v8998_v34 = vpop.f32.mrf.mxu1 }
 0x245   : > { %v6469_v59 = vpop.f32.mrf.mxu0 }
 0x247   : > { %v6470_v45 = vpop.f32.mrf.mxu0 }
 0x248   : > { %v6471_v19 = vadd.f32 %v6470_v45, %v6469_v59 }
 0x249   : > { %v6472_v62 = vpop.f32.mrf.mxu0 }
 0x24a   : > { %v8989_v48 = vadd.f32 %v6471_v19, %v8645_v29  ;;  %v9003_v19 = vpop.f32.mrf.mxu1 }
 0x24b   : > { %v6473_v31 = vpop.f32.mrf.mxu0 }
 0x24c   : > { %9693 = vst [vmem:[#allocation45_spill] sm:$0xff] %v8989_v48  ;;  %v6474_v53 = vadd.f32 %v6473_v31, %v6472_v62  ;;  %v9008_v31 = vpop.f32.mrf.mxu1 }
 0x24e   : > { %v8994_v42 = vadd.f32 %v6474_v53, %v8647_v61 }
 0x250   : > { %9694 = vst [vmem:[#allocation46_spill] sm:$0xff] %v8994_v42 }
 0x252   : > { %v6475_v60 = vpop.f32.mrf.mxu0 }
 0x254   : > { %v6476_v58 = vpop.f32.mrf.mxu0 }
 0x255   : > { %v6477_v43 = vadd.f32 %v6476_v58, %v6475_v60  ;;  %v9010_v60 = vpop.f32.mrf.mxu1 }
 0x256   : > { %v6478_v44 = vpop.f32.mrf.mxu0 }
 0x257   : > { %v9001_v45 = vadd.f32 %v6477_v43, %v8658_v11 }
 0x258   : > { %v6479_v29 = vpop.f32.mrf.mxu0 }
 0x259   : > { %9695 = vst [vmem:[#allocation47_spill] sm:$0xff] %v9001_v45  ;;  %v6480_v59 = vadd.f32 %v6479_v29, %v6478_v44  ;;  %v6508_v44 = vadd.f32 %v8734_v18, %v8728_v57  ;;  %v9019_v29 = vpop.f32.mrf.mxu1 }
 0x25b   : > { %v9006_v62 = vadd.f32 %v6480_v59, %v8669_v47  ;;  %v6511_v47 = vadd.f32 %v8751_v6, %v8741_v5  ;;  %v4802_v5 = vadd.f32 %v6508_v44, %v8710_v17 }
 0x25d   : > { %v4807_v57 = vadd.f32 %v6511_v47, %v8737_v33  ;;  %v6529_v47 = vadd.f32 %v8815_v20, %v8804_v25 }
 0x25f   : > { %v6481_v61 = vpop.f32.mrf.mxu0 }
 0x261   : > { %v6482_v53 = vpop.f32.mrf.mxu0 }
 0x262   : > { %v6483_v42 = vadd.f32 %v6482_v53, %v6481_v61  ;;  %v6514_v53 = vadd.f32 %v8757_v30, %v8755_v28  ;;  %v6520_v28 = vadd.f32 %v8778_v10, %v8776_v46  ;;  %v6523_v30 = vadd.f32 %v8790_v51, %v8783_v12 }
 0x263   : > { %v6484_v48 = vpop.f32.mrf.mxu0  ;;  %v6526_v46 = vadd.f32 %v8799_v21, %v8797_v39 }
 0x264   : > { %v9013_v58 = vadd.f32 %v6483_v42, %v8677_v38  ;;  %v6517_v38 = vadd.f32 %v8770_v3, %v8762_v40  ;;  %v9028_v42 = vpop.f32.mrf.mxu1 }
 0x265   : > { %v6485_v11 = vpop.f32.mrf.mxu0 }
 0x266   : > { %v6486_v43 = vadd.f32 %v6485_v11, %v6484_v48  ;;  %v4810_v11 = vadd.f32 %v6514_v53, %v8744_v27  ;;  %v4815_v33 = vadd.f32 %v6517_v38, %v8760_v50 }
 0x268   : > { %v6675_v45 = vpop.f32.mrf.mxu0  ;;  %v9022_v59 = vadd.f32 %v6486_v43, %v8692_v32 }
 0x269   : > { %v9035_v32 = vadd.f32 %v6675_v45, %v4807_v57  ;;  %v4818_v57 = vadd.f32 %v6520_v28, %v8773_v0  ;;  %v4831_v28 = vadd.f32 %v6529_v47, %v8802_v35 }
 0x26a   : > { %v4959_v61 = vpop.f32.mrf.mxu0 }
 0x26b   : > { %v9032_v18 = vadd.f32 %v4959_v61, %v8730_v15  ;;  %v9045_v15 = vpop.f32.mrf.mxu1  ;;  %v5125_v50 = vmul.f32 %v9035_v32, %v9035_v32  ;;  %v4823_v61 = vadd.f32 %v6523_v30, %v8781_v4 }
 0x26c   : > { %v6676_v48 = vpop.f32.mrf.mxu0 }
 0x26d   : > { %v5123_v17 = vmul.f32 %v9032_v18, %v9032_v18  ;;  %v9049_v3 = vadd.f32 %v6676_v48, %v4810_v11  ;;  %v9065_v38 = vpop.f32.mrf.mxu1 }
 0x26e   : > { %v4962_v6 = vpop.f32.mrf.mxu0 }
 0x26f   : > { %v9038_v43 = vadd.f32 %v4962_v6, %v4802_v5  ;;  %v5126_v39 = vmul.f32 %v9049_v3, %v9049_v3  ;;  %v4826_v6 = vadd.f32 %v6526_v46, %v8793_v56 }
 0x270   : > { %v6679_v40 = vpop.f32.mrf.mxu0 }
 0x271   : > { %v5086_v27 = vadd.f32 %v9038_v43, %v9032_v18  ;;  %v5124_v45 = vmul.f32 %v9038_v43, %v9038_v43  ;;  %v9071_v5 = vadd.f32 %v6679_v40, %v4823_v61  ;;  %v9084_v40 = vpop.f32.mrf.mxu1 }
 0x272   : > { %v4975_v10 = vpop.f32.mrf.mxu0 }
 0x273   : > { %v5087_v12 = vadd.f32 %v5086_v27, %v9035_v32  ;;  %v5155_v51 = vadd.f32 %v5124_v45, %v5123_v17  ;;  %v9060_v44 = vadd.f32 %v4975_v10, %v4815_v33  ;;  %v6532_v33 = vadd.f32 %v8827_v7, %v8818_v63  ;;  %v9101_v47 = vpop.f32.mrf.mxu1 }
 0x274   : > { %v6680_v53 = vpop.f32.mrf.mxu0  ;;  %v6535_v17 = vadd.f32 %v8837_v41, %v8832_v52  ;;  %v6538_v10 = vadd.f32 %v8851_v54, %v8846_v9  ;;  %v5129_v7 = vmul.f32 %v9071_v5, %v9071_v5 }
 0x275   : > { %v5156_v21 = vadd.f32 %v5155_v51, %v5125_v50  ;;  %v5088_v48 = vadd.f32 %v5087_v12, %v9049_v3  ;;  %v5127_v4 = vmul.f32 %v9060_v44, %v9060_v44  ;;  %v9086_v27 = vadd.f32 %v6680_v53, %v4826_v6 }
 0x276   : > { %v4978_v11 = vpop.f32.mrf.mxu0  ;;  %v6541_v50 = vadd.f32 %v8865_v13, %v8863_v55  ;;  %v4839_v12 = vadd.f32 %v6535_v17, %v8830_v8  ;;  %v4834_v53 = vadd.f32 %v6532_v33, %v8812_v49  ;;  %v9699_v33 = vld [vmem:[#allocation14_spill] sm:$0xff] }
 0x277   : > { %v5089_v25 = vadd.f32 %v5088_v48, %v9060_v44  ;;  %v5157_v20 = vadd.f32 %v5156_v21, %v5126_v39  ;;  %v9077_v30 = vadd.f32 %v4978_v11, %v4818_v57  ;;  %v5130_v9 = vmul.f32 %v9086_v27, %v9086_v27  ;;  %v9696_v21 = vld [vmem:[#allocation12_spill] sm:$0xff] }
 0x278   : > { %v6683_v0 = vpop.f32.mrf.mxu0  ;;  %v4842_v48 = vadd.f32 %v6538_v10, %v9696_v21  ;;  %v9697_v11 = vld [vmem:[#allocation20_spill] sm:$0xff]  ;;  %v4847_v17 = vadd.f32 %v6541_v50, %v9699_v33  ;;  %v9700_v10 = vld [vmem:[#allocation26_spill] sm:$0xff] }
 0x279   : > { %v5158_v56 = vadd.f32 %v5157_v20, %v5127_v4  ;;  %v5090_v45 = vadd.f32 %v5089_v25, %v9077_v30  ;;  %v5128_v46 = vmul.f32 %v9077_v30, %v9077_v30  ;;  %v9107_v39 = vadd.f32 %v6683_v0, %v4839_v12  ;;  %v9698_v4 = vld [vmem:[#allocation23_spill] sm:$0xff]  ;;  %v9120_v0 = vpop.f32.mrf.mxu1  ;;  %v9702_v12 = vld [vmem:[#allocation30_spill] sm:$0xff] }
 0x27a   : > { %v4991_v63 = vpop.f32.mrf.mxu0  ;;  %v6544_v25 = vadd.f32 %v9697_v11, %v8877_v26  ;;  %v6547_v20 = vadd.f32 %v9698_v4, %v8891_v16  ;;  %v9706_v4 = vld [vmem:[#allocation19_spill] sm:$0xff] }
 0x27b   : > { %v5091_v52 = vadd.f32 %v5090_v45, %v9071_v5  ;;  %v5159_v35 = vadd.f32 %v5158_v56, %v5128_v46  ;;  %v9096_v41 = vadd.f32 %v4991_v63, %v4831_v28  ;;  %v9701_v63 = vld [vmem:[#allocation27_spill] sm:$0xff]  ;;  %v5133_v16 = vmul.f32 %v9107_v39, %v9107_v39  ;;  %v9137_v21 = vpop.f32.mrf.mxu1 }
 0x27c   : > { %v6684_v51 = vpop.f32.mrf.mxu0 }
 0x27d   : > { %v5160_v54 = vadd.f32 %v5159_v35, %v5129_v7  ;;  %v5092_v61 = vadd.f32 %v5091_v52, %v9086_v27  ;;  %v5131_v8 = vmul.f32 %v9096_v41, %v9096_v41  ;;  %v9122_v56 = vadd.f32 %v6684_v51, %v4842_v48  ;;  %v9703_v51 = vld [vmem:[#allocation32_spill] sm:$0xff] }
 0x27e   : > { %v4994_v57 = vpop.f32.mrf.mxu0  ;;  %v6550_v7 = vadd.f32 %v9701_v63, %v9700_v10  ;;  %v6556_v10 = vadd.f32 %v8944_v24, %v8939_v23  ;;  %v6559_v63 = vadd.f32 %v8951_v14, %v8946_v37 }
 0x27f   : > { %v5093_v13 = vadd.f32 %v5092_v61, %v9096_v41  ;;  %v5161_v55 = vadd.f32 %v5160_v54, %v5130_v9  ;;  %v9113_v6 = vadd.f32 %v4994_v57, %v4834_v53  ;;  %v6553_v9 = vadd.f32 %v9703_v51, %v9702_v12  ;;  %v9704_v54 = vld [vmem:[#allocation18_spill] sm:$0xff]  ;;  %v9708_v51 = vld [vmem:[#allocation40_spill] sm:$0xff] }
 0x280   : > { %v6687_v49 = vpop.f32.mrf.mxu0  ;;  %v4855_v61 = vadd.f32 %v6547_v20, %v9704_v54  ;;  %v5134_v48 = vmul.f32 %v9122_v56, %v9122_v56  ;;  %v4858_v33 = vadd.f32 %v6550_v7, %v9706_v4  ;;  %v9709_v54 = vld [vmem:[#allocation41_spill] sm:$0xff] }
 0x281   : > { %v5162_v28 = vadd.f32 %v5161_v55, %v5131_v8  ;;  %v5094_v45 = vadd.f32 %v5093_v13, %v9113_v6  ;;  %v5132_v46 = vmul.f32 %v9113_v6, %v9113_v6  ;;  %v9705_v8 = vld [vmem:[#allocation16_spill] sm:$0xff] }
 0x282   : > { %v5007_v26 = vpop.f32.mrf.mxu0  ;;  %v4850_v55 = vadd.f32 %v6544_v25, %v9705_v8  ;;  %v9143_v11 = vadd.f32 %v6687_v49, %v4855_v61  ;;  %v9707_v49 = vld [vmem:[#allocation21_spill] sm:$0xff]  ;;  %v6562_v61 = vadd.f32 %v9709_v54, %v9708_v51  ;;  %v6571_v51 = vadd.f32 %v8998_v34, %v8996_v2  ;;  %v9715_v2 = vld [vmem:[#allocation36_spill] sm:$0xff] }
 0x283   : > { %v5095_v52 = vadd.f32 %v5094_v45, %v9107_v39  ;;  %v5163_v35 = vadd.f32 %v5162_v28, %v5132_v46  ;;  %v9132_v50 = vadd.f32 %v5007_v26, %v4847_v17  ;;  %v4863_v26 = vadd.f32 %v6553_v9, %v9707_v49 }
 0x284   : > { %v6688_v53 = vpop.f32.mrf.mxu0  ;;  %v5137_v37 = vmul.f32 %v9143_v11, %v9143_v11 }
 0x285   : > { %v5164_v57 = vadd.f32 %v5163_v35, %v5133_v16  ;;  %v5096_v13 = vadd.f32 %v5095_v52, %v9122_v56  ;;  %v5135_v20 = vmul.f32 %v9132_v50, %v9132_v50  ;;  %v9156_v16 = vpop.f32.mrf.mxu1  ;;  %v9158_v52 = vadd.f32 %v6688_v53, %v4858_v33 }
 0x286   : > { %v5010_v17 = vpop.f32.mrf.mxu0  ;;  %v6565_v53 = vadd.f32 %v8984_v36, %v8979_v1 }
 0x287   : > { %v5097_v28 = vadd.f32 %v5096_v13, %v9132_v50  ;;  %v5165_v45 = vadd.f32 %v5164_v57, %v5134_v48  ;;  %v9149_v46 = vadd.f32 %v5010_v17, %v4850_v55  ;;  %v9710_v48 = vld [vmem:[#allocation29_spill] sm:$0xff]  ;;  %v9173_v8 = vpop.f32.mrf.mxu1  ;;  %v5138_v55 = vmul.f32 %v9158_v52, %v9158_v52  ;;  %v9711_v17 = vld [vmem:[#allocation24_spill] sm:$0xff] }
 0x288   : > { %v6691_v25 = vpop.f32.mrf.mxu0  ;;  %v4871_v57 = vadd.f32 %v6559_v63, %v9710_v48 }
 0x289   : > { %v5166_v7 = vadd.f32 %v5165_v45, %v5135_v20  ;;  %v5098_v35 = vadd.f32 %v5097_v28, %v9149_v46  ;;  %v5136_v12 = vmul.f32 %v9149_v46, %v9149_v46  ;;  %v4866_v28 = vadd.f32 %v6556_v10, %v9711_v17  ;;  %v9712_v45 = vld [vmem:[#allocation31_spill] sm:$0xff] }
 0x28a   : > { %v5023_v24 = vpop.f32.mrf.mxu0  ;;  %v9179_v20 = vadd.f32 %v6691_v25, %v4871_v57  ;;  %v4874_v49 = vadd.f32 %v6562_v61, %v9712_v45  ;;  %v9714_v25 = vld [vmem:[#allocation34_spill] sm:$0xff]  ;;  %v6574_v17 = vadd.f32 %v9008_v31, %v9003_v19  ;;  %v6580_v31 = vadd.f32 %v9045_v15, %v9028_v42 }
 0x28b   : > { %v5099_v23 = vadd.f32 %v5098_v35, %v9143_v11  ;;  %v5167_v14 = vadd.f32 %v5166_v7, %v5136_v12  ;;  %v9168_v9 = vadd.f32 %v5023_v24, %v4863_v26  ;;  %v9713_v35 = vld [vmem:[#allocation44_spill] sm:$0xff]  ;;  %v4879_v54 = vadd.f32 %v6565_v53, %v9714_v25  ;;  %v6591_v24 = vpop.f32.mrf.mxu1 }
 0x28c   : > { %v6692_v13 = vpop.f32.mrf.mxu0  ;;  %v6568_v12 = vadd.f32 %v8991_v22, %v9713_v35  ;;  %v5141_v57 = vmul.f32 %v9179_v20, %v9179_v20  ;;  %v4887_v53 = vadd.f32 %v6571_v51, %v9715_v2 }
 0x28d   : > { %v5168_v4 = vadd.f32 %v5167_v14, %v5137_v37  ;;  %v5100_v33 = vadd.f32 %v5099_v23, %v9158_v52  ;;  %v5139_v36 = vmul.f32 %v9168_v9, %v9168_v9  ;;  %v9192_v37 = vadd.f32 %v6692_v13, %v4874_v49 }
 0x28e   : > { %v5026_v26 = vpop.f32.mrf.mxu0 }
 0x28f   : > { %v5101_v1 = vadd.f32 %v5100_v33, %v9168_v9  ;;  %v5169_v63 = vadd.f32 %v5168_v4, %v5138_v55  ;;  %v9185_v7 = vadd.f32 %v5026_v26, %v4866_v28  ;;  %v9716_v33 = vld [vmem:[#allocation35_spill] sm:$0xff]  ;;  %v6593_v28 = vpop.f32.mrf.mxu1  ;;  %v5142_v45 = vmul.f32 %v9192_v37, %v9192_v37 }
 0x290   : > { %v6695_v10 = vpop.f32.mrf.mxu0  ;;  %v4882_v13 = vadd.f32 %v6568_v12, %v9716_v33  ;;  %v9719_v33 = vld [vmem:[#allocation43_spill] sm:$0xff] }
 0x291   : > { %v5170_v61 = vadd.f32 %v5169_v63, %v5139_v36  ;;  %v5102_v23 = vadd.f32 %v5101_v1, %v9185_v7  ;;  %v5140_v14 = vmul.f32 %v9185_v7, %v9185_v7  ;;  %v6577_v1 = vadd.f32 %v9019_v29, %v9010_v60 }
 0x292   : > { %v5039_v48 = vpop.f32.mrf.mxu0  ;;  %v9211_v36 = vadd.f32 %v6695_v10, %v4887_v53  ;;  %v6583_v10 = vadd.f32 %v9084_v40, %v9065_v38 }
 0x293   : > { %v5103_v22 = vadd.f32 %v5102_v23, %v9179_v20  ;;  %v5171_v55 = vadd.f32 %v5170_v61, %v5140_v14  ;;  %v9200_v34 = vadd.f32 %v5039_v48, %v4879_v54  ;;  %v6594_v54 = vpop.f32.mrf.mxu1  ;;  %v9717_v23 = vld [vmem:[#allocation39_spill] sm:$0xff]  ;;  %v9718_v48 = vld [vmem:[#allocation42_spill] sm:$0xff] }
 0x294   : > { %v6696_v4 = vpop.f32.mrf.mxu0  ;;  %v4890_v14 = vadd.f32 %v6574_v17, %v9717_v23  ;;  %v6586_v17 = vadd.f32 %v9120_v0, %v9101_v47  ;;  %v6592_v47 = vadd.f32 %v6591_v24, %v9173_v8 }
 0x295   : > { %v5172_v49 = vadd.f32 %v5171_v55, %v5141_v57  ;;  %v5104_v26 = vadd.f32 %v5103_v22, %v9192_v37  ;;  %v5143_v12 = vmul.f32 %v9200_v34, %v9200_v34  ;;  %v4895_v57 = vadd.f32 %v6577_v1, %v9718_v48 }
 0x296   : > { %v5042_v63 = vpop.f32.mrf.mxu0  ;;  %v5145_v55 = vmul.f32 %v9211_v36, %v9211_v36  ;;  %v9229_v42 = vadd.f32 %v6696_v4, %v4890_v14  ;;  %v9721_v14 = vld [vmem:[#allocation46_spill] sm:$0xff] }
 0x297   : > { %v5105_v35 = vadd.f32 %v5104_v26, %v9200_v34  ;;  %v5173_v51 = vadd.f32 %v5172_v49, %v5142_v45  ;;  %v9216_v19 = vadd.f32 %v5042_v63, %v4882_v13  ;;  %v4898_v13 = vadd.f32 %v6580_v31, %v9719_v33  ;;  %v6596_v45 = vpop.f32.mrf.mxu1  ;;  %v9720_v63 = vld [vmem:[#allocation45_spill] sm:$0xff] }
 0x298   : > { %v6699_v25 = vpop.f32.mrf.mxu0  ;;  %v6589_v26 = vadd.f32 %v9156_v16, %v9137_v21  ;;  %v5146_v1 = vmul.f32 %v9229_v42, %v9229_v42  ;;  %v9722_v16 = vld [vmem:[#allocation47_spill] sm:$0xff] }
 0x299   : > { %v5174_v61 = vadd.f32 %v5173_v51, %v5143_v12  ;;  %v5106_v60 = vadd.f32 %v5105_v35, %v9216_v19  ;;  %v5144_v29 = vmul.f32 %v9216_v19, %v9216_v19  ;;  %v4903_v35 = vadd.f32 %v6583_v10, %v9720_v63  ;;  %v6597_v31 = vpop.f32.mrf.mxu1 }
 0x29a   : > { %v5055_v22 = vpop.f32.mrf.mxu0  ;;  %v6598_v24 = vadd.f32 %v6597_v31, %v6596_v45 }
 0x29b   : > { %v5107_v15 = vadd.f32 %v5106_v60, %v9211_v36  ;;  %v5175_v2 = vadd.f32 %v5174_v61, %v5144_v29  ;;  %v9235_v38 = vadd.f32 %v5055_v22, %v4895_v57  ;;  %v9247_v61 = vadd.f32 %v6699_v25, %v4903_v35 }
 0x29c   : > { %v6700_v53 = vpop.f32.mrf.mxu0  ;;  %v4906_v60 = vadd.f32 %v6586_v17, %v9721_v14  ;;  %v4911_v29 = vadd.f32 %v6589_v26, %v9722_v16  ;;  %v6595_v57 = vadd.f32 %v6594_v54, %v6593_v28  ;;  %v4914_v25 = vadd.f32 %v6592_v47, %v9006_v62 }
 0x29d   : > { %v5176_v49 = vadd.f32 %v5175_v2, %v5145_v55  ;;  %v5108_v40 = vadd.f32 %v5107_v15, %v9229_v42  ;;  %v5147_v10 = vmul.f32 %v9235_v38, %v9235_v38  ;;  %v4922_v62 = vadd.f32 %v6598_v24, %v9022_v59  ;;  %v9724_v24 = vld [vmem:[#allocation6_spill] sm:$0xff] }
 0x29e   : > { %v5058_v4 = vpop.f32.mrf.mxu0  ;;  %v9254_v22 = vadd.f32 %v6700_v53, %v4906_v60  ;;  %v4919_v54 = vadd.f32 %v6595_v57, %v9013_v58  ;;  %v5149_v26 = vmul.f32 %v9247_v61, %v9247_v61  ;;  %v7102_v57 = vld [vmem:[%s9595_s6 + $0x78] sm:$0xff] }
 0x29f   : > { %v5109_v12 = vadd.f32 %v5108_v40, %v9235_v38  ;;  %v9244_v51 = vadd.f32 %v5058_v4, %v4898_v13  ;;  %v5177_v23 = vadd.f32 %v5176_v49, %v5146_v1 }
 0x2a0   : > { %v6703_v0 = vpop.f32.mrf.mxu0  ;;  %v5150_v35 = vmul.f32 %v9254_v22, %v9254_v22 }
 0x2a1   : > { %v5110_v21 = vadd.f32 %v5109_v12, %v9244_v51  ;;  %v5178_v15 = vadd.f32 %v5177_v23, %v5147_v10  ;;  %v5148_v2 = vmul.f32 %v9244_v51, %v9244_v51  ;;  %v9267_v45 = vadd.f32 %v6703_v0, %v4919_v54  ;;  %v9728_v54 = vld [vmem:[#allocation10_spill] sm:$0xff] }
 0x2a2   : > { %v5071_v48 = vpop.f32.mrf.mxu0  ;;  %v9723_v10 = vmov 0.0  }
 0x2a3   : > { %v5111_v8 = vadd.f32 %v5110_v21, %v9247_v61  ;;  %v9260_v33 = vadd.f32 %v5071_v48, %v4911_v29  ;;  %v5179_v49 = vadd.f32 %v5178_v15, %v5148_v2  ;;  %v5153_v48 = vmul.f32 %v9267_v45, %v9267_v45  ;;  %v9726_v2 = vld [vmem:[#allocation8_spill] sm:$0xff] }
 0x2a4   : > { %v6704_v55 = vpop.f32.mrf.mxu0 }
 0x2a5   : > { %v5112_v13 = vadd.f32 %v5111_v8, %v9254_v22  ;;  %v9273_v4 = vadd.f32 %v6704_v55, %v4922_v62  ;;  %v5180_v63 = vadd.f32 %v5179_v49, %v5149_v26  ;;  %v5151_v59 = vmul.f32 %v9260_v33, %v9260_v33  ;;  %v9730_v62 = vld [vmem:[#allocation13_spill] sm:$0xff] }
 0x2a6   : > { %v5074_v28 = vpop.f32.mrf.mxu0 }
 0x2a7   : > { %v5113_v53 = vadd.f32 %v5112_v13, %v9260_v33  ;;  %v9265_v17 = vadd.f32 %v5074_v28, %v4914_v25  ;;  %v5181_v47 = vadd.f32 %v5180_v63, %v5150_v35  ;;  %v5154_v55 = vmul.f32 %v9273_v4, %v9273_v4  ;;  %v9725_v25 = vld [vmem:[#allocation7_spill] sm:$0xff]  ;;  %v9727_v13 = vld [vmem:[#allocation9_spill] sm:$0xff]  ;;  %v9733_v63 = vld [vmem:[#allocation22_spill] sm:$0xff] }
 0x2a8   : > { %v9734_v35 = vld [vmem:[#allocation25_spill] sm:$0xff] }
 0x2a9   : > { %v5114_v40 = vadd.f32 %v5113_v53, %v9265_v17  ;;  %v5182_v23 = vadd.f32 %v5181_v47, %v5151_v59  ;;  %v5152_v60 = vmul.f32 %v9265_v17, %v9265_v17  ;;  %v9729_v53 = vld [vmem:[#allocation11_spill] sm:$0xff]  ;;  %v9737_v59 = vld [vmem:[#allocation37_spill] sm:$0xff] }
 0x2ab   : > { %v5115_v1 = vadd.f32 %v5114_v40, %v9267_v45  ;;  %v5183_v29 = vadd.f32 %v5182_v23, %v5152_v60  ;;  %v9731_v40 = vld [vmem:[#allocation15_spill] sm:$0xff]  ;;  %v9738_v23 = vld [vmem:[#allocation38_spill] sm:$0xff] }
 0x2ad   : > { %v5116_v58 = vadd.f32 %v5115_v1, %v9273_v4  ;;  %v5184_v8 = vadd.f32 %v5183_v29, %v5153_v48  ;;  %v9732_v1 = vld [vmem:[#allocation17_spill] sm:$0xff] }
 0x2af   : > { %v5117_v12 = vrot.slane %v5116_v58, 4  ;;  %v5185_v15 = vadd.f32 %v5184_v8, %v5154_v55  ;;  %v5357_v8 = vlaneseq  ;;  %v5352_v55 = vld [vmem:[%s9593_s4] sm:$0x1] }
 0x2b1   : > { %v5118_v0 = vadd.f32 %v5117_v12, %v5116_v58  ;;  %v5186_v28 = vrot.slane %v5185_v15, 4  ;;  %v9735_v12 = vld [vmem:[#allocation28_spill] sm:$0xff] }
 0x2b3   : > { %v5119_v31 = vrot.slane %v5118_v0, 2  ;;  %v5187_v49 = vadd.f32 %v5186_v28, %v5185_v15 }
 0x2b5   : > { %v5120_v14 = vadd.f32 %v5119_v31, %v5118_v0  ;;  %v5188_v26 = vrot.slane %v5187_v49, 2  ;;  %v9736_v0 = vld [vmem:[#allocation33_spill] sm:$0xff] }
 0x2b7   : > { %v5121_v21 = vrot.slane %v5120_v14, 1  ;;  %v5189_v58 = vadd.f32 %v5188_v26, %v5187_v49 }
 0x2b9   : > { %v5122_v16 = vadd.f32 %v5121_v21, %v5120_v14  ;;  %v5190_v47 = vrot.slane %v5189_v58, 1 }
 0x2bb   : > { %6738 = vmatmul.mubr.f32.vlgmr.msra.gmra.mxu1 %v5122_v16  ;;  %v5191_v31 = vadd.f32 %v5190_v47, %v5189_v58 }
 0x2bc   : > { %6741 = vmatpush3.msra.mxu1 %v7102_v57  ;;  %6772 = vmatprep.mubr.msk.f32.mxu1 %vm7166_vm6, %v9723_v10 }
 0x2bd   : > { %6742 = vmatprep.subr.mxu1 %v9723_v10 }
 0x2be   : > { %6743 = vmatpush3.msra.mxu1 %v9724_v24  ;;  %v5358_v24 = vshrl.u32 %v5357_v8, 7 }
 0x2bf   : > { %6744 = vmatprep.subr.mxu1 %v9723_v10 }
 0x2c0   : > { %6745 = vmatpush3.msra.mxu1 %v9725_v25  ;;  %v5359_v25 = vsub.s32 0, %v5358_v24  ;;  %v5437_v24 = vld [vmem:[%s9369_s16 + $0x30] sm:$0xff] }
 0x2c1   : > { %6746 = vmatprep.subr.mxu1 %v9723_v10 }
 0x2c2   : > { %6747 = vmatpush3.msra.mxu1 %v9726_v2  ;;  %v5354_v2 = vld [vmem:[%s9594_s5] sm:$0x1] }
 0x2c3   : > { %6748 = vmatprep.subr.mxu1 %v9723_v10 }
 0x2c4   : > { %6749 = vmatpush3.msra.mxu1 %v9727_v13 }
 0x2c5   : > { %6750 = vmatprep.subr.mxu1 %v9723_v10 }
 0x2c6   : > { %6751 = vmatpush3.msra.mxu1 %v9728_v54 }
 0x2c7   : > { %6752 = vmatprep.subr.mxu1 %v9723_v10 }
 0x2c8   : > { %6753 = vmatpush3.msra.mxu1 %v9729_v53 }
 0x2c9   : > { %6754 = vmatprep.subr.mxu1 %v9723_v10 }
 0x2ca   : > { %6755 = vmatpush3.msra.mxu1 %v9730_v62 }
 0x2cb   : > { %6756 = vmatprep.subr.mxu1 %v9723_v10 }
 0x2cc   : > { %6757 = vmatpush3.msra.mxu1 %v9731_v40 }
 0x2cd   : > { %6758 = vmatprep.subr.mxu1 %v9723_v10 }
 0x2ce   : > { %6759 = vmatpush3.msra.mxu1 %v9732_v1 }
 0x2cf   : > { %6760 = vmatprep.subr.mxu1 %v9723_v10 }
 0x2d0   : > { %6761 = vmatpush3.msra.mxu1 %v9733_v63 }
 0x2d1   : > { %6762 = vmatprep.subr.mxu1 %v9723_v10 }
 0x2d2   : > { %6763 = vmatpush3.msra.mxu1 %v9734_v35 }
 0x2d3   : > { %6764 = vmatprep.subr.mxu1 %v9723_v10 }
 0x2d4   : > { %6765 = vmatpush3.msra.mxu1 %v9735_v12 }
 0x2d5   : > { %6766 = vmatprep.subr.mxu1 %v9723_v10 }
 0x2d6   : > { %6767 = vmatpush3.msra.mxu1 %v9736_v0 }
 0x2d7   : > { %6768 = vmatprep.subr.mxu1 %v9723_v10 }
 0x2d8   : > { %6769 = vmatpush3.msra.mxu1 %v9737_v59 }
 0x2d9   : > { %6770 = vmatprep.subr.mxu1 %v9723_v10 }
 0x2da   : > { %6771 = vmatpush3.msra.mxu1 %v9738_v23 }
 0x2db   : > { %6773 = vmatmul.mubr.f32.vlgmr.msra.gmra.mxu1 %v5191_v31 }
 0x37b   : > { %v5274_v14 = vpop.f32.mrf.mxu1 }
 0x37c   : > { %v5348_v21 = vmul.f32 %v5274_v14, %v5274_v14 }
 0x37d   : > { %v6739_v60 = vpop.f32.mrf.mxu1 }
 0x37e   : > { %v5431_v60 = vld [vmem:[%s9369_s16] sm:$0xff] }
 0x39b   : > { %v5344_v16 = vpop.f32.mrf.mxu1 }
 0x39c   : > { %v5349_v29 = vsub.f32 %v5344_v16, %v5348_v21  ;;  %v5434_v21 = vld [vmem:[%s9369_s16 + $0x18] sm:$0xff]  ;;  %v5432_v16 = vld [vmem:[%s9369_s16 + $0x8] sm:$0xff] }
 0x39d   : > { %v6774_v48 = vpop.f32.mrf.mxu1 }
 0x39e   : > { %v5350_v57 = vadd.f32 1e-05, %v5349_v29 }
 0x3a0   : > { %7099 = vrsqrt.f32 %v5350_v57 }
 0x3ad   : > { %v7100_v10 = vpop.eup %7099 }
 0x3ae   : > { %v5353_v15 = vmul.f32 %v7100_v10, %v5352_v55  ;;  %v5435_v55 = vld [vmem:[%s9369_s16 + $0x20] sm:$0xff]  ;;  %v5436_v10 = vld [vmem:[%s9369_s16 + $0x28] sm:$0xff] }
 0x3b0   : > { %v5355_v13 = vmul.f32 %v5353_v15, %v5274_v14  ;;  %v5360_v28 = vrot.slane %v5353_v15, %v5359_v25  ;;  %v5433_v14 = vld [vmem:[%s9369_s16 + $0x10] sm:$0xff] }
 0x3b2   : > { %v5356_v54 = vsub.f32 %v5354_v2, %v5355_v13  ;;  %v5361_v53 = vmul.f32 %v5360_v28, %v9032_v18  ;;  %v5362_v49 = vmul.f32 %v5360_v28, %v9038_v43  ;;  %v5363_v62 = vmul.f32 %v5360_v28, %v9035_v32 }
 0x3b3   : > { %v5364_v40 = vmul.f32 %v5360_v28, %v9049_v3  ;;  %v5365_v26 = vmul.f32 %v5360_v28, %v9060_v44  ;;  %v5366_v1 = vmul.f32 %v5360_v28, %v9077_v30  ;;  %v5367_v63 = vmul.f32 %v5360_v28, %v9071_v5 }
 0x3b4   : > { %v9335_v58 = vrot.slane %v5356_v54, %v5359_v25  ;;  %v5368_v35 = vmul.f32 %v5360_v28, %v9086_v27  ;;  %v5369_v12 = vmul.f32 %v5360_v28, %v9096_v41  ;;  %v5370_v18 = vmul.f32 %v5360_v28, %v9113_v6  ;;  %v5438_v25 = vld [vmem:[%s9369_s16 + $0x38] sm:$0xff]  ;;  %v5441_v54 = vld [vmem:[%s9369_s16 + $0x50] sm:$0xff] }
 0x3b5   : > { %v5371_v43 = vmul.f32 %v5360_v28, %v9107_v39  ;;  %v5372_v32 = vmul.f32 %v5360_v28, %v9122_v56  ;;  %v5373_v3 = vmul.f32 %v5360_v28, %v9132_v50  ;;  %v5374_v44 = vmul.f32 %v5360_v28, %v9149_v46 }
 0x3b6   : > { %v5375_v30 = vmul.f32 %v5360_v28, %v9143_v11  ;;  %v5376_v5 = vmul.f32 %v5360_v28, %v9158_v52  ;;  %v5377_v47 = vmul.f32 %v5360_v28, %v9168_v9  ;;  %v5378_v27 = vmul.f32 %v5360_v28, %v9185_v7 }
 0x3b7   : > { %v5379_v41 = vmul.f32 %v5360_v28, %v9179_v20  ;;  %v5380_v6 = vmul.f32 %v5360_v28, %v9192_v37  ;;  %v5381_v39 = vmul.f32 %v5360_v28, %v9200_v34  ;;  %v5382_v56 = vmul.f32 %v5360_v28, %v9216_v19 }
 0x3b8   : > { %v5383_v50 = vmul.f32 %v5360_v28, %v9211_v36  ;;  %v5384_v11 = vmul.f32 %v5360_v28, %v9229_v42  ;;  %v5385_v46 = vmul.f32 %v5360_v28, %v9235_v38  ;;  %v5386_v52 = vmul.f32 %v5360_v28, %v9244_v51 }
 0x3b9   : > { %v5387_v9 = vmul.f32 %v5360_v28, %v9247_v61  ;;  %v5388_v20 = vmul.f32 %v5360_v28, %v9254_v22  ;;  %v5389_v7 = vmul.f32 %v5360_v28, %v9260_v33  ;;  %v5390_v37 = vmul.f32 %v5360_v28, %v9265_v17 }
 0x3ba   : > { %v5391_v34 = vmul.f32 %v5360_v28, %v9267_v45  ;;  %v5392_v19 = vmul.f32 %v5360_v28, %v9273_v4  ;;  %v5399_v36 = vadd.f32 %v9335_v58, %v5361_v53  ;;  %v5400_v42 = vadd.f32 %v9335_v58, %v5362_v49  ;;  %v5439_v53 = vld [vmem:[%s9369_s16 + $0x40] sm:$0xff]  ;;  %v5442_v49 = vld [vmem:[%s9369_s16 + $0x58] sm:$0xff] }
 0x3bb   : > { %v5401_v38 = vadd.f32 %v9335_v58, %v5363_v62  ;;  %v5402_v51 = vadd.f32 %v9335_v58, %v5364_v40  ;;  %v5403_v61 = vadd.f32 %v9335_v58, %v5365_v26  ;;  %v5404_v22 = vadd.f32 %v9335_v58, %v5366_v1  ;;  %v5440_v62 = vld [vmem:[%s9369_s16 + $0x48] sm:$0xff] }
 0x3bc   : > { %v5405_v33 = vadd.f32 %v9335_v58, %v5367_v63  ;;  %v5406_v17 = vadd.f32 %v9335_v58, %v5368_v35  ;;  %v5407_v45 = vadd.f32 %v9335_v58, %v5369_v12  ;;  %v5408_v4 = vadd.f32 %v9335_v58, %v5370_v18  ;;  %v5445_v35 = vld [vmem:[%s9369_s16 + $0x70] sm:$0xff]  ;;  %v5443_v12 = vld [vmem:[%s9369_s16 + $0x60] sm:$0xff]  ;;  %v5446_v18 = vld [vmem:[%s9369_s16 + $0x78] sm:$0xff] }
 0x3bd   : > { %v9380_v0 = vadd.f32 %v9335_v58, %v5371_v43  ;;  %v9383_v59 = vadd.f32 %v9335_v58, %v5372_v32  ;;  %v9386_v31 = vadd.f32 %v9335_v58, %v5373_v3  ;;  %v9389_v23 = vadd.f32 %v9335_v58, %v5374_v44 }
 0x3be   : > { %v9400_v29 = vadd.f32 %v9335_v58, %v5375_v30  ;;  %v9403_v48 = vadd.f32 %v9335_v58, %v5376_v5  ;;  %v9406_v57 = vadd.f32 %v9335_v58, %v5377_v47  ;;  %v9409_v8 = vadd.f32 %v9335_v58, %v5378_v27  ;;  %v5444_v30 = vld [vmem:[%s9369_s16 + $0x68] sm:$0xff]  ;;  %v5449_v5 = vld [vmem:[%s9369_s16 + $0x90] sm:$0xff]  ;;  %v5447_v47 = vld [vmem:[%s9369_s16 + $0x80] sm:$0xff] }
 0x3bf   : > { %v9416_v15 = vadd.f32 %v9335_v58, %v5379_v41  ;;  %v9419_v2 = vadd.f32 %v9335_v58, %v5380_v6  ;;  %v9422_v13 = vadd.f32 %v9335_v58, %v5381_v39  ;;  %v9425_v28 = vadd.f32 %v9335_v58, %v5382_v56  ;;  %v5450_v56 = vld [vmem:[%s9369_s16 + $0x98] sm:$0xff] }
 0x3c0   : > { %v9432_v40 = vadd.f32 %v9335_v58, %v5383_v50  ;;  %v9435_v26 = vadd.f32 %v9335_v58, %v5384_v11  ;;  %v9438_v1 = vadd.f32 %v9335_v58, %v5385_v46  ;;  %v9441_v63 = vadd.f32 %v9335_v58, %v5386_v52  ;;  %v5448_v50 = vld [vmem:[%s9369_s16 + $0x88] sm:$0xff]  ;;  %v5453_v11 = vld [vmem:[%s9369_s16 + $0xb0] sm:$0xff] }
 0x3c1   : > { %v9447_v43 = vadd.f32 %v9335_v58, %v5387_v9  ;;  %v9450_v32 = vadd.f32 %v9335_v58, %v5388_v20  ;;  %v9453_v3 = vadd.f32 %v9335_v58, %v5389_v7  ;;  %v9456_v44 = vadd.f32 %v9335_v58, %v5390_v37  ;;  %v5451_v7 = vld [vmem:[%s9369_s16 + $0xa0] sm:$0xff]  ;;  %v5454_v37 = vld [vmem:[%s9369_s16 + $0xb8] sm:$0xff] }
 0x3c2   : > { %v9462_v27 = vadd.f32 %v9335_v58, %v5391_v34  ;;  %v9465_v41 = vadd.f32 %v9335_v58, %v5392_v19  ;;  %v5463_v6 = vadd.f32 %v5431_v60, %v5399_v36  ;;  %v5464_v39 = vadd.f32 %v5432_v16, %v5400_v42  ;;  %v5452_v34 = vld [vmem:[%s9369_s16 + $0xa8] sm:$0xff]  ;;  %v5457_v36 = vld [vmem:[%s9369_s16 + $0xd0] sm:$0xff]  ;;  %v5455_v42 = vld [vmem:[%s9369_s16 + $0xc0] sm:$0xff] }
 0x3c3   : > { %9739 = vst [vmem:[#allocation12_spill] sm:$0xff] %v9456_v44  ;;  %v5465_v46 = vadd.f32 %v5433_v14, %v5401_v38  ;;  %v5466_v52 = vadd.f32 %v5434_v21, %v5402_v51  ;;  %v5467_v9 = vadd.f32 %v5435_v55, %v5403_v61  ;;  %v5468_v20 = vadd.f32 %v5436_v10, %v5404_v22  ;;  %v5456_v38 = vld [vmem:[%s9369_s16 + $0xc8] sm:$0xff]  ;;  %v5461_v14 = vld [vmem:[%s9369_s16 + $0xf0] sm:$0xff]  ;;  %v5462_v60 = vld [vmem:[%s9369_s16 + $0xf8] sm:$0xff] }
 0x3c4   : > { %9740 = vst [vmem:[#allocation20_spill] sm:$0xff] %v9462_v27  ;;  %v5469_v27 = vadd.f32 %v5437_v24, %v5405_v33  ;;  %v5470_v44 = vadd.f32 %v5438_v25, %v5406_v17  ;;  %v5471_v58 = vadd.f32 %v5439_v53, %v5407_v45  ;;  %v5472_v19 = vadd.f32 %v5440_v62, %v5408_v4  ;;  %v5458_v17 = vld [vmem:[%s9369_s16 + $0xd8] sm:$0xff]  ;;  %v5459_v45 = vld [vmem:[%s9369_s16 + $0xe0] sm:$0xff]  ;;  %v5460_v4 = vld [vmem:[%s9369_s16 + $0xe8] sm:$0xff] }
 0x3c5   : > { %5495 = vst [vmem:[%s9474_s20] sm:$0xff] %v5463_v6  ;;  %5496 = vst [vmem:[%s9474_s20 + $0x8] sm:$0xff] %v5464_v39  ;;  %v5473_v51 = vadd.f32 %v5441_v54, %v9380_v0  ;;  %v5474_v61 = vadd.f32 %v5442_v49, %v9383_v59  ;;  %v5475_v22 = vadd.f32 %v5443_v12, %v9386_v31 }
 0x3c6   : > { %v5476_v33 = vadd.f32 %v5444_v30, %v9389_v23  ;;  %5497 = vst [vmem:[%s9474_s20 + $0x10] sm:$0xff] %v5465_v46  ;;  %5498 = vst [vmem:[%s9474_s20 + $0x18] sm:$0xff] %v5466_v52  ;;  %v5477_v0 = vadd.f32 %v5445_v35, %v9400_v29  ;;  %v5478_v59 = vadd.f32 %v5446_v18, %v9403_v48 }
 0x3c7   : > { %5499 = vst [vmem:[%s9474_s20 + $0x20] sm:$0xff] %v5467_v9  ;;  %5500 = vst [vmem:[%s9474_s20 + $0x28] sm:$0xff] %v5468_v20  ;;  %v5479_v31 = vadd.f32 %v5447_v47, %v9406_v57  ;;  %v5480_v23 = vadd.f32 %v5448_v50, %v9409_v8  ;;  %v5481_v21 = vadd.f32 %v5449_v5, %v9416_v15 }
 0x3c8   : > { %5501 = vst [vmem:[%s9474_s20 + $0x30] sm:$0xff] %v5469_v27  ;;  %5502 = vst [vmem:[%s9474_s20 + $0x38] sm:$0xff] %v5470_v44  ;;  %v5482_v16 = vadd.f32 %v5450_v56, %v9419_v2  ;;  %v5483_v29 = vadd.f32 %v5451_v7, %v9422_v13  ;;  %v5484_v48 = vadd.f32 %v5452_v34, %v9425_v28 }
 0x3c9   : > { %5503 = vst [vmem:[%s9474_s20 + $0x40] sm:$0xff] %v5471_v58  ;;  %5504 = vst [vmem:[%s9474_s20 + $0x48] sm:$0xff] %v5472_v19  ;;  %v5485_v57 = vadd.f32 %v5453_v11, %v9432_v40  ;;  %v5486_v8 = vadd.f32 %v5454_v37, %v9435_v26  ;;  %v5487_v24 = vadd.f32 %v5455_v42, %v9438_v1 }
 0x3ca   : > { %5505 = vst [vmem:[%s9474_s20 + $0x50] sm:$0xff] %v5473_v51  ;;  %5506 = vst [vmem:[%s9474_s20 + $0x58] sm:$0xff] %v5474_v61  ;;  %v5488_v55 = vadd.f32 %v5456_v38, %v9441_v63  ;;  %v5489_v25 = vadd.f32 %v5457_v36, %v9447_v43  ;;  %v5490_v10 = vadd.f32 %v5458_v17, %v9450_v32  ;;  %v9741_v2 = vld [vmem:[#allocation12_spill] sm:$0xff] }
 0x3cb   : > { %5507 = vst [vmem:[%s9474_s20 + $0x60] sm:$0xff] %v5475_v22  ;;  %5508 = vst [vmem:[%s9474_s20 + $0x68] sm:$0xff] %v5476_v33  ;;  %v5491_v15 = vadd.f32 %v5459_v45, %v9453_v3  ;;  %v5492_v13 = vadd.f32 %v5460_v4, %v9741_v2  ;;  %v9742_v28 = vld [vmem:[#allocation20_spill] sm:$0xff]  ;;  %v5494_v53 = vadd.f32 %v5462_v60, %v9465_v41 }
 0x3cc   : > { %5509 = vst [vmem:[%s9474_s20 + $0x70] sm:$0xff] %v5477_v0  ;;  %5510 = vst [vmem:[%s9474_s20 + $0x78] sm:$0xff] %v5478_v59  ;;  %v5493_v54 = vadd.f32 %v5461_v14, %v9742_v28 }
 0x3cd   : > { %5511 = vst [vmem:[%s9474_s20 + $0x80] sm:$0xff] %v5479_v31  ;;  %5512 = vst [vmem:[%s9474_s20 + $0x88] sm:$0xff] %v5480_v23 }
 0x3ce   : > { %5513 = vst [vmem:[%s9474_s20 + $0x90] sm:$0xff] %v5481_v21  ;;  %5514 = vst [vmem:[%s9474_s20 + $0x98] sm:$0xff] %v5482_v16 }
 0x3cf   : > { %5515 = vst [vmem:[%s9474_s20 + $0xa0] sm:$0xff] %v5483_v29  ;;  %5516 = vst [vmem:[%s9474_s20 + $0xa8] sm:$0xff] %v5484_v48 }
 0x3d0   : > { %5517 = vst [vmem:[%s9474_s20 + $0xb0] sm:$0xff] %v5485_v57  ;;  %5518 = vst [vmem:[%s9474_s20 + $0xb8] sm:$0xff] %v5486_v8 }
 0x3d1   : > { %5519 = vst [vmem:[%s9474_s20 + $0xc0] sm:$0xff] %v5487_v24  ;;  %5520 = vst [vmem:[%s9474_s20 + $0xc8] sm:$0xff] %v5488_v55 }
 0x3d2   : > { %5521 = vst [vmem:[%s9474_s20 + $0xd0] sm:$0xff] %v5489_v25  ;;  %5522 = vst [vmem:[%s9474_s20 + $0xd8] sm:$0xff] %v5490_v10 }
 0x3d3   : > { %5523 = vst [vmem:[%s9474_s20 + $0xe0] sm:$0xff] %v5491_v15  ;;  %5524 = vst [vmem:[%s9474_s20 + $0xe8] sm:$0xff] %v5492_v13 }
 0x3d4   : > { %5525 = vst [vmem:[%s9474_s20 + $0xf0] sm:$0xff] %v5493_v54  ;;  %5526 = vst [vmem:[%s9474_s20 + $0xf8] sm:$0xff] %v5494_v53 }
 0x3d5   : > { %7116 = shalt.err (!%p7113_p3)
}
 0x3d6   : > { %s7117_s13 = scalar_lea.hbm %s9531_s23, 4096  ;;  %s7121_s17 = scalar_lea.hbm %s9596_s7, 8192 }
 0x3d7   : > { %p7118_p4 = scmp.ne.s32.totalorder %s9531_s23, %s7117_s13  ;;  %p7122_p9 = scmp.lt.s32.totalorder %s9531_s23, %s9596_s7 }
 0x3d8   : > { %p7123_p10 = scmp.lt.s32.totalorder %s7121_s17, %s7117_s13 }
 0x3d9   : > { %p7119_p7 = pnand %p7118_p4, %p7248_p5 }
 0x3da   : > { %p7124_p11 = por %p7123_p10, %p7122_p9 }
 0x3db   : > { %p7120_p8 = pneg %p7119_p7 }
 0x3dd   : > { %p7125_p12 = pnand %p7124_p11, %p7120_p8 }
 0x3df   : > { %7128 = shalt.err (!%p7125_p12)
}
 0x3e0   : > { %s7168_s28 = smov 128   ;;  %s7169_s21 = smov 8  }
 0x3e1   : > { %6776 = dma.vmem_to_hbm [thread:$0]  (%p7248_p5), %s9533_s19, 4096, %s9531_s23, %s9549_s29, %s7168_s28, %s7168_s28, %s7169_s21  }
 0x3e2 PF: > { %p6782_p13 = scmp.ge.s32.totalorder %s7163_s27, 2  ;;  %s5556_s8 = sand.u32 1, %s7151_s24  }
 0x3e3   : > { %s5557_s22 = scalar_lea.sflag [#allocation4], %s5556_s8 }
 0x3e4   : > { %p6779_p0 = pnand %p6782_p13, %p7252_p6 }
 0x3e6   : > { %p6780_p1 = pneg %p6779_p0 }
 0x3e8   : > { %7146 = dma.done.wait (%p6780_p1), %s5557_s22, 4096  }
 0x3e9   : > { %7148 = vsyncadd (%p6780_p1), %s5557_s22, 4294963200  ;;  %p17_p2 = scmp.ge.s32.totalorder %s7235_s30, 4   ;;  %s9743_s24 = smov %s7155_s25 }
 0x3ea   : > { %s9744_s25 = smov %s7159_s26  ;;  %s9745_s26 = smov %s7246_s10 }
 0x3eb   : > { %s9746_s27 = smov %s7235_s30  ;;  %19 = sbr.rel (!%p17_p2) target bundleno = 3 (0x3), region = 88 }
 0x3f0   :  { %5562 = vsyncpa [#allocation4], 1 }
 0x3f1   :  { %5564 = vsyncpa [#allocation4 + $0x1], 1 }

// kernel: residual_block_forward_nhwc.2
= control target key start
LH: loop header
LB: loop body
LE: loop exit
PB: predicated region body
PF: predicated region fallthrough
CT: control target
= control target key end

     0   :  { %11 = vsyncpa [#allocation5], 0  ;;  %s11172_s0 = inlined_call_operand.hbm [shape: f32[2,16,16,128], index: 0, kind: input, shape index: {}]   ;;  %s11173_s1 = inlined_call_operand.hbm [shape: bf16[1152,128], index: 1, kind: input, shape index: {}]   ;;  %s11174_s2 = inlined_call_operand.hbm [shape: f32[1,128], index: 2, kind: input, shape index: {}]   ;;  %s11175_s3 = inlined_call_operand.vmem [shape: f32[1,128], index: 3, kind: input, shape index: {}]   ;;  %s11176_s4 = inlined_call_operand.vmem [shape: f32[1,128], index: 4, kind: input, shape index: {}]   ;;  %s11177_s5 = inlined_call_operand.hbm [shape: f32[128,128], index: 5, kind: input, shape index: {}]   ;;  %s11178_s6 = inlined_call_operand.vmem [shape: bf16[2,18,18,128], index: 6, kind: output, shape index: {}]  }
   0x1   :  { %13 = vsyncpa [#allocation5 + $0x1], 0 }
   0x2   :  { %14 = vsyncpa [#allocation7], 0 }
   0x3   :  { %15 = vsyncpa [#allocation10], 0  ;;  %s8518_s21 = smov 0   ;;  %s8520_s22 = smov 0  }
   0x4   :  { %s8522_s23 = smov 0   ;;  %s8524_s24 = smov 0  }
   0x5 LB: > { %s8537_s25 = sadd.s32 4294967295, %s8470_s24   ;;  %p41_p0 = scmp.ne.s32.totalorder %s8462_s22, %s8458_s21  ;;  %s8470_s24 = sphi %s8524_s24, %s11378_s24   ;;  %s8466_s23 = sphi %s8522_s23, %s11377_s23   ;;  %s8462_s22 = sphi %s8520_s22, %s11376_s22   ;;  %s8458_s21 = sphi %s8518_s21, %s11375_s21  }
   0x6   : > { %p11179_p1 = scmp.eq.s32.totalorder %s8537_s25, 0  ;;  %p6846_p2 = scmp.ge.s32.totalorder %s8470_s24, 1 }
   0x7   : > { %p183_p3 = scmp.lt.s32.totalorder %s8470_s24, 3  ;;  %s8472_s28 = smov [#allocation6]  }
   0x8   : > { %p8545_p4 = por %p11179_p1, %p41_p0  ;;  %s195_s29 = sshll.u32 %s8472_s28, 4  ;;  %s196_s29 = int_to_ptr.vmem [resolvable:$true] %s195_s29 }
   0x9   : > { %p8549_p5 = pnand %p6846_p2, %p183_p3  ;;  %s8473_s7 = smov [#allocation8]  }
   0xa   : > { %s11206_s26 = scalar_select %p8545_p4, 1, 0 }
   0xb   : > { %s11207_s27 = scalar_select %p8549_p5, 1, 0 }
   0xc   : > { %p7975_p6 = pneg %p8549_p5  ;;  %s209_s8 = sshll.u32 %s8473_s7, 4  ;;  %s210_s8 = int_to_ptr.vmem [resolvable:$true] %s209_s8 }
   0xd   : > { %s8474_s9 = smov [#allocation9]   ;;  %s8333_s11 = scalar_lea.vmem %s196_s29, 9216 }
   0xe   : > { %p8557_p7 = pnand %p7975_p6, %p11179_p1  ;;  %s225_s10 = sshll.u32 %s8474_s9, 4  ;;  %s226_s10 = int_to_ptr.vmem [resolvable:$true] %s225_s10 }
   0xf   : > { %p8334_p9 = scmp.ne.s32.totalorder %s196_s29, %s8333_s11  ;;  %p8341_p12 = scmp.lt.s32.totalorder %s196_s29, %s196_s29 }
  0x10   : > { %p8324_p8 = pneg %p8557_p7  ;;  %p8342_p13 = scmp.lt.s32.totalorder %s8333_s11, %s8333_s11 }
  0x12   : > { %p8336_p10 = pnand %p8334_p9, %p8324_p8  ;;  %p8343_p0 = por %p8342_p13, %p8341_p12 }
  0x14   : > { %p8337_p11 = pneg %p8336_p10 }
  0x16   : > { %p8344_p2 = pnand %p8343_p0, %p8337_p11 }
  0x18   : > { %8347 = shalt.err (!%p8344_p2)
}
  0x19   : > { %s8475_s12 = smov 64   ;;  %s8476_s13 = smov 4  }
  0x1a   : > { %7978 = dma.hbm_to_vmem [thread:$0]  (!%p8557_p7), %s11173_s1, 9216, %s196_s29, [#allocation7], %s8475_s12, %s8475_s12, %s8476_s13  }
  0x1b   : > { %s8359_s16 = scalar_lea.vmem %s210_s8, 16  ;;  %s8366_s17 = scalar_lea.vmem %s210_s8, 32 }
  0x1c   : > { %p8360_p3 = scmp.ne.s32.totalorder %s210_s8, %s8359_s16  ;;  %p8367_p10 = scmp.lt.s32.totalorder %s210_s8, %s210_s8 }
  0x1d   : > { %p8368_p12 = scmp.lt.s32.totalorder %s8366_s17, %s8359_s16 }
  0x1e   : > { %p8362_p6 = pnand %p8360_p3, %p8324_p8 }
  0x1f   : > { %p8369_p11 = por %p8368_p12, %p8367_p10 }
  0x20   : > { %p8363_p9 = pneg %p8362_p6 }
  0x22   : > { %p8370_p13 = pnand %p8369_p11, %p8363_p9 }
  0x24   : > { %8373 = shalt.err (!%p8370_p13)
}
  0x25   : > { %7981 = dma.hbm_to_vmem [thread:$0]  (!%p8557_p7), %s11174_s2, 16, %s210_s8, [#allocation7]  }
  0x26   : > { %s8385_s20 = scalar_lea.vmem %s226_s10, 2048  ;;  %p8393_p6 = scmp.lt.s32.totalorder %s226_s10, %s226_s10 }
  0x27   : > { %p8386_p0 = scmp.ne.s32.totalorder %s226_s10, %s8385_s20  ;;  %p8394_p1 = scmp.lt.s32.totalorder %s8385_s20, %s8385_s20 }
  0x29   : > { %p8388_p2 = pnand %p8386_p0, %p8324_p8  ;;  %p8395_p4 = por %p8394_p1, %p8393_p6 }
  0x2b   : > { %p8389_p3 = pneg %p8388_p2 }
  0x2d   : > { %p8396_p10 = pnand %p8395_p4, %p8389_p3 }
  0x2f   : > { %8399 = shalt.err (!%p8396_p10)
}
  0x30   : > { %s8477_s21 = smov 128   ;;  %s8478_s28 = smov 8  }
  0x31   : > { %7984 = dma.hbm_to_vmem [thread:$0]  (!%p8557_p7), %s11177_s5, 2048, %s226_s10, [#allocation10], %s8477_s21, %s8477_s21, %s8478_s28  }
  0x32   : > { %s8591_s8 = sadd.s32 1, %s8470_s24   ;;  %s28_s11 = sadd.s32 1, %s8466_s23 }
  0x33   : > { %s25_s9 = ssub.s32 %s8470_s24, %s8591_s8  ;;  %p35_p4 = scmp.ne.s32.totalorder %s8466_s23, %s8462_s22 }
  0x34   : > { %p26_p1 = scmp.eq.s32.totalorder %s25_s9, 0  ;;  %p36_p8 = scmp.eq.s32.totalorder %s8470_s24, 0 }
  0x35   : > { %p7992_p9 = scmp.lt.s32.totalorder %s8470_s24, 2  ;;  %s239_s30 = sand.u32 1, %s8466_s23  }
  0x36   : > { %s8601_s12 = scalar_select %p26_p1, %s8466_s23, %s28_s11  }
  0x37   : > { %p37_p12 = por %p36_p8, %p35_p4  ;;  %s6851_s13 = sshll.u32 %s239_s30, 8 }
  0x38   : > { %s7271_s14 = sshll.u32 %s8470_s24, 12  ;;  %s243_s10 = scalar_lea.vmem [#allocation4], %s6851_s13 }
  0x39   : > { %s8608_s17 = scalar_lea.hbm %s11172_s0, %s7271_s14  ;;  %s250_s18 = sshll.u32 %s243_s10, 4  ;;  %s8610_s18 = int_to_ptr.vmem [resolvable:$true] %s250_s18 }
  0x3a   : > { %p8612_p7 = pnand %p7992_p9, %p37_p12  ;;  %s8616_s20 = scalar_lea.sflag [#allocation5], %s239_s30 }
  0x3b   : > { %s8400_s24 = scalar_lea.hbm %s8608_s17, 4096  ;;  %s8405_s9 = scalar_lea.hbm %s11172_s0, 8192 }
  0x3c   : > { %p8401_p11 = scmp.ne.s32.totalorder %s8608_s17, %s8400_s24  ;;  %p8402_p13 = pneg %p8612_p7 }
  0x3d   : > { %p8406_p3 = scmp.lt.s32.totalorder %s8608_s17, %s11172_s0  ;;  %p8407_p6 = scmp.lt.s32.totalorder %s8405_s9, %s8400_s24 }
  0x3e   : > { %p8403_p0 = pnand %p8402_p13, %p8401_p11 }
  0x3f   : > { %p8408_p10 = por %p8407_p6, %p8406_p3 }
  0x40   : > { %p8404_p2 = pneg %p8403_p0 }
  0x42   : > { %p8409_p1 = pnand %p8408_p10, %p8404_p2 }
  0x44   : > { %8412 = shalt.err (!%p8409_p1)
}
  0x45   : > { %s8413_s30 = scalar_lea.vmem %s8610_s18, 4096  ;;  %s8479_s14 = smov [#allocation4]  }
  0x46   : > { %p8414_p4 = scmp.ne.s32.totalorder %s8610_s18, %s8413_s30  ;;  %s8418_s15 = sshll.u32 %s8479_s14, 4  ;;  %s8419_s15 = int_to_ptr.vmem [resolvable:$false] %s8418_s15 }
  0x47   : > { %s8420_s16 = scalar_lea.vmem %s8419_s15, 8192  ;;  %p8421_p12 = scmp.lt.s32.totalorder %s8610_s18, %s8419_s15 }
  0x48   : > { %p8416_p8 = pnand %p8414_p4, %p8402_p13  ;;  %p8422_p11 = scmp.lt.s32.totalorder %s8420_s16, %s8413_s30 }
  0x4a   : > { %p8417_p9 = pneg %p8416_p8  ;;  %p8423_p0 = por %p8422_p11, %p8421_p12 }
  0x4c   : > { %p8424_p5 = pnand %p8423_p0, %p8417_p9 }
  0x4e   : > { %8427 = shalt.err (!%p8424_p5)
}
  0x4f   : > { %7988 = dma.hbm_to_vmem [thread:$0]  (!%p8612_p7), %s8608_s17, 4096, %s8610_s18, %s8616_s20, %s8477_s21, %s8477_s21, %s8478_s28  }
  0x50   : > { %p11210_p13 = scmp.ne.s32.totalorder %s11207_s27, 0 }
  0x52   : > { %262 = sbr.rel (%p11210_p13) target bundleno = 1226 (0x4ca), region = 44 }
  0x57   : > { %s264_s10 = sand.u32 1, %s8462_s22   ;;  %p11211_p5 = scmp.ne.s32.totalorder %s11206_s26, 0 }
  0x58   : > { %s6855_s24 = sshll.u32 %s264_s10, 8  ;;  %s265_s29 = scalar_lea.sflag [#allocation5], %s264_s10 }
  0x59   : > { %s8643_s7 = scalar_lea.vmem [#allocation4], %s6855_s24 }
  0x5a   : > { %8445 = dma.done.wait (%p11211_p5), %s265_s29, 4096  }
  0x5b   : > { %8447 = vsyncadd (%p11211_p5), %s265_s29, 4294963200  ;;  %p11212_p2 = scmp.eq.s32.totalorder %s8537_s25, 0 }
  0x5d   : > { %8449 = dma.done.wait (%p11212_p2), [#allocation7], 9232   ;;  %p11213_p7 = pmov %p11212_p2 }
  0x5e   : > { %p11214_p3 = pmov %p11212_p2 }
  0x5f   : > { %8451 = vsyncadd (%p11213_p7), [#allocation7], 4294958064 }
  0x60   : > { %8453 = dma.done.wait (%p11214_p3), [#allocation10], 2048   ;;  %p11215_p6 = pmov %p11212_p2 }
  0x61   : > { %p309_p10 = scmp.lt.s32.totalorder %s8537_s25, 1  ;;  %v8480_v0 = vmov 0   ;;  %v8038_v1 = vld [vmem:[#allocation6 + $0x78] sm:$0xff]   ;;  %v8042_v5 = vld [vmem:[#allocation6 + $0x70] sm:$0xff]   ;;  %v8046_v9 = vld [vmem:[#allocation6 + $0x68] sm:$0xff]   ;;  %vm1597_vm4 = vcmask 1042432  }
  0x62   : > { %8455 = vsyncadd (%p11215_p6), [#allocation10], 4294965248  ;;  %315 = vst [vmem:[#allocation3] sm:$0xf] %v8480_v0  ;;  %v8039_v2 = vld [vmem:[#allocation6 + $0x38] sm:$0xff]   ;;  %7336 = vmatprep.subr.bf16.mxu0 %v8038_v1  ;;  %v8043_v6 = vld [vmem:[#allocation6 + $0x30] sm:$0xff]  }
  0x63   : > { %316 = vst [vmem:[#allocation3 + $0x4] sm:$0xf] %v8480_v0  ;;  %317 = vst [vmem:[#allocation3 + $0x8] sm:$0x1] %v8480_v0  ;;  %s11380_s25 = smov (!%p309_p10, %s8537_s25), 1  ;;  %v8040_v3 = vld [vmem:[#allocation6 + $0xf8] sm:$0xff]   ;;  %7337 = vmatpush3.bf16.msra.mxu0 %v8039_v2 }
  0x64   : > { %318 = vst [vmem:[#allocation3 + $0xc] sm:$0xf] %v8480_v0  ;;  %319 = vst [vmem:[#allocation3 + $0x10] sm:$0xf] %v8480_v0  ;;  %s7960_s26 = smul.u32 216, %s11380_s25  ;;  %v8041_v4 = vld [vmem:[#allocation6 + $0xb8] sm:$0xff]   ;;  %7448 = vmatprep.subr.bf16.mxu1 %v8040_v3  ;;  %7338 = vmatprep.subr.bf16.mxu0 %v8042_v5 }
  0x65   : > { %320 = vst [vmem:[#allocation3 + $0x14] sm:$0x1] %v8480_v0  ;;  %321 = vst [vmem:[#allocation3 + $0x18] sm:$0xf] %v8480_v0  ;;  %7449 = vmatpush3.bf16.msra.mxu1 %v8041_v4  ;;  %v8044_v7 = vld [vmem:[#allocation6 + $0xf0] sm:$0xff]   ;;  %v8047_v10 = vld [vmem:[#allocation6 + $0x28] sm:$0xff]  }
  0x66   : > { %322 = vst [vmem:[#allocation3 + $0x1c] sm:$0xf] %v8480_v0  ;;  %323 = vst [vmem:[#allocation3 + $0x20] sm:$0x1] %v8480_v0  ;;  %s8718_s28 = scalar_lea.vmem %s11178_s6, %s7960_s26  ;;  %v8045_v8 = vld [vmem:[#allocation6 + $0xb0] sm:$0xff]   ;;  %7450 = vmatprep.subr.bf16.mxu1 %v8044_v7  ;;  %v8048_v11 = vld [vmem:[#allocation6 + $0xe8] sm:$0xff]  }
  0x67   : > { %324 = vst [vmem:[#allocation3 + $0x24] sm:$0xf] %v8480_v0  ;;  %325 = vst [vmem:[#allocation3 + $0x28] sm:$0xf] %v8480_v0  ;;  %7339 = vmatpush3.bf16.msra.mxu0 %v8043_v6  ;;  %v8049_v12 = vld [vmem:[#allocation6 + $0xa8] sm:$0xff]   ;;  %v8050_v13 = vld [vmem:[#allocation6 + $0x60] sm:$0xff]  }
  0x68   : > { %326 = vst [vmem:[#allocation3 + $0x2c] sm:$0x1] %v8480_v0  ;;  %327 = vst [vmem:[#allocation3 + $0x30] sm:$0xf] %v8480_v0  ;;  %7340 = vmatprep.subr.bf16.mxu0 %v8046_v9  ;;  %v8051_v14 = vld [vmem:[#allocation6 + $0x20] sm:$0xff]   ;;  %v8054_v17 = vld [vmem:[#allocation6 + $0x58] sm:$0xff]  }
  0x69   : > { %328 = vst [vmem:[#allocation3 + $0x34] sm:$0xf] %v8480_v0  ;;  %329 = vst [vmem:[#allocation3 + $0x38] sm:$0x1] %v8480_v0  ;;  %7451 = vmatpush3.bf16.msra.mxu1 %v8045_v8  ;;  %v8052_v15 = vld [vmem:[#allocation6 + $0xe0] sm:$0xff]   ;;  %v8055_v18 = vld [vmem:[#allocation6 + $0x18] sm:$0xff]  }
  0x6a   : > { %330 = vst [vmem:[#allocation3 + $0x3c] sm:$0xf] %v8480_v0  ;;  %331 = vst [vmem:[#allocation3 + $0x40] sm:$0xf] %v8480_v0  ;;  %7452 = vmatprep.subr.bf16.mxu1 %v8048_v11  ;;  %v8053_v16 = vld [vmem:[#allocation6 + $0xa0] sm:$0xff]   ;;  %v8056_v19 = vld [vmem:[#allocation6 + $0xd8] sm:$0xff]  }
  0x6b   : > { %332 = vst [vmem:[#allocation3 + $0x44] sm:$0x1] %v8480_v0  ;;  %333 = vst [vmem:[#allocation3 + $0x48] sm:$0xf] %v8480_v0  ;;  %7341 = vmatpush3.bf16.msra.mxu0 %v8047_v10  ;;  %v8057_v20 = vld [vmem:[#allocation6 + $0x98] sm:$0xff]   ;;  %v8058_v21 = vld [vmem:[#allocation6 + $0x50] sm:$0xff]  }
  0x6c   : > { %334 = vst [vmem:[#allocation3 + $0x4c] sm:$0xf] %v8480_v0  ;;  %335 = vst [vmem:[#allocation3 + $0x50] sm:$0x1] %v8480_v0  ;;  %7342 = vmatprep.subr.bf16.mxu0 %v8050_v13  ;;  %v8059_v22 = vld [vmem:[#allocation6 + $0x10] sm:$0xff]   ;;  %v8062_v25 = vld [vmem:[#allocation6 + $0x48] sm:$0xff]  }
  0x6d   : > { %336 = vst [vmem:[#allocation3 + $0x54] sm:$0xf] %v8480_v0  ;;  %337 = vst [vmem:[#allocation3 + $0x58] sm:$0xf] %v8480_v0  ;;  %7453 = vmatpush3.bf16.msra.mxu1 %v8049_v12  ;;  %v8060_v23 = vld [vmem:[#allocation6 + $0xd0] sm:$0xff]   ;;  %v8063_v26 = vld [vmem:[#allocation6 + $0x8] sm:$0xff]  }
  0x6e   : > { %338 = vst [vmem:[#allocation3 + $0x5c] sm:$0x1] %v8480_v0  ;;  %339 = vst [vmem:[#allocation3 + $0x60] sm:$0xf] %v8480_v0  ;;  %7454 = vmatprep.subr.bf16.mxu1 %v8052_v15  ;;  %v8061_v24 = vld [vmem:[#allocation6 + $0x90] sm:$0xff]   ;;  %v8064_v27 = vld [vmem:[#allocation6 + $0xc8] sm:$0xff]  }
  0x6f   : > { %340 = vst [vmem:[#allocation3 + $0x64] sm:$0xf] %v8480_v0  ;;  %341 = vst [vmem:[#allocation3 + $0x68] sm:$0x1] %v8480_v0  ;;  %7343 = vmatpush3.bf16.msra.mxu0 %v8051_v14  ;;  %vm1050_vm0 = vsmask.f32 3328 }
  0x70   : > { %342 = vst [vmem:[#allocation3 + $0x6c] sm:$0xf] %v8480_v0  ;;  %343 = vst [vmem:[#allocation3 + $0x70] sm:$0xf] %v8480_v0  ;;  %7344 = vmatprep.subr.bf16.mxu0 %v8054_v17  ;;  %vm1051_vm1 = vsmask.f32 7440 }
  0x71   : > { %344 = vst [vmem:[#allocation3 + $0x74] sm:$0x1] %v8480_v0  ;;  %345 = vst [vmem:[#allocation3 + $0x78] sm:$0xf] %v8480_v0  ;;  %7455 = vmatpush3.bf16.msra.mxu1 %v8053_v16  ;;  %v8065_v28 = vld [vmem:[#allocation6 + $0x88] sm:$0xff]   ;;  %v8066_v29 = vld [vmem:[#allocation6 + $0x40] sm:$0xff]  }
  0x72   : > { %346 = vst [vmem:[#allocation3 + $0x7c] sm:$0xf] %v8480_v0  ;;  %347 = vst [vmem:[#allocation3 + $0x80] sm:$0x1] %v8480_v0  ;;  %7456 = vmatprep.subr.bf16.mxu1 %v8056_v19  ;;  %vm497_vm2 = vsmask.f32 256 }
  0x73   : > { %348 = vst [vmem:[#allocation3 + $0x84] sm:$0xf] %v8480_v0  ;;  %349 = vst [vmem:[#allocation3 + $0x88] sm:$0xf] %v8480_v0  ;;  %7345 = vmatpush3.bf16.msra.mxu0 %v8055_v18  ;;  %vm498_vm3 = vsmask.f32 4368 }
  0x74   : > { %350 = vst [vmem:[#allocation3 + $0x8c] sm:$0x1] %v8480_v0  ;;  %351 = vst [vmem:[#allocation3 + $0x90] sm:$0xf] %v8480_v0  ;;  %7346 = vmatprep.subr.bf16.mxu0 %v8058_v21  ;;  %v8067_v30 = vld [vmem:[#allocation6] sm:$0xff]   ;;  %vm1598_vm5 = vcmask 1046532  }
  0x75   : > { %352 = vst [vmem:[#allocation3 + $0x94] sm:$0xf] %v8480_v0  ;;  %353 = vst [vmem:[#allocation3 + $0x98] sm:$0x1] %v8480_v0  ;;  %7457 = vmatpush3.bf16.msra.mxu1 %v8057_v20  ;;  %v8068_v31 = vld [vmem:[#allocation6 + $0xc0] sm:$0xff]   ;;  %v8073_v48 = vld [vmem:[#allocation6 + $0x178] sm:$0xff]  }
  0x76   : > { %354 = vst [vmem:[#allocation3 + $0x9c] sm:$0xf] %v8480_v0  ;;  %355 = vst [vmem:[#allocation3 + $0xa0] sm:$0xf] %v8480_v0  ;;  %7458 = vmatprep.subr.bf16.mxu1 %v8060_v23  ;;  %v938_v32 = vld [vmem:[#allocation3] sm:$0xf] }
  0x77   : > { %356 = vst [vmem:[#allocation3 + $0xa4] sm:$0x1] %v8480_v0  ;;  %357 = vst [vmem:[#allocation3 + $0xa8] sm:$0xf] %v8480_v0  ;;  %7347 = vmatpush3.bf16.msra.mxu0 %v8059_v22  ;;  %v939_v33 = vld [vmem:[#allocation3 + $0x4] sm:$0xf] }
  0x78   : > { %358 = vst [vmem:[#allocation3 + $0xac] sm:$0xf] %v8480_v0  ;;  %359 = vst [vmem:[#allocation3 + $0xb0] sm:$0x1] %v8480_v0  ;;  %7348 = vmatprep.subr.bf16.mxu0 %v8062_v25  ;;  %v1002_v34 = vld [vmem:[#allocation3] sm:$0xf] }
  0x79   : > { %360 = vst [vmem:[#allocation3 + $0xb4] sm:$0xf] %v8480_v0  ;;  %361 = vst [vmem:[#allocation3 + $0xb8] sm:$0xf] %v8480_v0  ;;  %7459 = vmatpush3.bf16.msra.mxu1 %v8061_v24  ;;  %v1003_v35 = vld [vmem:[#allocation3 + $0x4] sm:$0xf] }
  0x7a   : > { %362 = vst [vmem:[#allocation3 + $0xbc] sm:$0x1] %v8480_v0  ;;  %363 = vst [vmem:[#allocation3 + $0xc0] sm:$0xf] %v8480_v0  ;;  %7460 = vmatprep.subr.bf16.mxu1 %v8064_v27  ;;  %v1004_v36 = vld [vmem:[#allocation3 + $0x8] sm:$0x1] }
  0x7b   : > { %364 = vst [vmem:[#allocation3 + $0xc4] sm:$0xf] %v8480_v0  ;;  %365 = vst [vmem:[#allocation3 + $0xc8] sm:$0x1] %v8480_v0  ;;  %7349 = vmatpush3.bf16.msra.mxu0 %v8063_v26  ;;  %v1054_v37 = vshrl.u32 %v1002_v34, 16  ;;  %v1057_v38 = vshll.u32 %v1002_v34, 16 }
  0x7c   : > { %366 = vst [vmem:[#allocation3 + $0xcc] sm:$0xf] %v8480_v0  ;;  %367 = vst [vmem:[#allocation3 + $0xd0] sm:$0xf] %v8480_v0  ;;  %7350 = vmatprep.subr.bf16.mxu0 %v8066_v29  ;;  %v1063_v39 = vshll.u32 %v1003_v35, 16  ;;  %v1067_v40 = vshrl.u32 %v1003_v35, 16 }
  0x7d   : > { %368 = vst [vmem:[#allocation3 + $0xd4] sm:$0x1] %v8480_v0  ;;  %6166 = vst [vmem:[%s8718_s28] sm:$0xf] %v8480_v0  ;;  %7461 = vmatpush3.bf16.msra.mxu1 %v8065_v28  ;;  %v1073_v41 = vshll.u32 %v1004_v36, 16  ;;  %v8072_v42 = vld [vmem:[#allocation6 + $0x80] sm:$0xff]   ;;  %v1056_v43 = vrot.slane %v1054_v37, 4 }
  0x7e   : > { %6167 = vst [vmem:[%s8718_s28 + $0x4] sm:$0xf] %v8480_v0  ;;  %6168 = vst [vmem:[%s8718_s28 + $0x8] sm:$0x1] %v8480_v0  ;;  %7462 = vmatprep.subr.bf16.mxu1 %v8068_v31  ;;  %v1059_v44 = vrot.slane %v1057_v38, 5  ;;  %v1065_v46 = vrot.slane %v1063_v39, 5 }
  0x7f   : > { %6217 = vst [vmem:[%s8718_s28 + $0xcc] sm:$0xf] %v8480_v0  ;;  %6218 = vst [vmem:[%s8718_s28 + $0xd0] sm:$0xf] %v8480_v0  ;;  %7351 = vmatpush3.bf16.msra.mxu0 %v8067_v30  ;;  %v1069_v47 = vrot.slane %v1067_v40, 4  ;;  %vm821_vm7 = vcmask 1043456  }
  0x80   : > { %6219 = vst [vmem:[%s8718_s28 + $0xd4] sm:$0x1] %v8480_v0  ;;  %6169 = vst [vmem:[%s8718_s28 + $0xc] sm:$0xf] %v8480_v0  ;;  %v1060_v49 = vor.u32 %v1059_v44, %v1056_v43  ;;  %v1075_v50 = vrot.slane %v1073_v41, 5  ;;  %v369_v51 = vld [vmem:[%s8643_s7] sm:$0xff]  ;;  %7560 = vmatprep.subr.bf16.mxu0 %v8073_v48 }
  0x81   : > { %6170 = vst [vmem:[%s8718_s28 + $0x10] sm:$0xf] %v8480_v0  ;;  %6171 = vst [vmem:[%s8718_s28 + $0x14] sm:$0x1] %v8480_v0  ;;  %7463 = vmatpush3.bf16.msra.mxu1 %v8072_v42  ;;  %v370_v52 = vld [vmem:[%s8643_s7 + $0x8] sm:$0xff]  ;;  %vm828_vm9 = vcmask 1040384   ;;  %v1070_v54 = vor.u32 %v1069_v47, %v1065_v46  ;;  %v7272_v55 = vpack.c.bf16 %v369_v51, %v369_v51 }
  0x82   : > { %6172 = vst [vmem:[%s8718_s28 + $0x18] sm:$0xf] %v8480_v0  ;;  %6173 = vst [vmem:[%s8718_s28 + $0x1c] sm:$0xf] %v8480_v0  ;;  %vm822_vm8 = vsmask.f32 7938  ;;  %v7273_v56 = vpack.c.bf16 %v370_v52, %v370_v52 }
  0x83   : > { %6174 = vst [vmem:[%s8718_s28 + $0x20] sm:$0x1] %v8480_v0  ;;  %6175 = vst [vmem:[%s8718_s28 + $0x24] sm:$0xf] %v8480_v0  ;;  %v1501_v57 = vld [vmem:[#allocation3] sm:$0xe] }
  0x84   : > { %6176 = vst [vmem:[%s8718_s28 + $0x28] sm:$0xf] %v8480_v0  ;;  %6177 = vst [vmem:[%s8718_s28 + $0x2c] sm:$0x1] %v8480_v0  ;;  %v1502_v58 = vld [vmem:[#allocation3 + $0x4] sm:$0xf] }
  0x85   : > { %6178 = vst [vmem:[%s8718_s28 + $0x30] sm:$0xf] %v8480_v0  ;;  %6179 = vst [vmem:[%s8718_s28 + $0x34] sm:$0xf] %v8480_v0  ;;  %v1503_v59 = vld [vmem:[#allocation3 + $0x8] sm:$0x1] }
  0x86   : > { %6180 = vst [vmem:[%s8718_s28 + $0x38] sm:$0x1] %v8480_v0  ;;  %6181 = vst [vmem:[%s8718_s28 + $0x3c] sm:$0xf] %v8480_v0  ;;  %v1061_v60 = vrot.slane %v1060_v49, 4  ;;  %v6892_v61 = vrot.slane %v1501_v57, 9 }
  0x87   : > { %6182 = vst [vmem:[%s8718_s28 + $0x40] sm:$0xf] %v8480_v0  ;;  %6183 = vst [vmem:[%s8718_s28 + $0x44] sm:$0x1] %v8480_v0  ;;  %v1602_v62 = vrot.slane %v1502_v58, 5  ;;  %v1605_v63 = vrot.slane %v1503_v59, 5 }
  0x88   : > { %6184 = vst [vmem:[%s8718_s28 + $0x48] sm:$0xf] %v8480_v0  ;;  %6185 = vst [vmem:[%s8718_s28 + $0x4c] sm:$0xf] %v8480_v0  ;;  %v11220_v1 = vmov 0  ;;  %v501_v2 = vshrl.u32 %v7272_v55, 16 }
  0x89   : > { %6186 = vst [vmem:[%s8718_s28 + $0x50] sm:$0x1] %v8480_v0  ;;  %6187 = vst [vmem:[%s8718_s28 + $0x54] sm:$0xf] %v8480_v0  ;;  %v504_v3 = vshll.u32 %v7272_v55, 16  ;;  %v509_v4 = vshrl.u32 %v7273_v56, 16 }
  0x8a   : > { %6188 = vst [vmem:[%s8718_s28 + $0x58] sm:$0xf] %v8480_v0  ;;  %6189 = vst [vmem:[%s8718_s28 + $0x5c] sm:$0x1] %v8480_v0  ;;  %v512_v6 = vshll.u32 %v7273_v56, 16  ;;  %v11223_v7 = vmov 0 }
  0x8b   : > { %6190 = vst [vmem:[%s8718_s28 + $0x60] sm:$0xf] %v8480_v0  ;;  %6191 = vst [vmem:[%s8718_s28 + $0x64] sm:$0xf] %v8480_v0  ;;  %v1604_v9 = vrot.slane %v1602_v62, 4  ;;  %v371_v10 = vld [vmem:[%s8643_s7 + $0x10] sm:$0xff] }
  0x8c   : > { %6192 = vst [vmem:[%s8718_s28 + $0x68] sm:$0x1] %v8480_v0  ;;  %6193 = vst [vmem:[%s8718_s28 + $0x6c] sm:$0xf] %v8480_v0  ;;  %v503_v12 = vrot.slane %v501_v2, 7  ;;  %v511_v13 = vrot.slane %v509_v4, 7  ;;  %v7274_v17 = vpack.c.bf16 %v371_v10, %v371_v10 }
  0x8d   : > { %6194 = vst [vmem:[%s8718_s28 + $0x70] sm:$0xf] %v8480_v0  ;;  %6195 = vst [vmem:[%s8718_s28 + $0x74] sm:$0x1] %v8480_v0  ;;  %v824_v14 = vld [vmem:[#allocation3 + $0xc] sm:$0xf] }
  0x8e   : > { %6196 = vst [vmem:[%s8718_s28 + $0x78] sm:$0xf] %v8480_v0  ;;  %6197 = vst [vmem:[%s8718_s28 + $0x7c] sm:$0xf] %v8480_v0  ;;  %v11226_v15 = vmov 0  ;;  %v372_v16 = vld [vmem:[%s8643_s7 + $0x18] sm:$0xff]  ;;  %v506_v21 = vor.u32 %v504_v3, %v503_v12  ;;  %v514_v23 = vor.u32 %v512_v6, %v511_v13 }
  0x8f   : > { %6198 = vst [vmem:[%s8718_s28 + $0x80] sm:$0x1] %v8480_v0  ;;  %6199 = vst [vmem:[%s8718_s28 + $0x84] sm:$0xf] %v8480_v0  ;;  %v830_v19 = vld [vmem:[#allocation3 + $0x14] sm:$0x1]  ;;  %v7275_v20 = vpack.c.bf16 %v372_v16, %v372_v16 }
  0x90   : > { %6200 = vst [vmem:[%s8718_s28 + $0x88] sm:$0xf] %v8480_v0  ;;  %6201 = vst [vmem:[%s8718_s28 + $0x8c] sm:$0x1] %v8480_v0  ;;  %v507_v22 = vrot.slane %v503_v12, 4  ;;  %v516_v24 = vrot.slane %v511_v13, 4 }
  0x91   : > { %6202 = vst [vmem:[%s8718_s28 + $0x90] sm:$0xf] %v8480_v0  ;;  %6203 = vst [vmem:[%s8718_s28 + $0x94] sm:$0xf] %v8480_v0  ;;  %v373_v25 = vld [vmem:[%s8643_s7 + $0x20] sm:$0xff]  ;;  %v374_v26 = vld [vmem:[%s8643_s7 + $0x28] sm:$0xff] }
  0x92   : > { %6204 = vst [vmem:[%s8718_s28 + $0x98] sm:$0x1] %v8480_v0  ;;  %6205 = vst [vmem:[%s8718_s28 + $0x9c] sm:$0xf] %v8480_v0  ;;  %v518_v27 = vshrl.u32 %v7274_v17, 16  ;;  %v521_v28 = vshll.u32 %v7274_v17, 16  ;;  %v7276_v34 = vpack.c.bf16 %v373_v25, %v373_v25  ;;  %v7277_v38 = vpack.c.bf16 %v374_v26, %v374_v26 }
  0x93   : > { %6206 = vst [vmem:[%s8718_s28 + $0xa0] sm:$0xf] %v8480_v0  ;;  %6207 = vst [vmem:[%s8718_s28 + $0xa4] sm:$0x1] %v8480_v0  ;;  %v526_v29 = vshrl.u32 %v7275_v20, 16  ;;  %v529_v30 = vshll.u32 %v7275_v20, 16 }
  0x94   : > { %6208 = vst [vmem:[%s8718_s28 + $0xa8] sm:$0xf] %v8480_v0  ;;  %6209 = vst [vmem:[%s8718_s28 + $0xac] sm:$0xf] %v8480_v0  ;;  %v520_v35 = vrot.slane %v518_v27, 7  ;;  %v375_v39 = vld [vmem:[%s8643_s7 + $0x30] sm:$0xff] }
  0x95   : > { %6210 = vst [vmem:[%s8718_s28 + $0xb0] sm:$0x1] %v8480_v0  ;;  %6211 = vst [vmem:[%s8718_s28 + $0xb4] sm:$0xf] %v8480_v0  ;;  %v528_v36 = vrot.slane %v526_v29, 7  ;;  %v376_v40 = vld [vmem:[%s8643_s7 + $0x38] sm:$0xff]  ;;  %v8880_v44 = vpack.c.bf16 %v375_v39, %v375_v39 }
  0x96   : > { %6212 = vst [vmem:[%s8718_s28 + $0xb8] sm:$0xf] %v8480_v0  ;;  %6213 = vst [vmem:[%s8718_s28 + $0xbc] sm:$0x1] %v8480_v0  ;;  %v833_v37 = vld [vmem:[#allocation3 + $0x18] sm:$0xf]  ;;  %v523_v48 = vor.u32 %v521_v28, %v520_v35 }
  0x97   : > { %6214 = vst [vmem:[%s8718_s28 + $0xc0] sm:$0xf] %v8480_v0  ;;  %6215 = vst [vmem:[%s8718_s28 + $0xc4] sm:$0xf] %v8480_v0  ;;  %v837_v41 = vld [vmem:[#allocation3 + $0x20] sm:$0x1] }
  0x98   : > { %6216 = vst [vmem:[%s8718_s28 + $0xc8] sm:$0x1] %v8480_v0  ;;  %970 = vst [vmem:[#allocation2] sm:$0xf] %v938_v32  ;;  %v1071_v0 = vrot.slane %v1070_v54, 4  ;;  %v535_v42 = vshrl.u32 %v7276_v34, 16 }
  0x99   : > { %971 = vst [vmem:[#allocation2 + $0x24] sm:$0xf] %v939_v33  ;;  %vm8830_vm6 = vmor %vm1050_vm0, %vm1051_vm1  ;;  %v538_v43 = vshll.u32 %v7276_v34, 16  ;;  %v8077_v47 = vld [vmem:[#allocation6 + $0x138] sm:$0xff]   ;;  %v524_v49 = vrot.slane %v520_v35, 4  ;;  %v533_v51 = vrot.slane %v528_v36, 4 }
  0x9a   : > { %vm8838_vm10 = vmor %vm1597_vm4, %vm1598_vm5  ;;  %v1066_v5 = vsel %vm8830_vm6, %v1061_v60, %v1065_v46  ;;  %v1076_v11 = vsel %vm8830_vm6, %v1071_v0, %v1075_v50  ;;  %v8882_v46 = vpack.c.bf16 %v376_v40, %v376_v40  ;;  %v531_v50 = vor.u32 %v529_v30, %v528_v36  ;;  %v8087_v59 = vld [vmem:[#allocation6 + $0x170] sm:$0xff]   ;;  %v8104_v25 = vld [vmem:[#allocation6 + $0x128] sm:$0xff]  }
  0x9b   : > { %vm8844_vm11 = vmor %vm497_vm2, %vm498_vm3  ;;  %v1603_v8 = vsel %vm8838_vm10, %v6892_v61, %v1602_v62  ;;  %1469 = vst [vmem:[#allocation2 + $0x4] sm:$0xf] %v1066_v5  ;;  %v1606_v18 = vsel %vm8838_vm10, %v1604_v9, %v1605_v63  ;;  %v537_v55 = vrot.slane %v535_v42, 7  ;;  %v543_v60 = vshrl.u32 %v7277_v38, 16  ;;  %v840_v61 = vld [vmem:[#allocation3 + $0x24] sm:$0xf] }
  0x9c   : > { %v11221_v1 = vsel %vm8844_vm11, 4294967295, %v11220_v1  ;;  %vm8852_vm12 = vmand %vm821_vm7, %vm822_vm8  ;;  %1744 = vst [vmem:[#allocation2 + $0x8] sm:$0xf] %v1603_v8  ;;  %v515_v31 = vsel %vm8844_vm11, %v507_v22, %v514_v23  ;;  %v532_v56 = vsel %vm8844_vm11, %v524_v49, %v531_v50  ;;  %v546_v0 = vshll.u32 %v7277_v38, 16  ;;  %v8090_v2 = vld [vmem:[#allocation6 + $0x130] sm:$0xff]   ;;  %v8101_v9 = vld [vmem:[#allocation6 + $0x168] sm:$0xff]  }
  0x9d   : > { %11222 = vst [vmem:[#allocation14_spill] sm:$0xff] %v11221_v1  ;;  %v11224_v7 = vsel %vm8852_vm12, 4294967295, %v11223_v7  ;;  %vm8863_vm13 = vmand %vm828_vm9, %vm497_vm2  ;;  %v825_v32 = vsel %vm8852_vm12, %v506_v21, %v824_v14  ;;  %v834_v57 = vsel %vm8852_vm12, %v523_v48, %v833_v37  ;;  %v540_v62 = vor.u32 %v538_v43, %v537_v55 }
  0x9e   : > { %11225 = vst [vmem:[#allocation15_spill] sm:$0xff] %v11224_v7  ;;  %v11227_v15 = vsel %vm8863_vm13, 4294967295, %v11226_v15  ;;  %1470 = vst [vmem:[#allocation2 + $0x28] sm:$0xf] %v1076_v11  ;;  %v831_v33 = vsel %vm8863_vm13, %v516_v24, %v830_v19  ;;  %v838_v58 = vsel %vm8863_vm13, %v533_v51, %v837_v41  ;;  %v541_v63 = vrot.slane %v537_v55, 4 }
  0x9f   : > { %11228 = vst [vmem:[#allocation16_spill] sm:$0xff] %v11227_v15  ;;  %1745 = vst [vmem:[#allocation2 + $0x2c] sm:$0xf] %v1606_v18  ;;  %v552_v3 = vshrl.u32 %v8880_v44, 16  ;;  %v545_v4 = vrot.slane %v543_v60, 7  ;;  %v555_v5 = vshll.u32 %v8880_v44, 16  ;;  %v841_v13 = vsel %vm8852_vm12, %v540_v62, %v840_v61 }
  0xa0   : > { %826 = vst [vmem:[#allocation3 + $0xc] sm:$0xf] %v825_v32  ;;  %827 = vst [vmem:[#allocation3 + $0x10] sm:$0xf] %v515_v31  ;;  %v8069_v52 = vld [vmem:[#allocation2] ss:$36 sps:$4 sm:$0xff]  }
  0xa1   : > { %832 = vst [vmem:[#allocation3 + $0x14] sm:$0x1] %v831_v33  ;;  %835 = vst [vmem:[#allocation3 + $0x18] sm:$0xf] %v834_v57  ;;  %v560_v6 = vshrl.u32 %v8882_v46, 16  ;;  %v563_v8 = vshll.u32 %v8882_v46, 16  ;;  %v548_v18 = vor.u32 %v546_v0, %v545_v4 }
  0xa2   : > { %836 = vst [vmem:[#allocation3 + $0x1c] sm:$0xf] %v532_v56  ;;  %839 = vst [vmem:[#allocation3 + $0x20] sm:$0x1] %v838_v58  ;;  %v844_v19 = vld [vmem:[#allocation3 + $0x2c] sm:$0x1] }
  0xa3   : > { %842 = vst [vmem:[#allocation3 + $0x24] sm:$0xf] %v841_v13  ;;  %v549_v29 = vsel %vm8844_vm11, %v541_v63, %v548_v18  ;;  %v550_v30 = vrot.slane %v545_v4, 4  ;;  %v8902_v55 = vrot.slane %v552_v3, 7  ;;  %vm8482_vm14 = vmmov 0  }
  0xa4   : > { %843 = vst [vmem:[#allocation3 + $0x28] sm:$0xf] %v549_v29 }
  0xa5   : > { %v8071_v54 = vld [vmem:[#allocation2 + $0x4] ss:$36 sps:$4 sm:$0xff]   ;;  %v845_v49 = vsel %vm8863_vm13, %v550_v30, %v844_v19 }
  0xa6   : > { %4952 = vmatprep.mubr.bf16.mxu0 %v8071_v54  ;;  %846 = vst [vmem:[#allocation3 + $0x2c] sm:$0x1] %v845_v49  ;;  %v8074_v56 = vld [vmem:[#allocation2 + $0x8] ss:$36 sps:$4 sm:$0xff]  }
  0xa7   : > { %4953 = vmatmul.mubr.bf16.vlgmr.msra.gmra.mxu0 %v8069_v52  ;;  %v1776_v10 = vld [vmem:[#allocation3 + $0xc] sm:$0xf]  ;;  %v1777_v11 = vld [vmem:[#allocation3 + $0x10] sm:$0xf] }
  0xa8   : > { %7561 = vmatpush3.bf16.msra.mxu0 %v8077_v47  ;;  %v940_v12 = vld [vmem:[#allocation3 + $0xc] sm:$0xf]  ;;  %1808 = vst [vmem:[#allocation2 + $0xc] sm:$0xf] %v1776_v10  ;;  %1809 = vst [vmem:[#allocation2 + $0x30] sm:$0xf] %v1777_v11 }
  0xa9   : > { %v941_v14 = vld [vmem:[#allocation3 + $0x10] sm:$0xf]  ;;  %972 = vst [vmem:[#allocation2 + $0x48] sm:$0xf] %v940_v12  ;;  %v1005_v16 = vld [vmem:[#allocation3 + $0xc] sm:$0xf]  ;;  %7562 = vmatprep.subr.bf16.mxu0 %v8087_v59 }
  0xaa   : > { %v1006_v17 = vld [vmem:[#allocation3 + $0x10] sm:$0xf]  ;;  %973 = vst [vmem:[#allocation2 + $0x6c] sm:$0xf] %v941_v14  ;;  %v1007_v20 = vld [vmem:[#allocation3 + $0x14] sm:$0x1] }
  0xab   : > { %v1078_v21 = vshrl.u32 %v1005_v16, 16  ;;  %v1081_v22 = vshll.u32 %v1005_v16, 16  ;;  %v1087_v23 = vshll.u32 %v1006_v17, 16  ;;  %v1091_v24 = vshrl.u32 %v1006_v17, 16  ;;  %v1504_v27 = vld [vmem:[#allocation3 + $0xc] sm:$0xe] }
  0xac   : > { %v1097_v26 = vshll.u32 %v1007_v20, 16  ;;  %v1505_v28 = vld [vmem:[#allocation3 + $0x10] sm:$0xf]  ;;  %v1506_v35 = vld [vmem:[#allocation3 + $0x14] sm:$0x1]  ;;  %7563 = vmatpush3.bf16.msra.mxu0 %v8090_v2  ;;  %v6893_v37 = vrot.slane %v1504_v27, 9  ;;  %v557_v2 = vor.u32 %v555_v5, %v8902_v55 }
  0xad   : > { %v1080_v31 = vrot.slane %v1078_v21, 4  ;;  %v1083_v32 = vrot.slane %v1081_v22, 5  ;;  %v1089_v33 = vrot.slane %v1087_v23, 5  ;;  %v1093_v34 = vrot.slane %v1091_v24, 4  ;;  %v1778_v40 = vld [vmem:[#allocation3 + $0x18] sm:$0xf]  ;;  %7564 = vmatprep.subr.bf16.mxu0 %v8101_v9 }
  0xae   : > { %v1099_v36 = vrot.slane %v1097_v26, 5  ;;  %v1609_v38 = vrot.slane %v1505_v28, 5  ;;  %v1612_v39 = vrot.slane %v1506_v35, 5  ;;  %v1779_v43 = vld [vmem:[#allocation3 + $0x1c] sm:$0xf]  ;;  %v558_v26 = vrot.slane %v8902_v55, 4 }
  0xaf   : > { %v1084_v41 = vor.u32 %v1083_v32, %v1080_v31  ;;  %v1094_v42 = vor.u32 %v1093_v34, %v1089_v33  ;;  %1810 = vst [vmem:[#allocation2 + $0x54] sm:$0xf] %v1778_v40  ;;  %v942_v47 = vld [vmem:[#allocation3 + $0x18] sm:$0xf]  ;;  %v943_v48 = vld [vmem:[#allocation3 + $0x1c] sm:$0xf] }
  0xb0   : > { %v1610_v50 = vsel %vm8838_vm10, %v6893_v37, %v1609_v38  ;;  %v1611_v51 = vrot.slane %v1609_v38, 4  ;;  %1811 = vst [vmem:[#allocation2 + $0x78] sm:$0xf] %v1779_v43  ;;  %974 = vst [vmem:[#allocation2 + $0x90] sm:$0xf] %v942_v47  ;;  %7565 = vmatpush3.bf16.msra.mxu0 %v8104_v25 }
  0xb1   : > { %975 = vst [vmem:[#allocation2 + $0xb4] sm:$0xf] %v943_v48  ;;  %v1008_v52 = vld [vmem:[#allocation3 + $0x18] sm:$0xf]  ;;  %v1009_v54 = vld [vmem:[#allocation3 + $0x1c] sm:$0xf] }
  0xb2   : > { %v1085_v57 = vrot.slane %v1084_v41, 4  ;;  %v1095_v58 = vrot.slane %v1094_v42, 4  ;;  %1746 = vst [vmem:[#allocation2 + $0x50] sm:$0xf] %v1610_v50  ;;  %v847_v59 = vld [vmem:[#allocation3 + $0x30] sm:$0xf]  ;;  %v1613_v61 = vsel %vm8838_vm10, %v1611_v51, %v1612_v39 }
  0xb3   : > { %v8076_v60 = vld [vmem:[#allocation2 + $0xc] ss:$36 sps:$4 sm:$0xff]   ;;  %v1010_v62 = vld [vmem:[#allocation3 + $0x20] sm:$0x1]  ;;  %v1102_v63 = vshrl.u32 %v1008_v52, 16  ;;  %v1105_v0 = vshll.u32 %v1008_v52, 16  ;;  %v848_v27 = vsel %vm8852_vm12, %v557_v2, %v847_v59 }
  0xb4   : > { %v1090_v3 = vsel %vm8830_vm6, %v1085_v57, %v1089_v33  ;;  %v1100_v4 = vsel %vm8830_vm6, %v1095_v58, %v1099_v36  ;;  %1747 = vst [vmem:[#allocation2 + $0x74] sm:$0xf] %v1613_v61  ;;  %v1111_v9 = vshll.u32 %v1009_v54, 16  ;;  %v1115_v10 = vshrl.u32 %v1009_v54, 16  ;;  %v1507_v11 = vld [vmem:[#allocation3 + $0x18] sm:$0xe]  ;;  %5113 = vmatprep.mubr.bf16.mxu1 %v8076_v60 }
  0xb5   : > { %v1508_v12 = vld [vmem:[#allocation3 + $0x1c] sm:$0xf]  ;;  %1471 = vst [vmem:[#allocation2 + $0x4c] sm:$0xf] %v1090_v3  ;;  %1472 = vst [vmem:[#allocation2 + $0x70] sm:$0xf] %v1100_v4  ;;  %5114 = vmatmul.mubr.bf16.vlgmr.msra.gmra.mxu1 %v8074_v56 }
  0xb6   : > { %v1104_v13 = vrot.slane %v1102_v63, 4  ;;  %v1107_v14 = vrot.slane %v1105_v0, 5  ;;  %v1121_v16 = vshll.u32 %v1010_v62, 16  ;;  %v1509_v17 = vld [vmem:[#allocation3 + $0x20] sm:$0x1]  ;;  %v6894_v44 = vrot.slane %v1507_v11, 9 }
  0xb7   : > { %v1113_v5 = vrot.slane %v1111_v9, 5  ;;  %v1117_v18 = vrot.slane %v1115_v10, 4  ;;  %v1616_v19 = vrot.slane %v1508_v12, 5  ;;  %v1619_v20 = vrot.slane %v1509_v17, 5  ;;  %v1780_v21 = vld [vmem:[#allocation3 + $0x24] sm:$0xf] }
  0xb8   : > { %v1108_v22 = vor.u32 %v1107_v14, %v1104_v13  ;;  %v1123_v23 = vrot.slane %v1121_v16, 5  ;;  %v1781_v24 = vld [vmem:[#allocation3 + $0x28] sm:$0xf]  ;;  %1812 = vst [vmem:[#allocation2 + $0x9c] sm:$0xf] %v1780_v21  ;;  %v562_v33 = vrot.slane %v560_v6, 7 }
  0xb9   : > { %v944_v25 = vld [vmem:[#allocation3 + $0x24] sm:$0xf]  ;;  %v1118_v28 = vor.u32 %v1117_v18, %v1113_v5  ;;  %v1617_v29 = vsel %vm8838_vm10, %v6894_v44, %v1616_v19  ;;  %v1618_v30 = vrot.slane %v1616_v19, 4  ;;  %1813 = vst [vmem:[#allocation2 + $0xc0] sm:$0xf] %v1781_v24  ;;  %v377_v42 = vld [vmem:[%s8643_s7 + $0x40] sm:$0xff] }
  0xba   : > { %v945_v31 = vld [vmem:[#allocation3 + $0x28] sm:$0xf]  ;;  %976 = vst [vmem:[#allocation2 + $0xd8] sm:$0xf] %v944_v25  ;;  %v1011_v32 = vld [vmem:[#allocation3 + $0x24] sm:$0xf]  ;;  %v565_v49 = vor.u32 %v563_v8, %v562_v33  ;;  %v8932_v2 = vpack.c.bf16 %v377_v42, %v377_v42 }
  0xbb   : > { %849 = vst [vmem:[#allocation3 + $0x30] sm:$0xf] %v848_v27  ;;  %v1109_v34 = vrot.slane %v1108_v22, 4  ;;  %1748 = vst [vmem:[#allocation2 + $0x98] sm:$0xf] %v1617_v29  ;;  %v1119_v37 = vrot.slane %v1118_v28, 4  ;;  %v1620_v38 = vsel %vm8838_vm10, %v1618_v30, %v1619_v20 }
  0xbc   : > { %977 = vst [vmem:[#allocation2 + $0xfc] sm:$0xf] %v945_v31  ;;  %v1012_v35 = vld [vmem:[#allocation3 + $0x28] sm:$0xf]  ;;  %v1013_v36 = vld [vmem:[#allocation3 + $0x2c] sm:$0x1]  ;;  %v566_v60 = vsel %vm8844_vm11, %v558_v26, %v565_v49 }
  0xbd   : > { %v1126_v39 = vshrl.u32 %v1011_v32, 16  ;;  %v1129_v40 = vshll.u32 %v1011_v32, 16  ;;  %v1510_v41 = vld [vmem:[#allocation3 + $0x24] sm:$0xe]  ;;  %v8081_v43 = vld [vmem:[#allocation2 + $0x54] ss:$36 sps:$4 sm:$0xff]   ;;  %v1114_v48 = vsel %vm8830_vm6, %v1109_v34, %v1113_v5  ;;  %v1124_v52 = vsel %vm8830_vm6, %v1119_v37, %v1123_v23 }
  0xbe   : > { %v8083_v47 = vld [vmem:[#allocation2 + $0x50] ss:$36 sps:$4 sm:$0xff]   ;;  %1749 = vst [vmem:[#allocation2 + $0xbc] sm:$0xf] %v1620_v38  ;;  %v1135_v6 = vshll.u32 %v1012_v35, 16  ;;  %5121 = vmatprep.mubr.bf16.mxu1 %v8081_v43  ;;  %v1139_v58 = vshrl.u32 %v1012_v35, 16 }
  0xbf   : > { %v851_v50 = vld [vmem:[#allocation3 + $0x38] sm:$0x1]  ;;  %v8078_v51 = vld [vmem:[#allocation2 + $0x4c] ss:$36 sps:$4 sm:$0xff]   ;;  %1473 = vst [vmem:[#allocation2 + $0x94] sm:$0xf] %v1114_v48  ;;  %5122 = vmatmul.mubr.bf16.gmra.mxu1 %v8083_v47 }
  0xc0   : > { %v1128_v54 = vrot.slane %v1126_v39, 4  ;;  %v1131_v55 = vrot.slane %v1129_v40, 5  ;;  %v8080_v56 = vld [vmem:[#allocation2 + $0x48] ss:$36 sps:$4 sm:$0xff]   ;;  %1474 = vst [vmem:[#allocation2 + $0xb8] sm:$0xf] %v1124_v52  ;;  %4960 = vmatprep.mubr.bf16.mxu0 %v8078_v51 }
  0xc1   : > { %v1137_v57 = vrot.slane %v1135_v6, 5  ;;  %v1145_v59 = vshll.u32 %v1013_v36, 16  ;;  %v378_v61 = vld [vmem:[%s8643_s7 + $0x48] sm:$0xff]  ;;  %v567_v8 = vrot.slane %v562_v33, 4  ;;  %850 = vst [vmem:[#allocation3 + $0x34] sm:$0xf] %v566_v60  ;;  %4961 = vmatmul.mubr.bf16.gmra.mxu0 %v8080_v56 }
  0xc2   : > { %v1132_v46 = vor.u32 %v1131_v55, %v1128_v54  ;;  %v1511_v62 = vld [vmem:[#allocation3 + $0x28] sm:$0xf]  ;;  %v1512_v63 = vld [vmem:[#allocation3 + $0x2c] sm:$0x1]  ;;  %v6895_v0 = vrot.slane %v1510_v41, 9  ;;  %v1141_v3 = vrot.slane %v1139_v58, 4  ;;  %v7281_v25 = vpack.c.bf16 %v378_v61, %v378_v61 }
  0xc3   : > { %v1147_v4 = vrot.slane %v1145_v59, 5  ;;  %v1623_v9 = vrot.slane %v1511_v62, 5  ;;  %v1626_v10 = vrot.slane %v1512_v63, 5  ;;  %v1782_v11 = vld [vmem:[#allocation3 + $0x30] sm:$0xf]  ;;  %v852_v13 = vsel %vm8863_vm13, %v567_v8, %v851_v50  ;;  %v379_v19 = vld [vmem:[%s8643_s7 + $0x50] sm:$0xff] }
  0xc4   : > { %v1133_v12 = vrot.slane %v1132_v46, 4  ;;  %1814 = vst [vmem:[#allocation2 + $0xe4] sm:$0xf] %v1782_v11  ;;  %v946_v14 = vld [vmem:[#allocation3 + $0x30] sm:$0xf]  ;;  %v1142_v17 = vor.u32 %v1141_v3, %v1137_v57  ;;  %v569_v29 = vshrl.u32 %v8932_v2, 16  ;;  %v8947_v38 = vpack.c.bf16 %v379_v19, %v379_v19 }
  0xc5   : > { %v1014_v16 = vld [vmem:[#allocation3 + $0x30] sm:$0xf]  ;;  %v1624_v44 = vsel %vm8838_vm10, %v6895_v0, %v1623_v9  ;;  %v1625_v5 = vrot.slane %v1623_v9, 4  ;;  %853 = vst [vmem:[#allocation3 + $0x38] sm:$0x1] %v852_v13  ;;  %v8115_v48 = vld [vmem:[#allocation6 + $0x160] sm:$0xff]  }
  0xc6   : > { %978 = vst [vmem:[#allocation2 + $0x120] sm:$0xf] %v946_v14  ;;  %v1150_v18 = vshrl.u32 %v1014_v16, 16  ;;  %v380_v20 = vld [vmem:[%s8643_s7 + $0x58] sm:$0xff]  ;;  %v8088_v21 = vld [vmem:[#allocation2 + $0x9c] ss:$36 sps:$4 sm:$0xff]   ;;  %v1138_v23 = vsel %vm8830_vm6, %v1133_v12, %v1137_v57  ;;  %7566 = vmatprep.subr.bf16.mxu0 %v8115_v48 }
  0xc7   : > { %v8091_v22 = vld [vmem:[#allocation2 + $0x98] ss:$36 sps:$4 sm:$0xff]   ;;  %1750 = vst [vmem:[#allocation2 + $0xe0] sm:$0xf] %v1624_v44  ;;  %v1153_v24 = vshll.u32 %v1014_v16, 16  ;;  %v1143_v26 = vrot.slane %v1142_v17, 4  ;;  %v1627_v27 = vsel %vm8838_vm10, %v1625_v5, %v1626_v10  ;;  %5129 = vmatprep.mubr.bf16.mxu1 %v8088_v21  ;;  %v8949_v39 = vpack.c.bf16 %v380_v20, %v380_v20 }
  0xc8   : > { %1475 = vst [vmem:[#allocation2 + $0xdc] sm:$0xf] %v1138_v23  ;;  %v1152_v28 = vrot.slane %v1150_v18, 4  ;;  %v1513_v30 = vld [vmem:[#allocation3 + $0x30] sm:$0xe]  ;;  %5130 = vmatmul.mubr.bf16.gmra.mxu1 %v8091_v22  ;;  %v571_v43 = vrot.slane %v569_v29, 7 }
  0xc9   : > { %v8084_v31 = vld [vmem:[#allocation2 + $0x94] ss:$36 sps:$4 sm:$0xff]   ;;  %1751 = vst [vmem:[#allocation2 + $0x104] sm:$0xf] %v1627_v27  ;;  %v1155_v33 = vrot.slane %v1153_v24, 5  ;;  %v1148_v34 = vsel %vm8830_vm6, %v1143_v26, %v1147_v4  ;;  %v572_v6 = vshll.u32 %v8932_v2, 16 }
  0xca   : > { %v8086_v32 = vld [vmem:[#allocation2 + $0x90] ss:$36 sps:$4 sm:$0xff]   ;;  %4968 = vmatprep.mubr.bf16.mxu0 %v8084_v31  ;;  %1476 = vst [vmem:[#allocation2 + $0x100] sm:$0xf] %v1148_v34  ;;  %v577_v49 = vshrl.u32 %v7281_v25, 16  ;;  %v580_v50 = vshll.u32 %v7281_v25, 16 }
  0xcb   : > { %v1783_v35 = vld [vmem:[#allocation3 + $0x34] sm:$0xf]  ;;  %v1156_v40 = vor.u32 %v1155_v33, %v1152_v28  ;;  %4969 = vmatmul.mubr.bf16.gmra.mxu0 %v8086_v32  ;;  %v854_v51 = vld [vmem:[#allocation3 + $0x3c] sm:$0xf]  ;;  %v6896_v52 = vrot.slane %v1513_v30, 9  ;;  %v575_v58 = vrot.slane %v571_v43, 4  ;;  %v574_v61 = vor.u32 %v572_v6, %v571_v43 }
  0xcc   : > { %v947_v36 = vld [vmem:[#allocation3 + $0x34] sm:$0xf]  ;;  %1815 = vst [vmem:[#allocation2 + $0x108] sm:$0xf] %v1783_v35  ;;  %v1016_v54 = vld [vmem:[#allocation3 + $0x38] sm:$0x1] }
  0xcd   : > { %v1015_v37 = vld [vmem:[#allocation3 + $0x34] sm:$0xf]  ;;  %979 = vst [vmem:[#allocation2 + $0x144] sm:$0xf] %v947_v36  ;;  %v1157_v55 = vrot.slane %v1156_v40, 4  ;;  %v1169_v60 = vshll.u32 %v1016_v54, 16  ;;  %v855_v12 = vsel %vm8852_vm12, %v574_v61, %v854_v51 }
  0xce   : > { %v1159_v41 = vshll.u32 %v1015_v37, 16  ;;  %v1163_v42 = vshrl.u32 %v1015_v37, 16  ;;  %v1514_v47 = vld [vmem:[#allocation3 + $0x34] sm:$0xf]  ;;  %v858_v59 = vld [vmem:[#allocation3 + $0x44] sm:$0x1] }
  0xcf   : > { %v579_v46 = vrot.slane %v577_v49, 7  ;;  %v1515_v8 = vld [vmem:[#allocation3 + $0x38] sm:$0x1]  ;;  %v1630_v62 = vrot.slane %v1514_v47, 5  ;;  %v586_v3 = vshrl.u32 %v8947_v38, 16  ;;  %v1171_v9 = vrot.slane %v1169_v60, 5 }
  0xd0   : > { %v1161_v56 = vrot.slane %v1159_v41, 5  ;;  %v1165_v57 = vrot.slane %v1163_v42, 4  ;;  %v1633_v2 = vrot.slane %v1515_v8, 5  ;;  %v381_v4 = vld [vmem:[%s8643_s7 + $0x60] sm:$0xff]  ;;  %v382_v13 = vld [vmem:[%s8643_s7 + $0x68] sm:$0xff]  ;;  %v383_v19 = vld [vmem:[%s8643_s7 + $0x70] sm:$0xff] }
  0xd1   : > { %v582_v10 = vor.u32 %v580_v50, %v579_v46  ;;  %v584_v11 = vrot.slane %v579_v46, 4  ;;  %v8118_v14 = vld [vmem:[#allocation6 + $0x120] sm:$0xff]   ;;  %856 = vst [vmem:[#allocation3 + $0x3c] sm:$0xf] %v855_v12  ;;  %v1631_v17 = vsel %vm8838_vm10, %v6896_v52, %v1630_v62  ;;  %v1632_v44 = vrot.slane %v1630_v62, 4  ;;  %v8129_v40 = vld [vmem:[#allocation6 + $0x158] sm:$0xff]  }
  0xd2   : > { %v1162_v63 = vsel %vm8830_vm6, %v1157_v55, %v1161_v56  ;;  %v1166_v0 = vor.u32 %v1165_v57, %v1161_v56  ;;  %v588_v5 = vrot.slane %v586_v3, 7  ;;  %v861_v18 = vld [vmem:[#allocation3 + $0x48] sm:$0xf]  ;;  %v8092_v20 = vld [vmem:[#allocation2 + $0xdc] ss:$36 sps:$4 sm:$0xff]   ;;  %v589_v24 = vshll.u32 %v8947_v38, 16  ;;  %7567 = vmatpush3.bf16.msra.mxu0 %v8118_v14 }
  0xd3   : > { %1477 = vst [vmem:[#allocation2 + $0x124] sm:$0xf] %v1162_v63  ;;  %v8094_v21 = vld [vmem:[#allocation2 + $0xd8] ss:$36 sps:$4 sm:$0xff]   ;;  %v583_v22 = vsel %vm8844_vm11, %v575_v58, %v582_v10  ;;  %1752 = vst [vmem:[#allocation2 + $0x128] sm:$0xf] %v1631_v17  ;;  %v859_v23 = vsel %vm8863_vm13, %v584_v11, %v858_v59  ;;  %v7284_v25 = vpack.c.bf16 %v381_v4, %v381_v4  ;;  %4976 = vmatprep.mubr.bf16.mxu0 %v8092_v20 }
  0xd4   : > { %v1167_v16 = vrot.slane %v1166_v0, 4  ;;  %v8095_v26 = vld [vmem:[#allocation2 + $0xe4] ss:$36 sps:$4 sm:$0xff]   ;;  %857 = vst [vmem:[#allocation3 + $0x40] sm:$0xf] %v583_v22  ;;  %v1634_v29 = vsel %vm8838_vm10, %v1632_v44, %v1633_v2  ;;  %v7285_v30 = vpack.c.bf16 %v382_v13, %v382_v13  ;;  %v591_v31 = vor.u32 %v589_v24, %v588_v5  ;;  %4977 = vmatmul.mubr.bf16.gmra.mxu0 %v8094_v21 }
  0xd5   : > { %v8097_v27 = vld [vmem:[#allocation2 + $0xe0] ss:$36 sps:$4 sm:$0xff]   ;;  %860 = vst [vmem:[#allocation3 + $0x44] sm:$0x1] %v859_v23  ;;  %1753 = vst [vmem:[#allocation2 + $0x14c] sm:$0xf] %v1634_v29  ;;  %5137 = vmatprep.mubr.bf16.mxu1 %v8095_v26  ;;  %v8973_v38 = vpack.c.bf16 %v383_v19, %v383_v19  ;;  %7568 = vmatprep.subr.bf16.mxu0 %v8129_v40 }
  0xd6   : > { %v1172_v28 = vsel %vm8830_vm6, %v1167_v16, %v1171_v9  ;;  %v594_v32 = vshrl.u32 %v8949_v39, 16  ;;  %v597_v33 = vshll.u32 %v8949_v39, 16  ;;  %v603_v34 = vshrl.u32 %v7284_v25, 16  ;;  %5138 = vmatmul.mubr.bf16.gmra.mxu1 %v8097_v27  ;;  %v865_v43 = vld [vmem:[#allocation3 + $0x50] sm:$0x1] }
  0xd7   : > { %1478 = vst [vmem:[#allocation2 + $0x148] sm:$0xf] %v1172_v28  ;;  %v592_v35 = vrot.slane %v588_v5, 4  ;;  %v606_v36 = vshll.u32 %v7284_v25, 16  ;;  %v611_v37 = vshrl.u32 %v7285_v30, 16  ;;  %v862_v42 = vsel %vm8852_vm12, %v591_v31, %v861_v18  ;;  %v8130_v26 = vld [vmem:[#allocation6 + $0x1f8] sm:$0xff]  }
  0xd8   : > { %v596_v41 = vrot.slane %v594_v32, 7  ;;  %v605_v47 = vrot.slane %v603_v34, 7  ;;  %v614_v48 = vshll.u32 %v7285_v30, 16  ;;  %863 = vst [vmem:[#allocation3 + $0x48] sm:$0xf] %v862_v42  ;;  %v620_v49 = vshrl.u32 %v8973_v38, 16  ;;  %7672 = vmatprep.subr.bf16.mxu1 %v8130_v26 }
  0xd9   : > { %v613_v6 = vrot.slane %v611_v37, 7  ;;  %v868_v39 = vld [vmem:[#allocation3 + $0x54] sm:$0xf]  ;;  %v623_v50 = vshll.u32 %v8973_v38, 16  ;;  %v1784_v51 = vld [vmem:[#allocation3 + $0x3c] sm:$0xf] }
  0xda   : > { %v948_v52 = vld [vmem:[#allocation3 + $0x3c] sm:$0xf]  ;;  %v599_v55 = vor.u32 %v597_v33, %v596_v41  ;;  %v608_v56 = vor.u32 %v606_v36, %v605_v47  ;;  %1816 = vst [vmem:[#allocation2 + $0x12c] sm:$0xf] %v1784_v51  ;;  %v601_v59 = vrot.slane %v596_v41, 4  ;;  %v609_v61 = vrot.slane %v605_v47, 4 }
  0xdb   : > { %v1017_v54 = vld [vmem:[#allocation3 + $0x3c] sm:$0xf]  ;;  %980 = vst [vmem:[#allocation2 + $0x168] sm:$0xf] %v948_v52  ;;  %v1785_v46 = vld [vmem:[#allocation3 + $0x40] sm:$0xf]  ;;  %v616_v0 = vor.u32 %v614_v48, %v613_v6 }
  0xdc   : > { %v1174_v57 = vshrl.u32 %v1017_v54, 16  ;;  %v1177_v58 = vshll.u32 %v1017_v54, 16  ;;  %v1516_v60 = vld [vmem:[#allocation3 + $0x3c] sm:$0xe]  ;;  %v949_v8 = vld [vmem:[#allocation3 + $0x40] sm:$0xf]  ;;  %v600_v63 = vsel %vm8844_vm11, %v592_v35, %v599_v55  ;;  %v869_v2 = vsel %vm8852_vm12, %v608_v56, %v868_v39 }
  0xdd   : > { %v1018_v62 = vld [vmem:[#allocation3 + $0x40] sm:$0xf]  ;;  %v872_v3 = vld [vmem:[#allocation3 + $0x5c] sm:$0x1]  ;;  %1817 = vst [vmem:[#allocation2 + $0x150] sm:$0xf] %v1785_v46  ;;  %v866_v11 = vsel %vm8863_vm13, %v601_v59, %v865_v43  ;;  %v617_v19 = vsel %vm8844_vm11, %v609_v61, %v616_v0 }
  0xde   : > { %v8098_v4 = vld [vmem:[#allocation2 + $0x124] ss:$36 sps:$4 sm:$0xff]   ;;  %981 = vst [vmem:[#allocation2 + $0x18c] sm:$0xf] %v949_v8  ;;  %v1176_v10 = vrot.slane %v1174_v57, 4  ;;  %v1179_v13 = vrot.slane %v1177_v58, 5 }
  0xdf   : > { %v8100_v9 = vld [vmem:[#allocation2 + $0x120] ss:$36 sps:$4 sm:$0xff]   ;;  %864 = vst [vmem:[#allocation3 + $0x4c] sm:$0xf] %v600_v63  ;;  %870 = vst [vmem:[#allocation3 + $0x54] sm:$0xf] %v869_v2  ;;  %4984 = vmatprep.mubr.bf16.mxu0 %v8098_v4 }
  0xe0   : > { %v1019_v12 = vld [vmem:[#allocation3 + $0x44] sm:$0x1]  ;;  %v1183_v14 = vshll.u32 %v1018_v62, 16  ;;  %v1187_v16 = vshrl.u32 %v1018_v62, 16  ;;  %v6897_v17 = vrot.slane %v1516_v60, 9  ;;  %v618_v20 = vrot.slane %v613_v6, 4  ;;  %4985 = vmatmul.mubr.bf16.gmra.mxu0 %v8100_v9 }
  0xe1   : > { %867 = vst [vmem:[#allocation3 + $0x50] sm:$0x1] %v866_v11  ;;  %v1193_v44 = vshll.u32 %v1019_v12, 16  ;;  %v1517_v5 = vld [vmem:[#allocation3 + $0x40] sm:$0xf]  ;;  %v1180_v21 = vor.u32 %v1179_v13, %v1176_v10  ;;  %v8993_v43 = vrot.slane %v620_v49, 7 }
  0xe2   : > { %v1518_v18 = vld [vmem:[#allocation3 + $0x44] sm:$0x1]  ;;  %v1185_v22 = vrot.slane %v1183_v14, 5  ;;  %v1189_v23 = vrot.slane %v1187_v16, 4  ;;  %v1637_v24 = vrot.slane %v1517_v5, 5  ;;  %v873_v31 = vsel %vm8863_vm13, %v618_v20, %v872_v3  ;;  %v384_v61 = vld [vmem:[%s8643_s7 + $0x78] sm:$0xff] }
  0xe3   : > { %v1786_v25 = vld [vmem:[#allocation3 + $0x48] sm:$0xf]  ;;  %871 = vst [vmem:[#allocation3 + $0x58] sm:$0xf] %v617_v19  ;;  %v1195_v27 = vrot.slane %v1193_v44, 5  ;;  %v1640_v28 = vrot.slane %v1518_v18, 5  ;;  %v625_v49 = vor.u32 %v623_v50, %v8993_v43 }
  0xe4   : > { %1818 = vst [vmem:[#allocation2 + $0x174] sm:$0xf] %v1786_v25  ;;  %v950_v29 = vld [vmem:[#allocation3 + $0x48] sm:$0xf]  ;;  %v1181_v32 = vrot.slane %v1180_v21, 4  ;;  %v1190_v33 = vor.u32 %v1189_v23, %v1185_v22  ;;  %v1638_v34 = vsel %vm8838_vm10, %v6897_v17, %v1637_v24  ;;  %v1639_v35 = vrot.slane %v1637_v24, 4 }
  0xe5   : > { %v1020_v30 = vld [vmem:[#allocation3 + $0x48] sm:$0xf]  ;;  %982 = vst [vmem:[#allocation2 + $0x1b0] sm:$0xf] %v950_v29  ;;  %874 = vst [vmem:[#allocation3 + $0x5c] sm:$0x1] %v873_v31  ;;  %v7287_v23 = vpack.c.bf16 %v384_v61, %v384_v61 }
  0xe6   : > { %v1519_v36 = vld [vmem:[#allocation3 + $0x48] sm:$0xe]  ;;  %v875_v37 = vld [vmem:[#allocation3 + $0x60] sm:$0xf]  ;;  %1754 = vst [vmem:[#allocation2 + $0x170] sm:$0xf] %v1638_v34  ;;  %v1186_v6 = vsel %vm8830_vm6, %v1181_v32, %v1185_v22  ;;  %v1641_v51 = vsel %vm8838_vm10, %v1639_v35, %v1640_v28 }
  0xe7   : > { %v1198_v40 = vshrl.u32 %v1020_v30, 16  ;;  %v1201_v41 = vshll.u32 %v1020_v30, 16  ;;  %v6898_v42 = vrot.slane %v1519_v36, 9  ;;  %v8102_v47 = vld [vmem:[#allocation2 + $0x12c] ss:$36 sps:$4 sm:$0xff]   ;;  %v1191_v39 = vrot.slane %v1190_v33, 4 }
  0xe8   : > { %v8105_v48 = vld [vmem:[#allocation2 + $0x128] ss:$36 sps:$4 sm:$0xff]   ;;  %1479 = vst [vmem:[#allocation2 + $0x16c] sm:$0xf] %v1186_v6  ;;  %1755 = vst [vmem:[#allocation2 + $0x194] sm:$0xf] %v1641_v51  ;;  %5145 = vmatprep.mubr.bf16.mxu1 %v8102_v47  ;;  %v876_v38 = vsel %vm8852_vm12, %v625_v49, %v875_v37 }
  0xe9   : > { %v1787_v52 = vld [vmem:[#allocation3 + $0x4c] sm:$0xf]  ;;  %v1196_v56 = vsel %vm8830_vm6, %v1191_v39, %v1195_v27  ;;  %v1022_v57 = vld [vmem:[#allocation3 + $0x50] sm:$0x1]  ;;  %v1200_v58 = vrot.slane %v1198_v40, 4  ;;  %v1203_v59 = vrot.slane %v1201_v41, 5  ;;  %5146 = vmatmul.mubr.bf16.gmra.mxu1 %v8105_v48 }
  0xea   : > { %v951_v54 = vld [vmem:[#allocation3 + $0x4c] sm:$0xf]  ;;  %1819 = vst [vmem:[#allocation2 + $0x198] sm:$0xf] %v1787_v52  ;;  %1480 = vst [vmem:[#allocation2 + $0x190] sm:$0xf] %v1196_v56 }
  0xeb   : > { %v1021_v55 = vld [vmem:[#allocation3 + $0x4c] sm:$0xf]  ;;  %983 = vst [vmem:[#allocation2 + $0x1d4] sm:$0xf] %v951_v54  ;;  %v1217_v8 = vshll.u32 %v1022_v57, 16  ;;  %v1204_v50 = vor.u32 %v1203_v59, %v1200_v58  ;;  %v8133_v9 = vld [vmem:[#allocation6 + $0x118] sm:$0xff]  }
  0xec   : > { %v1207_v60 = vshll.u32 %v1021_v55, 16  ;;  %v1211_v46 = vshrl.u32 %v1021_v55, 16  ;;  %v1520_v62 = vld [vmem:[#allocation3 + $0x4c] sm:$0xf]  ;;  %v1521_v63 = vld [vmem:[#allocation3 + $0x50] sm:$0x1]  ;;  %7569 = vmatpush3.bf16.msra.mxu0 %v8133_v9 }
  0xed   : > { %v1644_v2 = vrot.slane %v1520_v62, 5  ;;  %v1647_v3 = vrot.slane %v1521_v63, 5  ;;  %v1788_v4 = vld [vmem:[#allocation3 + $0x54] sm:$0xf]  ;;  %877 = vst [vmem:[#allocation3 + $0x60] sm:$0xf] %v876_v38 }
  0xee   : > { %v1209_v0 = vrot.slane %v1207_v60, 5  ;;  %v1213_v10 = vrot.slane %v1211_v46, 4  ;;  %v1219_v11 = vrot.slane %v1217_v8, 5  ;;  %v1789_v12 = vld [vmem:[#allocation3 + $0x58] sm:$0xf]  ;;  %v1205_v16 = vrot.slane %v1204_v50, 4 }
  0xef   : > { %1820 = vst [vmem:[#allocation2 + $0x1bc] sm:$0xf] %v1788_v4  ;;  %v952_v13 = vld [vmem:[#allocation3 + $0x54] sm:$0xf]  ;;  %v385_v14 = vld [vmem:[%s8643_s7 + $0x80] sm:$0xff]  ;;  %v1645_v17 = vsel %vm8838_vm10, %v6898_v42, %v1644_v2  ;;  %v1646_v44 = vrot.slane %v1644_v2, 4 }
  0xf0   : > { %1821 = vst [vmem:[#allocation2 + $0x1e0] sm:$0xf] %v1789_v12  ;;  %v953_v5 = vld [vmem:[#allocation3 + $0x58] sm:$0xf]  ;;  %984 = vst [vmem:[#allocation2 + $0x1f8] sm:$0xf] %v952_v13  ;;  %v1214_v19 = vor.u32 %v1213_v10, %v1209_v0  ;;  %v1210_v24 = vsel %vm8830_vm6, %v1205_v16, %v1209_v0  ;;  %v9015_v36 = vpack.c.bf16 %v385_v14, %v385_v14 }
  0xf1   : > { %v626_v18 = vrot.slane %v8993_v43, 4  ;;  %1756 = vst [vmem:[#allocation2 + $0x1b8] sm:$0xf] %v1645_v17  ;;  %985 = vst [vmem:[#allocation2 + $0x21c] sm:$0xf] %v953_v5  ;;  %v1648_v25 = vsel %vm8838_vm10, %v1646_v44, %v1647_v3  ;;  %v8134_v29 = vld [vmem:[#allocation6 + $0x1b8] sm:$0xff]  }
  0xf2   : > { %v1023_v20 = vld [vmem:[#allocation3 + $0x54] sm:$0xf]  ;;  %v1024_v21 = vld [vmem:[#allocation3 + $0x58] sm:$0xf]  ;;  %v1025_v22 = vld [vmem:[#allocation3 + $0x5c] sm:$0x1]  ;;  %7673 = vmatpush3.bf16.msra.mxu1 %v8134_v29 }
  0xf3   : > { %v1222_v26 = vshrl.u32 %v1023_v20, 16  ;;  %v1225_v27 = vshll.u32 %v1023_v20, 16  ;;  %v1522_v28 = vld [vmem:[#allocation3 + $0x54] sm:$0xe]  ;;  %v1215_v32 = vrot.slane %v1214_v19, 4  ;;  %v1231_v41 = vshll.u32 %v1024_v21, 16 }
  0xf4   : > { %v8109_v30 = vld [vmem:[#allocation2 + $0x174] ss:$36 sps:$4 sm:$0xff]   ;;  %1481 = vst [vmem:[#allocation2 + $0x1b4] sm:$0xf] %v1210_v24  ;;  %1757 = vst [vmem:[#allocation2 + $0x1dc] sm:$0xf] %v1648_v25 }
  0xf5   : > { %v8111_v31 = vld [vmem:[#allocation2 + $0x170] ss:$36 sps:$4 sm:$0xff]   ;;  %v8108_v34 = vld [vmem:[#allocation2 + $0x168] ss:$36 sps:$4 sm:$0xff]   ;;  %v1224_v35 = vrot.slane %v1222_v26, 4  ;;  %5153 = vmatprep.mubr.bf16.mxu1 %v8109_v30  ;;  %v1220_v37 = vsel %vm8830_vm6, %v1215_v32, %v1219_v11  ;;  %v1227_v40 = vrot.slane %v1225_v27, 5 }
  0xf6   : > { %v8106_v33 = vld [vmem:[#allocation2 + $0x16c] ss:$36 sps:$4 sm:$0xff]   ;;  %v1235_v42 = vshrl.u32 %v1024_v21, 16  ;;  %v1523_v47 = vld [vmem:[#allocation3 + $0x58] sm:$0xf]  ;;  %v386_v48 = vld [vmem:[%s8643_s7 + $0x88] sm:$0xff]  ;;  %5154 = vmatmul.mubr.bf16.gmra.mxu1 %v8111_v31 }
  0xf7   : > { %4992 = vmatprep.mubr.bf16.mxu0 %v8106_v33  ;;  %1482 = vst [vmem:[#allocation2 + $0x1d8] sm:$0xf] %v1220_v37  ;;  %v1241_v6 = vshll.u32 %v1025_v22, 16  ;;  %v628_v39 = vshrl.u32 %v7287_v23, 16  ;;  %v631_v51 = vshll.u32 %v7287_v23, 16  ;;  %v6899_v54 = vrot.slane %v1522_v28, 9 }
  0xf8   : > { %v1524_v52 = vld [vmem:[#allocation3 + $0x5c] sm:$0x1]  ;;  %4993 = vmatmul.mubr.bf16.gmra.mxu0 %v8108_v34  ;;  %v1228_v55 = vor.u32 %v1227_v40, %v1224_v35  ;;  %v1233_v49 = vrot.slane %v1231_v41, 5  ;;  %v1237_v56 = vrot.slane %v1235_v42, 4  ;;  %v1651_v57 = vrot.slane %v1523_v47, 5  ;;  %v387_v60 = vld [vmem:[%s8643_s7 + $0x90] sm:$0xff] }
  0xf9   : > { %v1790_v58 = vld [vmem:[#allocation3 + $0x60] sm:$0xf]  ;;  %v879_v59 = vld [vmem:[#allocation3 + $0x68] sm:$0x1]  ;;  %v1243_v61 = vrot.slane %v1241_v6, 5  ;;  %v630_v46 = vrot.slane %v628_v39, 7  ;;  %v7289_v63 = vpack.c.bf16 %v386_v48, %v386_v48  ;;  %v7290_v13 = vpack.c.bf16 %v387_v60, %v387_v60 }
  0xfa   : > { %v1654_v8 = vrot.slane %v1524_v52, 5  ;;  %1822 = vst [vmem:[#allocation2 + $0x204] sm:$0xf] %v1790_v58  ;;  %v954_v62 = vld [vmem:[#allocation3 + $0x60] sm:$0xf]  ;;  %v388_v38 = vld [vmem:[%s8643_s7 + $0x98] sm:$0xff]  ;;  %v1238_v0 = vor.u32 %v1237_v56, %v1233_v49  ;;  %v1652_v2 = vsel %vm8838_vm10, %v6899_v54, %v1651_v57 }
  0xfb   : > { %v1229_v50 = vrot.slane %v1228_v55, 4  ;;  %v1653_v3 = vrot.slane %v1651_v57, 4  ;;  %986 = vst [vmem:[#allocation2 + $0x240] sm:$0xf] %v954_v62  ;;  %v1026_v4 = vld [vmem:[#allocation3 + $0x60] sm:$0xf]  ;;  %v633_v10 = vor.u32 %v631_v51, %v630_v46  ;;  %v7291_v43 = vpack.c.bf16 %v388_v38, %v388_v38 }
  0xfc   : > { %v8116_v9 = vld [vmem:[#allocation2 + $0x1bc] ss:$36 sps:$4 sm:$0xff]   ;;  %v635_v11 = vrot.slane %v630_v46, 4  ;;  %1758 = vst [vmem:[#allocation2 + $0x200] sm:$0xf] %v1652_v2  ;;  %v1246_v12 = vshrl.u32 %v1026_v4, 16 }
  0xfd   : > { %v8119_v14 = vld [vmem:[#allocation2 + $0x1b8] ss:$36 sps:$4 sm:$0xff]   ;;  %v1234_v16 = vsel %vm8830_vm6, %v1229_v50, %v1233_v49  ;;  %v1239_v17 = vrot.slane %v1238_v0, 4  ;;  %v1655_v44 = vsel %vm8838_vm10, %v1653_v3, %v1654_v8  ;;  %v1249_v5 = vshll.u32 %v1026_v4, 16  ;;  %5161 = vmatprep.mubr.bf16.mxu1 %v8116_v9  ;;  %v8114_v24 = vld [vmem:[#allocation2 + $0x1b0] ss:$36 sps:$4 sm:$0xff]  }
  0xfe   : > { %1483 = vst [vmem:[#allocation2 + $0x1fc] sm:$0xf] %v1234_v16  ;;  %v634_v19 = vsel %vm8844_vm11, %v626_v18, %v633_v10  ;;  %1759 = vst [vmem:[#allocation2 + $0x224] sm:$0xf] %v1655_v44  ;;  %v880_v20 = vsel %vm8863_vm13, %v635_v11, %v879_v59  ;;  %v1248_v21 = vrot.slane %v1246_v12, 4  ;;  %v637_v22 = vshrl.u32 %v9015_v36, 16  ;;  %5162 = vmatmul.mubr.bf16.gmra.mxu1 %v8119_v14 }
  0xff   : > { %v8112_v23 = vld [vmem:[#allocation2 + $0x1b4] ss:$36 sps:$4 sm:$0xff]   ;;  %v1244_v25 = vsel %vm8830_vm6, %v1239_v17, %v1243_v61  ;;  %878 = vst [vmem:[#allocation3 + $0x64] sm:$0xf] %v634_v19  ;;  %881 = vst [vmem:[#allocation3 + $0x68] sm:$0x1] %v880_v20 }
 0x100   : > { %v1251_v26 = vrot.slane %v1249_v5, 5  ;;  %v882_v27 = vld [vmem:[#allocation3 + $0x6c] sm:$0xf]  ;;  %1484 = vst [vmem:[#allocation2 + $0x220] sm:$0xf] %v1244_v25  ;;  %v639_v18 = vrot.slane %v637_v22, 7  ;;  %5000 = vmatprep.mubr.bf16.mxu0 %v8112_v23 }
 0x101   : > { %v640_v28 = vshll.u32 %v9015_v36, 16  ;;  %v645_v29 = vshrl.u32 %v7289_v63, 16  ;;  %v648_v30 = vshll.u32 %v7289_v63, 16  ;;  %v1525_v31 = vld [vmem:[#allocation3 + $0x60] sm:$0xe]  ;;  %v654_v34 = vshrl.u32 %v7290_v13, 16  ;;  %5001 = vmatmul.mubr.bf16.gmra.mxu0 %v8114_v24 }
 0x102   : > { %v1252_v32 = vor.u32 %v1251_v26, %v1248_v21  ;;  %v6900_v33 = vrot.slane %v1525_v31, 9  ;;  %v643_v37 = vrot.slane %v639_v18, 4  ;;  %v886_v42 = vld [vmem:[#allocation3 + $0x74] sm:$0x1]  ;;  %v657_v48 = vshll.u32 %v7290_v13, 16  ;;  %v8145_v56 = vld [vmem:[#allocation6 + $0x150] sm:$0xff]  }
 0x103   : > { %v642_v35 = vor.u32 %v640_v28, %v639_v18  ;;  %v647_v40 = vrot.slane %v645_v29, 7  ;;  %v656_v47 = vrot.slane %v654_v34, 7  ;;  %v662_v51 = vshrl.u32 %v7291_v43, 16  ;;  %v889_v52 = vld [vmem:[#allocation3 + $0x78] sm:$0xf]  ;;  %7570 = vmatprep.subr.bf16.mxu0 %v8145_v56  ;;  %v8146_v12 = vld [vmem:[#allocation6 + $0x1f0] sm:$0xff]  }
 0x104   : > { %v1253_v41 = vrot.slane %v1252_v32, 4  ;;  %v665_v49 = vshll.u32 %v7291_v43, 16  ;;  %v8122_v8 = vld [vmem:[#allocation2 + $0x1f8] ss:$36 sps:$4 sm:$0xff]   ;;  %v893_v38 = vld [vmem:[#allocation3 + $0x80] sm:$0x1]  ;;  %7674 = vmatprep.subr.bf16.mxu1 %v8146_v12 }
 0x105   : > { %v650_v6 = vor.u32 %v648_v30, %v647_v40  ;;  %v652_v39 = vrot.slane %v647_v40, 4  ;;  %v883_v36 = vsel %vm8852_vm12, %v642_v35, %v882_v27  ;;  %v659_v54 = vor.u32 %v657_v48, %v656_v47  ;;  %v389_v29 = vld [vmem:[%s8643_s7 + $0xa0] sm:$0xff]  ;;  %v8149_v30 = vld [vmem:[#allocation6 + $0x110] sm:$0xff]   ;;  %v8125_v32 = vld [vmem:[#allocation2 + $0x200] ss:$36 sps:$4 sm:$0xff]  }
 0x106   : > { %884 = vst [vmem:[#allocation3 + $0x6c] sm:$0xf] %v883_v36  ;;  %v660_v55 = vrot.slane %v656_v47, 4  ;;  %v1791_v57 = vld [vmem:[#allocation3 + $0x64] sm:$0xf]  ;;  %v664_v3 = vrot.slane %v662_v51, 7  ;;  %7571 = vmatpush3.bf16.msra.mxu0 %v8149_v30 }
 0x107   : > { %v955_v58 = vld [vmem:[#allocation3 + $0x64] sm:$0xf]  ;;  %v651_v60 = vsel %vm8844_vm11, %v643_v37, %v650_v6  ;;  %v887_v61 = vsel %vm8863_vm13, %v652_v39, %v886_v42  ;;  %v8120_v46 = vld [vmem:[#allocation2 + $0x1fc] ss:$36 sps:$4 sm:$0xff]   ;;  %1823 = vst [vmem:[#allocation2 + $0x228] sm:$0xf] %v1791_v57  ;;  %v890_v63 = vsel %vm8852_vm12, %v659_v54, %v889_v52  ;;  %v9059_v54 = vpack.c.bf16 %v389_v29, %v389_v29 }
 0x108   : > { %v1027_v59 = vld [vmem:[#allocation3 + $0x64] sm:$0xf]  ;;  %987 = vst [vmem:[#allocation2 + $0x264] sm:$0xf] %v955_v58  ;;  %885 = vst [vmem:[#allocation3 + $0x70] sm:$0xf] %v651_v60  ;;  %5008 = vmatprep.mubr.bf16.mxu0 %v8120_v46  ;;  %v667_v16 = vor.u32 %v665_v49, %v664_v3 }
 0x109   : > { %v1255_v62 = vshll.u32 %v1027_v59, 16  ;;  %888 = vst [vmem:[#allocation3 + $0x74] sm:$0x1] %v887_v61  ;;  %v1028_v50 = vld [vmem:[#allocation3 + $0x68] sm:$0x1]  ;;  %v1259_v0 = vshrl.u32 %v1027_v59, 16  ;;  %5009 = vmatmul.mubr.bf16.gmra.mxu0 %v8122_v8 }
 0x10a   : > { %v1526_v2 = vld [vmem:[#allocation3 + $0x64] sm:$0xf]  ;;  %891 = vst [vmem:[#allocation3 + $0x78] sm:$0xf] %v890_v63  ;;  %v1265_v9 = vshll.u32 %v1028_v50, 16  ;;  %v669_v17 = vrot.slane %v664_v3, 4  ;;  %v668_v25 = vsel %vm8844_vm11, %v660_v55, %v667_v16 }
 0x10b   : > { %v1257_v4 = vrot.slane %v1255_v62, 5  ;;  %v1527_v10 = vld [vmem:[#allocation3 + $0x68] sm:$0x1]  ;;  %v1658_v11 = vrot.slane %v1526_v2, 5  ;;  %v1261_v13 = vrot.slane %v1259_v0, 4  ;;  %v390_v59 = vld [vmem:[%s8643_s7 + $0xa8] sm:$0xff] }
 0x10c   : > { %v1661_v14 = vrot.slane %v1527_v10, 5  ;;  %v1267_v5 = vrot.slane %v1265_v9, 5  ;;  %v894_v26 = vsel %vm8863_vm13, %v669_v17, %v893_v38  ;;  %892 = vst [vmem:[#allocation3 + $0x7c] sm:$0xf] %v668_v25  ;;  %v8150_v6 = vld [vmem:[#allocation6 + $0x1b0] sm:$0xff]   ;;  %v7293_v9 = vpack.c.bf16 %v390_v59, %v390_v59 }
 0x10d   : > { %v1258_v44 = vsel %vm8830_vm6, %v1253_v41, %v1257_v4  ;;  %v1659_v19 = vsel %vm8838_vm10, %v6900_v33, %v1658_v11  ;;  %v1660_v20 = vrot.slane %v1658_v11, 4  ;;  %v1262_v21 = vor.u32 %v1261_v13, %v1257_v4  ;;  %v1792_v22 = vld [vmem:[#allocation3 + $0x6c] sm:$0xf]  ;;  %895 = vst [vmem:[#allocation3 + $0x80] sm:$0x1] %v894_v26  ;;  %7675 = vmatpush3.bf16.msra.mxu1 %v8150_v6 }
 0x10e   : > { %1485 = vst [vmem:[#allocation2 + $0x244] sm:$0xf] %v1258_v44  ;;  %1760 = vst [vmem:[#allocation2 + $0x248] sm:$0xf] %v1659_v19  ;;  %v956_v23 = vld [vmem:[#allocation3 + $0x6c] sm:$0xf] }
 0x10f   : > { %v1029_v24 = vld [vmem:[#allocation3 + $0x6c] sm:$0xf]  ;;  %v1662_v27 = vsel %vm8838_vm10, %v1660_v20, %v1661_v14  ;;  %1824 = vst [vmem:[#allocation2 + $0x24c] sm:$0xf] %v1792_v22  ;;  %988 = vst [vmem:[#allocation2 + $0x288] sm:$0xf] %v956_v23 }
 0x110   : > { %v1270_v43 = vshrl.u32 %v1029_v24, 16  ;;  %v1273_v18 = vshll.u32 %v1029_v24, 16  ;;  %v1528_v28 = vld [vmem:[#allocation3 + $0x6c] sm:$0xe]  ;;  %v8123_v31 = vld [vmem:[#allocation2 + $0x204] ss:$36 sps:$4 sm:$0xff]  }
 0x111   : > { %v1263_v33 = vrot.slane %v1262_v21, 4  ;;  %1761 = vst [vmem:[#allocation2 + $0x26c] sm:$0xf] %v1662_v27  ;;  %v1793_v34 = vld [vmem:[#allocation3 + $0x70] sm:$0xf]  ;;  %5169 = vmatprep.mubr.bf16.mxu1 %v8123_v31  ;;  %v6901_v56 = vrot.slane %v1528_v28, 9 }
 0x112   : > { %v957_v35 = vld [vmem:[#allocation3 + $0x70] sm:$0xf]  ;;  %1825 = vst [vmem:[#allocation2 + $0x270] sm:$0xf] %v1793_v34  ;;  %v1031_v41 = vld [vmem:[#allocation3 + $0x74] sm:$0x1]  ;;  %5170 = vmatmul.mubr.bf16.gmra.mxu1 %v8125_v32 }
 0x113   : > { %v1030_v37 = vld [vmem:[#allocation3 + $0x70] sm:$0xf]  ;;  %v1268_v40 = vsel %vm8830_vm6, %v1263_v33, %v1267_v5  ;;  %989 = vst [vmem:[#allocation2 + $0x2ac] sm:$0xf] %v957_v35  ;;  %v1272_v42 = vrot.slane %v1270_v43, 4  ;;  %v1275_v47 = vrot.slane %v1273_v18, 5 }
 0x114   : > { %v1279_v48 = vshll.u32 %v1030_v37, 16  ;;  %1486 = vst [vmem:[#allocation2 + $0x268] sm:$0xf] %v1268_v40  ;;  %v1283_v39 = vshrl.u32 %v1030_v37, 16  ;;  %v1289_v36 = vshll.u32 %v1031_v41, 16  ;;  %v391_v50 = vld [vmem:[%s8643_s7 + $0xb0] sm:$0xff] }
 0x115   : > { %v1529_v51 = vld [vmem:[#allocation3 + $0x70] sm:$0xf]  ;;  %v1530_v52 = vld [vmem:[#allocation3 + $0x74] sm:$0x1]  ;;  %v1276_v55 = vor.u32 %v1275_v47, %v1272_v42  ;;  %v1794_v58 = vld [vmem:[#allocation3 + $0x78] sm:$0xf]  ;;  %v9070_v23 = vpack.c.bf16 %v391_v50, %v391_v50 }
 0x116   : > { %v1281_v49 = vrot.slane %v1279_v48, 5  ;;  %v1665_v57 = vrot.slane %v1529_v51, 5  ;;  %v1285_v60 = vrot.slane %v1283_v39, 4  ;;  %v1668_v61 = vrot.slane %v1530_v52, 5  ;;  %1826 = vst [vmem:[#allocation2 + $0x294] sm:$0xf] %v1794_v58 }
 0x117   : > { %v958_v46 = vld [vmem:[#allocation3 + $0x78] sm:$0xf]  ;;  %v1277_v8 = vrot.slane %v1276_v55, 4  ;;  %v1795_v38 = vld [vmem:[#allocation3 + $0x7c] sm:$0xf]  ;;  %v1291_v2 = vrot.slane %v1289_v36, 5 }
 0x118   : > { %v1666_v62 = vsel %vm8838_vm10, %v6901_v56, %v1665_v57  ;;  %v1667_v63 = vrot.slane %v1665_v57, 4  ;;  %990 = vst [vmem:[#allocation2 + $0x2d0] sm:$0xf] %v958_v46  ;;  %v1286_v0 = vor.u32 %v1285_v60, %v1281_v49  ;;  %1827 = vst [vmem:[#allocation2 + $0x2b8] sm:$0xf] %v1795_v38  ;;  %v671_v10 = vshrl.u32 %v9059_v54, 16 }
 0x119   : > { %1762 = vst [vmem:[#allocation2 + $0x290] sm:$0xf] %v1666_v62  ;;  %v959_v3 = vld [vmem:[#allocation3 + $0x7c] sm:$0xf]  ;;  %v1032_v4 = vld [vmem:[#allocation3 + $0x78] sm:$0xf]  ;;  %v1282_v11 = vsel %vm8830_vm6, %v1277_v8, %v1281_v49 }
 0x11a   : > { %v1669_v12 = vsel %vm8838_vm10, %v1667_v63, %v1668_v61  ;;  %991 = vst [vmem:[#allocation2 + $0x2f4] sm:$0xf] %v959_v3  ;;  %v1033_v13 = vld [vmem:[#allocation3 + $0x7c] sm:$0xf]  ;;  %v1034_v14 = vld [vmem:[#allocation3 + $0x80] sm:$0x1] }
 0x11b   : > { %v1294_v16 = vshrl.u32 %v1032_v4, 16  ;;  %v1297_v17 = vshll.u32 %v1032_v4, 16  ;;  %v8131_v44 = vld [vmem:[#allocation2 + $0x24c] ss:$36 sps:$4 sm:$0xff]   ;;  %v1287_v19 = vrot.slane %v1286_v0, 4  ;;  %v1303_v26 = vshll.u32 %v1033_v13, 16 }
 0x11c   : > { %v8135_v5 = vld [vmem:[#allocation2 + $0x248] ss:$36 sps:$4 sm:$0xff]   ;;  %1487 = vst [vmem:[#allocation2 + $0x28c] sm:$0xf] %v1282_v11  ;;  %1763 = vst [vmem:[#allocation2 + $0x2b4] sm:$0xf] %v1669_v12  ;;  %5177 = vmatprep.mubr.bf16.mxu1 %v8131_v44 }
 0x11d   : > { %v8126_v20 = vld [vmem:[#allocation2 + $0x244] ss:$36 sps:$4 sm:$0xff]   ;;  %v1296_v22 = vrot.slane %v1294_v16, 4  ;;  %v1292_v24 = vsel %vm8830_vm6, %v1287_v19, %v1291_v2  ;;  %v1299_v25 = vrot.slane %v1297_v17, 5  ;;  %v1307_v27 = vshrl.u32 %v1033_v13, 16  ;;  %5178 = vmatmul.mubr.bf16.gmra.mxu1 %v8135_v5  ;;  %v392_v41 = vld [vmem:[%s8643_s7 + $0xb8] sm:$0xff] }
 0x11e   : > { %v8128_v21 = vld [vmem:[#allocation2 + $0x240] ss:$36 sps:$4 sm:$0xff]   ;;  %v1531_v18 = vld [vmem:[#allocation3 + $0x78] sm:$0xe]  ;;  %5016 = vmatprep.mubr.bf16.mxu0 %v8126_v20  ;;  %1488 = vst [vmem:[#allocation2 + $0x2b0] sm:$0xf] %v1292_v24  ;;  %v7295_v50 = vpack.c.bf16 %v392_v41, %v392_v41 }
 0x11f   : > { %v896_v43 = vld [vmem:[#allocation3 + $0x84] sm:$0xf]  ;;  %v1313_v28 = vshll.u32 %v1034_v14, 16  ;;  %v673_v29 = vrot.slane %v671_v10, 7  ;;  %v674_v30 = vshll.u32 %v9059_v54, 16  ;;  %v679_v31 = vshrl.u32 %v7293_v9, 16  ;;  %5017 = vmatmul.mubr.bf16.gmra.mxu0 %v8128_v21 }
 0x120   : > { %v1532_v32 = vld [vmem:[#allocation3 + $0x7c] sm:$0xf]  ;;  %v1300_v33 = vor.u32 %v1299_v25, %v1296_v22  ;;  %v1305_v34 = vrot.slane %v1303_v26, 5  ;;  %v1309_v35 = vrot.slane %v1307_v27, 4  ;;  %v682_v37 = vshll.u32 %v7293_v9, 16  ;;  %v8161_v42 = vld [vmem:[#allocation6 + $0x148] sm:$0xff]  }
 0x121   : > { %v1533_v40 = vld [vmem:[#allocation3 + $0x80] sm:$0x1]  ;;  %v1315_v47 = vrot.slane %v1313_v28, 5  ;;  %v676_v48 = vor.u32 %v674_v30, %v673_v29  ;;  %v677_v6 = vrot.slane %v673_v29, 4  ;;  %v681_v39 = vrot.slane %v679_v31, 7  ;;  %7572 = vmatprep.subr.bf16.mxu0 %v8161_v42  ;;  %v393_v16 = vld [vmem:[%s8643_s7 + $0xc0] sm:$0xff] }
 0x122   : > { %v1301_v36 = vrot.slane %v1300_v33, 4  ;;  %v1310_v51 = vor.u32 %v1309_v35, %v1305_v34  ;;  %v6902_v52 = vrot.slane %v1531_v18, 9  ;;  %v1672_v55 = vrot.slane %v1532_v32, 5  ;;  %v8162_v54 = vld [vmem:[#allocation6 + $0x1e8] sm:$0xff]   ;;  %v8139_v49 = vld [vmem:[#allocation2 + $0x294] ss:$36 sps:$4 sm:$0xff]  }
 0x123   : > { %v684_v56 = vor.u32 %v682_v37, %v681_v39  ;;  %v686_v57 = vrot.slane %v681_v39, 4  ;;  %v897_v58 = vsel %vm8852_vm12, %v676_v48, %v896_v43  ;;  %v1675_v59 = vrot.slane %v1533_v40, 5  ;;  %v8141_v60 = vld [vmem:[#allocation2 + $0x290] ss:$36 sps:$4 sm:$0xff]   ;;  %7676 = vmatprep.subr.bf16.mxu1 %v8162_v54  ;;  %5185 = vmatprep.mubr.bf16.mxu1 %v8139_v49  ;;  %v900_v38 = vld [vmem:[#allocation3 + $0x8c] sm:$0x1] }
 0x124   : > { %v1306_v61 = vsel %vm8830_vm6, %v1301_v36, %v1305_v34  ;;  %v1311_v46 = vrot.slane %v1310_v51, 4  ;;  %898 = vst [vmem:[#allocation3 + $0x84] sm:$0xf] %v897_v58  ;;  %v1673_v8 = vsel %vm8838_vm10, %v6902_v52, %v1672_v55  ;;  %v1674_v62 = vrot.slane %v1672_v55, 4  ;;  %v8138_v4 = vld [vmem:[#allocation2 + $0x288] ss:$36 sps:$4 sm:$0xff]  }
 0x125   : > { %1489 = vst [vmem:[#allocation2 + $0x2d4] sm:$0xf] %v1306_v61  ;;  %v685_v63 = vsel %vm8844_vm11, %v677_v6, %v684_v56  ;;  %1764 = vst [vmem:[#allocation2 + $0x2d8] sm:$0xf] %v1673_v8  ;;  %v688_v0 = vshrl.u32 %v9070_v23, 16  ;;  %v691_v2 = vshll.u32 %v9070_v23, 16  ;;  %v901_v11 = vsel %vm8863_vm13, %v686_v57, %v900_v38  ;;  %5186 = vmatmul.mubr.bf16.gmra.mxu1 %v8141_v60 }
 0x126   : > { %v8136_v3 = vld [vmem:[#allocation2 + $0x28c] ss:$36 sps:$4 sm:$0xff]   ;;  %v1316_v9 = vsel %vm8830_vm6, %v1311_v46, %v1315_v47  ;;  %899 = vst [vmem:[#allocation3 + $0x88] sm:$0xf] %v685_v63  ;;  %v1676_v10 = vsel %vm8838_vm10, %v1674_v62, %v1675_v59  ;;  %902 = vst [vmem:[#allocation3 + $0x8c] sm:$0x1] %v901_v11  ;;  %v7296_v44 = vpack.c.bf16 %v393_v16, %v393_v16 }
 0x127   : > { %1490 = vst [vmem:[#allocation2 + $0x2f8] sm:$0xf] %v1316_v9  ;;  %1765 = vst [vmem:[#allocation2 + $0x2fc] sm:$0xf] %v1676_v10  ;;  %v690_v12 = vrot.slane %v688_v0, 7  ;;  %v696_v13 = vshrl.u32 %v7295_v50, 16  ;;  %5024 = vmatprep.mubr.bf16.mxu0 %v8136_v3 }
 0x128   : > { %v699_v14 = vshll.u32 %v7295_v50, 16  ;;  %v903_v17 = vld [vmem:[#allocation3 + $0x90] sm:$0xf]  ;;  %5025 = vmatmul.mubr.bf16.gmra.mxu0 %v8138_v4  ;;  %v907_v21 = vld [vmem:[#allocation3 + $0x98] sm:$0x1]  ;;  %v705_v22 = vshrl.u32 %v7296_v44, 16 }
 0x129   : > { %v693_v5 = vor.u32 %v691_v2, %v690_v12  ;;  %v694_v19 = vrot.slane %v690_v12, 4  ;;  %v698_v20 = vrot.slane %v696_v13, 7  ;;  %v708_v23 = vshll.u32 %v7296_v44, 16  ;;  %v8165_v24 = vld [vmem:[#allocation6 + $0x108] sm:$0xff]   ;;  %v8144_v41 = vld [vmem:[#allocation2 + $0x2d0] ss:$36 sps:$4 sm:$0xff]  }
 0x12a   : > { %v394_v28 = vld [vmem:[%s8643_s7 + $0xc8] sm:$0xff]  ;;  %7573 = vmatpush3.bf16.msra.mxu0 %v8165_v24  ;;  %v910_v52 = vld [vmem:[#allocation3 + $0x9c] sm:$0xf]  ;;  %v9102_v57 = vrot.slane %v705_v22, 7  ;;  %v395_v50 = vld [vmem:[%s8643_s7 + $0xd0] sm:$0xff] }
 0x12b   : > { %v1796_v25 = vld [vmem:[#allocation3 + $0x84] sm:$0xf]  ;;  %v701_v43 = vor.u32 %v699_v14, %v698_v20  ;;  %v904_v18 = vsel %vm8852_vm12, %v693_v5, %v903_v17  ;;  %v703_v31 = vrot.slane %v698_v20, 4  ;;  %v9100_v56 = vpack.c.bf16 %v394_v28, %v394_v28  ;;  %v8174_v28 = vld [vmem:[#allocation6 + $0x1e0] sm:$0xff]   ;;  %v3181_v45 = vld [vmem:[#allocation3 + $0x48] sm:$0xe] }
 0x12c   : > { %v960_v26 = vld [vmem:[#allocation3 + $0x84] sm:$0xf]  ;;  %1828 = vst [vmem:[#allocation2 + $0x2dc] sm:$0xf] %v1796_v25  ;;  %905 = vst [vmem:[#allocation3 + $0x90] sm:$0xf] %v904_v18  ;;  %v710_v63 = vor.u32 %v708_v23, %v9102_v57  ;;  %v9113_v16 = vpack.c.bf16 %v395_v50, %v395_v50 }
 0x12d   : > { %v1035_v27 = vld [vmem:[#allocation3 + $0x84] sm:$0xf]  ;;  %992 = vst [vmem:[#allocation2 + $0x318] sm:$0xf] %v960_v26  ;;  %v1797_v33 = vld [vmem:[#allocation3 + $0x88] sm:$0xf]  ;;  %v702_v37 = vsel %vm8844_vm11, %v694_v19, %v701_v43  ;;  %v908_v47 = vsel %vm8863_vm13, %v703_v31, %v907_v21 }
 0x12e   : > { %v1318_v29 = vshrl.u32 %v1035_v27, 16  ;;  %v1321_v30 = vshll.u32 %v1035_v27, 16  ;;  %v1534_v32 = vld [vmem:[#allocation3 + $0x84] sm:$0xe]  ;;  %v961_v34 = vld [vmem:[#allocation3 + $0x88] sm:$0xf]  ;;  %v911_v14 = vsel %vm8852_vm12, %v710_v63, %v910_v52 }
 0x12f   : > { %v1036_v35 = vld [vmem:[#allocation3 + $0x88] sm:$0xf]  ;;  %v8142_v40 = vld [vmem:[#allocation2 + $0x2d4] ss:$36 sps:$4 sm:$0xff]   ;;  %1829 = vst [vmem:[#allocation2 + $0x300] sm:$0xf] %v1797_v33 }
 0x130   : > { %993 = vst [vmem:[#allocation2 + $0x33c] sm:$0xf] %v961_v34  ;;  %v1320_v42 = vrot.slane %v1318_v29, 4  ;;  %906 = vst [vmem:[#allocation3 + $0x94] sm:$0xf] %v702_v37  ;;  %v1323_v6 = vrot.slane %v1321_v30, 5  ;;  %5032 = vmatprep.mubr.bf16.mxu0 %v8142_v40 }
 0x131   : > { %v1037_v48 = vld [vmem:[#allocation3 + $0x8c] sm:$0x1]  ;;  %v1327_v39 = vshll.u32 %v1036_v35, 16  ;;  %v1331_v36 = vshrl.u32 %v1036_v35, 16  ;;  %v6903_v51 = vrot.slane %v1534_v32, 9  ;;  %5033 = vmatmul.mubr.bf16.gmra.mxu0 %v8144_v41  ;;  %v8166_v46 = vld [vmem:[#allocation6 + $0x1a8] sm:$0xff]  }
 0x132   : > { %909 = vst [vmem:[#allocation3 + $0x98] sm:$0x1] %v908_v47  ;;  %v1337_v55 = vshll.u32 %v1037_v48, 16  ;;  %v1535_v54 = vld [vmem:[#allocation3 + $0x88] sm:$0xf]  ;;  %v1324_v58 = vor.u32 %v1323_v6, %v1320_v42  ;;  %v711_v38 = vrot.slane %v9102_v57, 4  ;;  %7677 = vmatpush3.bf16.msra.mxu1 %v8166_v46 }
 0x133   : > { %v1536_v49 = vld [vmem:[#allocation3 + $0x8c] sm:$0x1]  ;;  %v1329_v59 = vrot.slane %v1327_v39, 5  ;;  %v1333_v60 = vrot.slane %v1331_v36, 4  ;;  %v1679_v61 = vrot.slane %v1535_v54, 5  ;;  %v713_v12 = vshrl.u32 %v9100_v56, 16  ;;  %7678 = vmatprep.subr.bf16.mxu1 %v8174_v28 }
 0x134   : > { %v1339_v8 = vrot.slane %v1337_v55, 5  ;;  %v1682_v62 = vrot.slane %v1536_v49, 5  ;;  %v1325_v0 = vrot.slane %v1324_v58, 4  ;;  %v1798_v9 = vld [vmem:[#allocation3 + $0x90] sm:$0xf]  ;;  %v716_v13 = vshll.u32 %v9100_v56, 16 }
 0x135   : > { %v1334_v2 = vor.u32 %v1333_v60, %v1329_v59  ;;  %v1680_v3 = vsel %vm8838_vm10, %v6903_v51, %v1679_v61  ;;  %v1681_v4 = vrot.slane %v1679_v61, 4  ;;  %1830 = vst [vmem:[#allocation2 + $0x324] sm:$0xf] %v1798_v9  ;;  %v962_v10 = vld [vmem:[#allocation3 + $0x90] sm:$0xf]  ;;  %v715_v31 = vrot.slane %v713_v12, 7 }
 0x136   : > { %1766 = vst [vmem:[#allocation2 + $0x320] sm:$0xf] %v1680_v3  ;;  %v1038_v11 = vld [vmem:[#allocation3 + $0x90] sm:$0xf]  ;;  %v8147_v17 = vld [vmem:[#allocation2 + $0x2dc] ss:$36 sps:$4 sm:$0xff]   ;;  %v1330_v5 = vsel %vm8830_vm6, %v1325_v0, %v1329_v59 }
 0x137   : > { %v8151_v44 = vld [vmem:[#allocation2 + $0x2d8] ss:$36 sps:$4 sm:$0xff]   ;;  %v1335_v19 = vrot.slane %v1334_v2, 4  ;;  %v1683_v20 = vsel %vm8838_vm10, %v1681_v4, %v1682_v62  ;;  %994 = vst [vmem:[#allocation2 + $0x360] sm:$0xf] %v962_v10  ;;  %5193 = vmatprep.mubr.bf16.mxu1 %v8147_v17  ;;  %v1342_v26 = vshrl.u32 %v1038_v11, 16  ;;  %v718_v48 = vor.u32 %v716_v13, %v715_v31 }
 0x138   : > { %912 = vst [vmem:[#allocation3 + $0x9c] sm:$0xf] %v911_v14  ;;  %1491 = vst [vmem:[#allocation2 + $0x31c] sm:$0xf] %v1330_v5  ;;  %v1799_v21 = vld [vmem:[#allocation3 + $0x94] sm:$0xf]  ;;  %5194 = vmatmul.mubr.bf16.gmra.mxu1 %v8151_v44 }
 0x139   : > { %1767 = vst [vmem:[#allocation2 + $0x344] sm:$0xf] %v1683_v20  ;;  %v963_v22 = vld [vmem:[#allocation3 + $0x94] sm:$0xf]  ;;  %v1340_v24 = vsel %vm8830_vm6, %v1335_v19, %v1339_v8  ;;  %1831 = vst [vmem:[#allocation2 + $0x348] sm:$0xf] %v1799_v21  ;;  %v719_v56 = vsel %vm8844_vm11, %v711_v38, %v718_v48 }
 0x13a   : > { %v1039_v23 = vld [vmem:[#allocation3 + $0x94] sm:$0xf]  ;;  %995 = vst [vmem:[#allocation2 + $0x384] sm:$0xf] %v963_v22  ;;  %v1040_v25 = vld [vmem:[#allocation3 + $0x98] sm:$0x1] }
 0x13b   : > { %v1345_v27 = vshll.u32 %v1038_v11, 16  ;;  %v1351_v43 = vshll.u32 %v1039_v23, 16  ;;  %v396_v18 = vld [vmem:[%s8643_s7 + $0xd8] sm:$0xff]  ;;  %1492 = vst [vmem:[#allocation2 + $0x340] sm:$0xf] %v1340_v24  ;;  %v1355_v29 = vshrl.u32 %v1039_v23, 16 }
 0x13c   : > { %v1361_v30 = vshll.u32 %v1040_v25, 16  ;;  %v1537_v32 = vld [vmem:[#allocation3 + $0x90] sm:$0xe]  ;;  %v722_v33 = vshrl.u32 %v9113_v16, 16  ;;  %v1344_v34 = vrot.slane %v1342_v26, 4  ;;  %v720_v6 = vrot.slane %v715_v31, 4 }
 0x13d   : > { %v1347_v35 = vrot.slane %v1345_v27, 5  ;;  %v1353_v37 = vrot.slane %v1351_v43, 5  ;;  %v1538_v40 = vld [vmem:[#allocation3 + $0x94] sm:$0xf]  ;;  %v6904_v41 = vrot.slane %v1537_v32, 9  ;;  %v1357_v42 = vrot.slane %v1355_v29, 4 }
 0x13e   : > { %v1363_v47 = vrot.slane %v1361_v30, 5  ;;  %v1539_v39 = vld [vmem:[#allocation3 + $0x98] sm:$0x1]  ;;  %v1686_v52 = vrot.slane %v1538_v40, 5  ;;  %v9123_v54 = vrot.slane %v722_v33, 7  ;;  %v7299_v60 = vpack.c.bf16 %v396_v18, %v396_v18 }
 0x13f   : > { %v8177_v36 = vld [vmem:[#allocation6 + $0x1a0] sm:$0xff]   ;;  %v1348_v51 = vor.u32 %v1347_v35, %v1344_v34  ;;  %v1689_v55 = vrot.slane %v1539_v39, 5  ;;  %v1358_v49 = vor.u32 %v1357_v42, %v1353_v37  ;;  %v914_v59 = vld [vmem:[#allocation3 + $0xa4] sm:$0x1]  ;;  %913 = vst [vmem:[#allocation3 + $0xa0] sm:$0xf] %v719_v56 }
 0x140   : > { %v1800_v58 = vld [vmem:[#allocation3 + $0x9c] sm:$0xf]  ;;  %7679 = vmatpush3.bf16.msra.mxu1 %v8177_v36  ;;  %v1687_v46 = vsel %vm8838_vm10, %v6904_v41, %v1686_v52  ;;  %v1688_v8 = vrot.slane %v1686_v52, 4  ;;  %v915_v62 = vsel %vm8863_vm13, %v720_v6, %v914_v59  ;;  %v8155_v57 = vld [vmem:[#allocation2 + $0x324] ss:$36 sps:$4 sm:$0xff]   ;;  %v725_v10 = vshll.u32 %v9113_v16, 16 }
 0x141   : > { %v1349_v61 = vrot.slane %v1348_v51, 4  ;;  %1832 = vst [vmem:[#allocation2 + $0x36c] sm:$0xf] %v1800_v58  ;;  %v964_v63 = vld [vmem:[#allocation3 + $0x9c] sm:$0xf]  ;;  %v1359_v2 = vrot.slane %v1358_v49, 4  ;;  %5201 = vmatprep.mubr.bf16.mxu1 %v8155_v57 }
 0x142   : > { %v8179_v50 = vld [vmem:[#allocation6 + $0x140] sm:$0xff]   ;;  %v8157_v0 = vld [vmem:[#allocation2 + $0x320] ss:$36 sps:$4 sm:$0xff]   ;;  %1768 = vst [vmem:[#allocation2 + $0x368] sm:$0xf] %v1687_v46  ;;  %v1690_v9 = vsel %vm8838_vm10, %v1688_v8, %v1689_v55  ;;  %v728_v13 = vrot.slane %v9123_v54, 4  ;;  %v727_v16 = vor.u32 %v725_v10, %v9123_v54 }
 0x143   : > { %916 = vst [vmem:[#allocation3 + $0xa4] sm:$0x1] %v915_v62  ;;  %996 = vst [vmem:[#allocation2 + $0x3a8] sm:$0xf] %v964_v63  ;;  %v8152_v38 = vld [vmem:[#allocation2 + $0x31c] ss:$36 sps:$4 sm:$0xff]   ;;  %v1354_v4 = vsel %vm8830_vm6, %v1349_v61, %v1353_v37  ;;  %7574 = vmatprep.subr.bf16.mxu0 %v8179_v50  ;;  %v1364_v11 = vsel %vm8830_vm6, %v1359_v2, %v1363_v47  ;;  %5202 = vmatmul.mubr.bf16.gmra.mxu1 %v8157_v0 }
 0x144   : > { %v8154_v3 = vld [vmem:[#allocation2 + $0x318] ss:$36 sps:$4 sm:$0xff]   ;;  %1493 = vst [vmem:[#allocation2 + $0x364] sm:$0xf] %v1354_v4  ;;  %1769 = vst [vmem:[#allocation2 + $0x38c] sm:$0xf] %v1690_v9  ;;  %5040 = vmatprep.mubr.bf16.mxu0 %v8152_v38 }
 0x145   : > { %v1041_v12 = vld [vmem:[#allocation3 + $0x9c] sm:$0xf]  ;;  %v730_v14 = vshrl.u32 %v7299_v60, 16  ;;  %v733_v17 = vshll.u32 %v7299_v60, 16  ;;  %1494 = vst [vmem:[#allocation2 + $0x388] sm:$0xf] %v1364_v11  ;;  %5041 = vmatmul.mubr.bf16.gmra.mxu0 %v8154_v3 }
 0x146   : > { %v1366_v44 = vshrl.u32 %v1041_v12, 16  ;;  %v1369_v5 = vshll.u32 %v1041_v12, 16  ;;  %v917_v19 = vld [vmem:[#allocation3 + $0xa8] sm:$0xf]  ;;  %v1540_v20 = vld [vmem:[#allocation3 + $0x9c] sm:$0xe] }
 0x147   : > { %v397_v21 = vld [vmem:[%s8643_s7 + $0xe0] sm:$0xff]  ;;  %v732_v22 = vrot.slane %v730_v14, 7  ;;  %v6905_v23 = vrot.slane %v1540_v20, 9  ;;  %v918_v26 = vsel %vm8852_vm12, %v727_v16, %v917_v19  ;;  %v921_v27 = vld [vmem:[#allocation3 + $0xb0] sm:$0x1]  ;;  %v398_v42 = vld [vmem:[%s8643_s7 + $0xe8] sm:$0xff] }
 0x148   : > { %v1368_v24 = vrot.slane %v1366_v44, 4  ;;  %v1371_v25 = vrot.slane %v1369_v5, 5  ;;  %v1801_v43 = vld [vmem:[#allocation3 + $0xa0] sm:$0xf]  ;;  %919 = vst [vmem:[#allocation3 + $0xa8] sm:$0xf] %v918_v26  ;;  %v7300_v47 = vpack.c.bf16 %v397_v21, %v397_v21  ;;  %v7301_v56 = vpack.c.bf16 %v398_v42, %v398_v42 }
 0x149   : > { %v965_v18 = vld [vmem:[#allocation3 + $0xa0] sm:$0xf]  ;;  %v735_v29 = vor.u32 %v733_v17, %v732_v22  ;;  %1833 = vst [vmem:[#allocation2 + $0x390] sm:$0xf] %v1801_v43  ;;  %v737_v34 = vrot.slane %v732_v22, 4  ;;  %v8182_v51 = vld [vmem:[#allocation6 + $0x100] sm:$0xff]  }
 0x14a   : > { %v1042_v28 = vld [vmem:[#allocation3 + $0xa0] sm:$0xf]  ;;  %997 = vst [vmem:[#allocation2 + $0x3cc] sm:$0xf] %v965_v18  ;;  %v1043_v30 = vld [vmem:[#allocation3 + $0xa4] sm:$0x1]  ;;  %v1372_v31 = vor.u32 %v1371_v25, %v1368_v24  ;;  %7575 = vmatpush3.bf16.msra.mxu0 %v8182_v51 }
 0x14b   : > { %v1375_v32 = vshll.u32 %v1042_v28, 16  ;;  %v1379_v33 = vshrl.u32 %v1042_v28, 16  ;;  %v1385_v35 = vshll.u32 %v1043_v30, 16  ;;  %v736_v37 = vsel %vm8844_vm11, %v728_v13, %v735_v29  ;;  %v1541_v40 = vld [vmem:[#allocation3 + $0xa0] sm:$0xf]  ;;  %v8184_v46 = vld [vmem:[#allocation6 + $0x1d8] sm:$0xff]  }
 0x14c   : > { %v1542_v41 = vld [vmem:[#allocation3 + $0xa4] sm:$0x1]  ;;  %v1373_v48 = vrot.slane %v1372_v31, 4  ;;  %920 = vst [vmem:[#allocation3 + $0xac] sm:$0xf] %v736_v37  ;;  %v1693_v36 = vrot.slane %v1541_v40, 5  ;;  %v922_v49 = vsel %vm8863_vm13, %v737_v34, %v921_v27  ;;  %7680 = vmatprep.subr.bf16.mxu1 %v8184_v46 }
 0x14d   : > { %v1377_v6 = vrot.slane %v1375_v32, 5  ;;  %v1381_v39 = vrot.slane %v1379_v33, 4  ;;  %v8158_v52 = vld [vmem:[#allocation2 + $0x364] ss:$36 sps:$4 sm:$0xff]   ;;  %v1387_v54 = vrot.slane %v1385_v35, 5  ;;  %v1696_v8 = vrot.slane %v1542_v41, 5 }
 0x14e   : > { %v8160_v55 = vld [vmem:[#allocation2 + $0x360] ss:$36 sps:$4 sm:$0xff]   ;;  %v1694_v60 = vsel %vm8838_vm10, %v6905_v23, %v1693_v36  ;;  %v1695_v61 = vrot.slane %v1693_v36, 4  ;;  %923 = vst [vmem:[#allocation3 + $0xb0] sm:$0x1] %v922_v49  ;;  %5048 = vmatprep.mubr.bf16.mxu0 %v8158_v52  ;;  %v739_v62 = vshrl.u32 %v7300_v47, 16 }
 0x14f   : > { %v1378_v58 = vsel %vm8830_vm6, %v1373_v48, %v1377_v6  ;;  %v1382_v59 = vor.u32 %v1381_v39, %v1377_v6  ;;  %1770 = vst [vmem:[#allocation2 + $0x3b0] sm:$0xf] %v1694_v60  ;;  %v742_v63 = vshll.u32 %v7300_v47, 16  ;;  %v747_v50 = vshrl.u32 %v7301_v56, 16  ;;  %5049 = vmatmul.mubr.bf16.gmra.mxu0 %v8160_v55  ;;  %v1802_v0 = vld [vmem:[#allocation3 + $0xa8] sm:$0xf] }
 0x150   : > { %1495 = vst [vmem:[#allocation2 + $0x3ac] sm:$0xf] %v1378_v58  ;;  %v966_v2 = vld [vmem:[#allocation3 + $0xa8] sm:$0xf]  ;;  %v750_v38 = vshll.u32 %v7301_v56, 16  ;;  %v1697_v9 = vsel %vm8838_vm10, %v1695_v61, %v1696_v8  ;;  %v741_v10 = vrot.slane %v739_v62, 7 }
 0x151   : > { %v1383_v57 = vrot.slane %v1382_v59, 4  ;;  %v8163_v3 = vld [vmem:[#allocation2 + $0x36c] ss:$36 sps:$4 sm:$0xff]   ;;  %1834 = vst [vmem:[#allocation2 + $0x3b4] sm:$0xf] %v1802_v0  ;;  %v9158_v13 = vrot.slane %v747_v50, 7 }
 0x152   : > { %v8167_v4 = vld [vmem:[#allocation2 + $0x368] ss:$36 sps:$4 sm:$0xff]   ;;  %998 = vst [vmem:[#allocation2 + $0x3f0] sm:$0xf] %v966_v2  ;;  %1771 = vst [vmem:[#allocation2 + $0x3d4] sm:$0xf] %v1697_v9  ;;  %5209 = vmatprep.mubr.bf16.mxu1 %v8163_v3  ;;  %v744_v19 = vor.u32 %v742_v63, %v741_v10 }
 0x153   : > { %v1388_v11 = vsel %vm8830_vm6, %v1383_v57, %v1387_v54  ;;  %v1044_v12 = vld [vmem:[#allocation3 + $0xa8] sm:$0xf]  ;;  %v924_v14 = vld [vmem:[#allocation3 + $0xb4] sm:$0xf]  ;;  %v1803_v44 = vld [vmem:[#allocation3 + $0xac] sm:$0xf]  ;;  %5210 = vmatmul.mubr.bf16.gmra.mxu1 %v8167_v4  ;;  %v752_v27 = vor.u32 %v750_v38, %v9158_v13 }
 0x154   : > { %v8185_v17 = vld [vmem:[#allocation6 + $0x198] sm:$0xff]   ;;  %1496 = vst [vmem:[#allocation2 + $0x3d0] sm:$0xf] %v1388_v11  ;;  %v967_v5 = vld [vmem:[#allocation3 + $0xac] sm:$0xf]  ;;  %v1390_v20 = vshrl.u32 %v1044_v12, 16  ;;  %v925_v18 = vsel %vm8852_vm12, %v744_v19, %v924_v14 }
 0x155   : > { %v1045_v16 = vld [vmem:[#allocation3 + $0xac] sm:$0xf]  ;;  %1835 = vst [vmem:[#allocation2 + $0x3d8] sm:$0xf] %v1803_v44  ;;  %999 = vst [vmem:[#allocation2 + $0x414] sm:$0xf] %v967_v5  ;;  %7681 = vmatpush3.bf16.msra.mxu1 %v8185_v17 }
 0x156   : > { %v1393_v21 = vshll.u32 %v1044_v12, 16  ;;  %v1399_v22 = vshll.u32 %v1045_v16, 16  ;;  %v1403_v23 = vshrl.u32 %v1045_v16, 16  ;;  %v1543_v24 = vld [vmem:[#allocation3 + $0xa8] sm:$0xe]  ;;  %v745_v26 = vrot.slane %v741_v10, 4 }
 0x157   : > { %v1046_v25 = vld [vmem:[#allocation3 + $0xb0] sm:$0x1]  ;;  %v754_v43 = vrot.slane %v9158_v13, 4  ;;  %v1544_v28 = vld [vmem:[#allocation3 + $0xac] sm:$0xf]  ;;  %v1392_v29 = vrot.slane %v1390_v20, 4 }
 0x158   : > { %v1395_v30 = vrot.slane %v1393_v21, 5  ;;  %v1401_v31 = vrot.slane %v1399_v22, 5  ;;  %v1405_v32 = vrot.slane %v1403_v23, 4  ;;  %926 = vst [vmem:[#allocation3 + $0xb4] sm:$0xf] %v925_v18  ;;  %v8186_v33 = vld [vmem:[#allocation6 + $0x1d0] sm:$0xff]   ;;  %v753_v35 = vsel %vm8844_vm11, %v745_v26, %v752_v27 }
 0x159   : > { %v1409_v34 = vshll.u32 %v1046_v25, 16  ;;  %v1545_v37 = vld [vmem:[#allocation3 + $0xb0] sm:$0x1]  ;;  %v6906_v40 = vrot.slane %v1543_v24, 9  ;;  %v1700_v41 = vrot.slane %v1544_v28, 5  ;;  %v8189_v42 = vld [vmem:[#allocation6 + $0x190] sm:$0xff]   ;;  %7682 = vmatprep.subr.bf16.mxu1 %v8186_v33 }
 0x15a   : > { %v1396_v47 = vor.u32 %v1395_v30, %v1392_v29  ;;  %v1406_v48 = vor.u32 %v1405_v32, %v1401_v31  ;;  %927 = vst [vmem:[#allocation3 + $0xb8] sm:$0xf] %v753_v35  ;;  %v1703_v6 = vrot.slane %v1545_v37, 5  ;;  %7683 = vmatpush3.bf16.msra.mxu1 %v8189_v42  ;;  %v8170_v55 = vld [vmem:[#allocation2 + $0x3a8] ss:$36 sps:$4 sm:$0xff]   ;;  %v400_v11 = vld [vmem:[%s8643_s7 + $0xf8] sm:$0xff] }
 0x15b   : > { %v1411_v39 = vrot.slane %v1409_v34, 5  ;;  %v1701_v36 = vsel %vm8838_vm10, %v6906_v40, %v1700_v41  ;;  %v1702_v51 = vrot.slane %v1700_v41, 4  ;;  %v8168_v52 = vld [vmem:[#allocation2 + $0x3ac] ss:$36 sps:$4 sm:$0xff]   ;;  %v928_v8 = vld [vmem:[#allocation3 + $0xbc] sm:$0x1]  ;;  %v7303_v23 = vpack.c.bf16 %v400_v11, %v400_v11 }
 0x15c   : > { %v1397_v54 = vrot.slane %v1396_v47, 4  ;;  %1772 = vst [vmem:[#allocation2 + $0x3f8] sm:$0xf] %v1701_v36  ;;  %v8171_v49 = vld [vmem:[#allocation2 + $0x3b4] ss:$36 sps:$4 sm:$0xff]   ;;  %v1407_v58 = vrot.slane %v1406_v48, 4  ;;  %5056 = vmatprep.mubr.bf16.mxu0 %v8168_v52  ;;  %v929_v62 = vsel %vm8863_vm13, %v754_v43, %v928_v8 }
 0x15d   : > { %v8173_v56 = vld [vmem:[#allocation2 + $0x3b0] ss:$36 sps:$4 sm:$0xff]   ;;  %v1704_v59 = vsel %vm8838_vm10, %v1702_v51, %v1703_v6  ;;  %5057 = vmatmul.mubr.bf16.gmra.mxu0 %v8170_v55  ;;  %5217 = vmatprep.mubr.bf16.mxu1 %v8171_v49  ;;  %930 = vst [vmem:[#allocation3 + $0xbc] sm:$0x1] %v929_v62  ;;  %v399_v10 = vld [vmem:[%s8643_s7 + $0xf0] sm:$0xff]  ;;  %v8194_v20 = vld [vmem:[#allocation6 + $0x1c8] sm:$0xff]  }
 0x15e   : > { %v1402_v60 = vsel %vm8830_vm6, %v1397_v54, %v1401_v31  ;;  %1773 = vst [vmem:[#allocation2 + $0x41c] sm:$0xf] %v1704_v59  ;;  %v1412_v61 = vsel %vm8830_vm6, %v1407_v58, %v1411_v39  ;;  %5218 = vmatmul.mubr.bf16.gmra.mxu1 %v8173_v56  ;;  %v7302_v5 = vpack.c.bf16 %v399_v10, %v399_v10  ;;  %v8178_v26 = vld [vmem:[#allocation2 + $0x3f0] ss:$36 sps:$4 sm:$0xff]   ;;  %v931_v34 = vld [vmem:[#allocation3 + $0xc0] sm:$0xf] }
 0x15f   : > { %1497 = vst [vmem:[#allocation2 + $0x3f4] sm:$0xf] %v1402_v60  ;;  %v1804_v46 = vld [vmem:[#allocation3 + $0xb4] sm:$0xf]  ;;  %1498 = vst [vmem:[#allocation2 + $0x418] sm:$0xf] %v1412_v61  ;;  %7684 = vmatprep.subr.bf16.mxu1 %v8194_v20 }
 0x160   : > { %1836 = vst [vmem:[#allocation2 + $0x3fc] sm:$0xf] %v1804_v46  ;;  %v968_v63 = vld [vmem:[#allocation3 + $0xb4] sm:$0xf]  ;;  %v756_v27 = vshrl.u32 %v7302_v5, 16  ;;  %v759_v29 = vshll.u32 %v7302_v5, 16 }
 0x161   : > { %v1047_v50 = vld [vmem:[#allocation3 + $0xb4] sm:$0xf]  ;;  %v1805_v57 = vld [vmem:[#allocation3 + $0xb8] sm:$0xf]  ;;  %1000 = vst [vmem:[#allocation2 + $0x438] sm:$0xf] %v968_v63 }
 0x162   : > { %v969_v0 = vld [vmem:[#allocation3 + $0xb8] sm:$0xf]  ;;  %1837 = vst [vmem:[#allocation2 + $0x420] sm:$0xf] %v1805_v57  ;;  %v1414_v38 = vshrl.u32 %v1047_v50, 16  ;;  %v1417_v3 = vshll.u32 %v1047_v50, 16 }
 0x163   : > { %v1048_v2 = vld [vmem:[#allocation3 + $0xb8] sm:$0xf]  ;;  %1001 = vst [vmem:[#allocation2 + $0x45c] sm:$0xf] %v969_v0  ;;  %v1546_v44 = vld [vmem:[#allocation3 + $0xb4] sm:$0xe] }
 0x164   : > { %v1423_v4 = vshll.u32 %v1048_v2, 16  ;;  %v1427_v9 = vshrl.u32 %v1048_v2, 16  ;;  %v1416_v12 = vrot.slane %v1414_v38, 4  ;;  %v1419_v13 = vrot.slane %v1417_v3, 5  ;;  %v1547_v16 = vld [vmem:[#allocation3 + $0xb8] sm:$0xf] }
 0x165   : > { %v6907_v19 = vrot.slane %v1546_v44, 9  ;;  %v1707_v24 = vrot.slane %v1547_v16, 5  ;;  %v1049_v43 = vld [vmem:[#allocation3 + $0xbc] sm:$0x1]  ;;  %v758_v37 = vrot.slane %v756_v27, 7  ;;  %v764_v40 = vshrl.u32 %v7303_v23, 16 }
 0x166   : > { %v1425_v14 = vrot.slane %v1423_v4, 5  ;;  %v1429_v17 = vrot.slane %v1427_v9, 4  ;;  %v1420_v21 = vor.u32 %v1419_v13, %v1416_v12  ;;  %v8175_v25 = vld [vmem:[#allocation2 + $0x3f4] ss:$36 sps:$4 sm:$0xff]   ;;  %v1433_v33 = vshll.u32 %v1049_v43, 16  ;;  %v8195_v47 = vld [vmem:[#allocation6 + $0x188] sm:$0xff]  }
 0x167   : > { %v1708_v30 = vsel %vm8838_vm10, %v6907_v19, %v1707_v24  ;;  %5064 = vmatprep.mubr.bf16.mxu0 %v8175_v25  ;;  %v8183_v32 = vld [vmem:[#allocation2 + $0x3f8] ss:$36 sps:$4 sm:$0xff]   ;;  %v767_v41 = vshll.u32 %v7303_v23, 16  ;;  %v1709_v6 = vrot.slane %v1707_v24, 4  ;;  %v761_v51 = vor.u32 %v759_v29, %v758_v37  ;;  %7685 = vmatpush3.bf16.msra.mxu1 %v8195_v47  ;;  %v1840_v56 = vld [vmem:[#allocation3 + $0xc] sm:$0xf] }
 0x168   : > { %v1430_v22 = vor.u32 %v1429_v17, %v1425_v14  ;;  %v1421_v18 = vrot.slane %v1420_v21, 4  ;;  %1774 = vst [vmem:[#allocation2 + $0x440] sm:$0xf] %v1708_v30  ;;  %5065 = vmatmul.mubr.bf16.gmra.mxu0 %v8178_v26  ;;  %v1548_v42 = vld [vmem:[#allocation3 + $0xbc] sm:$0x1]  ;;  %v1435_v48 = vrot.slane %v1433_v33, 5 }
 0x169   : > { %v8180_v31 = vld [vmem:[#allocation2 + $0x3fc] ss:$36 sps:$4 sm:$0xff]   ;;  %v1710_v39 = vrot.slane %v1548_v42, 5  ;;  %v762_v52 = vrot.slane %v758_v37, 4  ;;  %v9182_v55 = vrot.slane %v764_v40, 7  ;;  %v932_v61 = vsel %vm8852_vm12, %v761_v51, %v931_v34  ;;  %v9195_v16 = vld [vmem:[#allocation6 + $0x238] sm:$0xff]  }
 0x16a   : > { %v1431_v28 = vrot.slane %v1430_v22, 4  ;;  %v1426_v35 = vsel %vm8830_vm6, %v1421_v18, %v1425_v14  ;;  %5225 = vmatprep.mubr.bf16.mxu1 %v8180_v31  ;;  %v8196_v36 = vld [vmem:[#allocation6 + $0x1c0] sm:$0xff]   ;;  %v1841_v58 = vld [vmem:[#allocation3 + $0x10] sm:$0xf]  ;;  %v1842_v59 = vld [vmem:[#allocation3 + $0x14] sm:$0x1]  ;;  %7842 = vmatprep.subr.bf16.mxu0 %v9195_v16 }
 0x16b   : > { %1499 = vst [vmem:[#allocation2 + $0x43c] sm:$0xf] %v1426_v35  ;;  %5226 = vmatmul.mubr.bf16.gmra.mxu1 %v8183_v32  ;;  %v1711_v49 = vsel %vm8838_vm10, %v1709_v6, %v1710_v39  ;;  %v769_v60 = vor.u32 %v767_v41, %v9182_v55  ;;  %7686 = vmatprep.subr.bf16.mxu1 %v8196_v36  ;;  %v1889_v46 = vshrl.u32 %v1840_v56, 16  ;;  %v2336_v8 = vld [vmem:[#allocation3 + $0xc] sm:$0xe]  ;;  %v1892_v63 = vshll.u32 %v1840_v56, 16 }
 0x16c   : > { %v1436_v54 = vsel %vm8830_vm6, %v1431_v28, %v1435_v48  ;;  %1775 = vst [vmem:[#allocation2 + $0x464] sm:$0xf] %v1711_v49  ;;  %v2337_v62 = vld [vmem:[#allocation3 + $0x10] sm:$0xf]  ;;  %933 = vst [vmem:[#allocation3 + $0xc0] sm:$0xf] %v932_v61 }
 0x16d   : > { %1500 = vst [vmem:[#allocation2 + $0x460] sm:$0xf] %v1436_v54  ;;  %v1898_v50 = vshll.u32 %v1841_v58, 16  ;;  %v1902_v57 = vshrl.u32 %v1841_v58, 16  ;;  %v1908_v0 = vshll.u32 %v1842_v59, 16  ;;  %v770_v38 = vsel %vm8844_vm11, %v762_v52, %v769_v60  ;;  %v8200_v10 = vld [vmem:[#allocation6 + $0x180] sm:$0xff]  }
 0x16e   : > { %v2338_v2 = vld [vmem:[#allocation3 + $0x14] sm:$0x1]  ;;  %v1891_v3 = vrot.slane %v1889_v46, 4  ;;  %v6908_v4 = vrot.slane %v2336_v8, 9  ;;  %v2434_v9 = vrot.slane %v2337_v62, 5  ;;  %v1894_v11 = vrot.slane %v1892_v63, 5  ;;  %7687 = vmatpush3.bf16.msra.mxu1 %v8200_v10 }
 0x16f   : > { %934 = vst [vmem:[#allocation3 + $0xc4] sm:$0xf] %v770_v38  ;;  %v1900_v12 = vrot.slane %v1898_v50, 5  ;;  %v1904_v13 = vrot.slane %v1902_v57, 4  ;;  %v1910_v14 = vrot.slane %v1908_v0, 5  ;;  %v2437_v5 = vrot.slane %v2338_v2, 5 }
 0x170   : > { %v2435_v17 = vsel %vm8838_vm10, %v6908_v4, %v2434_v9  ;;  %v2436_v44 = vrot.slane %v2434_v9, 4  ;;  %v1895_v19 = vor.u32 %v1894_v11, %v1891_v3  ;;  %v2609_v21 = vld [vmem:[#allocation3 + $0x18] sm:$0xf]  ;;  %v2610_v22 = vld [vmem:[#allocation3 + $0x1c] sm:$0xf] }
 0x171   : > { %v1905_v20 = vor.u32 %v1904_v13, %v1900_v12  ;;  %2576 = vst [vmem:[#allocation2 + $0x14] sm:$0xf] %v2435_v17  ;;  %2641 = vst [vmem:[#allocation2 + $0x18] sm:$0xf] %v2609_v21  ;;  %v2673_v24 = vld [vmem:[#allocation3 + $0x18] sm:$0xf] }
 0x172   : > { %v2438_v23 = vsel %vm8838_vm10, %v2436_v44, %v2437_v5  ;;  %2642 = vst [vmem:[#allocation2 + $0x3c] sm:$0xf] %v2610_v22  ;;  %v2674_v25 = vld [vmem:[#allocation3 + $0x1c] sm:$0xf]  ;;  %v2675_v26 = vld [vmem:[#allocation3 + $0x20] sm:$0x1] }
 0x173   : > { %v8190_v43 = vld [vmem:[#allocation2 + $0x438] ss:$36 sps:$4 sm:$0xff]   ;;  %v1896_v18 = vrot.slane %v1895_v19, 4  ;;  %2577 = vst [vmem:[#allocation2 + $0x38] sm:$0xf] %v2438_v23  ;;  %v1906_v29 = vrot.slane %v1905_v20, 4 }
 0x174   : > { %v8187_v27 = vld [vmem:[#allocation2 + $0x43c] ss:$36 sps:$4 sm:$0xff]   ;;  %v2722_v30 = vshrl.u32 %v2673_v24, 16  ;;  %v2725_v31 = vshll.u32 %v2673_v24, 16  ;;  %v2731_v32 = vshll.u32 %v2674_v25, 16  ;;  %v2735_v34 = vshrl.u32 %v2674_v25, 16 }
 0x175   : > { %v1806_v28 = vld [vmem:[#allocation3 + $0xc0] sm:$0xf]  ;;  %5072 = vmatprep.mubr.bf16.mxu0 %v8187_v27  ;;  %v1901_v33 = vsel %vm8830_vm6, %v1896_v18, %v1900_v12  ;;  %v2741_v35 = vshll.u32 %v2675_v26, 16  ;;  %v1843_v37 = vld [vmem:[#allocation3 + $0x18] sm:$0xf]  ;;  %v1911_v42 = vsel %vm8830_vm6, %v1906_v29, %v1910_v14 }
 0x176   : > { %1838 = vst [vmem:[#allocation2 + $0x444] sm:$0xf] %v1806_v28  ;;  %v1844_v40 = vld [vmem:[#allocation3 + $0x1c] sm:$0xf]  ;;  %5073 = vmatmul.mubr.bf16.gmra.mxu0 %v8190_v43  ;;  %v1807_v41 = vld [vmem:[#allocation3 + $0xc4] sm:$0xf] }
 0x177   : > { %2304 = vst [vmem:[#allocation2 + $0x10] sm:$0xf] %v1901_v33  ;;  %v2724_v47 = vrot.slane %v2722_v30, 4  ;;  %v2727_v48 = vrot.slane %v2725_v31, 5  ;;  %v2733_v6 = vrot.slane %v2731_v32, 5  ;;  %v2737_v39 = vrot.slane %v2735_v34, 4 }
 0x178   : > { %1839 = vst [vmem:[#allocation2 + $0x468] sm:$0xf] %v1807_v41  ;;  %2305 = vst [vmem:[#allocation2 + $0x34] sm:$0xf] %v1911_v42  ;;  %v2743_v36 = vrot.slane %v2741_v35, 5  ;;  %v1913_v52 = vshrl.u32 %v1843_v37, 16 }
 0x179   : > { %v1845_v51 = vld [vmem:[#allocation3 + $0x20] sm:$0x1]  ;;  %v1916_v54 = vshll.u32 %v1843_v37, 16  ;;  %v2728_v49 = vor.u32 %v2727_v48, %v2724_v47  ;;  %v1922_v56 = vshll.u32 %v1844_v40, 16  ;;  %v1926_v58 = vshrl.u32 %v1844_v40, 16  ;;  %v8214_v34 = vld [vmem:[#allocation6 + $0x230] sm:$0xff]  }
 0x17a   : > { %v1932_v59 = vshll.u32 %v1845_v51, 16  ;;  %v2339_v60 = vld [vmem:[#allocation3 + $0x18] sm:$0xe]  ;;  %v2738_v61 = vor.u32 %v2737_v39, %v2733_v6  ;;  %v1915_v46 = vrot.slane %v1913_v52, 4  ;;  %v2340_v62 = vld [vmem:[#allocation3 + $0x1c] sm:$0xf] }
 0x17b   : > { %v1918_v8 = vrot.slane %v1916_v54, 5  ;;  %v2341_v63 = vld [vmem:[#allocation3 + $0x20] sm:$0x1]  ;;  %v2729_v50 = vrot.slane %v2728_v49, 4  ;;  %v1924_v57 = vrot.slane %v1922_v56, 5  ;;  %v1928_v0 = vrot.slane %v1926_v58, 4 }
 0x17c   : > { %v1934_v2 = vrot.slane %v1932_v59, 5  ;;  %v2611_v38 = vld [vmem:[#allocation3 + $0x24] sm:$0xf]  ;;  %v2739_v3 = vrot.slane %v2738_v61, 4  ;;  %v6909_v9 = vrot.slane %v2339_v60, 9  ;;  %v2441_v10 = vrot.slane %v2340_v62, 5 }
 0x17d   : > { %v1919_v4 = vor.u32 %v1918_v8, %v1915_v46  ;;  %v2612_v11 = vld [vmem:[#allocation3 + $0x28] sm:$0xf]  ;;  %2643 = vst [vmem:[#allocation2 + $0x60] sm:$0xf] %v2611_v38  ;;  %v2734_v12 = vsel %vm8830_vm6, %v2729_v50, %v2733_v6  ;;  %v1929_v13 = vor.u32 %v1928_v0, %v1924_v57  ;;  %v2444_v14 = vrot.slane %v2341_v63, 5  ;;  %v8227_v8 = vld [vmem:[#allocation6 + $0x228] sm:$0xff]  }
 0x17e   : > { %2644 = vst [vmem:[#allocation2 + $0x84] sm:$0xf] %v2612_v11  ;;  %v2676_v17 = vld [vmem:[#allocation3 + $0x24] sm:$0xf]  ;;  %v2677_v44 = vld [vmem:[#allocation3 + $0x28] sm:$0xf]  ;;  %v2744_v5 = vsel %vm8830_vm6, %v2739_v3, %v2743_v36  ;;  %v2442_v20 = vsel %vm8838_vm10, %v6909_v9, %v2441_v10  ;;  %v7352_v36 = vpop.f32.mrf.mxu0 }
 0x17f   : > { %3137 = vst [vmem:[#allocation2 + $0x1c] sm:$0xf] %v2734_v12  ;;  %v1920_v19 = vrot.slane %v1919_v4, 4  ;;  %v2443_v21 = vrot.slane %v2441_v10, 4  ;;  %v2678_v22 = vld [vmem:[#allocation3 + $0x2c] sm:$0x1] }
 0x180   : > { %v8191_v23 = vld [vmem:[#allocation2 + $0x444] ss:$36 sps:$4 sm:$0xff]   ;;  %3138 = vst [vmem:[#allocation2 + $0x40] sm:$0xf] %v2744_v5  ;;  %v1930_v25 = vrot.slane %v1929_v13, 4  ;;  %v2746_v28 = vshrl.u32 %v2676_v17, 16  ;;  %v7353_v62 = vpop.f32.mrf.mxu0 }
 0x181   : > { %v8193_v24 = vld [vmem:[#allocation2 + $0x440] ss:$36 sps:$4 sm:$0xff]   ;;  %2578 = vst [vmem:[#allocation2 + $0x5c] sm:$0xf] %v2442_v20  ;;  %v8197_v26 = vld [vmem:[#allocation2 + $0x10] ss:$36 sps:$4 sm:$0xff]   ;;  %v1925_v43 = vsel %vm8830_vm6, %v1920_v19, %v1924_v57  ;;  %v2445_v18 = vsel %vm8838_vm10, %v2443_v21, %v2444_v14  ;;  %5233 = vmatprep.mubr.bf16.mxu1 %v8191_v23  ;;  %v9217_v0 = vadd.f32 %v7353_v62, %v7352_v36 }
 0x182   : > { %v8199_v27 = vld [vmem:[#allocation2 + $0x14] ss:$36 sps:$4 sm:$0xff]   ;;  %v1935_v29 = vsel %vm8830_vm6, %v1930_v25, %v1934_v2  ;;  %2306 = vst [vmem:[#allocation2 + $0x58] sm:$0xf] %v1925_v43  ;;  %2579 = vst [vmem:[#allocation2 + $0x80] sm:$0xf] %v2445_v18  ;;  %5234 = vmatmul.mubr.bf16.gmra.mxu1 %v8193_v24 }
 0x183   : > { %v2749_v30 = vshll.u32 %v2676_v17, 16  ;;  %v2755_v31 = vshll.u32 %v2677_v44, 16  ;;  %v2759_v32 = vshrl.u32 %v2677_v44, 16  ;;  %v1846_v33 = vld [vmem:[#allocation3 + $0x24] sm:$0xf]  ;;  %5274 = vmatprep.mubr.bf16.mxu0 %v8199_v27  ;;  %v2748_v35 = vrot.slane %v2746_v28, 4 }
 0x184   : > { %2307 = vst [vmem:[#allocation2 + $0x7c] sm:$0xf] %v1935_v29  ;;  %v2765_v37 = vshll.u32 %v2678_v22, 16  ;;  %v1847_v40 = vld [vmem:[#allocation3 + $0x28] sm:$0xf]  ;;  %5275 = vmatmul.mubr.bf16.vlgmr.msra.gmra.mxu0 %v8197_v26  ;;  %v1937_v6 = vshrl.u32 %v1846_v33, 16 }
 0x185   : > { %v1848_v41 = vld [vmem:[#allocation3 + $0x2c] sm:$0x1]  ;;  %v2751_v42 = vrot.slane %v2749_v30, 5  ;;  %v2757_v47 = vrot.slane %v2755_v31, 5  ;;  %v2761_v48 = vrot.slane %v2759_v32, 4  ;;  %7843 = vmatpush3.bf16.msra.mxu0 %v9195_v16  ;;  %v1940_v52 = vshll.u32 %v1846_v33, 16 }
 0x186   : > { %v2342_v39 = vld [vmem:[#allocation3 + $0x24] sm:$0xe]  ;;  %v2767_v51 = vrot.slane %v2765_v37, 5  ;;  %v1946_v54 = vshll.u32 %v1847_v40, 16  ;;  %v1950_v49 = vshrl.u32 %v1847_v40, 16  ;;  %v1939_v60 = vrot.slane %v1937_v6, 4  ;;  %7844 = vmatprep.subr.bf16.mxu0 %v8214_v34 }
 0x187   : > { %v2343_v56 = vld [vmem:[#allocation3 + $0x28] sm:$0xf]  ;;  %v2752_v58 = vor.u32 %v2751_v42, %v2748_v35  ;;  %v2762_v59 = vor.u32 %v2761_v48, %v2757_v47  ;;  %v1956_v61 = vshll.u32 %v1848_v41, 16  ;;  %v2344_v46 = vld [vmem:[#allocation3 + $0x2c] sm:$0x1]  ;;  %v1942_v57 = vrot.slane %v1940_v52, 5 }
 0x188   : > { %v8202_v63 = vld [vmem:[#allocation2 + $0x18] ss:$36 sps:$4 sm:$0xff]   ;;  %v1948_v38 = vrot.slane %v1946_v54, 5  ;;  %v1952_v3 = vrot.slane %v1950_v49, 4  ;;  %v6910_v10 = vrot.slane %v2342_v39, 9  ;;  %v2448_v11 = vrot.slane %v2343_v56, 5 }
 0x189   : > { %v8204_v50 = vld [vmem:[#allocation2 + $0x1c] ss:$36 sps:$4 sm:$0xff]   ;;  %v2753_v2 = vrot.slane %v2752_v58, 4  ;;  %v2763_v16 = vrot.slane %v2762_v59, 4  ;;  %v1943_v4 = vor.u32 %v1942_v57, %v1939_v60  ;;  %v1958_v9 = vrot.slane %v1956_v61, 5  ;;  %7845 = vmatpush3.bf16.msra.mxu0 %v8214_v34  ;;  %v8253_v40 = vld [vmem:[#allocation6 + $0x218] sm:$0xff]   ;;  %v7464_v61 = vpop.f32.mrf.mxu1  ;;  %v9233_v57 = vpop.f32.mrf.mxu0 }
 0x18a   : > { %5435 = vmatprep.mubr.bf16.mxu1 %v8204_v50  ;;  %v8240_v12 = vld [vmem:[#allocation6 + $0x220] sm:$0xff]   ;;  %v1953_v5 = vor.u32 %v1952_v3, %v1948_v38  ;;  %v2451_v19 = vrot.slane %v2344_v46, 5  ;;  %7846 = vmatprep.subr.bf16.mxu0 %v8227_v8  ;;  %v2449_v21 = vsel %vm8838_vm10, %v6910_v10, %v2448_v11  ;;  %v2450_v22 = vrot.slane %v2448_v11, 4  ;;  %v2613_v23 = vld [vmem:[#allocation3 + $0x30] sm:$0xf]  ;;  %v9231_v46 = vld [vmem:[#allocation6 + $0x210] sm:$0xff]  }
 0x18b   : > { %v8205_v13 = vld [vmem:[#allocation2 + $0x5c] ss:$36 sps:$4 sm:$0xff]   ;;  %v2758_v17 = vsel %vm8830_vm6, %v2753_v2, %v2757_v47  ;;  %v2768_v44 = vsel %vm8830_vm6, %v2763_v16, %v2767_v51  ;;  %5436 = vmatmul.mubr.bf16.vlgmr.msra.gmra.mxu1 %v8202_v63  ;;  %v1944_v20 = vrot.slane %v1943_v4, 4  ;;  %v2614_v24 = vld [vmem:[#allocation3 + $0x34] sm:$0xf] }
 0x18c   : > { %v8207_v14 = vld [vmem:[#allocation2 + $0x58] ss:$36 sps:$4 sm:$0xff]   ;;  %3139 = vst [vmem:[#allocation2 + $0x64] sm:$0xf] %v2758_v17  ;;  %3140 = vst [vmem:[#allocation2 + $0x88] sm:$0xf] %v2768_v44  ;;  %5282 = vmatprep.mubr.bf16.mxu0 %v8205_v13  ;;  %v2452_v18 = vsel %vm8838_vm10, %v2450_v22, %v2451_v19 }
 0x18d   : > { %v1954_v25 = vrot.slane %v1953_v5, 4  ;;  %2580 = vst [vmem:[#allocation2 + $0xa4] sm:$0xf] %v2449_v21  ;;  %2645 = vst [vmem:[#allocation2 + $0xa8] sm:$0xf] %v2613_v23  ;;  %5283 = vmatmul.mubr.bf16.gmra.mxu0 %v8207_v14  ;;  %v1949_v43 = vsel %vm8830_vm6, %v1944_v20, %v1948_v38 }
 0x18e   : > { %2646 = vst [vmem:[#allocation2 + $0xcc] sm:$0xf] %v2614_v24  ;;  %v2679_v26 = vld [vmem:[#allocation3 + $0x30] sm:$0xf]  ;;  %v2680_v27 = vld [vmem:[#allocation3 + $0x34] sm:$0xf]  ;;  %7847 = vmatpush3.bf16.msra.mxu0 %v8227_v8 }
 0x18f   : > { %v2681_v28 = vld [vmem:[#allocation3 + $0x38] sm:$0x1]  ;;  %v2770_v29 = vshrl.u32 %v2679_v26, 16  ;;  %v2773_v30 = vshll.u32 %v2679_v26, 16  ;;  %v1849_v31 = vld [vmem:[#allocation3 + $0x30] sm:$0xf]  ;;  %v1959_v32 = vsel %vm8830_vm6, %v1954_v25, %v1958_v9  ;;  %7848 = vmatprep.subr.bf16.mxu0 %v8240_v12  ;;  %v7465_v9 = vpop.f32.mrf.mxu1 }
 0x190   : > { %2308 = vst [vmem:[#allocation2 + $0xa0] sm:$0xf] %v1949_v43  ;;  %2581 = vst [vmem:[#allocation2 + $0xc8] sm:$0xf] %v2452_v18  ;;  %v2779_v33 = vshll.u32 %v2680_v27, 16  ;;  %v2783_v34 = vshrl.u32 %v2680_v27, 16  ;;  %v9243_v27 = vadd.f32 %v7465_v9, %v7464_v61  ;;  %v9245_v43 = vpop.f32.mrf.mxu0 }
 0x191   : > { %v2789_v35 = vshll.u32 %v2681_v28, 16  ;;  %v1850_v37 = vld [vmem:[#allocation3 + $0x34] sm:$0xf]  ;;  %2309 = vst [vmem:[#allocation2 + $0xc4] sm:$0xf] %v1959_v32  ;;  %v2772_v41 = vrot.slane %v2770_v29, 4  ;;  %v9237_v21 = vpop.f32.mrf.mxu1 }
 0x192   : > { %v2775_v42 = vrot.slane %v2773_v30, 5  ;;  %v1851_v47 = vld [vmem:[#allocation3 + $0x38] sm:$0x1]  ;;  %v1961_v48 = vshrl.u32 %v1849_v31, 16  ;;  %v1964_v6 = vshll.u32 %v1849_v31, 16  ;;  %v2781_v39 = vrot.slane %v2779_v33, 5  ;;  %7849 = vmatpush3.bf16.msra.mxu0 %v8240_v12 }
 0x193   : > { %v2785_v36 = vrot.slane %v2783_v34, 4  ;;  %v2791_v51 = vrot.slane %v2789_v35, 5  ;;  %v1970_v52 = vshll.u32 %v1850_v37, 16  ;;  %v2345_v54 = vld [vmem:[#allocation3 + $0x30] sm:$0xe]  ;;  %v1974_v59 = vshrl.u32 %v1850_v37, 16  ;;  %7850 = vmatprep.subr.bf16.mxu0 %v8253_v40  ;;  %v9249_v31 = vpop.f32.mrf.mxu1 }
 0x194   : > { %v2776_v49 = vor.u32 %v2775_v42, %v2772_v41  ;;  %v1963_v56 = vrot.slane %v1961_v48, 4  ;;  %v1966_v58 = vrot.slane %v1964_v6, 5  ;;  %v2346_v60 = vld [vmem:[#allocation3 + $0x34] sm:$0xf]  ;;  %v8208_v8 = vld [vmem:[#allocation2 + $0x64] ss:$36 sps:$4 sm:$0xff]  }
 0x195   : > { %v2786_v62 = vor.u32 %v2785_v36, %v2781_v39  ;;  %v1972_v63 = vrot.slane %v1970_v52, 5  ;;  %v1980_v50 = vshll.u32 %v1851_v47, 16  ;;  %v8210_v2 = vld [vmem:[#allocation2 + $0x60] ss:$36 sps:$4 sm:$0xff]   ;;  %v1976_v3 = vrot.slane %v1974_v59, 4  ;;  %5443 = vmatprep.mubr.bf16.mxu1 %v8208_v8 }
 0x196   : > { %v2777_v16 = vrot.slane %v2776_v49, 4  ;;  %v1967_v38 = vor.u32 %v1966_v58, %v1963_v56  ;;  %v2347_v4 = vld [vmem:[#allocation3 + $0x38] sm:$0x1]  ;;  %v6911_v13 = vrot.slane %v2345_v54, 9  ;;  %v2455_v14 = vrot.slane %v2346_v60, 5  ;;  %5444 = vmatmul.mubr.bf16.gmra.mxu1 %v8210_v2  ;;  %7851 = vmatpush3.bf16.msra.mxu0 %v8253_v40  ;;  %v8279_v32 = vld [vmem:[#allocation6 + $0x208] sm:$0xff]   ;;  %v7358_v56 = vpop.f32.mrf.mxu0 }
 0x197   : > { %v2787_v10 = vrot.slane %v2786_v62, 4  ;;  %v1982_v11 = vrot.slane %v1980_v50, 5  ;;  %v2615_v17 = vld [vmem:[#allocation3 + $0x3c] sm:$0xf]  ;;  %v1977_v5 = vor.u32 %v1976_v3, %v1972_v63  ;;  %v2458_v19 = vrot.slane %v2347_v4, 5  ;;  %7852 = vmatprep.subr.bf16.mxu0 %v9231_v46 }
 0x198   : > { %v2782_v44 = vsel %vm8830_vm6, %v2777_v16, %v2781_v39  ;;  %v1968_v12 = vrot.slane %v1967_v38, 4  ;;  %v2616_v20 = vld [vmem:[#allocation3 + $0x40] sm:$0xf]  ;;  %2647 = vst [vmem:[#allocation2 + $0xf0] sm:$0xf] %v2615_v17  ;;  %v2456_v25 = vsel %vm8838_vm10, %v6911_v13, %v2455_v14  ;;  %v2457_v26 = vrot.slane %v2455_v14, 4  ;;  %v7470_v39 = vpop.f32.mrf.mxu1  ;;  %v7359_v3 = vpop.f32.mrf.mxu0 }
 0x199   : > { %v8211_v22 = vld [vmem:[#allocation2 + $0xa4] ss:$36 sps:$4 sm:$0xff]   ;;  %v2792_v24 = vsel %vm8830_vm6, %v2787_v10, %v2791_v51  ;;  %3141 = vst [vmem:[#allocation2 + $0xac] sm:$0xf] %v2782_v44  ;;  %2648 = vst [vmem:[#allocation2 + $0x114] sm:$0xf] %v2616_v20 }
 0x19a   : > { %v8213_v23 = vld [vmem:[#allocation2 + $0xa0] ss:$36 sps:$4 sm:$0xff]   ;;  %3142 = vst [vmem:[#allocation2 + $0xd0] sm:$0xf] %v2792_v24  ;;  %v1973_v18 = vsel %vm8830_vm6, %v1968_v12, %v1972_v63  ;;  %v1978_v28 = vrot.slane %v1977_v5, 4  ;;  %5290 = vmatprep.mubr.bf16.mxu0 %v8211_v22  ;;  %v2459_v33 = vsel %vm8838_vm10, %v2457_v26, %v2458_v19  ;;  %7853 = vmatpush3.bf16.msra.mxu0 %v9231_v46  ;;  %v7471_v62 = vpop.f32.mrf.mxu1  ;;  %v9261_v5 = vpop.f32.mrf.mxu0 }
 0x19b   : > { %2582 = vst [vmem:[#allocation2 + $0xec] sm:$0xf] %v2456_v25  ;;  %v2682_v29 = vld [vmem:[#allocation3 + $0x3c] sm:$0xf]  ;;  %v2683_v30 = vld [vmem:[#allocation3 + $0x40] sm:$0xf]  ;;  %5291 = vmatmul.mubr.bf16.gmra.mxu0 %v8213_v23  ;;  %7854 = vmatprep.subr.bf16.mxu0 %v8279_v32  ;;  %v9259_v12 = vadd.f32 %v7359_v3, %v7358_v56  ;;  %v9263_v19 = vadd.f32 %v7471_v62, %v7470_v39 }
 0x19c   : > { %2310 = vst [vmem:[#allocation2 + $0xe8] sm:$0xf] %v1973_v18  ;;  %v2684_v34 = vld [vmem:[#allocation3 + $0x44] sm:$0x1]  ;;  %v2794_v35 = vshrl.u32 %v2682_v29, 16  ;;  %v2797_v37 = vshll.u32 %v2682_v29, 16  ;;  %v1983_v41 = vsel %vm8830_vm6, %v1978_v28, %v1982_v11  ;;  %v9257_v14 = vpop.f32.mrf.mxu1 }
 0x19d   : > { %v2803_v40 = vshll.u32 %v2683_v30, 16  ;;  %2583 = vst [vmem:[#allocation2 + $0x110] sm:$0xf] %v2459_v33  ;;  %v2807_v42 = vshrl.u32 %v2683_v30, 16  ;;  %v2813_v47 = vshll.u32 %v2684_v34, 16  ;;  %v9269_v30 = vpop.f32.mrf.mxu0  ;;  %v8292_v39 = vld [vmem:[#allocation6 + $0x200] sm:$0xff]  }
 0x19e   : > { %v1852_v48 = vld [vmem:[#allocation3 + $0x3c] sm:$0xf]  ;;  %v1853_v6 = vld [vmem:[#allocation3 + $0x40] sm:$0xf]  ;;  %2311 = vst [vmem:[#allocation2 + $0x10c] sm:$0xf] %v1983_v41  ;;  %7855 = vmatpush3.bf16.msra.mxu0 %v8279_v32  ;;  %v9265_v25 = vpop.f32.mrf.mxu1 }
 0x19f   : > { %v2796_v36 = vrot.slane %v2794_v35, 4  ;;  %v2799_v51 = vrot.slane %v2797_v37, 5  ;;  %v2805_v52 = vrot.slane %v2803_v40, 5  ;;  %v1854_v54 = vld [vmem:[#allocation3 + $0x44] sm:$0x1]  ;;  %v1985_v49 = vshrl.u32 %v1852_v48, 16  ;;  %7856 = vmatprep.subr.bf16.mxu0 %v8292_v39 }
 0x1a0   : > { %v2809_v58 = vrot.slane %v2807_v42, 4  ;;  %v2815_v59 = vrot.slane %v2813_v47, 5  ;;  %v1988_v60 = vshll.u32 %v1852_v48, 16  ;;  %v1994_v61 = vshll.u32 %v1853_v6, 16  ;;  %v2348_v8 = vld [vmem:[#allocation3 + $0x3c] sm:$0xe]  ;;  %v7476_v40 = vpop.f32.mrf.mxu1 }
 0x1a1   : > { %v2800_v63 = vor.u32 %v2799_v51, %v2796_v36  ;;  %v1987_v50 = vrot.slane %v1985_v49, 4  ;;  %v1998_v2 = vshrl.u32 %v1853_v6, 16  ;;  %v2004_v16 = vshll.u32 %v1854_v54, 16  ;;  %v2349_v38 = vld [vmem:[#allocation3 + $0x40] sm:$0xf]  ;;  %v7364_v6 = vpop.f32.mrf.mxu0 }
 0x1a2   : > { %v2810_v4 = vor.u32 %v2809_v58, %v2805_v52  ;;  %v1990_v9 = vrot.slane %v1988_v60, 5  ;;  %v1996_v10 = vrot.slane %v1994_v61, 5  ;;  %v2350_v11 = vld [vmem:[#allocation3 + $0x44] sm:$0x1]  ;;  %v6912_v13 = vrot.slane %v2348_v8, 9  ;;  %v7477_v56 = vpop.f32.mrf.mxu1  ;;  %7857 = vmatpush3.bf16.msra.mxu0 %v8292_v39 }
 0x1a3   : > { %v8215_v46 = vld [vmem:[#allocation2 + $0xac] ss:$36 sps:$4 sm:$0xff]   ;;  %v2801_v44 = vrot.slane %v2800_v63, 4  ;;  %v2000_v23 = vrot.slane %v1998_v2, 4  ;;  %v2006_v24 = vrot.slane %v2004_v16, 5  ;;  %v2462_v18 = vrot.slane %v2349_v38, 5  ;;  %v7365_v62 = vpop.f32.mrf.mxu0 }
 0x1a4   : > { %v8217_v17 = vld [vmem:[#allocation2 + $0xa8] ss:$36 sps:$4 sm:$0xff]   ;;  %v2811_v20 = vrot.slane %v2810_v4, 4  ;;  %v1991_v22 = vor.u32 %v1990_v9, %v1987_v50  ;;  %5451 = vmatprep.mubr.bf16.mxu1 %v8215_v46  ;;  %v2465_v28 = vrot.slane %v2350_v11, 5  ;;  %v2687_v54 = vld [vmem:[#allocation3 + $0x50] sm:$0x1]  ;;  %v9281_v3 = vadd.f32 %v7365_v62, %v7364_v6  ;;  %v9283_v4 = vpop.f32.mrf.mxu1 }
 0x1a5   : > { %v2806_v26 = vsel %vm8830_vm6, %v2801_v44, %v2805_v52  ;;  %v2617_v29 = vld [vmem:[#allocation3 + $0x48] sm:$0xf]  ;;  %5452 = vmatmul.mubr.bf16.gmra.mxu1 %v8217_v17  ;;  %v8218_v33 = vld [vmem:[#allocation2 + $0xec] ss:$36 sps:$4 sm:$0xff]   ;;  %v2001_v37 = vor.u32 %v2000_v23, %v1996_v10  ;;  %v2463_v41 = vsel %vm8838_vm10, %v6912_v13, %v2462_v18  ;;  %v2464_v42 = vrot.slane %v2462_v18, 4  ;;  %v9285_v17 = vpop.f32.mrf.mxu0 }
 0x1a6   : > { %v8220_v34 = vld [vmem:[#allocation2 + $0xe8] ss:$36 sps:$4 sm:$0xff]   ;;  %v2816_v32 = vsel %vm8830_vm6, %v2811_v20, %v2815_v59  ;;  %3143 = vst [vmem:[#allocation2 + $0xf4] sm:$0xf] %v2806_v26  ;;  %v1992_v35 = vrot.slane %v1991_v22, 4  ;;  %5298 = vmatprep.mubr.bf16.mxu0 %v8218_v33  ;;  %v2837_v2 = vshll.u32 %v2687_v54, 16 }
 0x1a7   : > { %2649 = vst [vmem:[#allocation2 + $0x138] sm:$0xf] %v2617_v29  ;;  %3144 = vst [vmem:[#allocation2 + $0x118] sm:$0xf] %v2816_v32  ;;  %v2618_v47 = vld [vmem:[#allocation3 + $0x4c] sm:$0xf]  ;;  %5299 = vmatmul.mubr.bf16.gmra.mxu0 %v8220_v34  ;;  %v2466_v58 = vsel %vm8838_vm10, %v2464_v42, %v2465_v28  ;;  %v9287_v34 = vpop.f32.mrf.mxu0  ;;  %v9289_v32 = vpop.f32.mrf.mxu1  ;;  %v9291_v42 = vadd.f32 %v7477_v56, %v7476_v40 }
 0x1a8   : > { %v2685_v48 = vld [vmem:[#allocation3 + $0x48] sm:$0xf]  ;;  %v1997_v36 = vsel %vm8830_vm6, %v1992_v35, %v1996_v10  ;;  %v2002_v51 = vrot.slane %v2001_v37, 4  ;;  %2584 = vst [vmem:[#allocation2 + $0x134] sm:$0xf] %v2463_v41  ;;  %v2839_v44 = vrot.slane %v2837_v2, 5 }
 0x1a9   : > { %2650 = vst [vmem:[#allocation2 + $0x15c] sm:$0xf] %v2618_v47  ;;  %v2686_v52 = vld [vmem:[#allocation3 + $0x4c] sm:$0xf]  ;;  %v2818_v49 = vshrl.u32 %v2685_v48, 16  ;;  %v2821_v59 = vshll.u32 %v2685_v48, 16 }
 0x1aa   : > { %2312 = vst [vmem:[#allocation2 + $0x130] sm:$0xf] %v1997_v36  ;;  %v2827_v60 = vshll.u32 %v2686_v52, 16  ;;  %v2831_v61 = vshrl.u32 %v2686_v52, 16  ;;  %v1855_v8 = vld [vmem:[#allocation3 + $0x48] sm:$0xf]  ;;  %v2007_v63 = vsel %vm8830_vm6, %v2002_v51, %v2006_v24 }
 0x1ab   : > { %2585 = vst [vmem:[#allocation2 + $0x158] sm:$0xf] %v2466_v58  ;;  %v2820_v50 = vrot.slane %v2818_v49, 4  ;;  %v1856_v16 = vld [vmem:[#allocation3 + $0x4c] sm:$0xf]  ;;  %v2823_v9 = vrot.slane %v2821_v59, 5  ;;  %v7370_v59 = vpop.f32.mrf.mxu0 }
 0x1ac   : > { %v1857_v38 = vld [vmem:[#allocation3 + $0x50] sm:$0x1]  ;;  %2313 = vst [vmem:[#allocation2 + $0x154] sm:$0xf] %v2007_v63  ;;  %v2829_v10 = vrot.slane %v2827_v60, 5  ;;  %v2833_v11 = vrot.slane %v2831_v61, 4  ;;  %v7482_v63 = vpop.f32.mrf.mxu1 }
 0x1ad   : > { %v2009_v13 = vshrl.u32 %v1855_v8, 16  ;;  %v2351_v46 = vld [vmem:[#allocation3 + $0x48] sm:$0xe]  ;;  %v2012_v20 = vshll.u32 %v1855_v8, 16  ;;  %v2018_v22 = vshll.u32 %v1856_v16, 16  ;;  %v2022_v23 = vshrl.u32 %v1856_v16, 16 }
 0x1ae   : > { %v2352_v24 = vld [vmem:[#allocation3 + $0x4c] sm:$0xf]  ;;  %v2824_v26 = vor.u32 %v2823_v9, %v2820_v50  ;;  %v2834_v18 = vor.u32 %v2833_v11, %v2829_v10  ;;  %v2028_v29 = vshll.u32 %v1857_v38, 16  ;;  %v2353_v33 = vld [vmem:[#allocation3 + $0x50] sm:$0x1]  ;;  %v6913_v54 = vrot.slane %v2351_v46, 9  ;;  %v7371_v9 = vpop.f32.mrf.mxu0 }
 0x1af   : > { %v2011_v28 = vrot.slane %v2009_v13, 4  ;;  %v8221_v35 = vld [vmem:[#allocation2 + $0xf4] ss:$36 sps:$4 sm:$0xff]   ;;  %v2014_v41 = vrot.slane %v2012_v20, 5  ;;  %v2020_v6 = vrot.slane %v2018_v22, 5  ;;  %v2024_v39 = vrot.slane %v2022_v23, 4 }
 0x1b0   : > { %v8223_v37 = vld [vmem:[#allocation2 + $0xf0] ss:$36 sps:$4 sm:$0xff]   ;;  %v2825_v47 = vrot.slane %v2824_v26, 4  ;;  %v2835_v48 = vrot.slane %v2834_v18, 4  ;;  %5459 = vmatprep.mubr.bf16.mxu1 %v8221_v35  ;;  %v2030_v52 = vrot.slane %v2028_v29, 5  ;;  %v2469_v49 = vrot.slane %v2352_v24, 5  ;;  %v9301_v18 = vpop.f32.mrf.mxu0 }
 0x1b1   : > { %v2619_v36 = vld [vmem:[#allocation3 + $0x54] sm:$0xf]  ;;  %v2015_v51 = vor.u32 %v2014_v41, %v2011_v28  ;;  %v2620_v58 = vld [vmem:[#allocation3 + $0x58] sm:$0xf]  ;;  %5460 = vmatmul.mubr.bf16.gmra.mxu1 %v8223_v37  ;;  %v2025_v56 = vor.u32 %v2024_v39, %v2020_v6  ;;  %v2472_v61 = vrot.slane %v2353_v33, 5  ;;  %v7483_v28 = vpop.f32.mrf.mxu1 }
 0x1b2   : > { %2651 = vst [vmem:[#allocation2 + $0x180] sm:$0xf] %v2619_v36  ;;  %v2830_v60 = vsel %vm8830_vm6, %v2825_v47, %v2829_v10  ;;  %v2840_v40 = vsel %vm8830_vm6, %v2835_v48, %v2839_v44  ;;  %2652 = vst [vmem:[#allocation2 + $0x1a4] sm:$0xf] %v2620_v58  ;;  %v2688_v8 = vld [vmem:[#allocation3 + $0x54] sm:$0xf]  ;;  %v2470_v38 = vsel %vm8838_vm10, %v6913_v54, %v2469_v49  ;;  %v9307_v54 = vpop.f32.mrf.mxu0 }
 0x1b3   : > { %v2689_v62 = vld [vmem:[#allocation3 + $0x58] sm:$0xf]  ;;  %v8226_v2 = vld [vmem:[#allocation2 + $0x130] ss:$36 sps:$4 sm:$0xff]   ;;  %3145 = vst [vmem:[#allocation2 + $0x13c] sm:$0xf] %v2830_v60 }
 0x1b4   : > { %v8224_v50 = vld [vmem:[#allocation2 + $0x134] ss:$36 sps:$4 sm:$0xff]   ;;  %3146 = vst [vmem:[#allocation2 + $0x160] sm:$0xf] %v2840_v40  ;;  %v2016_v16 = vrot.slane %v2015_v51, 4  ;;  %v2026_v11 = vrot.slane %v2025_v56, 4 }
 0x1b5   : > { %v2471_v10 = vrot.slane %v2469_v49, 4  ;;  %2586 = vst [vmem:[#allocation2 + $0x17c] sm:$0xf] %v2470_v38  ;;  %v2690_v13 = vld [vmem:[#allocation3 + $0x5c] sm:$0x1]  ;;  %v2842_v46 = vshrl.u32 %v2688_v8, 16  ;;  %5306 = vmatprep.mubr.bf16.mxu0 %v8224_v50 }
 0x1b6   : > { %v2845_v44 = vshll.u32 %v2688_v8, 16  ;;  %v2021_v20 = vsel %vm8830_vm6, %v2016_v16, %v2020_v6  ;;  %v2851_v22 = vshll.u32 %v2689_v62, 16  ;;  %v2855_v23 = vshrl.u32 %v2689_v62, 16  ;;  %v1858_v26 = vld [vmem:[#allocation3 + $0x54] sm:$0xf]  ;;  %5307 = vmatmul.mubr.bf16.gmra.mxu0 %v8226_v2  ;;  %v9309_v2 = vpop.f32.mrf.mxu1 }
 0x1b7   : > { %v2861_v24 = vshll.u32 %v2690_v13, 16  ;;  %v2031_v29 = vsel %vm8830_vm6, %v2026_v11, %v2030_v52  ;;  %2314 = vst [vmem:[#allocation2 + $0x178] sm:$0xf] %v2021_v20  ;;  %v2473_v33 = vsel %vm8838_vm10, %v2471_v10, %v2472_v61  ;;  %v2844_v35 = vrot.slane %v2842_v46, 4  ;;  %v1859_v41 = vld [vmem:[#allocation3 + $0x58] sm:$0xf]  ;;  %v7376_v46 = vpop.f32.mrf.mxu0 }
 0x1b8   : > { %v2847_v37 = vrot.slane %v2845_v44, 5  ;;  %v1860_v47 = vld [vmem:[#allocation3 + $0x5c] sm:$0x1]  ;;  %2315 = vst [vmem:[#allocation2 + $0x19c] sm:$0xf] %v2031_v29  ;;  %v2853_v48 = vrot.slane %v2851_v22, 5  ;;  %v9311_v10 = vadd.f32 %v7371_v9, %v7370_v59  ;;  %v9313_v13 = vadd.f32 %v7483_v28, %v7482_v63 }
 0x1b9   : > { %2587 = vst [vmem:[#allocation2 + $0x1a0] sm:$0xf] %v2473_v33  ;;  %v2857_v6 = vrot.slane %v2855_v23, 4  ;;  %v2863_v39 = vrot.slane %v2861_v24, 5  ;;  %v2033_v36 = vshrl.u32 %v1858_v26, 16  ;;  %v2036_v58 = vshll.u32 %v1858_v26, 16 }
 0x1ba   : > { %v2354_v51 = vld [vmem:[#allocation3 + $0x54] sm:$0xe]  ;;  %v2848_v49 = vor.u32 %v2847_v37, %v2844_v35  ;;  %v2042_v52 = vshll.u32 %v1859_v41, 16  ;;  %v2046_v60 = vshrl.u32 %v1859_v41, 16  ;;  %v2355_v40 = vld [vmem:[#allocation3 + $0x58] sm:$0xf]  ;;  %v7377_v37 = vpop.f32.mrf.mxu0 }
 0x1bb   : > { %v2858_v56 = vor.u32 %v2857_v6, %v2853_v48  ;;  %v2035_v61 = vrot.slane %v2033_v36, 4  ;;  %v2052_v8 = vshll.u32 %v1860_v47, 16  ;;  %v2356_v62 = vld [vmem:[#allocation3 + $0x5c] sm:$0x1]  ;;  %v6914_v50 = vrot.slane %v2354_v51, 9  ;;  %v9320_v47 = vpop.f32.mrf.mxu1 }
 0x1bc   : > { %v8228_v16 = vld [vmem:[#allocation2 + $0x13c] ss:$36 sps:$4 sm:$0xff]   ;;  %v2849_v38 = vrot.slane %v2848_v49, 4  ;;  %v2038_v11 = vrot.slane %v2036_v58, 5  ;;  %v2044_v23 = vrot.slane %v2042_v52, 5  ;;  %v2048_v24 = vrot.slane %v2046_v60, 4 }
 0x1bd   : > { %v8230_v20 = vld [vmem:[#allocation2 + $0x138] ss:$36 sps:$4 sm:$0xff]   ;;  %v2859_v22 = vrot.slane %v2858_v56, 4  ;;  %5467 = vmatprep.mubr.bf16.mxu1 %v8228_v16  ;;  %v2054_v33 = vrot.slane %v2052_v8, 5  ;;  %v2476_v35 = vrot.slane %v2355_v40, 5  ;;  %v2479_v9 = vrot.slane %v2356_v62, 5 }
 0x1be   : > { %v2854_v26 = vsel %vm8830_vm6, %v2849_v38, %v2853_v48  ;;  %v2039_v29 = vor.u32 %v2038_v11, %v2035_v61  ;;  %5468 = vmatmul.mubr.bf16.gmra.mxu1 %v8230_v20  ;;  %v2049_v63 = vor.u32 %v2048_v24, %v2044_v23  ;;  %v2621_v28 = vld [vmem:[#allocation3 + $0x60] sm:$0xf]  ;;  %v2622_v41 = vld [vmem:[#allocation3 + $0x64] sm:$0xf]  ;;  %v9324_v49 = vadd.f32 %v7377_v37, %v7376_v46  ;;  %v2693_v8 = vld [vmem:[#allocation3 + $0x68] sm:$0x1]  ;;  %v9340_v46 = vpop.f32.mrf.mxu1 }
 0x1bf   : > { %v2864_v59 = vsel %vm8830_vm6, %v2859_v22, %v2863_v39  ;;  %3147 = vst [vmem:[#allocation2 + $0x184] sm:$0xf] %v2854_v26  ;;  %v8233_v36 = vld [vmem:[#allocation2 + $0x178] ss:$36 sps:$4 sm:$0xff]   ;;  %v2477_v48 = vsel %vm8838_vm10, %v6914_v50, %v2476_v35  ;;  %2653 = vst [vmem:[#allocation2 + $0x1c8] sm:$0xf] %v2621_v28  ;;  %v9328_v40 = vadd.f32 %v9245_v43, %v9233_v57 }
 0x1c0   : > { %v8231_v6 = vld [vmem:[#allocation2 + $0x17c] ss:$36 sps:$4 sm:$0xff]   ;;  %3148 = vst [vmem:[#allocation2 + $0x1a8] sm:$0xf] %v2864_v59  ;;  %v2040_v51 = vrot.slane %v2039_v29, 4  ;;  %v2050_v58 = vrot.slane %v2049_v63, 4  ;;  %v9332_v56 = vadd.f32 %v9249_v31, %v9237_v21  ;;  %v9342_v63 = vpop.f32.mrf.mxu0 }
 0x1c1   : > { %2654 = vst [vmem:[#allocation2 + $0x1ec] sm:$0xf] %v2622_v41  ;;  %v2478_v39 = vrot.slane %v2476_v35, 4  ;;  %2588 = vst [vmem:[#allocation2 + $0x1c4] sm:$0xf] %v2477_v48  ;;  %5314 = vmatprep.mubr.bf16.mxu0 %v8231_v6  ;;  %v2885_v11 = vshll.u32 %v2693_v8, 16 }
 0x1c2   : > { %v2691_v52 = vld [vmem:[#allocation3 + $0x60] sm:$0xf]  ;;  %v2692_v60 = vld [vmem:[#allocation3 + $0x64] sm:$0xf]  ;;  %v2045_v61 = vsel %vm8830_vm6, %v2040_v51, %v2044_v23  ;;  %5315 = vmatmul.mubr.bf16.gmra.mxu0 %v8233_v36  ;;  %v2055_v38 = vsel %vm8830_vm6, %v2050_v58, %v2054_v33  ;;  %v1863_v24 = vld [vmem:[#allocation3 + $0x68] sm:$0x1] }
 0x1c3   : > { %v2866_v62 = vshrl.u32 %v2691_v52, 16  ;;  %v2869_v50 = vshll.u32 %v2691_v52, 16  ;;  %v2875_v16 = vshll.u32 %v2692_v60, 16  ;;  %2316 = vst [vmem:[#allocation2 + $0x1c0] sm:$0xf] %v2045_v61  ;;  %v2480_v57 = vsel %vm8838_vm10, %v2478_v39, %v2479_v9  ;;  %v9344_v9 = vpop.f32.mrf.mxu1 }
 0x1c4   : > { %v2879_v43 = vshrl.u32 %v2692_v60, 16  ;;  %v1861_v21 = vld [vmem:[#allocation3 + $0x60] sm:$0xf]  ;;  %v1862_v31 = vld [vmem:[#allocation3 + $0x64] sm:$0xf]  ;;  %v2887_v35 = vrot.slane %v2885_v11, 5  ;;  %v9348_v60 = vadd.f32 %v9269_v30, %v9261_v5  ;;  %v9352_v61 = vadd.f32 %v9265_v25, %v9257_v14 }
 0x1c5   : > { %2317 = vst [vmem:[#allocation2 + $0x1e4] sm:$0xf] %v2055_v38  ;;  %2589 = vst [vmem:[#allocation2 + $0x1e8] sm:$0xf] %v2480_v57  ;;  %v2868_v20 = vrot.slane %v2866_v62, 4  ;;  %v2871_v22 = vrot.slane %v2869_v50, 5  ;;  %v9354_v8 = vpop.f32.mrf.mxu1 }
 0x1c6   : > { %v2877_v23 = vrot.slane %v2875_v16, 5  ;;  %v2057_v26 = vshrl.u32 %v1861_v21, 16  ;;  %v2881_v29 = vrot.slane %v2879_v43, 4  ;;  %v2060_v33 = vshll.u32 %v1861_v21, 16  ;;  %v2357_v59 = vld [vmem:[#allocation3 + $0x60] sm:$0xe] }
 0x1c7   : > { %v2066_v37 = vshll.u32 %v1862_v31, 16  ;;  %v2872_v28 = vor.u32 %v2871_v22, %v2868_v20  ;;  %v2070_v6 = vshrl.u32 %v1862_v31, 16  ;;  %v2076_v36 = vshll.u32 %v1863_v24, 16  ;;  %v2358_v51 = vld [vmem:[#allocation3 + $0x64] sm:$0xf]  ;;  %v9356_v22 = vpop.f32.mrf.mxu0  ;;  %v9358_v5 = vpop.f32.mrf.mxu1 }
 0x1c8   : > { %v2059_v41 = vrot.slane %v2057_v26, 4  ;;  %v8234_v48 = vld [vmem:[#allocation2 + $0x184] ss:$36 sps:$4 sm:$0xff]   ;;  %v2882_v39 = vor.u32 %v2881_v29, %v2877_v23  ;;  %v2062_v52 = vrot.slane %v2060_v33, 5  ;;  %v6915_v21 = vrot.slane %v2357_v59, 9 }
 0x1c9   : > { %v8236_v58 = vld [vmem:[#allocation2 + $0x180] ss:$36 sps:$4 sm:$0xff]   ;;  %v2873_v62 = vrot.slane %v2872_v28, 4  ;;  %v2068_v50 = vrot.slane %v2066_v37, 5  ;;  %v2072_v16 = vrot.slane %v2070_v6, 4  ;;  %v2078_v38 = vrot.slane %v2076_v36, 5  ;;  %5475 = vmatprep.mubr.bf16.mxu1 %v8234_v48  ;;  %v7494_v48 = vpop.f32.mrf.mxu1 }
 0x1ca   : > { %v2359_v57 = vld [vmem:[#allocation3 + $0x68] sm:$0x1]  ;;  %v2883_v43 = vrot.slane %v2882_v39, 4  ;;  %v2063_v11 = vor.u32 %v2062_v52, %v2059_v41  ;;  %v2483_v31 = vrot.slane %v2358_v51, 5  ;;  %v2623_v20 = vld [vmem:[#allocation3 + $0x6c] sm:$0xf]  ;;  %5476 = vmatmul.mubr.bf16.gmra.mxu1 %v8236_v58  ;;  %v9364_v29 = vadd.f32 %v9287_v34, %v9285_v17 }
 0x1cb   : > { %v2878_v14 = vsel %vm8830_vm6, %v2873_v62, %v2877_v23  ;;  %v2073_v25 = vor.u32 %v2072_v16, %v2068_v50  ;;  %v2486_v30 = vrot.slane %v2359_v57, 5  ;;  %v2624_v24 = vld [vmem:[#allocation3 + $0x70] sm:$0xf]  ;;  %2655 = vst [vmem:[#allocation2 + $0x210] sm:$0xf] %v2623_v20  ;;  %v9372_v23 = vadd.f32 %v9289_v32, %v9283_v4  ;;  %v7382_v62 = vpop.f32.mrf.mxu0 }
 0x1cc   : > { %v2694_v26 = vld [vmem:[#allocation3 + $0x6c] sm:$0xf]  ;;  %v8237_v33 = vld [vmem:[#allocation2 + $0x1c4] ss:$36 sps:$4 sm:$0xff]   ;;  %v2888_v59 = vsel %vm8830_vm6, %v2883_v43, %v2887_v35  ;;  %3149 = vst [vmem:[#allocation2 + $0x1cc] sm:$0xf] %v2878_v14  ;;  %v2484_v41 = vsel %vm8838_vm10, %v6915_v21, %v2483_v31  ;;  %v9376_v51 = vadd.f32 %v9307_v54, %v9301_v18  ;;  %v9380_v35 = vadd.f32 %v9320_v47, %v9309_v2  ;;  %v7495_v43 = vpop.f32.mrf.mxu1 }
 0x1cd   : > { %v8239_v37 = vld [vmem:[#allocation2 + $0x1c0] ss:$36 sps:$4 sm:$0xff]   ;;  %v2064_v28 = vrot.slane %v2063_v11, 4  ;;  %2656 = vst [vmem:[#allocation2 + $0x234] sm:$0xf] %v2624_v24  ;;  %v2074_v6 = vrot.slane %v2073_v25, 4  ;;  %5322 = vmatprep.mubr.bf16.mxu0 %v8237_v33  ;;  %v7383_v14 = vpop.f32.mrf.mxu0 }
 0x1ce   : > { %3150 = vst [vmem:[#allocation2 + $0x1f0] sm:$0xf] %v2888_v59  ;;  %v2485_v36 = vrot.slane %v2483_v31, 4  ;;  %2590 = vst [vmem:[#allocation2 + $0x20c] sm:$0xf] %v2484_v41  ;;  %v2890_v32 = vshrl.u32 %v2694_v26, 16  ;;  %5323 = vmatmul.mubr.bf16.gmra.mxu0 %v8239_v37  ;;  %v7497_v37 = vpop.f32.mrf.mxu1 }
 0x1cf   : > { %v2695_v17 = vld [vmem:[#allocation3 + $0x70] sm:$0xf]  ;;  %v2696_v34 = vld [vmem:[#allocation3 + $0x74] sm:$0x1]  ;;  %v2069_v4 = vsel %vm8830_vm6, %v2064_v28, %v2068_v50  ;;  %v2893_v58 = vshll.u32 %v2694_v26, 16  ;;  %v2079_v16 = vsel %vm8830_vm6, %v2074_v6, %v2078_v38 }
 0x1d0   : > { %v2899_v39 = vshll.u32 %v2695_v17, 16  ;;  %v1864_v52 = vld [vmem:[#allocation3 + $0x6c] sm:$0xf]  ;;  %2318 = vst [vmem:[#allocation2 + $0x208] sm:$0xf] %v2069_v4  ;;  %v2487_v18 = vsel %vm8838_vm10, %v2485_v36, %v2486_v30  ;;  %v2903_v54 = vshrl.u32 %v2695_v17, 16  ;;  %v7385_v36 = vpop.f32.mrf.mxu0 }
 0x1d1   : > { %v2909_v2 = vshll.u32 %v2696_v34, 16  ;;  %v1865_v47 = vld [vmem:[#allocation3 + $0x70] sm:$0xf]  ;;  %v1866_v57 = vld [vmem:[#allocation3 + $0x74] sm:$0x1]  ;;  %v2892_v50 = vrot.slane %v2890_v32, 4 }
 0x1d2   : > { %2319 = vst [vmem:[#allocation2 + $0x22c] sm:$0xf] %v2079_v16  ;;  %2591 = vst [vmem:[#allocation2 + $0x230] sm:$0xf] %v2487_v18  ;;  %v2895_v11 = vrot.slane %v2893_v58, 5  ;;  %v2901_v21 = vrot.slane %v2899_v39, 5  ;;  %v7498_v58 = vpop.f32.mrf.mxu1 }
 0x1d3   : > { %v2081_v31 = vshrl.u32 %v1864_v52, 16  ;;  %v2360_v20 = vld [vmem:[#allocation3 + $0x6c] sm:$0xe]  ;;  %v2905_v25 = vrot.slane %v2903_v54, 4  ;;  %v2911_v24 = vrot.slane %v2909_v2, 5  ;;  %v2084_v38 = vshll.u32 %v1864_v52, 16  ;;  %v7386_v2 = vpop.f32.mrf.mxu0 }
 0x1d4   : > { %v2090_v26 = vshll.u32 %v1865_v47, 16  ;;  %v2361_v33 = vld [vmem:[#allocation3 + $0x70] sm:$0xf]  ;;  %v2896_v30 = vor.u32 %v2895_v11, %v2892_v50  ;;  %v2094_v28 = vshrl.u32 %v1865_v47, 16  ;;  %v2100_v41 = vshll.u32 %v1866_v57, 16 }
 0x1d5   : > { %v2083_v59 = vrot.slane %v2081_v31, 4  ;;  %v2362_v6 = vld [vmem:[#allocation3 + $0x74] sm:$0x1]  ;;  %v2906_v17 = vor.u32 %v2905_v25, %v2901_v21  ;;  %v2086_v34 = vrot.slane %v2084_v38, 5  ;;  %v6916_v32 = vrot.slane %v2360_v20, 9  ;;  %v7500_v31 = vpop.f32.mrf.mxu1 }
 0x1d6   : > { %v2092_v4 = vrot.slane %v2090_v26, 5  ;;  %v8241_v39 = vld [vmem:[#allocation2 + $0x1cc] ss:$36 sps:$4 sm:$0xff]   ;;  %v2897_v18 = vrot.slane %v2896_v30, 4  ;;  %v9388_v54 = vadd.f32 %v7383_v14, %v7382_v62  ;;  %v9390_v52 = vadd.f32 %v7495_v43, %v7494_v48  ;;  %v2625_v48 = vld [vmem:[#allocation3 + $0x78] sm:$0xf] }
 0x1d7   : > { %v8243_v16 = vld [vmem:[#allocation2 + $0x1c8] ss:$36 sps:$4 sm:$0xff]   ;;  %v9392_v44 = vadd.f32 %v7498_v58, %v7497_v37  ;;  %v2907_v50 = vrot.slane %v2906_v17, 4  ;;  %v2087_v47 = vor.u32 %v2086_v34, %v2083_v59  ;;  %v2096_v57 = vrot.slane %v2094_v28, 4  ;;  %5483 = vmatprep.mubr.bf16.mxu1 %v8241_v39  ;;  %2657 = vst [vmem:[#allocation2 + $0x258] sm:$0xf] %v2625_v48 }
 0x1d8   : > { %v9396_v11 = vadd.f32 %v9344_v9, %v9340_v46  ;;  %v2902_v20 = vsel %vm8830_vm6, %v2897_v18, %v2901_v21  ;;  %v2102_v25 = vrot.slane %v2100_v41, 5  ;;  %v2490_v62 = vrot.slane %v2361_v33, 5  ;;  %5484 = vmatmul.mubr.bf16.gmra.mxu1 %v8243_v16  ;;  %v9406_v9 = vpop.f32.mrf.mxu0  ;;  %v7501_v21 = vpop.f32.mrf.mxu1  ;;  %v2626_v28 = vld [vmem:[#allocation3 + $0x7c] sm:$0xf]  ;;  %v2697_v41 = vld [vmem:[#allocation3 + $0x78] sm:$0xf] }
 0x1d9   : > { %v2493_v14 = vrot.slane %v2362_v6, 5  ;;  %v8244_v43 = vld [vmem:[#allocation2 + $0x20c] ss:$36 sps:$4 sm:$0xff]   ;;  %v2912_v26 = vsel %vm8830_vm6, %v2907_v50, %v2911_v24  ;;  %3151 = vst [vmem:[#allocation2 + $0x214] sm:$0xf] %v2902_v20  ;;  %v2088_v37 = vrot.slane %v2087_v47, 4  ;;  %v2097_v30 = vor.u32 %v2096_v57, %v2092_v4 }
 0x1da   : > { %v8246_v38 = vld [vmem:[#allocation2 + $0x208] ss:$36 sps:$4 sm:$0xff]   ;;  %v9404_v46 = vadd.f32 %v9356_v22, %v9342_v63  ;;  %3152 = vst [vmem:[#allocation2 + $0x238] sm:$0xf] %v2912_v26  ;;  %v2491_v33 = vsel %vm8838_vm10, %v6916_v32, %v2490_v62  ;;  %v2492_v59 = vrot.slane %v2490_v62, 4  ;;  %v9412_v24 = vadd.f32 %v9358_v5, %v9354_v8  ;;  %5330 = vmatprep.mubr.bf16.mxu0 %v8244_v43  ;;  %v9420_v39 = vpop.f32.mrf.mxu0 }
 0x1db   : > { %v9414_v6 = vadd.f32 %v7501_v21, %v7500_v31  ;;  %v2093_v63 = vsel %vm8830_vm6, %v2088_v37, %v2092_v4  ;;  %v2098_v22 = vrot.slane %v2097_v30, 4  ;;  %2592 = vst [vmem:[#allocation2 + $0x254] sm:$0xf] %v2491_v33  ;;  %2658 = vst [vmem:[#allocation2 + $0x27c] sm:$0xf] %v2626_v28  ;;  %v2914_v58 = vshrl.u32 %v2697_v41, 16  ;;  %5331 = vmatmul.mubr.bf16.gmra.mxu0 %v8246_v38 }
 0x1dc   : > { %v2698_v17 = vld [vmem:[#allocation3 + $0x7c] sm:$0xf]  ;;  %v2699_v34 = vld [vmem:[#allocation3 + $0x80] sm:$0x1]  ;;  %v9418_v32 = vadd.f32 %v7386_v2, %v7385_v36  ;;  %2320 = vst [vmem:[#allocation2 + $0x250] sm:$0xf] %v2093_v63  ;;  %v2494_v8 = vsel %vm8838_vm10, %v2492_v59, %v2493_v14  ;;  %v9430_v20 = vpop.f32.mrf.mxu0 }
 0x1dd   : > { %v2917_v5 = vshll.u32 %v2697_v41, 16  ;;  %v2923_v16 = vshll.u32 %v2698_v17, 16  ;;  %v2927_v18 = vshrl.u32 %v2698_v17, 16  ;;  %v9424_v50 = vld [vmem:[#allocation8] ss:$0 sm:$0xff]  ;;  %v2103_v4 = vsel %vm8830_vm6, %v2098_v22, %v2102_v25  ;;  %v9439_v22 = vpop.f32.mrf.mxu1 }
 0x1de   : > { %2593 = vst [vmem:[#allocation2 + $0x278] sm:$0xf] %v2494_v8  ;;  %v2916_v47 = vrot.slane %v2914_v58, 4  ;;  %v2933_v57 = vshll.u32 %v2699_v34, 16  ;;  %v4955_v36 = vadd.f32 %v9217_v0, %v9424_v50  ;;  %v1867_v2 = vld [vmem:[#allocation3 + $0x78] sm:$0xf]  ;;  %v4958_v43 = vadd.f32 %v9328_v40, %v9424_v50  ;;  %v9437_v0 = vpop.f32.mrf.mxu0 }
 0x1df   : > { %v1868_v31 = vld [vmem:[#allocation3 + $0x7c] sm:$0xf]  ;;  %2321 = vst [vmem:[#allocation2 + $0x274] sm:$0xf] %v2103_v4  ;;  %v2919_v62 = vrot.slane %v2917_v5, 5  ;;  %v2925_v14 = vrot.slane %v2923_v16, 5  ;;  %v4966_v8 = vadd.f32 %v9348_v60, %v9424_v50 }
 0x1e0   : > { %v2929_v48 = vrot.slane %v2927_v18, 4  ;;  %v1869_v38 = vld [vmem:[#allocation3 + $0x80] sm:$0x1]  ;;  %v2935_v26 = vrot.slane %v2933_v57, 5  ;;  %v9435_v25 = vadd.f32 %v9243_v27, %v4955_v36  ;;  %v2105_v37 = vshrl.u32 %v1867_v2, 16  ;;  %v9448_v57 = vpop.f32.mrf.mxu0 }
 0x1e1   : > { %v2108_v30 = vshll.u32 %v1867_v2, 16  ;;  %v2363_v21 = vld [vmem:[#allocation3 + $0x78] sm:$0xe]  ;;  %v2920_v33 = vor.u32 %v2919_v62, %v2916_v47  ;;  %v2114_v28 = vshll.u32 %v1868_v31, 16  ;;  %v2118_v41 = vshrl.u32 %v1868_v31, 16 }
 0x1e2   : > { %11229 = vst [vmem:[#allocation17_spill] sm:$0xff] %v9435_v25  ;;  %v2930_v59 = vor.u32 %v2929_v48, %v2925_v14  ;;  %v2364_v63 = vld [vmem:[#allocation3 + $0x7c] sm:$0xf]  ;;  %v8247_v17 = vld [vmem:[#allocation2 + $0x214] ss:$36 sps:$4 sm:$0xff]   ;;  %v2107_v40 = vrot.slane %v2105_v37, 4  ;;  %v9442_v58 = vadd.f32 %v9332_v56, %v4958_v43  ;;  %v4963_v27 = vadd.f32 %v9259_v12, %v9424_v50 }
 0x1e3   : > { %v8249_v34 = vld [vmem:[#allocation2 + $0x210] ss:$36 sps:$4 sm:$0xff]   ;;  %v2921_v5 = vrot.slane %v2920_v33, 4  ;;  %v2110_v18 = vrot.slane %v2108_v30, 5  ;;  %v2116_v4 = vrot.slane %v2114_v28, 5  ;;  %5491 = vmatprep.mubr.bf16.mxu1 %v8247_v17  ;;  %v2120_v36 = vrot.slane %v2118_v41, 4  ;;  %v9454_v30 = vpop.f32.mrf.mxu1 }
 0x1e4   : > { %11230 = vst [vmem:[#allocation18_spill] sm:$0xff] %v9442_v58  ;;  %v2931_v16 = vrot.slane %v2930_v59, 4  ;;  %v2365_v47 = vld [vmem:[#allocation3 + $0x80] sm:$0x1]  ;;  %v2124_v2 = vshll.u32 %v1869_v38, 16  ;;  %v6917_v31 = vrot.slane %v2363_v21, 9  ;;  %5492 = vmatmul.mubr.bf16.gmra.mxu1 %v8249_v34  ;;  %v9462_v34 = vadd.f32 %v9352_v61, %v4966_v8 }
 0x1e5   : > { %v2497_v62 = vrot.slane %v2364_v63, 5  ;;  %v2926_v56 = vsel %vm8830_vm6, %v2921_v5, %v2925_v14  ;;  %v2111_v60 = vor.u32 %v2110_v18, %v2107_v40  ;;  %v2500_v48 = vrot.slane %v2365_v47, 5  ;;  %v2627_v43 = vld [vmem:[#allocation3 + $0x84] sm:$0xf]  ;;  %v2628_v37 = vld [vmem:[#allocation3 + $0x88] sm:$0xf]  ;;  %v9466_v5 = vpop.f32.mrf.mxu0 }
 0x1e6   : > { %v2936_v12 = vsel %vm8830_vm6, %v2931_v16, %v2935_v26  ;;  %v8250_v33 = vld [vmem:[#allocation2 + $0x254] ss:$36 sps:$4 sm:$0xff]   ;;  %3153 = vst [vmem:[#allocation2 + $0x25c] sm:$0xf] %v2926_v56  ;;  %v2121_v38 = vor.u32 %v2120_v36, %v2116_v4  ;;  %v2126_v21 = vrot.slane %v2124_v2, 5  ;;  %v9459_v14 = vadd.f32 %v9263_v19, %v4963_v27  ;;  %11232 = vst [vmem:[#allocation20_spill] sm:$0xff] %v9462_v34 }
 0x1e7   : > { %v8252_v59 = vld [vmem:[#allocation2 + $0x250] ss:$36 sps:$4 sm:$0xff]   ;;  %3154 = vst [vmem:[#allocation2 + $0x280] sm:$0xf] %v2936_v12  ;;  %v2498_v28 = vsel %vm8838_vm10, %v6917_v31, %v2497_v62  ;;  %2659 = vst [vmem:[#allocation2 + $0x2a0] sm:$0xf] %v2627_v43  ;;  %v4971_v40 = vadd.f32 %v9281_v3, %v9424_v50  ;;  %5338 = vmatprep.mubr.bf16.mxu0 %v8250_v33  ;;  %v9472_v3 = vpop.f32.mrf.mxu1 }
 0x1e8   : > { %2660 = vst [vmem:[#allocation2 + $0x2c4] sm:$0xf] %v2628_v37  ;;  %11231 = vst [vmem:[#allocation19_spill] sm:$0xff] %v9459_v14  ;;  %v2112_v26 = vrot.slane %v2111_v60, 4  ;;  %v2499_v41 = vrot.slane %v2497_v62, 4  ;;  %v2122_v16 = vrot.slane %v2121_v38, 4  ;;  %5339 = vmatmul.mubr.bf16.gmra.mxu0 %v8252_v59 }
 0x1e9   : > { %2594 = vst [vmem:[#allocation2 + $0x29c] sm:$0xf] %v2498_v28  ;;  %v2700_v63 = vld [vmem:[#allocation3 + $0x84] sm:$0xf]  ;;  %v2701_v17 = vld [vmem:[#allocation3 + $0x88] sm:$0xf]  ;;  %v9476_v28 = vpop.f32.mrf.mxu0 }
 0x1ea   : > { %v2702_v18 = vld [vmem:[#allocation3 + $0x8c] sm:$0x1]  ;;  %v2938_v47 = vshrl.u32 %v2700_v63, 16  ;;  %v2941_v36 = vshll.u32 %v2700_v63, 16  ;;  %v2947_v19 = vshll.u32 %v2701_v17, 16  ;;  %v2117_v27 = vsel %vm8830_vm6, %v2112_v26, %v2116_v4  ;;  %v9478_v26 = vpop.f32.mrf.mxu1 }
 0x1eb   : > { %v2501_v2 = vsel %vm8838_vm10, %v2499_v41, %v2500_v48  ;;  %v2951_v61 = vshrl.u32 %v2701_v17, 16  ;;  %v2957_v8 = vshll.u32 %v2702_v18, 16  ;;  %v1870_v31 = vld [vmem:[#allocation3 + $0x84] sm:$0xf]  ;;  %v1871_v62 = vld [vmem:[#allocation3 + $0x88] sm:$0xf]  ;;  %v2127_v56 = vsel %vm8830_vm6, %v2122_v16, %v2126_v21  ;;  %v9485_v34 = vpop.f32.mrf.mxu0 }
 0x1ec   : > { %2322 = vst [vmem:[#allocation2 + $0x298] sm:$0xf] %v2117_v27  ;;  %2595 = vst [vmem:[#allocation2 + $0x2c0] sm:$0xf] %v2501_v2  ;;  %v2940_v12 = vrot.slane %v2938_v47, 4  ;;  %v2943_v60 = vrot.slane %v2941_v36, 5  ;;  %v9481_v27 = vadd.f32 %v9291_v42, %v4971_v40  ;;  %v9483_v2 = vpop.f32.mrf.mxu1 }
 0x1ed   : > { %v2949_v43 = vrot.slane %v2947_v19, 5  ;;  %v1872_v37 = vld [vmem:[#allocation3 + $0x8c] sm:$0x1]  ;;  %2323 = vst [vmem:[#allocation2 + $0x2bc] sm:$0xf] %v2127_v56  ;;  %v2953_v4 = vrot.slane %v2951_v61, 4 }
 0x1ee   : > { %v2959_v33 = vrot.slane %v2957_v8, 5  ;;  %v2129_v59 = vshrl.u32 %v1870_v31, 16  ;;  %v2132_v48 = vshll.u32 %v1870_v31, 16  ;;  %v2366_v38 = vld [vmem:[#allocation3 + $0x84] sm:$0xe]  ;;  %v2944_v41 = vor.u32 %v2943_v60, %v2940_v12  ;;  %11233 = vst [vmem:[#allocation21_spill] sm:$0xff] %v9481_v27 }
 0x1ef   : > { %v2138_v63 = vshll.u32 %v1871_v62, 16  ;;  %v2142_v17 = vshrl.u32 %v1871_v62, 16  ;;  %v2148_v21 = vshll.u32 %v1872_v37, 16  ;;  %v2367_v16 = vld [vmem:[#allocation3 + $0x88] sm:$0xf]  ;;  %v2954_v47 = vor.u32 %v2953_v4, %v2949_v43  ;;  %v9487_v4 = vpop.f32.mrf.mxu1 }
 0x1f0   : > { %v8254_v18 = vld [vmem:[#allocation2 + $0x25c] ss:$36 sps:$4 sm:$0xff]   ;;  %v2131_v36 = vrot.slane %v2129_v59, 4  ;;  %v2134_v19 = vrot.slane %v2132_v48, 5  ;;  %v2945_v8 = vrot.slane %v2944_v41, 4  ;;  %v6918_v37 = vrot.slane %v2366_v38, 9 }
 0x1f1   : > { %v8256_v61 = vld [vmem:[#allocation2 + $0x258] ss:$36 sps:$4 sm:$0xff]   ;;  %v2140_v31 = vrot.slane %v2138_v63, 5  ;;  %v2144_v56 = vrot.slane %v2142_v17, 4  ;;  %v2150_v7 = vrot.slane %v2148_v21, 5  ;;  %5499 = vmatprep.mubr.bf16.mxu1 %v8254_v18  ;;  %v2955_v12 = vrot.slane %v2954_v47, 4 }
 0x1f2   : > { %v2135_v60 = vor.u32 %v2134_v19, %v2131_v36  ;;  %v2368_v62 = vld [vmem:[#allocation3 + $0x8c] sm:$0x1]  ;;  %v2504_v1 = vrot.slane %v2367_v16, 5  ;;  %5500 = vmatmul.mubr.bf16.gmra.mxu1 %v8256_v61  ;;  %v2950_v42 = vsel %vm8830_vm6, %v2945_v8, %v2949_v43  ;;  %v4974_v48 = vadd.f32 %v9364_v29, %v9424_v50  ;;  %v2629_v21 = vld [vmem:[#allocation3 + $0x90] sm:$0xf]  ;;  %v9504_v36 = vpop.f32.mrf.mxu1 }
 0x1f3   : > { %v2145_v40 = vor.u32 %v2144_v56, %v2140_v31  ;;  %v2507_v59 = vrot.slane %v2368_v62, 5  ;;  %v2960_v41 = vsel %vm8830_vm6, %v2955_v12, %v2959_v33  ;;  %3155 = vst [vmem:[#allocation2 + $0x2a4] sm:$0xf] %v2950_v42  ;;  %v8257_v16 = vld [vmem:[#allocation2 + $0x29c] ss:$36 sps:$4 sm:$0xff]   ;;  %v4979_v29 = vadd.f32 %v9311_v10, %v9424_v50  ;;  %v9514_v12 = vpop.f32.mrf.mxu0 }
 0x1f4   : > { %v2136_v63 = vrot.slane %v2135_v60, 4  ;;  %v2505_v38 = vsel %vm8838_vm10, %v6918_v37, %v2504_v1  ;;  %v2506_v17 = vrot.slane %v2504_v1, 4  ;;  %v8259_v18 = vld [vmem:[#allocation2 + $0x298] ss:$36 sps:$4 sm:$0xff]   ;;  %3156 = vst [vmem:[#allocation2 + $0x2c8] sm:$0xf] %v2960_v41  ;;  %v9498_v43 = vadd.f32 %v9372_v23, %v4974_v48  ;;  %5346 = vmatprep.mubr.bf16.mxu0 %v8257_v16  ;;  %v9518_v42 = vpop.f32.mrf.mxu1 }
 0x1f5   : > { %v2146_v47 = vrot.slane %v2145_v40, 4  ;;  %2596 = vst [vmem:[#allocation2 + $0x2e4] sm:$0xf] %v2505_v38  ;;  %2661 = vst [vmem:[#allocation2 + $0x2e8] sm:$0xf] %v2629_v21  ;;  %v4982_v33 = vadd.f32 %v9376_v51, %v9424_v50  ;;  %v4987_v23 = vadd.f32 %v9324_v49, %v9424_v50  ;;  %v4990_v10 = vadd.f32 %v9404_v46, %v9424_v50  ;;  %v9526_v41 = vpop.f32.mrf.mxu0 }
 0x1f6   : > { %11234 = vst [vmem:[#allocation22_spill] sm:$0xff] %v9498_v43  ;;  %v2141_v1 = vsel %vm8830_vm6, %v2136_v63, %v2140_v31  ;;  %v2508_v19 = vsel %vm8838_vm10, %v2506_v17, %v2507_v59  ;;  %v2630_v61 = vld [vmem:[#allocation3 + $0x94] sm:$0xf]  ;;  %v2703_v8 = vld [vmem:[#allocation3 + $0x90] sm:$0xf]  ;;  %5347 = vmatmul.mubr.bf16.gmra.mxu0 %v8259_v18  ;;  %v9521_v48 = vadd.f32 %v9313_v13, %v4979_v29 }
 0x1f7   : > { %v2704_v56 = vld [vmem:[#allocation3 + $0x94] sm:$0xf]  ;;  %v2151_v51 = vsel %vm8830_vm6, %v2146_v47, %v2150_v7  ;;  %2324 = vst [vmem:[#allocation2 + $0x2e0] sm:$0xf] %v2141_v1  ;;  %2597 = vst [vmem:[#allocation2 + $0x308] sm:$0xf] %v2508_v19  ;;  %v9524_v7 = vadd.f32 %v9380_v35, %v4982_v33  ;;  %v9528_v47 = vpop.f32.mrf.mxu1 }
 0x1f8   : > { %2662 = vst [vmem:[#allocation2 + $0x30c] sm:$0xf] %v2630_v61  ;;  %v2705_v31 = vld [vmem:[#allocation3 + $0x98] sm:$0x1]  ;;  %v2962_v60 = vshrl.u32 %v2703_v8, 16  ;;  %v2965_v62 = vshll.u32 %v2703_v8, 16 }
 0x1f9   : > { %v2971_v37 = vshll.u32 %v2704_v56, 16  ;;  %2325 = vst [vmem:[#allocation2 + $0x304] sm:$0xf] %v2151_v51  ;;  %v2975_v49 = vshrl.u32 %v2704_v56, 16  ;;  %v2981_v40 = vshll.u32 %v2705_v31, 16  ;;  %11235 = vst [vmem:[#allocation23_spill] sm:$0xff] %v9521_v48  ;;  %v9530_v56 = vpop.f32.mrf.mxu0  ;;  %v9532_v31 = vpop.f32.mrf.mxu1  ;;  %v9535_v48 = vadd.f32 %v9396_v11, %v4987_v23 }
 0x1fa   : > { %v1873_v46 = vld [vmem:[#allocation3 + $0x90] sm:$0xf]  ;;  %v1874_v59 = vld [vmem:[#allocation3 + $0x94] sm:$0xf]  ;;  %11236 = vst [vmem:[#allocation24_spill] sm:$0xff] %v9524_v7  ;;  %v2964_v63 = vrot.slane %v2962_v60, 4 }
 0x1fb   : > { %v2967_v38 = vrot.slane %v2965_v62, 5  ;;  %v2973_v17 = vrot.slane %v2971_v37, 5  ;;  %v1875_v21 = vld [vmem:[#allocation3 + $0x98] sm:$0x1]  ;;  %v2153_v16 = vshrl.u32 %v1873_v46, 16  ;;  %v2977_v18 = vrot.slane %v2975_v49, 4 }
 0x1fc   : > { %v2983_v1 = vrot.slane %v2981_v40, 5  ;;  %v2156_v19 = vshll.u32 %v1873_v46, 16  ;;  %v2162_v61 = vshll.u32 %v1874_v59, 16  ;;  %v2369_v8 = vld [vmem:[#allocation3 + $0x90] sm:$0xe]  ;;  %v2166_v35 = vshrl.u32 %v1874_v59, 16  ;;  %v9540_v40 = vpop.f32.mrf.mxu0 }
 0x1fd   : > { %v2968_v13 = vor.u32 %v2967_v38, %v2964_v63  ;;  %v2155_v29 = vrot.slane %v2153_v16, 4  ;;  %v2172_v33 = vshll.u32 %v1875_v21, 16  ;;  %v2370_v51 = vld [vmem:[#allocation3 + $0x94] sm:$0xf]  ;;  %v8260_v60 = vld [vmem:[#allocation2 + $0x2a4] ss:$36 sps:$4 sm:$0xff]   ;;  %v2978_v37 = vor.u32 %v2977_v18, %v2973_v17 }
 0x1fe   : > { %v8262_v62 = vld [vmem:[#allocation2 + $0x2a0] ss:$36 sps:$4 sm:$0xff]   ;;  %v2158_v7 = vrot.slane %v2156_v19, 5  ;;  %11237 = vst [vmem:[#allocation25_spill] sm:$0xff] %v9535_v48  ;;  %v9538_v49 = vadd.f32 %v9412_v24, %v4990_v10  ;;  %v2164_v63 = vrot.slane %v2162_v61, 5  ;;  %v2168_v38 = vrot.slane %v2166_v35, 4  ;;  %5507 = vmatprep.mubr.bf16.mxu1 %v8260_v60  ;;  %v9542_v19 = vpop.f32.mrf.mxu1  ;;  %v9548_v35 = vpop.f32.mrf.mxu0 }
 0x1ff   : > { %v2969_v46 = vrot.slane %v2968_v13, 4  ;;  %v2174_v59 = vrot.slane %v2172_v33, 5  ;;  %v2371_v21 = vld [vmem:[#allocation3 + $0x98] sm:$0x1]  ;;  %v2979_v16 = vrot.slane %v2978_v37, 4  ;;  %v6919_v27 = vrot.slane %v2369_v8, 9  ;;  %5508 = vmatmul.mubr.bf16.gmra.mxu1 %v8262_v62 }
 0x200   : > { %11238 = vst [vmem:[#allocation26_spill] sm:$0xff] %v9538_v49  ;;  %v2159_v43 = vor.u32 %v2158_v7, %v2155_v29  ;;  %v2511_v14 = vrot.slane %v2370_v51, 5  ;;  %v2631_v18 = vld [vmem:[#allocation3 + $0x9c] sm:$0xf]  ;;  %v8263_v11 = vld [vmem:[#allocation2 + $0x2e4] ss:$36 sps:$4 sm:$0xff]   ;;  %v2169_v10 = vor.u32 %v2168_v38, %v2164_v63  ;;  %v4995_v61 = vadd.f32 %v9388_v54, %v9424_v50 }
 0x201   : > { %v8265_v23 = vld [vmem:[#allocation2 + $0x2e0] ss:$36 sps:$4 sm:$0xff]   ;;  %v2974_v24 = vsel %vm8830_vm6, %v2969_v46, %v2973_v17  ;;  %v2514_v13 = vrot.slane %v2371_v21, 5  ;;  %2663 = vst [vmem:[#allocation2 + $0x330] sm:$0xf] %v2631_v18  ;;  %v2984_v7 = vsel %vm8830_vm6, %v2979_v16, %v2983_v1  ;;  %5354 = vmatprep.mubr.bf16.mxu0 %v8263_v11  ;;  %v9559_v1 = vpop.f32.mrf.mxu0  ;;  %v9565_v11 = vpop.f32.mrf.mxu1 }
 0x202   : > { %3157 = vst [vmem:[#allocation2 + $0x2ec] sm:$0xf] %v2974_v24  ;;  %v2160_v8 = vrot.slane %v2159_v43, 4  ;;  %v2512_v29 = vsel %vm8838_vm10, %v6919_v27, %v2511_v14  ;;  %v2513_v33 = vrot.slane %v2511_v14, 4  ;;  %v2632_v51 = vld [vmem:[#allocation3 + $0xa0] sm:$0xf]  ;;  %v9555_v46 = vadd.f32 %v9390_v52, %v4995_v61  ;;  %5355 = vmatmul.mubr.bf16.gmra.mxu0 %v8265_v23 }
 0x203   : > { %v2706_v60 = vld [vmem:[#allocation3 + $0x9c] sm:$0xf]  ;;  %3158 = vst [vmem:[#allocation2 + $0x310] sm:$0xf] %v2984_v7  ;;  %v2170_v17 = vrot.slane %v2169_v10, 4  ;;  %v4998_v43 = vadd.f32 %v9418_v32, %v9424_v50  ;;  %v9569_v61 = vpop.f32.mrf.mxu0 }
 0x204   : > { %2598 = vst [vmem:[#allocation2 + $0x32c] sm:$0xf] %v2512_v29  ;;  %2664 = vst [vmem:[#allocation2 + $0x354] sm:$0xf] %v2632_v51  ;;  %v2707_v62 = vld [vmem:[#allocation3 + $0xa0] sm:$0xf]  ;;  %v2165_v14 = vsel %vm8830_vm6, %v2160_v8, %v2164_v63  ;;  %v2515_v27 = vsel %vm8838_vm10, %v2513_v33, %v2514_v13 }
 0x205   : > { %v2708_v54 = vld [vmem:[#allocation3 + $0xa4] sm:$0x1]  ;;  %v2986_v37 = vshrl.u32 %v2706_v60, 16  ;;  %11239 = vst [vmem:[#allocation27_spill] sm:$0xff] %v9555_v46  ;;  %v2989_v38 = vshll.u32 %v2706_v60, 16  ;;  %v2995_v21 = vshll.u32 %v2707_v62, 16  ;;  %v2175_v52 = vsel %vm8830_vm6, %v2170_v17, %v2174_v59  ;;  %v9571_v59 = vpop.f32.mrf.mxu0 }
 0x206   : > { %v1876_v16 = vld [vmem:[#allocation3 + $0x9c] sm:$0xf]  ;;  %v1877_v18 = vld [vmem:[#allocation3 + $0xa0] sm:$0xf]  ;;  %2326 = vst [vmem:[#allocation2 + $0x328] sm:$0xf] %v2165_v14 }
 0x207   : > { %2599 = vst [vmem:[#allocation2 + $0x350] sm:$0xf] %v2515_v27  ;;  %v2988_v32 = vrot.slane %v2986_v37, 4  ;;  %v2999_v24 = vshrl.u32 %v2707_v62, 16  ;;  %v3005_v23 = vshll.u32 %v2708_v54, 16  ;;  %v2991_v63 = vrot.slane %v2989_v38, 5  ;;  %v9573_v27 = vpop.f32.mrf.mxu1 }
 0x208   : > { %v1878_v10 = vld [vmem:[#allocation3 + $0xa4] sm:$0x1]  ;;  %2327 = vst [vmem:[#allocation2 + $0x34c] sm:$0xf] %v2175_v52  ;;  %v2997_v13 = vrot.slane %v2995_v21, 5  ;;  %v2177_v7 = vshrl.u32 %v1876_v16, 16 }
 0x209   : > { %v2180_v8 = vshll.u32 %v1876_v16, 16  ;;  %v2372_v29 = vld [vmem:[#allocation3 + $0x9c] sm:$0xe]  ;;  %v3001_v33 = vrot.slane %v2999_v24, 4  ;;  %v3007_v51 = vrot.slane %v3005_v23, 5  ;;  %v2186_v60 = vshll.u32 %v1877_v18, 16 }
 0x20a   : > { %v2190_v46 = vshrl.u32 %v1877_v18, 16  ;;  %v2373_v49 = vld [vmem:[#allocation3 + $0xa0] sm:$0xf]  ;;  %v2992_v17 = vor.u32 %v2991_v63, %v2988_v32  ;;  %v2179_v37 = vrot.slane %v2177_v7, 4  ;;  %v2196_v54 = vshll.u32 %v1878_v10, 16  ;;  %v9580_v63 = vpop.f32.mrf.mxu0 }
 0x20b   : > { %v2182_v62 = vrot.slane %v2180_v8, 5  ;;  %v2374_v14 = vld [vmem:[#allocation3 + $0xa4] sm:$0x1]  ;;  %v3002_v52 = vor.u32 %v3001_v33, %v2997_v13  ;;  %v2188_v38 = vrot.slane %v2186_v60, 5  ;;  %v6920_v48 = vrot.slane %v2372_v29, 9 }
 0x20c   : > { %v2192_v21 = vrot.slane %v2190_v46, 4  ;;  %v8267_v16 = vld [vmem:[#allocation2 + $0x2ec] ss:$36 sps:$4 sm:$0xff]   ;;  %v2993_v24 = vrot.slane %v2992_v17, 4  ;;  %v9576_v18 = vadd.f32 %v9392_v44, %v4998_v43  ;;  %v7390_v32 = vadd.f32 %v9420_v39, %v9406_v9  ;;  %v2633_v60 = vld [vmem:[#allocation3 + $0xa8] sm:$0xf]  ;;  %v9585_v44 = vpop.f32.mrf.mxu1 }
 0x20d   : > { %v8269_v58 = vld [vmem:[#allocation2 + $0x2e8] ss:$36 sps:$4 sm:$0xff]   ;;  %v2183_v23 = vor.u32 %v2182_v62, %v2179_v37  ;;  %v3003_v10 = vrot.slane %v3002_v52, 4  ;;  %v2198_v8 = vrot.slane %v2196_v54, 5  ;;  %v2518_v25 = vrot.slane %v2373_v49, 5  ;;  %5515 = vmatprep.mubr.bf16.mxu1 %v8267_v16 }
 0x20e   : > { %v2193_v7 = vor.u32 %v2192_v21, %v2188_v38  ;;  %v2998_v46 = vsel %vm8830_vm6, %v2993_v24, %v2997_v13  ;;  %v2521_v33 = vrot.slane %v2374_v14, 5  ;;  %v5003_v17 = vadd.f32 %v7390_v32, %v9424_v50  ;;  %5516 = vmatmul.mubr.bf16.gmra.mxu1 %v8269_v58  ;;  %v8270_v43 = vld [vmem:[#allocation2 + $0x32c] ss:$36 sps:$4 sm:$0xff]   ;;  %2665 = vst [vmem:[#allocation2 + $0x378] sm:$0xf] %v2633_v60  ;;  %v9600_v21 = vpop.f32.mrf.mxu0  ;;  %v9607_v32 = vpop.f32.mrf.mxu1 }
 0x20f   : > { %v2184_v29 = vrot.slane %v2183_v23, 4  ;;  %v8272_v9 = vld [vmem:[#allocation2 + $0x328] ss:$36 sps:$4 sm:$0xff]   ;;  %v3008_v39 = vsel %vm8830_vm6, %v3003_v10, %v3007_v51  ;;  %3159 = vst [vmem:[#allocation2 + $0x334] sm:$0xf] %v2998_v46  ;;  %v2519_v49 = vsel %vm8838_vm10, %v6920_v48, %v2518_v25  ;;  %v7393_v13 = vadd.f32 %v9437_v0, %v9430_v20  ;;  %5362 = vmatprep.mubr.bf16.mxu0 %v8270_v43 }
 0x210   : > { %v2194_v37 = vrot.slane %v2193_v7, 4  ;;  %3160 = vst [vmem:[#allocation2 + $0x358] sm:$0xf] %v3008_v39  ;;  %v2520_v54 = vrot.slane %v2518_v25, 4  ;;  %2600 = vst [vmem:[#allocation2 + $0x374] sm:$0xf] %v2519_v49  ;;  %v9596_v52 = vadd.f32 %v9414_v6, %v5003_v17  ;;  %v7505_v51 = vadd.f32 %v9454_v30, %v9439_v22  ;;  %5363 = vmatmul.mubr.bf16.gmra.mxu0 %v8272_v9  ;;  %v9615_v49 = vpop.f32.mrf.mxu1 }
 0x211   : > { %v2189_v62 = vsel %vm8830_vm6, %v2184_v29, %v2188_v38  ;;  %v2634_v58 = vld [vmem:[#allocation3 + $0xac] sm:$0xf]  ;;  %v2709_v14 = vld [vmem:[#allocation3 + $0xa8] sm:$0xf]  ;;  %v2711_v48 = vld [vmem:[#allocation3 + $0xb0] sm:$0x1]  ;;  %v5006_v16 = vadd.f32 %v7393_v13, %v9424_v50  ;;  %v7396_v60 = vadd.f32 %v9466_v5, %v9448_v57 }
 0x212   : > { %v2199_v20 = vsel %vm8830_vm6, %v2194_v37, %v2198_v8  ;;  %2328 = vst [vmem:[#allocation2 + $0x370] sm:$0xf] %v2189_v62  ;;  %2666 = vst [vmem:[#allocation2 + $0x39c] sm:$0xf] %v2634_v58  ;;  %v2710_v0 = vld [vmem:[#allocation3 + $0xac] sm:$0xf]  ;;  %v2522_v6 = vsel %vm8838_vm10, %v2520_v54, %v2521_v33  ;;  %v9613_v37 = vpop.f32.mrf.mxu0  ;;  %v9617_v57 = vpop.f32.mrf.mxu1 }
 0x213   : > { %v3010_v25 = vshrl.u32 %v2709_v14, 16  ;;  %v3013_v38 = vshll.u32 %v2709_v14, 16  ;;  %2329 = vst [vmem:[#allocation2 + $0x394] sm:$0xf] %v2199_v20  ;;  %v3019_v22 = vshll.u32 %v2710_v0, 16  ;;  %v3023_v30 = vshrl.u32 %v2710_v0, 16 }
 0x214   : > { %v3029_v24 = vshll.u32 %v2711_v48, 16  ;;  %v1879_v23 = vld [vmem:[#allocation3 + $0xa8] sm:$0xf]  ;;  %2601 = vst [vmem:[#allocation2 + $0x398] sm:$0xf] %v2522_v6  ;;  %v9609_v29 = vadd.f32 %v7505_v51, %v5006_v16  ;;  %v5011_v6 = vadd.f32 %v7396_v60, %v9424_v50 }
 0x215   : > { %v3012_v10 = vrot.slane %v3010_v25, 4  ;;  %v3015_v7 = vrot.slane %v3013_v38, 5  ;;  %v1880_v8 = vld [vmem:[#allocation3 + $0xac] sm:$0xf]  ;;  %v1881_v46 = vld [vmem:[#allocation3 + $0xb0] sm:$0x1] }
 0x216   : > { %11240 = vst [vmem:[#allocation28_spill] sm:$0xff] %v9609_v29  ;;  %v3021_v17 = vrot.slane %v3019_v22, 5  ;;  %v3025_v43 = vrot.slane %v3023_v30, 4  ;;  %v3031_v9 = vrot.slane %v3029_v24, 5  ;;  %v2201_v33 = vshrl.u32 %v1879_v23, 16 }
 0x217   : > { %v2375_v39 = vld [vmem:[#allocation3 + $0xa8] sm:$0xe]  ;;  %v3016_v13 = vor.u32 %v3015_v7, %v3012_v10  ;;  %v2204_v62 = vshll.u32 %v1879_v23, 16  ;;  %v2210_v54 = vshll.u32 %v1880_v8, 16  ;;  %v2214_v58 = vshrl.u32 %v1880_v8, 16  ;;  %v9624_v8 = vpop.f32.mrf.mxu0 }
 0x218   : > { %v2376_v14 = vld [vmem:[#allocation3 + $0xac] sm:$0xf]  ;;  %v3026_v20 = vor.u32 %v3025_v43, %v3021_v17  ;;  %v2203_v51 = vrot.slane %v2201_v33, 4  ;;  %v2220_v0 = vshll.u32 %v1881_v46, 16  ;;  %v2377_v48 = vld [vmem:[#allocation3 + $0xb0] sm:$0x1]  ;;  %v7508_v22 = vadd.f32 %v9478_v26, %v9472_v3  ;;  %v9626_v46 = vpop.f32.mrf.mxu1 }
 0x219   : > { %v6921_v25 = vrot.slane %v2375_v39, 9  ;;  %v8273_v5 = vld [vmem:[#allocation2 + $0x334] ss:$36 sps:$4 sm:$0xff]   ;;  %v3017_v16 = vrot.slane %v3016_v13, 4  ;;  %v7399_v30 = vadd.f32 %v9485_v34, %v9476_v28  ;;  %v2206_v23 = vrot.slane %v2204_v62, 5 }
 0x21a   : > { %v8275_v38 = vld [vmem:[#allocation2 + $0x330] ss:$36 sps:$4 sm:$0xff]   ;;  %v3027_v24 = vrot.slane %v3026_v20, 4  ;;  %v2212_v10 = vrot.slane %v2210_v54, 5  ;;  %v2216_v7 = vrot.slane %v2214_v58, 4  ;;  %5523 = vmatprep.mubr.bf16.mxu1 %v8273_v5  ;;  %v2222_v33 = vrot.slane %v2220_v0, 5  ;;  %v9639_v5 = vpop.f32.mrf.mxu1 }
 0x21b   : > { %v3022_v43 = vsel %vm8830_vm6, %v3017_v16, %v3021_v17  ;;  %v2525_v60 = vrot.slane %v2376_v14, 5  ;;  %v2528_v39 = vrot.slane %v2377_v48, 5  ;;  %v2635_v13 = vld [vmem:[#allocation3 + $0xb4] sm:$0xf]  ;;  %5524 = vmatmul.mubr.bf16.gmra.mxu1 %v8275_v38  ;;  %v2207_v28 = vor.u32 %v2206_v23, %v2203_v51  ;;  %v2636_v14 = vld [vmem:[#allocation3 + $0xb8] sm:$0xf] }
 0x21c   : > { %v8276_v3 = vld [vmem:[#allocation2 + $0x370] ss:$36 sps:$4 sm:$0xff]   ;;  %v3032_v34 = vsel %vm8830_vm6, %v3027_v24, %v3031_v9  ;;  %3161 = vst [vmem:[#allocation2 + $0x37c] sm:$0xf] %v3022_v43  ;;  %v2217_v62 = vor.u32 %v2216_v7, %v2212_v10  ;;  %2667 = vst [vmem:[#allocation2 + $0x3c0] sm:$0xf] %v2635_v13  ;;  %v9632_v54 = vadd.f32 %v7508_v22, %v5011_v6  ;;  %v9645_v22 = vpop.f32.mrf.mxu0  ;;  %v9649_v7 = vpop.f32.mrf.mxu1 }
 0x21d   : > { %v8278_v26 = vld [vmem:[#allocation2 + $0x374] ss:$36 sps:$4 sm:$0xff]   ;;  %3162 = vst [vmem:[#allocation2 + $0x3a0] sm:$0xf] %v3032_v34  ;;  %v2526_v17 = vsel %vm8838_vm10, %v6921_v25, %v2525_v60  ;;  %v2527_v58 = vrot.slane %v2525_v60, 4  ;;  %v5014_v0 = vadd.f32 %v7399_v30, %v9424_v50  ;;  %v7511_v48 = vadd.f32 %v9487_v4, %v9483_v2 }
 0x21e   : > { %11241 = vst [vmem:[#allocation29_spill] sm:$0xff] %v9632_v54  ;;  %v2712_v20 = vld [vmem:[#allocation3 + $0xb4] sm:$0xf]  ;;  %5370 = vmatprep.mubr.bf16.mxu0 %v8278_v26  ;;  %v2208_v9 = vrot.slane %v2207_v28, 4  ;;  %v2218_v51 = vrot.slane %v2217_v62, 4  ;;  %v7402_v25 = vadd.f32 %v9526_v41, %v9514_v12  ;;  %v7514_v6 = vadd.f32 %v9518_v42, %v9504_v36  ;;  %v9655_v13 = vpop.f32.mrf.mxu0 }
 0x21f   : > { %2602 = vst [vmem:[#allocation2 + $0x3bc] sm:$0xf] %v2526_v17  ;;  %2668 = vst [vmem:[#allocation2 + $0x3e4] sm:$0xf] %v2636_v14  ;;  %v2713_v38 = vld [vmem:[#allocation3 + $0xb8] sm:$0xf]  ;;  %5371 = vmatmul.mubr.bf16.gmra.mxu0 %v8276_v3  ;;  %v2529_v2 = vsel %vm8838_vm10, %v2527_v58, %v2528_v39 }
 0x220   : > { %v2714_v16 = vld [vmem:[#allocation3 + $0xbc] sm:$0x1]  ;;  %v3034_v4 = vshrl.u32 %v2712_v20, 16  ;;  %v3037_v30 = vshll.u32 %v2712_v20, 16  ;;  %v3043_v24 = vshll.u32 %v2713_v38, 16  ;;  %v2213_v43 = vsel %vm8830_vm6, %v2208_v9, %v2212_v10 }
 0x221   : > { %v1882_v23 = vld [vmem:[#allocation3 + $0xb4] sm:$0xf]  ;;  %v2223_v12 = vsel %vm8830_vm6, %v2218_v51, %v2222_v33  ;;  %2603 = vst [vmem:[#allocation2 + $0x3e0] sm:$0xf] %v2529_v2  ;;  %v3047_v36 = vshrl.u32 %v2713_v38, 16  ;;  %v3053_v42 = vshll.u32 %v2714_v16, 16  ;;  %v9657_v33 = vpop.f32.mrf.mxu0  ;;  %v9659_v2 = vpop.f32.mrf.mxu1 }
 0x222   : > { %v1883_v41 = vld [vmem:[#allocation3 + $0xb8] sm:$0xf]  ;;  %v1884_v60 = vld [vmem:[#allocation3 + $0xbc] sm:$0x1]  ;;  %2330 = vst [vmem:[#allocation2 + $0x3b8] sm:$0xf] %v2213_v43 }
 0x223   : > { %2331 = vst [vmem:[#allocation2 + $0x3dc] sm:$0xf] %v2223_v12  ;;  %v3036_v39 = vrot.slane %v3034_v4, 4  ;;  %v3039_v3 = vrot.slane %v3037_v30, 5  ;;  %v3045_v26 = vrot.slane %v3043_v24, 5  ;;  %v2225_v34 = vshrl.u32 %v1882_v23, 16 }
 0x224   : > { %v2378_v28 = vld [vmem:[#allocation3 + $0xb4] sm:$0xe]  ;;  %v3049_v62 = vrot.slane %v3047_v36, 4  ;;  %v3055_v17 = vrot.slane %v3053_v42, 5  ;;  %v2228_v10 = vshll.u32 %v1882_v23, 16  ;;  %v2234_v58 = vshll.u32 %v1883_v41, 16  ;;  %v9664_v23 = vpop.f32.mrf.mxu0 }
 0x225   : > { %v2379_v14 = vld [vmem:[#allocation3 + $0xb8] sm:$0xf]  ;;  %v3040_v20 = vor.u32 %v3039_v3, %v3036_v39  ;;  %v2227_v9 = vrot.slane %v2225_v34, 4  ;;  %v2238_v51 = vshrl.u32 %v1883_v41, 16  ;;  %v2244_v38 = vshll.u32 %v1884_v60, 16 }
 0x226   : > { %v2380_v16 = vld [vmem:[#allocation3 + $0xbc] sm:$0x1]  ;;  %v3050_v30 = vor.u32 %v3049_v62, %v3045_v26  ;;  %v2230_v24 = vrot.slane %v2228_v10, 5  ;;  %v9661_v12 = vadd.f32 %v7511_v48, %v5014_v0  ;;  %v5019_v36 = vadd.f32 %v7402_v25, %v9424_v50  ;;  %v935_v48 = vld [vmem:[#allocation3 + $0xc8] sm:$0x1]  ;;  %v9670_v25 = vpop.f32.mrf.mxu0 }
 0x227   : > { %v8280_v43 = vld [vmem:[#allocation2 + $0x378] ss:$36 sps:$4 sm:$0xff]   ;;  %v3041_v42 = vrot.slane %v3040_v20, 4  ;;  %v2236_v54 = vrot.slane %v2234_v58, 5  ;;  %v2240_v29 = vrot.slane %v2238_v51, 4  ;;  %v2246_v39 = vrot.slane %v2244_v38, 5  ;;  %v9672_v58 = vpop.f32.mrf.mxu1 }
 0x228   : > { %v8282_v4 = vld [vmem:[#allocation2 + $0x37c] ss:$36 sps:$4 sm:$0xff]   ;;  %11242 = vst [vmem:[#allocation30_spill] sm:$0xff] %v9661_v12  ;;  %v3051_v41 = vrot.slane %v3050_v30, 4  ;;  %v2231_v60 = vor.u32 %v2230_v24, %v2227_v9  ;;  %v6922_v3 = vrot.slane %v2378_v28, 9  ;;  %v2532_v34 = vrot.slane %v2379_v14, 5 }
 0x229   : > { %5531 = vmatprep.mubr.bf16.mxu1 %v8282_v4  ;;  %v3046_v62 = vsel %vm8830_vm6, %v3041_v42, %v3045_v26  ;;  %v2241_v10 = vor.u32 %v2240_v29, %v2236_v54  ;;  %v2535_v0 = vrot.slane %v2380_v16, 5  ;;  %v2637_v12 = vld [vmem:[#allocation3 + $0xc0] sm:$0xf]  ;;  %v9668_v50 = vadd.f32 %v7514_v6, %v5019_v36  ;;  %v2638_v16 = vld [vmem:[#allocation3 + $0xc4] sm:$0xf]  ;;  %v9688_v4 = vpop.f32.mrf.mxu0 }
 0x22a   : > { %5532 = vmatmul.mubr.bf16.gmra.mxu1 %v8280_v43  ;;  %v8283_v20 = vld [vmem:[#allocation2 + $0x3b8] ss:$36 sps:$4 sm:$0xff]   ;;  %v3056_v9 = vsel %vm8830_vm6, %v3051_v41, %v3055_v17  ;;  %3163 = vst [vmem:[#allocation2 + $0x3c4] sm:$0xf] %v3046_v62  ;;  %v2232_v28 = vrot.slane %v2231_v60, 4  ;;  %v2533_v14 = vsel %vm8838_vm10, %v6922_v3, %v2532_v34  ;;  %v2534_v26 = vrot.slane %v2532_v34, 4  ;;  %v9702_v60 = vpop.f32.mrf.mxu1 }
 0x22b   : > { %2669 = vst [vmem:[#allocation2 + $0x408] sm:$0xf] %v2637_v12  ;;  %v8285_v29 = vld [vmem:[#allocation2 + $0x3bc] ss:$36 sps:$4 sm:$0xff]   ;;  %3164 = vst [vmem:[#allocation2 + $0x3e8] sm:$0xf] %v3056_v9  ;;  %v7405_v17 = vadd.f32 %v9540_v40, %v9530_v56  ;;  %v9686_v43 = vadd.f32 %v9532_v31, %v9528_v47  ;;  %v7408_v56 = vadd.f32 %v9559_v1, %v9548_v35 }
 0x22c   : > { %v2242_v51 = vrot.slane %v2241_v10, 4  ;;  %2604 = vst [vmem:[#allocation2 + $0x404] sm:$0xf] %v2533_v14  ;;  %v11243_v6 = vrot.slane %v9182_v55, 4  ;;  %v2237_v30 = vsel %vm8830_vm6, %v2232_v28, %v2236_v54  ;;  %v2536_v24 = vsel %vm8838_vm10, %v2534_v26, %v2535_v0  ;;  %2670 = vst [vmem:[#allocation2 + $0x42c] sm:$0xf] %v2638_v16  ;;  %5378 = vmatprep.mubr.bf16.mxu0 %v8285_v29  ;;  %v9706_v9 = vpop.f32.mrf.mxu1 }
 0x22d   : > { %v2715_v55 = vld [vmem:[#allocation3 + $0xc0] sm:$0xf]  ;;  %v2716_v12 = vld [vmem:[#allocation3 + $0xc4] sm:$0xf]  ;;  %v9698_v47 = vadd.f32 %v9565_v11, %v9542_v19  ;;  %2332 = vst [vmem:[#allocation2 + $0x400] sm:$0xf] %v2237_v30  ;;  %5379 = vmatmul.mubr.bf16.gmra.mxu0 %v8283_v20  ;;  %v9704_v11 = vpop.f32.mrf.mxu0 }
 0x22e   : > { %v936_v38 = vsel %vm8863_vm13, %v11243_v6, %v935_v48  ;;  %v1885_v36 = vld [vmem:[#allocation3 + $0xc0] sm:$0xf]  ;;  %v2247_v31 = vsel %vm8830_vm6, %v2242_v51, %v2246_v39  ;;  %2605 = vst [vmem:[#allocation2 + $0x428] sm:$0xf] %v2536_v24  ;;  %v3058_v40 = vshrl.u32 %v2715_v55, 16  ;;  %v3061_v54 = vshll.u32 %v2715_v55, 16  ;;  %v9708_v24 = vpop.f32.mrf.mxu1 }
 0x22f   : > { %937 = vst [vmem:[#allocation3 + $0xc8] sm:$0x1] %v936_v38  ;;  %v3067_v42 = vshll.u32 %v2716_v12, 16  ;;  %v1886_v41 = vld [vmem:[#allocation3 + $0xc4] sm:$0xf]  ;;  %v3071_v3 = vshrl.u32 %v2716_v12, 16 }
 0x230   : > { %2333 = vst [vmem:[#allocation2 + $0x424] sm:$0xf] %v2247_v31  ;;  %v2249_v35 = vshrl.u32 %v1885_v36, 16  ;;  %v2252_v1 = vshll.u32 %v1885_v36, 16  ;;  %v2258_v34 = vshll.u32 %v1886_v41, 16  ;;  %v3060_v62 = vrot.slane %v3058_v40, 4 }
 0x231   : > { %v2381_v19 = vld [vmem:[#allocation3 + $0xc0] sm:$0xe]  ;;  %v3063_v10 = vrot.slane %v3061_v54, 5  ;;  %v3069_v39 = vrot.slane %v3067_v42, 5  ;;  %v2262_v0 = vshrl.u32 %v1886_v41, 16  ;;  %v3073_v28 = vrot.slane %v3071_v3, 4  ;;  %v9714_v41 = vpop.f32.mrf.mxu0 }
 0x232   : > { %v2382_v48 = vld [vmem:[#allocation3 + $0xc4] sm:$0xf]  ;;  %v2251_v14 = vrot.slane %v2249_v35, 4  ;;  %v2254_v26 = vrot.slane %v2252_v1, 5  ;;  %v2260_v29 = vrot.slane %v2258_v34, 5  ;;  %v6923_v38 = vrot.slane %v2381_v19, 9 }
 0x233   : > { %v2639_v20 = vld [vmem:[#allocation3 + $0xcc] sm:$0xf]  ;;  %v3064_v51 = vor.u32 %v3063_v10, %v3060_v62  ;;  %v2264_v6 = vrot.slane %v2262_v0, 4  ;;  %v2539_v16 = vrot.slane %v2382_v48, 5  ;;  %v2640_v30 = vld [vmem:[#allocation3 + $0xd0] sm:$0xf]  ;;  %v3074_v36 = vor.u32 %v3073_v28, %v3069_v39  ;;  %v9718_v10 = vpop.f32.mrf.mxu1 }
 0x234   : > { %2671 = vst [vmem:[#allocation2 + $0x450] sm:$0xf] %v2639_v20  ;;  %v8286_v55 = vld [vmem:[#allocation2 + $0x3c0] ss:$36 sps:$4 sm:$0xff]   ;;  %v2255_v31 = vor.u32 %v2254_v26, %v2251_v14  ;;  %2672 = vst [vmem:[#allocation2 + $0x474] sm:$0xf] %v2640_v30 }
 0x235   : > { %v8288_v12 = vld [vmem:[#allocation2 + $0x3c4] ss:$36 sps:$4 sm:$0xff]   ;;  %v9710_v40 = vld [vmem:[#allocation8] ss:$0 sm:$0xff]  ;;  %v3065_v35 = vrot.slane %v3064_v51, 4  ;;  %v2265_v34 = vor.u32 %v2264_v6, %v2260_v29  ;;  %v2540_v19 = vsel %vm8838_vm10, %v6923_v38, %v2539_v16  ;;  %v2541_v62 = vrot.slane %v2539_v16, 4 }
 0x236   : > { %v5022_v54 = vadd.f32 %v9710_v40, %v7405_v17  ;;  %v5027_v42 = vadd.f32 %v9710_v40, %v7408_v56  ;;  %v2717_v3 = vld [vmem:[#allocation3 + $0xc8] sm:$0x1]  ;;  %5539 = vmatprep.mubr.bf16.mxu1 %v8288_v12  ;;  %v3075_v0 = vrot.slane %v3074_v36, 4  ;;  %v2256_v28 = vrot.slane %v2255_v31, 4  ;;  %2606 = vst [vmem:[#allocation2 + $0x44c] sm:$0xf] %v2540_v19  ;;  %v9732_v31 = vpop.f32.mrf.mxu0 }
 0x237   : > { %v1887_v1 = vld [vmem:[#allocation3 + $0xc8] sm:$0x1]  ;;  %v3077_v48 = vshll.u32 %v2717_v3, 16  ;;  %5540 = vmatmul.mubr.bf16.gmra.mxu1 %v8286_v55  ;;  %v8289_v17 = vld [vmem:[#allocation2 + $0x400] ss:$36 sps:$4 sm:$0xff]   ;;  %v3070_v26 = vsel %vm8830_vm6, %v3065_v35, %v3069_v39  ;;  %v2266_v20 = vrot.slane %v2265_v34, 4  ;;  %v7411_v36 = vadd.f32 %v9571_v59, %v9569_v61  ;;  %v9740_v3 = vpop.f32.mrf.mxu1 }
 0x238   : > { %v2268_v14 = vshll.u32 %v1887_v1, 16  ;;  %v8291_v56 = vld [vmem:[#allocation2 + $0x404] ss:$36 sps:$4 sm:$0xff]   ;;  %v9723_v51 = vadd.f32 %v9686_v43, %v5022_v54  ;;  %v9726_v6 = vadd.f32 %v9698_v47, %v5027_v42  ;;  %3165 = vst [vmem:[#allocation2 + $0x40c] sm:$0xf] %v3070_v26  ;;  %v2261_v16 = vsel %vm8830_vm6, %v2256_v28, %v2260_v29 }
 0x239   : > { %v3079_v38 = vrot.slane %v3077_v48, 5  ;;  %v2383_v12 = vld [vmem:[#allocation3 + $0xc8] sm:$0x1]  ;;  %v2718_v55 = vld [vmem:[#allocation3 + $0xcc] sm:$0xf]  ;;  %5386 = vmatprep.mubr.bf16.mxu0 %v8291_v56  ;;  %v9736_v42 = vadd.f32 %v9585_v44, %v9573_v27  ;;  %v7414_v29 = vadd.f32 %v9600_v21, %v9580_v63  ;;  %v9746_v48 = vpop.f32.mrf.mxu0 }
 0x23a   : > { %v2270_v30 = vrot.slane %v2268_v14, 5  ;;  %2334 = vst [vmem:[#allocation2 + $0x448] sm:$0xf] %v2261_v16  ;;  %v2542_v43 = vrot.slane %v2383_v12, 5  ;;  %v2719_v39 = vld [vmem:[#allocation3 + $0xd0] sm:$0xf]  ;;  %5387 = vmatmul.mubr.bf16.gmra.mxu0 %v8289_v17  ;;  %v9750_v14 = vpop.f32.mrf.mxu1 }
 0x23b   : > { %v2720_v54 = vld [vmem:[#allocation3 + $0xd4] sm:$0x1]  ;;  %v3082_v47 = vshrl.u32 %v2718_v55, 16  ;;  %v3080_v61 = vsel %vm8830_vm6, %v3075_v0, %v3079_v38  ;;  %v3085_v35 = vshll.u32 %v2718_v55, 16  ;;  %v3091_v1 = vshll.u32 %v2719_v39, 16  ;;  %v9752_v38 = vpop.f32.mrf.mxu0 }
 0x23c   : > { %v2271_v59 = vsel %vm8830_vm6, %v2266_v20, %v2270_v30  ;;  %v3169_v34 = vld [vmem:[#allocation3 + $0x18] sm:$0xe]  ;;  %v3170_v19 = vld [vmem:[#allocation3 + $0x1c] sm:$0xf]  ;;  %3166 = vst [vmem:[#allocation2 + $0x430] sm:$0xf] %v3080_v61  ;;  %v2543_v27 = vsel %vm8838_vm10, %v2541_v62, %v2542_v43 }
 0x23d   : > { %2335 = vst [vmem:[#allocation2 + $0x46c] sm:$0xf] %v2271_v59  ;;  %v3084_v63 = vrot.slane %v3082_v47, 4  ;;  %v3095_v44 = vshrl.u32 %v2719_v39, 16  ;;  %v3101_v21 = vshll.u32 %v2720_v54, 16  ;;  %v3087_v0 = vrot.slane %v3085_v35, 5 }
 0x23e   : > { %v3171_v28 = vld [vmem:[#allocation3 + $0x20] sm:$0x1]  ;;  %2607 = vst [vmem:[#allocation2 + $0x470] sm:$0xf] %v2543_v27  ;;  %v3093_v17 = vrot.slane %v3091_v1, 5  ;;  %v6924_v56 = vrot.slane %v3169_v34, 9  ;;  %v5030_v27 = vadd.f32 %v9710_v40, %v7411_v36 }
 0x23f   : > { %v3267_v26 = vrot.slane %v3170_v19, 5  ;;  %v3172_v20 = vld [vmem:[#allocation3 + $0x24] sm:$0xe]  ;;  %v3097_v16 = vrot.slane %v3095_v44, 4  ;;  %v3103_v30 = vrot.slane %v3101_v21, 5  ;;  %v3270_v12 = vrot.slane %v3171_v28, 5  ;;  %v9758_v21 = vpop.f32.mrf.mxu0  ;;  %v9760_v28 = vpop.f32.mrf.mxu1 }
 0x240   : > { %v3173_v55 = vld [vmem:[#allocation3 + $0x28] sm:$0xf]  ;;  %v6925_v61 = vrot.slane %v3172_v20, 9  ;;  %v3088_v62 = vor.u32 %v3087_v0, %v3084_v63  ;;  %v3174_v54 = vld [vmem:[#allocation3 + $0x2c] sm:$0x1]  ;;  %v5035_v44 = vadd.f32 %v9710_v40, %v7414_v29 }
 0x241   : > { %v3268_v43 = vsel %vm8838_vm10, %v6924_v56, %v3267_v26  ;;  %v3269_v39 = vrot.slane %v3267_v26, 4  ;;  %v3274_v47 = vrot.slane %v3173_v55, 5  ;;  %v3175_v59 = vld [vmem:[#allocation3 + $0x30] sm:$0xe]  ;;  %v3098_v35 = vor.u32 %v3097_v16, %v3093_v17  ;;  %v3176_v34 = vld [vmem:[#allocation3 + $0x34] sm:$0xf] }
 0x242   : > { %3409 = vst [vmem:[#allocation2 + $0x20] sm:$0xf] %v3268_v43  ;;  %v3277_v1 = vrot.slane %v3174_v54, 5  ;;  %v3177_v19 = vld [vmem:[#allocation3 + $0x38] sm:$0x1]  ;;  %v3089_v63 = vrot.slane %v3088_v62, 4 }
 0x243   : > { %v3271_v0 = vsel %vm8838_vm10, %v3269_v39, %v3270_v12  ;;  %v3275_v56 = vsel %vm8838_vm10, %v6925_v61, %v3274_v47  ;;  %v3276_v26 = vrot.slane %v3274_v47, 4  ;;  %v3178_v20 = vld [vmem:[#allocation3 + $0x3c] sm:$0xe]  ;;  %v3099_v16 = vrot.slane %v3098_v35, 4  ;;  %v3179_v29 = vld [vmem:[#allocation3 + $0x40] sm:$0xf] }
 0x244   : > { %3410 = vst [vmem:[#allocation2 + $0x44] sm:$0xf] %v3271_v0  ;;  %3411 = vst [vmem:[#allocation2 + $0x68] sm:$0xf] %v3275_v56  ;;  %v6926_v55 = vrot.slane %v3175_v59, 9  ;;  %v3281_v36 = vrot.slane %v3176_v34, 5  ;;  %v3094_v62 = vsel %vm8830_vm6, %v3089_v63, %v3093_v17  ;;  %v9771_v61 = vadd.f32 %v9736_v42, %v5030_v27  ;;  %v9779_v63 = vpop.f32.mrf.mxu0 }
 0x245   : > { %v3284_v43 = vrot.slane %v3177_v19, 5  ;;  %v8293_v54 = vld [vmem:[#allocation2 + $0x408] ss:$36 sps:$4 sm:$0xff]   ;;  %v3278_v12 = vsel %vm8838_vm10, %v3276_v26, %v3277_v1  ;;  %v6927_v39 = vrot.slane %v3178_v20, 9  ;;  %v3104_v59 = vsel %vm8830_vm6, %v3099_v16, %v3103_v30  ;;  %3167 = vst [vmem:[#allocation2 + $0x454] sm:$0xf] %v3094_v62  ;;  %v9781_v1 = vpop.f32.mrf.mxu1 }
 0x246   : > { %v8295_v15 = vld [vmem:[#allocation2 + $0x40c] ss:$36 sps:$4 sm:$0xff]   ;;  %3412 = vst [vmem:[#allocation2 + $0x8c] sm:$0xf] %v3278_v12  ;;  %v3282_v34 = vsel %vm8838_vm10, %v6926_v55, %v3281_v36  ;;  %v3283_v19 = vrot.slane %v3281_v36, 4  ;;  %v7526_v17 = vadd.f32 %v9615_v49, %v9607_v32  ;;  %v3288_v27 = vrot.slane %v3179_v29, 5  ;;  %v9793_v55 = vpop.f32.mrf.mxu0 }
 0x247   : > { %v8296_v47 = vld [vmem:[#allocation2 + $0x448] ss:$36 sps:$4 sm:$0xff]   ;;  %5547 = vmatprep.mubr.bf16.mxu1 %v8295_v15  ;;  %3168 = vst [vmem:[#allocation2 + $0x478] sm:$0xf] %v3104_v59  ;;  %3413 = vst [vmem:[#allocation2 + $0xb0] sm:$0xf] %v3282_v34  ;;  %v7417_v30 = vadd.f32 %v9624_v8, %v9613_v37  ;;  %v7529_v0 = vadd.f32 %v9626_v46, %v9617_v57  ;;  %v7420_v56 = vadd.f32 %v9655_v13, %v9645_v22  ;;  %v9803_v62 = vpop.f32.mrf.mxu1 }
 0x248   : > { %v8298_v35 = vld [vmem:[#allocation2 + $0x44c] ss:$36 sps:$4 sm:$0xff]   ;;  %v3180_v42 = vld [vmem:[#allocation3 + $0x44] sm:$0x1]  ;;  %5548 = vmatmul.mubr.bf16.gmra.mxu1 %v8293_v54  ;;  %v3285_v32 = vsel %vm8838_vm10, %v3283_v19, %v3284_v43  ;;  %v6928_v20 = vrot.slane %v3181_v45, 9  ;;  %v9791_v16 = vadd.f32 %v7526_v17, %v5035_v44  ;;  %v3289_v37 = vsel %vm8838_vm10, %v6927_v39, %v3288_v27  ;;  %v9813_v19 = vpop.f32.mrf.mxu0 }
 0x249   : > { %5394 = vmatprep.mubr.bf16.mxu0 %v8298_v35  ;;  %v3291_v15 = vrot.slane %v3180_v42, 5  ;;  %v3182_v49 = vld [vmem:[#allocation3 + $0x4c] sm:$0xf]  ;;  %v3183_v26 = vld [vmem:[#allocation3 + $0x50] sm:$0x1]  ;;  %v3290_v57 = vrot.slane %v3288_v27, 4  ;;  %v5038_v43 = vadd.f32 %v9710_v40, %v7417_v30  ;;  %v5043_v29 = vadd.f32 %v9710_v40, %v7420_v56 }
 0x24a   : > { %5395 = vmatmul.mubr.bf16.gmra.mxu0 %v8296_v47  ;;  %3414 = vst [vmem:[#allocation2 + $0xd4] sm:$0xf] %v3285_v32  ;;  %v3295_v8 = vrot.slane %v3182_v49, 5  ;;  %v3298_v46 = vrot.slane %v3183_v26, 5  ;;  %3415 = vst [vmem:[#allocation2 + $0xf8] sm:$0xf] %v3289_v37  ;;  %v7532_v44 = vadd.f32 %v9649_v7, %v9639_v5  ;;  %v7423_v54 = vadd.f32 %v9664_v23, %v9657_v33 }
 0x24b   : > { %v3184_v22 = vld [vmem:[#allocation3 + $0x54] sm:$0xe]  ;;  %v3185_v13 = vld [vmem:[#allocation3 + $0x58] sm:$0xf]  ;;  %v3186_v36 = vld [vmem:[#allocation3 + $0x5c] sm:$0x1]  ;;  %v3292_v39 = vsel %vm8838_vm10, %v3290_v57, %v3291_v15  ;;  %v7535_v35 = vadd.f32 %v9672_v58, %v9659_v2  ;;  %v7426_v59 = vadd.f32 %v9688_v4, %v9670_v25  ;;  %v9815_v27 = vadd.f32 %v7529_v0, %v5038_v43  ;;  %v7549_v15 = vpop.f32.mrf.mxu1  ;;  %v7440_v43 = vpop.f32.mrf.mxu0 }
 0x24c   : > { %v8302_v12 = vld [vmem:[#allocation2 + $0x20] ss:$36 sps:$4 sm:$0xff]   ;;  %v3296_v47 = vsel %vm8838_vm10, %v6928_v20, %v3295_v8  ;;  %3416 = vst [vmem:[#allocation2 + $0x11c] sm:$0xf] %v3292_v39  ;;  %v3297_v5 = vrot.slane %v3295_v8, 4  ;;  %v6929_v7 = vrot.slane %v3184_v22, 9  ;;  %v9817_v45 = vadd.f32 %v7532_v44, %v5043_v29 }
 0x24d   : > { %3417 = vst [vmem:[#allocation2 + $0x140] sm:$0xf] %v3296_v47  ;;  %v3302_v33 = vrot.slane %v3185_v13, 5  ;;  %v3305_v23 = vrot.slane %v3186_v36, 5  ;;  %v3187_v34 = vld [vmem:[#allocation3 + $0x60] sm:$0xe]  ;;  %7858 = vmatprep.mubr.bf16.mxu0 %v8302_v12  ;;  %v5046_v2 = vadd.f32 %v9710_v40, %v7423_v54  ;;  %v5051_v32 = vadd.f32 %v9710_v40, %v7426_v59  ;;  %v7551_v54 = vpop.f32.mrf.mxu1 }
 0x24e   : > { %v8303_v17 = vld [vmem:[#allocation2 + $0x68] ss:$36 sps:$4 sm:$0xff]   ;;  %v6930_v42 = vrot.slane %v3187_v34, 9  ;;  %v8299_v58 = vld [vmem:[#allocation2 + $0x450] ss:$36 sps:$4 sm:$0xff]   ;;  %v3299_v4 = vsel %vm8838_vm10, %v3297_v5, %v3298_v46  ;;  %v7538_v20 = vadd.f32 %v9706_v9, %v9702_v60  ;;  %v7429_v37 = vadd.f32 %v9714_v41, %v9704_v11  ;;  %v7442_v34 = vpop.f32.mrf.mxu0 }
 0x24f   : > { %v8301_v25 = vld [vmem:[#allocation2 + $0x454] ss:$36 sps:$4 sm:$0xff]   ;;  %v3303_v30 = vsel %vm8838_vm10, %v6929_v7, %v3302_v33  ;;  %v3304_v56 = vrot.slane %v3302_v33, 4  ;;  %3418 = vst [vmem:[#allocation2 + $0x164] sm:$0xf] %v3299_v4  ;;  %v9825_v26 = vadd.f32 %v7535_v35, %v5046_v2  ;;  %v7541_v57 = vadd.f32 %v9718_v10, %v9708_v24 }
 0x250   : > { %3419 = vst [vmem:[#allocation2 + $0x188] sm:$0xf] %v3303_v30  ;;  %v3188_v0 = vld [vmem:[#allocation3 + $0x64] sm:$0xf]  ;;  %v3189_v49 = vld [vmem:[#allocation3 + $0x68] sm:$0x1]  ;;  %5555 = vmatprep.mubr.bf16.mxu1 %v8301_v25  ;;  %v7432_v36 = vadd.f32 %v9746_v48, %v9732_v31  ;;  %v9837_v11 = vadd.f32 %v7538_v20, %v5051_v32  ;;  %v5054_v24 = vadd.f32 %v9710_v40, %v7429_v37  ;;  %v7443_v32 = vpop.f32.mrf.mxu0 }
 0x251   : > { %v8304_v8 = vld [vmem:[#allocation2 + $0xb0] ss:$36 sps:$4 sm:$0xff]   ;;  %v3306_v46 = vsel %vm8838_vm10, %v3304_v56, %v3305_v23  ;;  %v3309_v22 = vrot.slane %v3188_v0, 5  ;;  %v3312_v13 = vrot.slane %v3189_v49, 5  ;;  %5556 = vmatmul.mubr.bf16.gmra.mxu1 %v8299_v58  ;;  %v3190_v60 = vld [vmem:[#allocation3 + $0x6c] sm:$0xe]  ;;  %v7544_v41 = vadd.f32 %v9750_v14, %v9740_v3  ;;  %v7552_v56 = vpop.f32.mrf.mxu1 }
 0x252   : > { %7859 = vmatmul.mubr.bf16.vlgmr.msra.gmra.mxu0 %v8303_v17  ;;  %3420 = vst [vmem:[#allocation2 + $0x1ac] sm:$0xf] %v3306_v46  ;;  %v3191_v9 = vld [vmem:[#allocation3 + $0x70] sm:$0xf]  ;;  %v3192_v44 = vld [vmem:[#allocation3 + $0x74] sm:$0x1]  ;;  %v9844_v39 = vadd.f32 %v7541_v57, %v5054_v24  ;;  %v5059_v47 = vadd.f32 %v9710_v40, %v7432_v36  ;;  %v7435_v35 = vadd.f32 %v9758_v21, %v9752_v38 }
 0x253   : > { %7862 = vmatprep.mubr.bf16.mxu0 %v8304_v8  ;;  %v3310_v10 = vsel %vm8838_vm10, %v6930_v42, %v3309_v22  ;;  %v3311_v29 = vrot.slane %v3309_v22, 4  ;;  %v6931_v31 = vrot.slane %v3190_v60, 9  ;;  %v3316_v48 = vrot.slane %v3191_v9, 5  ;;  %v8305_v12 = vld [vmem:[#allocation2 + $0xf8] ss:$36 sps:$4 sm:$0xff]  }
 0x254   : > { %3421 = vst [vmem:[#allocation2 + $0x1d0] sm:$0xf] %v3310_v10  ;;  %v7547_v3 = vadd.f32 %v9781_v1, %v9760_v28  ;;  %v3319_v7 = vrot.slane %v3192_v44, 5  ;;  %v3193_v33 = vld [vmem:[#allocation3 + $0x78] sm:$0xe]  ;;  %v9855_v21 = vadd.f32 %v7544_v41, %v5059_v47  ;;  %v5062_v28 = vadd.f32 %v9710_v40, %v7435_v35 }
 0x255   : > { %v3313_v14 = vsel %vm8838_vm10, %v3311_v29, %v3312_v13  ;;  %v3317_v59 = vsel %vm8838_vm10, %v6931_v31, %v3316_v48  ;;  %v3318_v5 = vrot.slane %v3316_v48, 4  ;;  %v3194_v23 = vld [vmem:[#allocation3 + $0x7c] sm:$0xf]  ;;  %v3195_v17 = vld [vmem:[#allocation3 + $0x80] sm:$0x1]  ;;  %v6932_v42 = vrot.slane %v3193_v33, 9 }
 0x256   : > { %3422 = vst [vmem:[#allocation2 + $0x1f4] sm:$0xf] %v3313_v14  ;;  %3423 = vst [vmem:[#allocation2 + $0x218] sm:$0xf] %v3317_v59  ;;  %v3323_v2 = vrot.slane %v3194_v23, 5  ;;  %v7438_v25 = vadd.f32 %v9793_v55, %v9779_v63  ;;  %v7550_v4 = vadd.f32 %v7549_v15, %v9803_v62  ;;  %v7441_v30 = vadd.f32 %v7440_v43, %v9813_v19  ;;  %v7445_v62 = vpop.f32.mrf.mxu0 }
 0x257   : > { %v3196_v38 = vld [vmem:[#allocation3 + $0x84] sm:$0xe]  ;;  %v3320_v58 = vsel %vm8838_vm10, %v3318_v5, %v3319_v7  ;;  %v3326_v20 = vrot.slane %v3195_v17, 5  ;;  %v3197_v37 = vld [vmem:[#allocation3 + $0x88] sm:$0xf]  ;;  %v9866_v8 = vadd.f32 %v7547_v3, %v5062_v28  ;;  %v7553_v43 = vadd.f32 %v7552_v56, %v7551_v54 }
 0x258   : > { %v8306_v1 = vld [vmem:[#allocation2 + $0x140] ss:$36 sps:$4 sm:$0xff]   ;;  %3424 = vst [vmem:[#allocation2 + $0x23c] sm:$0xf] %v3320_v58  ;;  %v3324_v0 = vsel %vm8838_vm10, %v6932_v42, %v3323_v2  ;;  %v3325_v49 = vrot.slane %v3323_v2, 4  ;;  %v6933_v46 = vrot.slane %v3196_v38, 9  ;;  %v5067_v63 = vadd.f32 %v9710_v40, %v7438_v25  ;;  %v7446_v44 = vpop.f32.mrf.mxu0  ;;  %v7554_v58 = vpop.f32.mrf.mxu1 }
 0x259   : > { %v3198_v57 = vld [vmem:[#allocation3 + $0x8c] sm:$0x1]  ;;  %3425 = vst [vmem:[#allocation2 + $0x260] sm:$0xf] %v3324_v0  ;;  %v3330_v22 = vrot.slane %v3197_v37, 5  ;;  %v5070_v55 = vadd.f32 %v9710_v40, %v7441_v30  ;;  %v7444_v60 = vadd.f32 %v7443_v32, %v7442_v34  ;;  %v7447_v14 = vadd.f32 %v7446_v44, %v7445_v62  ;;  %v5846_v34 = vld [vmem:[#allocation9 + $0x78] sm:$0xff] }
 0x25a   : > { %7863 = vmatmul.mubr.bf16.gmra.mxu0 %v8305_v12  ;;  %v3327_v19 = vsel %vm8838_vm10, %v3325_v49, %v3326_v20  ;;  %v3333_v15 = vrot.slane %v3198_v57, 5  ;;  %v3199_v13 = vld [vmem:[#allocation3 + $0x90] sm:$0xe]  ;;  %v3200_v36 = vld [vmem:[#allocation3 + $0x94] sm:$0xf]  ;;  %v9874_v29 = vadd.f32 %v7550_v4, %v5067_v63  ;;  %v11201_v25 = vmov 0.0   ;;  %v7576_v0 = vpop.f32.mrf.mxu0  ;;  %v7555_v57 = vpop.f32.mrf.mxu1 }
 0x25b   : > { %7866 = vmatprep.mubr.bf16.mxu0 %v8306_v1  ;;  %3426 = vst [vmem:[#allocation2 + $0x284] sm:$0xf] %v3327_v19  ;;  %v3331_v9 = vsel %vm8838_vm10, %v6933_v46, %v3330_v22  ;;  %v3332_v24 = vrot.slane %v3330_v22, 4  ;;  %v3201_v41 = vld [vmem:[#allocation3 + $0x98] sm:$0x1]  ;;  %v6934_v10 = vrot.slane %v3199_v13, 9  ;;  %v9876_v35 = vadd.f32 %v7553_v43, %v5070_v55  ;;  %7890 = vmatprep.subr.mxu1 %v11201_v25 }
 0x25c   : > { %3427 = vst [vmem:[#allocation2 + $0x2a8] sm:$0xf] %v3331_v9  ;;  %v3337_v31 = vrot.slane %v3200_v36, 5  ;;  %v3340_v48 = vrot.slane %v3201_v41, 5  ;;  %v3202_v12 = vld [vmem:[#allocation3 + $0x9c] sm:$0xe]  ;;  %v5075_v32 = vadd.f32 %v9710_v40, %v7444_v60  ;;  %7891 = vmatpush3.msra.mxu1 %v5846_v34  ;;  %v7556_v63 = vadd.f32 %v7555_v57, %v7554_v58  ;;  %v7577_v55 = vpop.f32.mrf.mxu0  ;;  %v7557_v60 = vpop.f32.mrf.mxu1 }
 0x25d   : > { %v3203_v47 = vld [vmem:[#allocation3 + $0xa0] sm:$0xf]  ;;  %v8307_v54 = vld [vmem:[#allocation2 + $0x188] ss:$36 sps:$4 sm:$0xff]   ;;  %v3334_v3 = vsel %vm8838_vm10, %v3332_v24, %v3333_v15  ;;  %v3204_v7 = vld [vmem:[#allocation3 + $0xa4] sm:$0x1]  ;;  %7892 = vmatprep.subr.mxu1 %v11201_v25  ;;  %v7578_v44 = vadd.f32 %v7577_v55, %v7576_v0 }
 0x25e   : > { %3428 = vst [vmem:[#allocation2 + $0x2cc] sm:$0xf] %v3334_v3  ;;  %v3338_v59 = vsel %vm8838_vm10, %v6934_v10, %v3337_v31  ;;  %v3339_v5 = vrot.slane %v3337_v31, 4  ;;  %v6935_v33 = vrot.slane %v3202_v12, 9  ;;  %v3344_v23 = vrot.slane %v3203_v47, 5  ;;  %v7579_v31 = vpop.f32.mrf.mxu0  ;;  %v7558_v3 = vpop.f32.mrf.mxu1 }
 0x25f   : > { %v8308_v17 = vld [vmem:[#allocation2 + $0x1d0] ss:$36 sps:$4 sm:$0xff]   ;;  %3429 = vst [vmem:[#allocation2 + $0x2f0] sm:$0xf] %v3338_v59  ;;  %v3347_v42 = vrot.slane %v3204_v7, 5  ;;  %v9893_v41 = vadd.f32 %v7556_v63, %v5075_v32  ;;  %v5078_v10 = vadd.f32 %v9710_v40, %v7447_v14  ;;  %v11246_v32 = vld [vmem:[#allocation18_spill] sm:$0xff] }
 0x260   : > { %v3341_v2 = vsel %vm8838_vm10, %v3339_v5, %v3340_v48  ;;  %v3345_v38 = vsel %vm8838_vm10, %v6935_v33, %v3344_v23  ;;  %v3346_v28 = vrot.slane %v3344_v23, 4  ;;  %v3205_v1 = vld [vmem:[#allocation3 + $0xa8] sm:$0xe]  ;;  %v3206_v4 = vld [vmem:[#allocation3 + $0xac] sm:$0xf]  ;;  %v7559_v33 = vadd.f32 %v7558_v3, %v7557_v60  ;;  %v11244_v23 = vld [vmem:[#allocation17_spill] sm:$0xff]  ;;  %v7580_v40 = vpop.f32.mrf.mxu0 }
 0x261   : > { %3430 = vst [vmem:[#allocation2 + $0x314] sm:$0xf] %v3341_v2  ;;  %3431 = vst [vmem:[#allocation2 + $0x338] sm:$0xf] %v3345_v38  ;;  %v3207_v30 = vld [vmem:[#allocation3 + $0xb0] sm:$0x1]  ;;  %v5277_v34 = vadd.f32 %v7578_v44, %v11244_v23  ;;  %v7581_v2 = vadd.f32 %v7580_v40, %v7579_v31 }
 0x262   : > { %v6936_v56 = vrot.slane %v3205_v1, 9  ;;  %7867 = vmatmul.mubr.bf16.gmra.mxu0 %v8307_v54  ;;  %v3348_v49 = vsel %vm8838_vm10, %v3346_v28, %v3347_v42  ;;  %v3351_v20 = vrot.slane %v3206_v4, 5  ;;  %v3354_v37 = vrot.slane %v3207_v30, 5  ;;  %v3208_v46 = vld [vmem:[#allocation3 + $0xb4] sm:$0xe]  ;;  %v9901_v14 = vld [vmem:[#allocation9 + $0x70] sm:$0xff]  ;;  %v7688_v42 = vpop.f32.mrf.mxu1 }
 0x263   : > { %7870 = vmatprep.mubr.bf16.mxu0 %v8308_v17  ;;  %3432 = vst [vmem:[#allocation2 + $0x35c] sm:$0xf] %v3348_v49  ;;  %v3209_v22 = vld [vmem:[#allocation3 + $0xb8] sm:$0xf]  ;;  %v3210_v13 = vld [vmem:[#allocation3 + $0xbc] sm:$0x1]  ;;  %7893 = vmatpush3.msra.mxu1 %v9901_v14  ;;  %v9906_v4 = vadd.f32 %v7559_v33, %v5078_v10  ;;  %v9910_v0 = vadd.f32 %v7581_v2, %v11246_v32  ;;  %v7582_v49 = vpop.f32.mrf.mxu0 }
 0x264   : > { %v8309_v62 = vld [vmem:[#allocation2 + $0x218] ss:$36 sps:$4 sm:$0xff]   ;;  %v3352_v19 = vsel %vm8838_vm10, %v6936_v56, %v3351_v20  ;;  %v3353_v15 = vrot.slane %v3351_v20, 4  ;;  %v6937_v36 = vrot.slane %v3208_v46, 9  ;;  %v3358_v43 = vrot.slane %v3209_v22, 5  ;;  %11245 = vst [vmem:[#allocation17_spill] sm:$0xff] %v9901_v14  ;;  %7894 = vmatprep.subr.mxu1 %v11201_v25  ;;  %v7689_v56 = vpop.f32.mrf.mxu1 }
 0x265   : > { %v8310_v9 = vld [vmem:[#allocation2 + $0x260] ss:$36 sps:$4 sm:$0xff]   ;;  %3433 = vst [vmem:[#allocation2 + $0x380] sm:$0xf] %v3352_v19  ;;  %v3361_v24 = vrot.slane %v3210_v13, 5  ;;  %v7690_v63 = vadd.f32 %v7689_v56, %v7688_v42  ;;  %v7583_v19 = vpop.f32.mrf.mxu0 }
 0x266   : > { %v3355_v48 = vsel %vm8838_vm10, %v3353_v15, %v3354_v37  ;;  %v3359_v12 = vsel %vm8838_vm10, %v6937_v36, %v3358_v43  ;;  %v3360_v47 = vrot.slane %v3358_v43, 4  ;;  %v3211_v54 = vld [vmem:[#allocation3 + $0xc0] sm:$0xe]  ;;  %v3212_v59 = vld [vmem:[#allocation3 + $0xc4] sm:$0xf]  ;;  %v9914_v55 = vpop.f32.mrf.mxu1  ;;  %v7584_v36 = vadd.f32 %v7583_v19, %v7582_v49 }
 0x267   : > { %3434 = vst [vmem:[#allocation2 + $0x3a4] sm:$0xf] %v3355_v48  ;;  %3435 = vst [vmem:[#allocation2 + $0x3c8] sm:$0xf] %v3359_v12  ;;  %v3213_v5 = vld [vmem:[#allocation3 + $0xc8] sm:$0x1] }
 0x268   : > { %v6938_v7 = vrot.slane %v3211_v54, 9  ;;  %v3362_v17 = vsel %vm8838_vm10, %v3360_v47, %v3361_v24  ;;  %v3365_v38 = vrot.slane %v3212_v59, 5  ;;  %v3368_v28 = vrot.slane %v3213_v5, 5  ;;  %v3214_v1 = vld [vmem:[#allocation3 + $0xcc] sm:$0xe]  ;;  %v9920_v60 = vpop.f32.mrf.mxu1  ;;  %v11247_v31 = vld [vmem:[#allocation19_spill] sm:$0xff] }
 0x269   : > { %3436 = vst [vmem:[#allocation2 + $0x3ec] sm:$0xf] %v3362_v17  ;;  %v3215_v58 = vld [vmem:[#allocation3 + $0xd0] sm:$0xf]  ;;  %v3216_v30 = vld [vmem:[#allocation3 + $0xd4] sm:$0x1]  ;;  %v9922_v24 = vadd.f32 %v7690_v63, %v5277_v34  ;;  %v9927_v48 = vadd.f32 %v7584_v36, %v11247_v31 }
 0x26a   : > { %7871 = vmatmul.mubr.bf16.gmra.mxu0 %v8309_v62  ;;  %v3366_v20 = vsel %vm8838_vm10, %v6938_v7, %v3365_v38  ;;  %v3367_v37 = vrot.slane %v3365_v38, 4  ;;  %v6939_v57 = vrot.slane %v3214_v1, 9  ;;  %v3372_v46 = vrot.slane %v3215_v58, 5  ;;  %v8311_v43 = vld [vmem:[#allocation2 + $0x2a8] ss:$36 sps:$4 sm:$0xff]   ;;  %v9929_v54 = vpop.f32.mrf.mxu1  ;;  %v11250_v38 = vld [vmem:[#allocation21_spill] sm:$0xff] }
 0x26b   : > { %7874 = vmatprep.mubr.bf16.mxu0 %v8310_v9  ;;  %3437 = vst [vmem:[#allocation2 + $0x410] sm:$0xf] %v3366_v20  ;;  %v3375_v22 = vrot.slane %v3216_v30, 5  ;;  %v7585_v9 = vpop.f32.mrf.mxu0  ;;  %v8312_v10 = vld [vmem:[#allocation2 + $0x2f0] ss:$36 sps:$4 sm:$0xff]   ;;  %v9931_v3 = vld [vmem:[#allocation9 + $0x68] sm:$0xff] }
 0x26c   : > { %v3369_v62 = vsel %vm8838_vm10, %v3367_v37, %v3368_v28  ;;  %v3373_v15 = vsel %vm8838_vm10, %v6939_v57, %v3372_v46  ;;  %v3374_v13 = vrot.slane %v3372_v46, 4  ;;  %11248 = vst [vmem:[#allocation18_spill] sm:$0xff] %v9931_v3  ;;  %v11249_v59 = vld [vmem:[#allocation20_spill] sm:$0xff]  ;;  %7895 = vmatpush3.msra.mxu1 %v9931_v3  ;;  %v9937_v7 = vpop.f32.mrf.mxu1  ;;  %v8313_v53 = vld [vmem:[#allocation2 + $0x338] ss:$36 sps:$4 sm:$0xff]   ;;  %v11253_v36 = vld [vmem:[#allocation23_spill] sm:$0xff] }
 0x26d   : > { %3438 = vst [vmem:[#allocation2 + $0x434] sm:$0xf] %v3369_v62  ;;  %3439 = vst [vmem:[#allocation2 + $0x458] sm:$0xf] %v3373_v15  ;;  %v7586_v12 = vpop.f32.mrf.mxu0  ;;  %7896 = vmatprep.subr.mxu1 %v11201_v25  ;;  %v9949_v32 = vld [vmem:[#allocation9 + $0x60] sm:$0xff]  ;;  %v11254_v31 = vld [vmem:[#allocation24_spill] sm:$0xff] }
 0x26e   : > { %v3376_v44 = vsel %vm8838_vm10, %v3374_v13, %v3375_v22  ;;  %v7587_v47 = vadd.f32 %v7586_v12, %v7585_v9  ;;  %v9940_v33 = vpop.f32.mrf.mxu1  ;;  %v8314_v34 = vld [vmem:[#allocation2 + $0x380] ss:$36 sps:$4 sm:$0xff]   ;;  %11251 = vst [vmem:[#allocation19_spill] sm:$0xff] %v9949_v32  ;;  %7897 = vmatpush3.msra.mxu1 %v9949_v32  ;;  %v11266_v32 = vld [vmem:[#allocation28_spill] sm:$0xff] }
 0x26f   : > { %3440 = vst [vmem:[#allocation2 + $0x47c] sm:$0xf] %v3376_v44  ;;  %v7588_v23 = vpop.f32.mrf.mxu0  ;;  %v11252_v20 = vld [vmem:[#allocation22_spill] sm:$0xff]  ;;  %7898 = vmatprep.subr.mxu1 %v11201_v25 }
 0x270   : > { %v9934_v5 = vadd.f32 %v7587_v47, %v11249_v59  ;;  %v9942_v42 = vpop.f32.mrf.mxu1  ;;  %v8315_v30 = vld [vmem:[#allocation2 + $0x3c8] ss:$36 sps:$4 sm:$0xff]   ;;  %v9972_v59 = vld [vmem:[#allocation9 + $0x58] sm:$0xff] }
 0x271   : > { %v7589_v40 = vpop.f32.mrf.mxu0  ;;  %11255 = vst [vmem:[#allocation20_spill] sm:$0xff] %v9972_v59  ;;  %7899 = vmatpush3.msra.mxu1 %v9972_v59 }
 0x272   : > { %7875 = vmatmul.mubr.bf16.gmra.mxu0 %v8311_v43  ;;  %v7590_v17 = vadd.f32 %v7589_v40, %v7588_v23  ;;  %v9947_v56 = vpop.f32.mrf.mxu1  ;;  %7900 = vmatprep.subr.mxu1 %v11201_v25 }
 0x273   : > { %7878 = vmatprep.mubr.bf16.mxu0 %v8312_v10  ;;  %v7591_v2 = vpop.f32.mrf.mxu0 }
 0x274   : > { %v9945_v28 = vadd.f32 %v7590_v17, %v11250_v38  ;;  %v8316_v49 = vld [vmem:[#allocation2 + $0x410] ss:$36 sps:$4 sm:$0xff]   ;;  %v9955_v57 = vpop.f32.mrf.mxu1 }
 0x275   : > { %v7592_v1 = vpop.f32.mrf.mxu0  ;;  %v11256_v38 = vld [vmem:[#allocation25_spill] sm:$0xff] }
 0x276   : > { %v7593_v58 = vadd.f32 %v7592_v1, %v7591_v2  ;;  %v9958_v22 = vpop.f32.mrf.mxu1  ;;  %v8317_v13 = vld [vmem:[#allocation2 + $0x458] ss:$36 sps:$4 sm:$0xff]  }
 0x277   : > { %v7594_v46 = vpop.f32.mrf.mxu0 }
 0x278   : > { %v9952_v37 = vadd.f32 %v7593_v58, %v11252_v20  ;;  %v9960_v62 = vpop.f32.mrf.mxu1  ;;  %v9985_v20 = vld [vmem:[#allocation9 + $0x50] sm:$0xff] }
 0x279   : > { %v7595_v63 = vpop.f32.mrf.mxu0  ;;  %11257 = vst [vmem:[#allocation21_spill] sm:$0xff] %v9985_v20  ;;  %7901 = vmatpush3.msra.mxu1 %v9985_v20 }
 0x27a   : > { %7879 = vmatmul.mubr.bf16.gmra.mxu0 %v8313_v53  ;;  %v7596_v19 = vadd.f32 %v7595_v63, %v7594_v46  ;;  %v9965_v44 = vpop.f32.mrf.mxu1  ;;  %v11258_v63 = vld [vmem:[#allocation26_spill] sm:$0xff]  ;;  %7902 = vmatprep.subr.mxu1 %v11201_v25 }
 0x27b   : > { %7882 = vmatprep.mubr.bf16.mxu0 %v8314_v34  ;;  %v7597_v15 = vpop.f32.mrf.mxu0 }
 0x27c   : > { %v9963_v43 = vadd.f32 %v7596_v19, %v11253_v36  ;;  %v9970_v47 = vpop.f32.mrf.mxu1  ;;  %v9996_v36 = vld [vmem:[#allocation9 + $0x48] sm:$0xff] }
 0x27d   : > { %v7598_v9 = vpop.f32.mrf.mxu0  ;;  %11260 = vst [vmem:[#allocation23_spill] sm:$0xff] %v9996_v36  ;;  %7903 = vmatpush3.msra.mxu1 %v9996_v36  ;;  %v10012_v36 = vld [vmem:[#allocation9 + $0x40] sm:$0xff] }
 0x27e   : > { %v7599_v10 = vadd.f32 %v7598_v9, %v7597_v15  ;;  %v9974_v53 = vpop.f32.mrf.mxu1  ;;  %7904 = vmatprep.subr.mxu1 %v11201_v25  ;;  %11263 = vst [vmem:[#allocation25_spill] sm:$0xff] %v10012_v36 }
 0x27f   : > { %v7600_v23 = vpop.f32.mrf.mxu0  ;;  %7905 = vmatpush3.msra.mxu1 %v10012_v36 }
 0x280   : > { %v9968_v12 = vadd.f32 %v7599_v10, %v11254_v31  ;;  %v9978_v40 = vpop.f32.mrf.mxu1  ;;  %7906 = vmatprep.subr.mxu1 %v11201_v25 }
 0x281   : > { %v7601_v34 = vpop.f32.mrf.mxu0 }
 0x282   : > { %7883 = vmatmul.mubr.bf16.gmra.mxu0 %v8315_v30  ;;  %v7602_v17 = vadd.f32 %v7601_v34, %v7600_v23  ;;  %v9983_v30 = vpop.f32.mrf.mxu1  ;;  %v11261_v34 = vld [vmem:[#allocation27_spill] sm:$0xff] }
 0x283   : > { %7886 = vmatprep.mubr.bf16.mxu0 %v8316_v49  ;;  %v7603_v2 = vpop.f32.mrf.mxu0 }
 0x284   : > { %v9981_v1 = vadd.f32 %v7602_v17, %v11256_v38  ;;  %v9987_v46 = vpop.f32.mrf.mxu1 }
 0x285   : > { %v7604_v58 = vpop.f32.mrf.mxu0 }
 0x286   : > { %v7605_v49 = vadd.f32 %v7604_v58, %v7603_v2  ;;  %v9994_v15 = vpop.f32.mrf.mxu1 }
 0x288   : > { %v9990_v19 = vadd.f32 %v7605_v49, %v11258_v63  ;;  %v9999_v10 = vpop.f32.mrf.mxu1 }
 0x28a   : > { %7887 = vmatmul.mubr.bf16.gmra.mxu0 %v8317_v13  ;;  %11259 = vst [vmem:[#allocation22_spill] sm:$0xff] %v9990_v19  ;;  %v7606_v13 = vpop.f32.mrf.mxu0  ;;  %v10005_v38 = vpop.f32.mrf.mxu1  ;;  %v10048_v19 = vld [vmem:[#allocation9 + $0x28] sm:$0xff] }
 0x28b   : > { %11274 = vst [vmem:[#allocation33_spill] sm:$0xff] %v10048_v19 }
 0x28c   : > { %v7607_v9 = vpop.f32.mrf.mxu0  ;;  %v10010_v63 = vpop.f32.mrf.mxu1 }
 0x28d   : > { %v7608_v31 = vadd.f32 %v7607_v9, %v7606_v13 }
 0x28e   : > { %v7609_v23 = vpop.f32.mrf.mxu0 }
 0x28f   : > { %v10003_v17 = vadd.f32 %v7608_v31, %v11261_v34  ;;  %v10016_v31 = vpop.f32.mrf.mxu1 }
 0x290   : > { %v7610_v2 = vpop.f32.mrf.mxu0 }
 0x291   : > { %v7611_v58 = vadd.f32 %v7610_v2, %v7609_v23  ;;  %v10021_v2 = vpop.f32.mrf.mxu1 }
 0x292   : > { %v7612_v20 = vpop.f32.mrf.mxu0 }
 0x293   : > { %v10008_v49 = vadd.f32 %v7611_v58, %v9576_v18  ;;  %v10023_v58 = vld [vmem:[#allocation9 + $0x38] sm:$0xff] }
 0x294   : > { %v7613_v13 = vpop.f32.mrf.mxu0  ;;  %11265 = vst [vmem:[#allocation27_spill] sm:$0xff] %v10023_v58  ;;  %7907 = vmatpush3.msra.mxu1 %v10023_v58  ;;  %v11271_v58 = vld [vmem:[#allocation30_spill] sm:$0xff] }
 0x295   : > { %11262 = vst [vmem:[#allocation24_spill] sm:$0xff] %v10008_v49  ;;  %v7614_v9 = vadd.f32 %v7613_v13, %v7612_v20  ;;  %7908 = vmatprep.subr.mxu1 %v11201_v25 }
 0x296   : > { %v7615_v34 = vpop.f32.mrf.mxu0 }
 0x297   : > { %v10019_v59 = vadd.f32 %v7614_v9, %v9596_v52 }
 0x298   : > { %v7616_v23 = vpop.f32.mrf.mxu0  ;;  %v10030_v13 = vpop.f32.mrf.mxu1 }
 0x299   : > { %11264 = vst [vmem:[#allocation26_spill] sm:$0xff] %v10019_v59  ;;  %v7617_v18 = vadd.f32 %v7616_v23, %v7615_v34  ;;  %v11268_v34 = vld [vmem:[#allocation29_spill] sm:$0xff]  ;;  %v10037_v59 = vld [vmem:[#allocation9 + $0x30] sm:$0xff] }
 0x29a   : > { %v10032_v9 = vpop.f32.mrf.mxu1  ;;  %11270 = vst [vmem:[#allocation31_spill] sm:$0xff] %v10037_v59  ;;  %7909 = vmatpush3.msra.mxu1 %v10037_v59 }
 0x29b   : > { %v10026_v3 = vadd.f32 %v7617_v18, %v11266_v32  ;;  %v7618_v20 = vpop.f32.mrf.mxu0  ;;  %7910 = vmatprep.subr.mxu1 %v11201_v25 }
 0x29c   : > { %v10041_v18 = vpop.f32.mrf.mxu1  ;;  %7911 = vmatpush3.msra.mxu1 %v10048_v19 }
 0x29d   : > { %11267 = vst [vmem:[#allocation28_spill] sm:$0xff] %v10026_v3  ;;  %v7619_v36 = vpop.f32.mrf.mxu0  ;;  %7912 = vmatprep.subr.mxu1 %v11201_v25 }
 0x29e   : > { %v7620_v14 = vadd.f32 %v7619_v36, %v7618_v20  ;;  %v10046_v20 = vpop.f32.mrf.mxu1 }
 0x29f   : > { %v7621_v52 = vpop.f32.mrf.mxu0  ;;  %11273 = vst [vmem:[#allocation32_spill] sm:$0xff] %v10046_v20  ;;  %v10062_v20 = vld [vmem:[#allocation9 + $0x20] sm:$0xff] }
 0x2a0   : > { %v10035_v23 = vadd.f32 %v7620_v14, %v11268_v34  ;;  %11278 = vst [vmem:[#allocation37_spill] sm:$0xff] %v10062_v20  ;;  %7913 = vmatpush3.msra.mxu1 %v10062_v20 }
 0x2a1   : > { %v7622_v49 = vpop.f32.mrf.mxu0  ;;  %7914 = vmatprep.subr.mxu1 %v11201_v25 }
 0x2a2   : > { %11269 = vst [vmem:[#allocation29_spill] sm:$0xff] %v10035_v23  ;;  %v7623_v32 = vadd.f32 %v7622_v49, %v7621_v52 }
 0x2a4   : > { %v10044_v3 = vadd.f32 %v7623_v32, %v11271_v58  ;;  %v10052_v49 = vpop.f32.mrf.mxu1 }
 0x2a5   : > { %11275 = vst [vmem:[#allocation34_spill] sm:$0xff] %v10052_v49 }
 0x2a6   : > { %11272 = vst [vmem:[#allocation30_spill] sm:$0xff] %v10044_v3  ;;  %v10057_v32 = vpop.f32.mrf.mxu1 }
 0x2a8   : > { %v7624_v36 = vpop.f32.mrf.mxu0 }
 0x2aa   : > { %v7625_v14 = vpop.f32.mrf.mxu0 }
 0x2ab   : > { %v7626_v34 = vadd.f32 %v7625_v14, %v7624_v36  ;;  %v10066_v14 = vpop.f32.mrf.mxu1 }
 0x2ac   : > { %v7627_v59 = vpop.f32.mrf.mxu0 }
 0x2ad   : > { %v10055_v52 = vadd.f32 %v7626_v34, %v9668_v50  ;;  %v10068_v34 = vpop.f32.mrf.mxu1 }
 0x2ae   : > { %v7628_v23 = vpop.f32.mrf.mxu0  ;;  %11279 = vst [vmem:[#allocation38_spill] sm:$0xff] %v10068_v34 }
 0x2af   : > { %11276 = vst [vmem:[#allocation35_spill] sm:$0xff] %v10055_v52  ;;  %v7629_v58 = vadd.f32 %v7628_v23, %v7627_v59  ;;  %v10073_v23 = vld [vmem:[#allocation9 + $0x18] sm:$0xff] }
 0x2b0   : > { %11281 = vst [vmem:[#allocation40_spill] sm:$0xff] %v10073_v23  ;;  %7915 = vmatpush3.msra.mxu1 %v10073_v23 }
 0x2b1   : > { %v10060_v3 = vadd.f32 %v7629_v58, %v9723_v51  ;;  %7916 = vmatprep.subr.mxu1 %v11201_v25 }
 0x2b2   : > { %v10077_v20 = vpop.f32.mrf.mxu1 }
 0x2b3   : > { %11277 = vst [vmem:[#allocation36_spill] sm:$0xff] %v10060_v3 }
 0x2b4   : > { %v10082_v52 = vpop.f32.mrf.mxu1 }
 0x2b5   : > { %11283 = vst [vmem:[#allocation42_spill] sm:$0xff] %v10082_v52 }
 0x2b6   : > { %v7630_v36 = vpop.f32.mrf.mxu0 }
 0x2b8   : > { %v7631_v19 = vpop.f32.mrf.mxu0 }
 0x2b9   : > { %v7632_v49 = vadd.f32 %v7631_v19, %v7630_v36 }
 0x2ba   : > { %v7633_v50 = vpop.f32.mrf.mxu0 }
 0x2bb   : > { %v10071_v59 = vadd.f32 %v7632_v49, %v9726_v6  ;;  %v10084_v6 = vld [vmem:[#allocation9 + $0x10] sm:$0xff] }
 0x2bc   : > { %v7634_v51 = vpop.f32.mrf.mxu0  ;;  %11284 = vst [vmem:[#allocation43_spill] sm:$0xff] %v10084_v6  ;;  %7917 = vmatpush3.msra.mxu1 %v10084_v6 }
 0x2bd   : > { %11280 = vst [vmem:[#allocation39_spill] sm:$0xff] %v10071_v59  ;;  %v7635_v58 = vadd.f32 %v7634_v51, %v7633_v50  ;;  %7918 = vmatprep.subr.mxu1 %v11201_v25  ;;  %v10091_v51 = vpop.f32.mrf.mxu1 }
 0x2be   : > { %11286 = vst [vmem:[#allocation45_spill] sm:$0xff] %v10091_v51  ;;  %v10105_v51 = vld [vmem:[#allocation9 + $0x8] sm:$0xff] }
 0x2bf   : > { %v10080_v3 = vadd.f32 %v7635_v58, %v9771_v61  ;;  %11289 = vst [vmem:[#allocation48_spill] sm:$0xff] %v10105_v51  ;;  %7919 = vmatpush3.msra.mxu1 %v10105_v51 }
 0x2c1   : > { %11282 = vst [vmem:[#allocation41_spill] sm:$0xff] %v10080_v3  ;;  %v10096_v3 = vpop.f32.mrf.mxu1 }
 0x2c2   : > { %v7636_v19 = vpop.f32.mrf.mxu0 }
 0x2c3   : > { %v10098_v59 = vpop.f32.mrf.mxu1 }
 0x2c4   : > { %v7637_v36 = vpop.f32.mrf.mxu0 }
 0x2c5   : > { %v7638_v34 = vadd.f32 %v7637_v36, %v7636_v19  ;;  %v10103_v25 = vpop.f32.mrf.mxu1 }
 0x2c6   : > { %v7639_v49 = vpop.f32.mrf.mxu0 }
 0x2c7   : > { %v10088_v23 = vadd.f32 %v7638_v34, %v9791_v16 }
 0x2c8   : > { %v7640_v50 = vpop.f32.mrf.mxu0 }
 0x2c9   : > { %11285 = vst [vmem:[#allocation44_spill] sm:$0xff] %v10088_v23  ;;  %v7641_v61 = vadd.f32 %v7640_v50, %v7639_v49  ;;  %v10107_v49 = vld [vmem:[#allocation9] sm:$0xff] }
 0x2ca   : > { %11290 = vst [vmem:[#allocation49_spill] sm:$0xff] %v10107_v49 }
 0x2cb   : > { %v10094_v58 = vadd.f32 %v7641_v61, %v9815_v27  ;;  %v11291_v27 = vmov 0.0  }
 0x2cc   : > { %7922 = vmatprep.mubr.msk.f32.mxu1 %vm8482_vm14, %v11291_v27  ;;  %7920 = vmatprep.subr.mxu1 %v11291_v27 }
 0x2cd   : > { %11287 = vst [vmem:[#allocation46_spill] sm:$0xff] %v10094_v58  ;;  %7921 = vmatpush3.msra.mxu1 %v10107_v49 }
 0x2ce   : > { %7925 = vmatprep.subr.mxu1 %v11291_v27 }
 0x2d0   : > { %v7642_v19 = vpop.f32.mrf.mxu0 }
 0x2d2   : > { %v7643_v36 = vpop.f32.mrf.mxu0 }
 0x2d3   : > { %v7644_v52 = vadd.f32 %v7643_v36, %v7642_v19 }
 0x2d4   : > { %v7645_v6 = vpop.f32.mrf.mxu0 }
 0x2d5   : > { %v10101_v16 = vadd.f32 %v7644_v52, %v9817_v45  ;;  %v10117_v45 = vpop.f32.mrf.mxu1 }
 0x2d6   : > { %v7646_v34 = vpop.f32.mrf.mxu0 }
 0x2d7   : > { %11288 = vst [vmem:[#allocation47_spill] sm:$0xff] %v10101_v16  ;;  %v7647_v23 = vadd.f32 %v7646_v34, %v7645_v6  ;;  %v10120_v19 = vpop.f32.mrf.mxu1 }
 0x2d8   : > { %11293 = vst [vmem:[#allocation51_spill] sm:$0xff] %v10120_v19 }
 0x2d9   : > { %v10113_v50 = vadd.f32 %v7647_v23, %v9825_v26  ;;  %v10125_v23 = vpop.f32.mrf.mxu1 }
 0x2da   : > { %11295 = vst [vmem:[#allocation53_spill] sm:$0xff] %v10125_v23 }
 0x2db   : > { %11292 = vst [vmem:[#allocation50_spill] sm:$0xff] %v10113_v50  ;;  %v10130_v49 = vpop.f32.mrf.mxu1 }
 0x2dc   : > { %11297 = vst [vmem:[#allocation55_spill] sm:$0xff] %v10130_v49 }
 0x2dd   : > { %v10132_v27 = vpop.f32.mrf.mxu1 }
 0x2df   : > { %v7648_v52 = vpop.f32.mrf.mxu0 }
 0x2e1   : > { %v7649_v6 = vpop.f32.mrf.mxu0 }
 0x2e2   : > { %v7650_v61 = vadd.f32 %v7649_v6, %v7648_v52 }
 0x2e3   : > { %v7651_v36 = vpop.f32.mrf.mxu0 }
 0x2e4   : > { %v10123_v34 = vadd.f32 %v7650_v61, %v9837_v11  ;;  %v10137_v61 = vpop.f32.mrf.mxu1 }
 0x2e5   : > { %v7652_v51 = vpop.f32.mrf.mxu0 }
 0x2e6   : > { %11294 = vst [vmem:[#allocation52_spill] sm:$0xff] %v10123_v34  ;;  %v7653_v26 = vadd.f32 %v7652_v51, %v7651_v36 }
 0x2e8   : > { %v10128_v50 = vadd.f32 %v7653_v26, %v9844_v39  ;;  %v10142_v26 = vpop.f32.mrf.mxu1 }
 0x2ea   : > { %11296 = vst [vmem:[#allocation54_spill] sm:$0xff] %v10128_v50  ;;  %v10144_v23 = vpop.f32.mrf.mxu1 }
 0x2ed   : > { %v7654_v58 = vpop.f32.mrf.mxu0 }
 0x2ef   : > { %v7655_v16 = vpop.f32.mrf.mxu0 }
 0x2f0   : > { %v7656_v52 = vadd.f32 %v7655_v16, %v7654_v58 }
 0x2f1   : > { %v7657_v6 = vpop.f32.mrf.mxu0 }
 0x2f2   : > { %v10135_v19 = vadd.f32 %v7656_v52, %v9855_v21  ;;  %v10149_v52 = vpop.f32.mrf.mxu1 }
 0x2f3   : > { %v7658_v11 = vpop.f32.mrf.mxu0 }
 0x2f4   : > { %11298 = vst [vmem:[#allocation56_spill] sm:$0xff] %v10135_v19  ;;  %v7659_v51 = vadd.f32 %v7658_v11, %v7657_v6  ;;  %v10154_v11 = vpop.f32.mrf.mxu1 }
 0x2f6   : > { %v10140_v36 = vadd.f32 %v7659_v51, %v9866_v8 }
 0x2f8   : > { %11299 = vst [vmem:[#allocation57_spill] sm:$0xff] %v10140_v36 }
 0x2fa   : > { %v7660_v39 = vpop.f32.mrf.mxu0 }
 0x2fc   : > { %v7661_v50 = vpop.f32.mrf.mxu0 }
 0x2fd   : > { %v7662_v34 = vadd.f32 %v7661_v50, %v7660_v39  ;;  %v10156_v50 = vpop.f32.mrf.mxu1 }
 0x2fe   : > { %v7663_v49 = vpop.f32.mrf.mxu0 }
 0x2ff   : > { %v10147_v58 = vadd.f32 %v7662_v34, %v9874_v29 }
 0x300   : > { %v7664_v21 = vpop.f32.mrf.mxu0 }
 0x301   : > { %11300 = vst [vmem:[#allocation58_spill] sm:$0xff] %v10147_v58  ;;  %v7665_v16 = vadd.f32 %v7664_v21, %v7663_v49  ;;  %v7693_v49 = vadd.f32 %v9920_v60, %v9914_v55  ;;  %v10165_v21 = vpop.f32.mrf.mxu1 }
 0x303   : > { %v10152_v6 = vadd.f32 %v7665_v16, %v9876_v35  ;;  %v7696_v35 = vadd.f32 %v9937_v7, %v9929_v54  ;;  %v5441_v54 = vadd.f32 %v7693_v49, %v9910_v0 }
 0x305   : > { %v5446_v55 = vadd.f32 %v7696_v35, %v9927_v48  ;;  %v7714_v35 = vadd.f32 %v9987_v46, %v9983_v30 }
 0x30a   : > { %v7666_v8 = vpop.f32.mrf.mxu0 }
 0x30c   : > { %v7667_v51 = vpop.f32.mrf.mxu0 }
 0x30d   : > { %v7668_v36 = vadd.f32 %v7667_v51, %v7666_v8  ;;  %v7699_v51 = vadd.f32 %v9942_v42, %v9940_v33  ;;  %v7705_v33 = vadd.f32 %v9960_v62, %v9958_v22  ;;  %v7708_v42 = vadd.f32 %v9970_v47, %v9965_v44 }
 0x30e   : > { %v7669_v19 = vpop.f32.mrf.mxu0  ;;  %v7711_v22 = vadd.f32 %v9978_v40, %v9974_v53 }
 0x30f   : > { %v10159_v39 = vadd.f32 %v7668_v36, %v9893_v41  ;;  %v7702_v41 = vadd.f32 %v9955_v57, %v9947_v56  ;;  %v10174_v36 = vpop.f32.mrf.mxu1 }
 0x310   : > { %v7670_v29 = vpop.f32.mrf.mxu0 }
 0x311   : > { %v7671_v34 = vadd.f32 %v7670_v29, %v7669_v19  ;;  %v5449_v29 = vadd.f32 %v7699_v51, %v9934_v5  ;;  %v5454_v48 = vadd.f32 %v7702_v41, %v9945_v28 }
 0x312   : > { %v7860_v58 = vpop.f32.mrf.mxu0 }
 0x313   : > { %v10168_v16 = vadd.f32 %v7671_v34, %v9906_v4  ;;  %v10181_v4 = vadd.f32 %v7860_v58, %v5446_v55  ;;  %v5457_v55 = vadd.f32 %v7705_v33, %v9952_v37  ;;  %v5470_v33 = vadd.f32 %v7714_v35, %v9981_v1 }
 0x314   : > { %v5598_v8 = vpop.f32.mrf.mxu0 }
 0x315   : > { %v10178_v60 = vadd.f32 %v5598_v8, %v9922_v24  ;;  %v10191_v24 = vpop.f32.mrf.mxu1  ;;  %v5764_v28 = vmul.f32 %v10181_v4, %v10181_v4  ;;  %v5462_v8 = vadd.f32 %v7708_v42, %v9963_v43 }
 0x316   : > { %v7861_v19 = vpop.f32.mrf.mxu0 }
 0x317   : > { %v5762_v0 = vmul.f32 %v10178_v60, %v10178_v60  ;;  %v10195_v57 = vadd.f32 %v7861_v19, %v5449_v29  ;;  %v10211_v41 = vpop.f32.mrf.mxu1 }
 0x318   : > { %v5601_v7 = vpop.f32.mrf.mxu0 }
 0x319   : > { %v10184_v34 = vadd.f32 %v5601_v7, %v5441_v54  ;;  %v5765_v53 = vmul.f32 %v10195_v57, %v10195_v57  ;;  %v5465_v7 = vadd.f32 %v7711_v22, %v9968_v12 }
 0x31a   : > { %v7864_v56 = vpop.f32.mrf.mxu0 }
 0x31b   : > { %v5725_v5 = vadd.f32 %v10184_v34, %v10178_v60  ;;  %v5763_v58 = vmul.f32 %v10184_v34, %v10184_v34  ;;  %v10217_v54 = vadd.f32 %v7864_v56, %v5462_v8  ;;  %v10230_v56 = vpop.f32.mrf.mxu1 }
 0x31c   : > { %v5614_v62 = vpop.f32.mrf.mxu0 }
 0x31d   : > { %v5726_v44 = vadd.f32 %v5725_v5, %v10181_v4  ;;  %v5794_v47 = vadd.f32 %v5763_v58, %v5762_v0  ;;  %v10206_v49 = vadd.f32 %v5614_v62, %v5454_v48  ;;  %v7717_v48 = vadd.f32 %v9999_v10, %v9994_v15  ;;  %v10247_v35 = vpop.f32.mrf.mxu1 }
 0x31e   : > { %v7865_v51 = vpop.f32.mrf.mxu0  ;;  %v7720_v0 = vadd.f32 %v10010_v63, %v10005_v38  ;;  %v7723_v62 = vadd.f32 %v10021_v2, %v10016_v31  ;;  %v5768_v10 = vmul.f32 %v10217_v54, %v10217_v54 }
 0x31f   : > { %v5795_v40 = vadd.f32 %v5794_v47, %v5764_v28  ;;  %v5727_v19 = vadd.f32 %v5726_v44, %v10195_v57  ;;  %v5766_v43 = vmul.f32 %v10206_v49, %v10206_v49  ;;  %v10232_v5 = vadd.f32 %v7865_v51, %v5465_v7  ;;  %v11301_v51 = vld [vmem:[#allocation22_spill] sm:$0xff] }
 0x320   : > { %v5617_v29 = vpop.f32.mrf.mxu0  ;;  %v7726_v28 = vadd.f32 %v10032_v9, %v10030_v13  ;;  %v5478_v44 = vadd.f32 %v7720_v0, %v10003_v17 }
 0x321   : > { %v5728_v30 = vadd.f32 %v5727_v19, %v10206_v49  ;;  %v5796_v46 = vadd.f32 %v5795_v40, %v5765_v53  ;;  %v10223_v42 = vadd.f32 %v5617_v29, %v5457_v55  ;;  %v5769_v31 = vmul.f32 %v10232_v5, %v10232_v5  ;;  %v11302_v19 = vld [vmem:[#allocation24_spill] sm:$0xff] }
 0x322   : > { %v7868_v37 = vpop.f32.mrf.mxu0  ;;  %v5473_v53 = vadd.f32 %v7717_v48, %v11301_v51  ;;  %v5481_v55 = vadd.f32 %v7723_v62, %v11302_v19 }
 0x323   : > { %v5797_v12 = vadd.f32 %v5796_v46, %v5766_v43  ;;  %v5729_v58 = vadd.f32 %v5728_v30, %v10223_v42  ;;  %v5767_v22 = vmul.f32 %v10223_v42, %v10223_v42  ;;  %v10253_v40 = vadd.f32 %v7868_v37, %v5478_v44  ;;  %v11303_v30 = vld [vmem:[#allocation32_spill] sm:$0xff]  ;;  %v11304_v46 = vld [vmem:[#allocation34_spill] sm:$0xff] }
 0x324   : > { %v5630_v15 = vpop.f32.mrf.mxu0  ;;  %v7729_v43 = vadd.f32 %v11303_v30, %v10041_v18  ;;  %v7732_v0 = vadd.f32 %v10057_v32, %v11304_v46  ;;  %v11305_v37 = vld [vmem:[#allocation26_spill] sm:$0xff] }
 0x325   : > { %v5730_v38 = vadd.f32 %v5729_v58, %v10217_v54  ;;  %v5798_v1 = vadd.f32 %v5797_v12, %v5767_v22  ;;  %v10242_v63 = vadd.f32 %v5630_v15, %v5470_v33  ;;  %v5486_v33 = vadd.f32 %v7726_v28, %v11305_v37  ;;  %v10266_v12 = vpop.f32.mrf.mxu1 }
 0x326   : > { %v7869_v47 = vpop.f32.mrf.mxu0  ;;  %v5772_v32 = vmul.f32 %v10253_v40, %v10253_v40 }
 0x327   : > { %v5799_v2 = vadd.f32 %v5798_v1, %v5768_v10  ;;  %v5731_v8 = vadd.f32 %v5730_v38, %v10232_v5  ;;  %v5770_v17 = vmul.f32 %v10242_v63, %v10242_v63  ;;  %v10268_v22 = vadd.f32 %v7869_v47, %v5481_v55  ;;  %v11306_v10 = vld [vmem:[#allocation38_spill] sm:$0xff] }
 0x328   : > { %v5633_v7 = vpop.f32.mrf.mxu0  ;;  %v7735_v38 = vadd.f32 %v11306_v10, %v10066_v14  ;;  %v11307_v47 = vld [vmem:[#allocation42_spill] sm:$0xff] }
 0x329   : > { %v5732_v13 = vadd.f32 %v5731_v8, %v10242_v63  ;;  %v5800_v9 = vadd.f32 %v5799_v2, %v5769_v31  ;;  %v10259_v29 = vadd.f32 %v5633_v7, %v5473_v53  ;;  %v7738_v31 = vadd.f32 %v11307_v47, %v10077_v20  ;;  %v11308_v2 = vld [vmem:[#allocation29_spill] sm:$0xff]  ;;  %v10283_v53 = vpop.f32.mrf.mxu1  ;;  %v11309_v7 = vld [vmem:[#allocation28_spill] sm:$0xff]  ;;  %v11313_v47 = vld [vmem:[#allocation51_spill] sm:$0xff] }
 0x32a   : > { %v7872_v48 = vpop.f32.mrf.mxu0  ;;  %v5494_v8 = vadd.f32 %v7732_v0, %v11308_v2  ;;  %v5773_v14 = vmul.f32 %v10268_v22, %v10268_v22  ;;  %v7747_v2 = vadd.f32 %v11313_v47, %v10117_v45  ;;  %v7753_v47 = vadd.f32 %v10137_v61, %v10132_v27 }
 0x32b   : > { %v5801_v58 = vadd.f32 %v5800_v9, %v5770_v17  ;;  %v5733_v62 = vadd.f32 %v5732_v13, %v10259_v29  ;;  %v5771_v15 = vmul.f32 %v10259_v29, %v10259_v29  ;;  %v5489_v13 = vadd.f32 %v7729_v43, %v11309_v7  ;;  %v11310_v9 = vld [vmem:[#allocation30_spill] sm:$0xff] }
 0x32c   : > { %v5646_v18 = vpop.f32.mrf.mxu0  ;;  %v10289_v17 = vadd.f32 %v7872_v48, %v5494_v8  ;;  %v5497_v30 = vadd.f32 %v7735_v38, %v11310_v9  ;;  %v11312_v48 = vld [vmem:[#allocation35_spill] sm:$0xff] }
 0x32d   : > { %v5734_v1 = vadd.f32 %v5733_v62, %v10253_v40  ;;  %v5802_v28 = vadd.f32 %v5801_v58, %v5771_v15  ;;  %v10278_v44 = vadd.f32 %v5646_v18, %v5486_v33  ;;  %v11311_v58 = vld [vmem:[#allocation45_spill] sm:$0xff]  ;;  %v7744_v15 = vadd.f32 %v10103_v25, %v10098_v59  ;;  %v10302_v18 = vpop.f32.mrf.mxu1 }
 0x32e   : > { %v7873_v51 = vpop.f32.mrf.mxu0  ;;  %v7741_v62 = vadd.f32 %v10096_v3, %v11311_v58  ;;  %v5502_v10 = vadd.f32 %v7738_v31, %v11312_v48  ;;  %v5776_v25 = vmul.f32 %v10289_v17, %v10289_v17  ;;  %v11318_v58 = vld [vmem:[#allocation41_spill] sm:$0xff] }
 0x32f   : > { %v5803_v19 = vadd.f32 %v5802_v28, %v5772_v32  ;;  %v5735_v55 = vadd.f32 %v5734_v1, %v10268_v22  ;;  %v5774_v0 = vmul.f32 %v10278_v44, %v10278_v44  ;;  %v10304_v32 = vadd.f32 %v7873_v51, %v5497_v30  ;;  %v11315_v51 = vld [vmem:[#allocation55_spill] sm:$0xff]  ;;  %v10319_v9 = vpop.f32.mrf.mxu1 }
 0x330   : > { %v5649_v46 = vpop.f32.mrf.mxu0  ;;  %v5513_v48 = vadd.f32 %v7747_v2, %v11318_v58 }
 0x331   : > { %v5736_v20 = vadd.f32 %v5735_v55, %v10278_v44  ;;  %v5804_v37 = vadd.f32 %v5803_v19, %v5773_v14  ;;  %v10295_v33 = vadd.f32 %v5649_v46, %v5489_v13  ;;  %v11314_v14 = vld [vmem:[#allocation53_spill] sm:$0xff]  ;;  %v11316_v55 = vld [vmem:[#allocation39_spill] sm:$0xff]  ;;  %v5777_v45 = vmul.f32 %v10304_v32, %v10304_v32 }
 0x332   : > { %v7876_v43 = vpop.f32.mrf.mxu0  ;;  %v7750_v19 = vadd.f32 %v11315_v51, %v11314_v14  ;;  %v5510_v7 = vadd.f32 %v7744_v15, %v11316_v55 }
 0x333   : > { %v5805_v38 = vadd.f32 %v5804_v37, %v5774_v0  ;;  %v5737_v1 = vadd.f32 %v5736_v20, %v10295_v33  ;;  %v5775_v28 = vmul.f32 %v10295_v33, %v10295_v33  ;;  %v11317_v20 = vld [vmem:[#allocation36_spill] sm:$0xff] }
 0x334   : > { %v5662_v3 = vpop.f32.mrf.mxu0  ;;  %v5505_v0 = vadd.f32 %v7741_v62, %v11317_v20  ;;  %v10325_v37 = vadd.f32 %v7876_v43, %v5510_v7  ;;  %v11319_v43 = vld [vmem:[#allocation44_spill] sm:$0xff] }
 0x335   : > { %v5738_v59 = vadd.f32 %v5737_v1, %v10289_v17  ;;  %v5806_v31 = vadd.f32 %v5805_v38, %v5775_v28  ;;  %v10314_v8 = vadd.f32 %v5662_v3, %v5502_v10  ;;  %v7756_v3 = vadd.f32 %v10144_v23, %v10142_v26  ;;  %v11320_v26 = vld [vmem:[#allocation47_spill] sm:$0xff] }
 0x336   : > { %v7877_v13 = vpop.f32.mrf.mxu0  ;;  %v5780_v7 = vmul.f32 %v10325_v37, %v10325_v37 }
 0x337   : > { %v5807_v30 = vadd.f32 %v5806_v31, %v5776_v25  ;;  %v5739_v46 = vadd.f32 %v5738_v59, %v10304_v32  ;;  %v5778_v15 = vmul.f32 %v10314_v8, %v10314_v8  ;;  %v5518_v25 = vadd.f32 %v7750_v19, %v11319_v43  ;;  %v7776_v59 = vpop.f32.mrf.mxu1 }
 0x338   : > { %v5665_v10 = vpop.f32.mrf.mxu0  ;;  %v10338_v31 = vadd.f32 %v7877_v13, %v5513_v48  ;;  %v5526_v19 = vadd.f32 %v7756_v3, %v11320_v26 }
 0x339   : > { %v5740_v38 = vadd.f32 %v5739_v46, %v10314_v8  ;;  %v5808_v1 = vadd.f32 %v5807_v30, %v5777_v45  ;;  %v10331_v28 = vadd.f32 %v5665_v10, %v5505_v0  ;;  %v11321_v30 = vld [vmem:[#allocation46_spill] sm:$0xff]  ;;  %v7759_v46 = vadd.f32 %v10154_v11, %v10149_v52  ;;  %v7778_v20 = vpop.f32.mrf.mxu1 }
 0x33a   : > { %v7880_v62 = vpop.f32.mrf.mxu0  ;;  %v5521_v13 = vadd.f32 %v7753_v47, %v11321_v30  ;;  %v5781_v0 = vmul.f32 %v10338_v31, %v10338_v31  ;;  %v7762_v10 = vadd.f32 %v10165_v21, %v10156_v50  ;;  %v7765_v11 = vadd.f32 %v10191_v24, %v10174_v36  ;;  %v11324_v30 = vld [vmem:[#allocation54_spill] sm:$0xff] }
 0x33b   : > { %v5809_v2 = vadd.f32 %v5808_v1, %v5778_v15  ;;  %v5741_v14 = vadd.f32 %v5740_v38, %v10331_v28  ;;  %v5779_v51 = vmul.f32 %v10331_v28, %v10331_v28  ;;  %v10357_v38 = vadd.f32 %v7880_v62, %v5526_v19 }
 0x33c   : > { %v5678_v55 = vpop.f32.mrf.mxu0  ;;  %v7768_v62 = vadd.f32 %v10230_v56, %v10211_v41 }
 0x33d   : > { %v5742_v27 = vadd.f32 %v5741_v14, %v10325_v37  ;;  %v5810_v61 = vadd.f32 %v5809_v2, %v5779_v51  ;;  %v10346_v23 = vadd.f32 %v5678_v55, %v5518_v25  ;;  %v7779_v25 = vpop.f32.mrf.mxu1  ;;  %v11322_v14 = vld [vmem:[#allocation50_spill] sm:$0xff]  ;;  %v11323_v55 = vld [vmem:[#allocation52_spill] sm:$0xff] }
 0x33e   : > { %v7881_v45 = vpop.f32.mrf.mxu0  ;;  %v5529_v51 = vadd.f32 %v7759_v46, %v11322_v14  ;;  %v7771_v46 = vadd.f32 %v10266_v12, %v10247_v35  ;;  %v7777_v35 = vadd.f32 %v7776_v59, %v10319_v9 }
 0x33f   : > { %v5811_v58 = vadd.f32 %v5810_v61, %v5780_v7  ;;  %v5743_v48 = vadd.f32 %v5742_v27, %v10338_v31  ;;  %v5782_v47 = vmul.f32 %v10346_v23, %v10346_v23  ;;  %v5534_v7 = vadd.f32 %v7762_v10, %v11323_v55 }
 0x340   : > { %v5681_v15 = vpop.f32.mrf.mxu0  ;;  %v5784_v61 = vmul.f32 %v10357_v38, %v10357_v38  ;;  %v10375_v36 = vadd.f32 %v7881_v45, %v5529_v51  ;;  %v11326_v51 = vld [vmem:[#allocation57_spill] sm:$0xff] }
 0x341   : > { %v5744_v1 = vadd.f32 %v5743_v48, %v10346_v23  ;;  %v5812_v3 = vadd.f32 %v5811_v58, %v5781_v0  ;;  %v10362_v52 = vadd.f32 %v5681_v15, %v5521_v13  ;;  %v5537_v13 = vadd.f32 %v7765_v11, %v11324_v30  ;;  %v7781_v0 = vpop.f32.mrf.mxu1  ;;  %v11325_v15 = vld [vmem:[#allocation56_spill] sm:$0xff] }
 0x342   : > { %v7884_v43 = vpop.f32.mrf.mxu0  ;;  %v7774_v48 = vadd.f32 %v10302_v18, %v10283_v53  ;;  %v5785_v10 = vmul.f32 %v10375_v36, %v10375_v36  ;;  %v11327_v18 = vld [vmem:[#allocation58_spill] sm:$0xff] }
 0x343   : > { %v5813_v2 = vadd.f32 %v5812_v3, %v5782_v47  ;;  %v5745_v50 = vadd.f32 %v5744_v1, %v10362_v52  ;;  %v5783_v21 = vmul.f32 %v10362_v52, %v10362_v52  ;;  %v5542_v1 = vadd.f32 %v7768_v62, %v11325_v15  ;;  %v7782_v11 = vpop.f32.mrf.mxu1 }
 0x344   : > { %v5694_v27 = vpop.f32.mrf.mxu0  ;;  %v7783_v59 = vadd.f32 %v7782_v11, %v7781_v0 }
 0x345   : > { %v5746_v24 = vadd.f32 %v5745_v50, %v10357_v38  ;;  %v5814_v26 = vadd.f32 %v5813_v2, %v5783_v21  ;;  %v10381_v41 = vadd.f32 %v5694_v27, %v5534_v7  ;;  %v10393_v2 = vadd.f32 %v7884_v43, %v5542_v1 }
 0x346   : > { %v7885_v19 = vpop.f32.mrf.mxu0  ;;  %v5545_v50 = vadd.f32 %v7771_v46, %v11326_v51  ;;  %v5550_v21 = vadd.f32 %v7774_v48, %v11327_v18  ;;  %v7780_v7 = vadd.f32 %v7779_v25, %v7778_v20  ;;  %v5553_v43 = vadd.f32 %v7777_v35, %v10152_v6 }
 0x347   : > { %v5815_v58 = vadd.f32 %v5814_v26, %v5784_v61  ;;  %v5747_v56 = vadd.f32 %v5746_v24, %v10375_v36  ;;  %v5786_v62 = vmul.f32 %v10381_v41, %v10381_v41  ;;  %v5561_v6 = vadd.f32 %v7783_v59, %v10168_v16  ;;  %v11329_v59 = vld [vmem:[#allocation17_spill] sm:$0xff] }
 0x348   : > { %v5697_v45 = vpop.f32.mrf.mxu0  ;;  %v10400_v27 = vadd.f32 %v7885_v19, %v5545_v50  ;;  %v5558_v25 = vadd.f32 %v7780_v7, %v10159_v39  ;;  %v5788_v48 = vmul.f32 %v10393_v2, %v10393_v2  ;;  %v8321_v7 = vld [vmem:[#allocation9 + $0x78] sm:$0xff] }
 0x349   : > { %v5748_v47 = vadd.f32 %v5747_v56, %v10381_v41  ;;  %v10390_v3 = vadd.f32 %v5697_v45, %v5537_v13  ;;  %v5816_v14 = vadd.f32 %v5815_v58, %v5785_v10 }
 0x34a   : > { %v7888_v12 = vpop.f32.mrf.mxu0  ;;  %v5789_v1 = vmul.f32 %v10400_v27, %v10400_v27 }
 0x34b   : > { %v5749_v53 = vadd.f32 %v5748_v47, %v10390_v3  ;;  %v5817_v24 = vadd.f32 %v5816_v14, %v5786_v62  ;;  %v5787_v26 = vmul.f32 %v10390_v3, %v10390_v3  ;;  %v10413_v0 = vadd.f32 %v7888_v12, %v5558_v25  ;;  %v11333_v25 = vld [vmem:[#allocation21_spill] sm:$0xff] }
 0x34c   : > { %v5710_v55 = vpop.f32.mrf.mxu0  ;;  %v11328_v62 = vmov 0.0  }
 0x34d   : > { %v5750_v9 = vadd.f32 %v5749_v53, %v10393_v2  ;;  %v10406_v30 = vadd.f32 %v5710_v55, %v5550_v21  ;;  %v5818_v58 = vadd.f32 %v5817_v24, %v5787_v26  ;;  %v5792_v55 = vmul.f32 %v10413_v0, %v10413_v0  ;;  %v11331_v26 = vld [vmem:[#allocation19_spill] sm:$0xff] }
 0x34e   : > { %v7889_v61 = vpop.f32.mrf.mxu0 }
 0x34f   : > { %v5751_v13 = vadd.f32 %v5750_v9, %v10400_v27  ;;  %v10419_v45 = vadd.f32 %v7889_v61, %v5561_v6  ;;  %v5819_v15 = vadd.f32 %v5818_v58, %v5788_v48  ;;  %v5790_v16 = vmul.f32 %v10406_v30, %v10406_v30  ;;  %v11335_v6 = vld [vmem:[#allocation25_spill] sm:$0xff] }
 0x350   : > { %v5713_v20 = vpop.f32.mrf.mxu0 }
 0x351   : > { %v5752_v19 = vadd.f32 %v5751_v13, %v10406_v30  ;;  %v10411_v46 = vadd.f32 %v5713_v20, %v5553_v43  ;;  %v5820_v35 = vadd.f32 %v5819_v15, %v5789_v1  ;;  %v5793_v61 = vmul.f32 %v10419_v45, %v10419_v45  ;;  %v11330_v43 = vld [vmem:[#allocation18_spill] sm:$0xff]  ;;  %v11332_v13 = vld [vmem:[#allocation20_spill] sm:$0xff]  ;;  %v11338_v15 = vld [vmem:[#allocation33_spill] sm:$0xff] }
 0x352   : > { %v11339_v1 = vld [vmem:[#allocation37_spill] sm:$0xff] }
 0x353   : > { %v5753_v56 = vadd.f32 %v5752_v19, %v10411_v46  ;;  %v5821_v14 = vadd.f32 %v5820_v35, %v5790_v16  ;;  %v5791_v50 = vmul.f32 %v10411_v46, %v10411_v46  ;;  %v11334_v19 = vld [vmem:[#allocation23_spill] sm:$0xff]  ;;  %v11342_v16 = vld [vmem:[#allocation48_spill] sm:$0xff] }
 0x355   : > { %v5754_v10 = vadd.f32 %v5753_v56, %v10413_v0  ;;  %v5822_v21 = vadd.f32 %v5821_v14, %v5791_v50  ;;  %v11336_v56 = vld [vmem:[#allocation27_spill] sm:$0xff]  ;;  %v11343_v14 = vld [vmem:[#allocation49_spill] sm:$0xff] }
 0x357   : > { %v5755_v39 = vadd.f32 %v5754_v10, %v10419_v45  ;;  %v5823_v9 = vadd.f32 %v5822_v21, %v5792_v55  ;;  %v11337_v10 = vld [vmem:[#allocation31_spill] sm:$0xff] }
 0x359   : > { %v5756_v47 = vrot.slane %v5755_v39, 4  ;;  %v5824_v24 = vadd.f32 %v5823_v9, %v5793_v61  ;;  %v5996_v9 = vlaneseq }
 0x35b   : > { %v5757_v12 = vadd.f32 %v5756_v47, %v5755_v39  ;;  %v5825_v20 = vrot.slane %v5824_v24, 4  ;;  %v11340_v47 = vld [vmem:[#allocation40_spill] sm:$0xff] }
 0x35d   : > { %v5758_v11 = vrot.slane %v5757_v12, 2  ;;  %v5826_v58 = vadd.f32 %v5825_v20, %v5824_v24  ;;  %v5993_v20 = vld [vmem:[%s11176_s4] sm:$0x1] }
 0x35f   : > { %v5759_v51 = vadd.f32 %v5758_v11, %v5757_v12  ;;  %v5827_v48 = vrot.slane %v5826_v58, 2  ;;  %v11341_v12 = vld [vmem:[#allocation43_spill] sm:$0xff] }
 0x361   : > { %v5760_v53 = vrot.slane %v5759_v51, 1  ;;  %v5828_v39 = vadd.f32 %v5827_v48, %v5826_v58 }
 0x363   : > { %v5761_v18 = vadd.f32 %v5760_v53, %v5759_v51  ;;  %v5829_v35 = vrot.slane %v5828_v39, 1 }
 0x365   : > { %7923 = vmatmul.mubr.f32.vlgmr.msra.gmra.mxu1 %v5761_v18  ;;  %v5830_v11 = vadd.f32 %v5829_v35, %v5828_v39 }
 0x366   : > { %7926 = vmatpush3.msra.mxu1 %v8321_v7  ;;  %7957 = vmatprep.mubr.msk.f32.mxu1 %vm8482_vm14, %v11328_v62 }
 0x367   : > { %7927 = vmatprep.subr.mxu1 %v11328_v62 }
 0x368   : > { %7928 = vmatpush3.msra.mxu1 %v11329_v59  ;;  %v5997_v59 = vshrl.u32 %v5996_v9, 7 }
 0x369   : > { %7929 = vmatprep.subr.mxu1 %v11328_v62 }
 0x36a   : > { %7930 = vmatpush3.msra.mxu1 %v11330_v43  ;;  %v5991_v43 = vld [vmem:[%s11175_s3] sm:$0x1]  ;;  %v5998_v24 = vsub.s32 0, %v5997_v59 }
 0x36b   : > { %7931 = vmatprep.subr.mxu1 %v11328_v62 }
 0x36c   : > { %7932 = vmatpush3.msra.mxu1 %v11331_v26 }
 0x36d   : > { %7933 = vmatprep.subr.mxu1 %v11328_v62 }
 0x36e   : > { %7934 = vmatpush3.msra.mxu1 %v11332_v13 }
 0x36f   : > { %7935 = vmatprep.subr.mxu1 %v11328_v62 }
 0x370   : > { %7936 = vmatpush3.msra.mxu1 %v11333_v25 }
 0x371   : > { %7937 = vmatprep.subr.mxu1 %v11328_v62 }
 0x372   : > { %7938 = vmatpush3.msra.mxu1 %v11334_v19 }
 0x373   : > { %7939 = vmatprep.subr.mxu1 %v11328_v62 }
 0x374   : > { %7940 = vmatpush3.msra.mxu1 %v11335_v6 }
 0x375   : > { %7941 = vmatprep.subr.mxu1 %v11328_v62 }
 0x376   : > { %7942 = vmatpush3.msra.mxu1 %v11336_v56 }
 0x377   : > { %7943 = vmatprep.subr.mxu1 %v11328_v62 }
 0x378   : > { %7944 = vmatpush3.msra.mxu1 %v11337_v10 }
 0x379   : > { %7945 = vmatprep.subr.mxu1 %v11328_v62 }
 0x37a   : > { %7946 = vmatpush3.msra.mxu1 %v11338_v15 }
 0x37b   : > { %7947 = vmatprep.subr.mxu1 %v11328_v62 }
 0x37c   : > { %7948 = vmatpush3.msra.mxu1 %v11339_v1 }
 0x37d   : > { %7949 = vmatprep.subr.mxu1 %v11328_v62 }
 0x37e   : > { %7950 = vmatpush3.msra.mxu1 %v11340_v47 }
 0x37f   : > { %7951 = vmatprep.subr.mxu1 %v11328_v62 }
 0x380   : > { %7952 = vmatpush3.msra.mxu1 %v11341_v12 }
 0x381   : > { %7953 = vmatprep.subr.mxu1 %v11328_v62 }
 0x382   : > { %7954 = vmatpush3.msra.mxu1 %v11342_v16 }
 0x383   : > { %7955 = vmatprep.subr.mxu1 %v11328_v62 }
 0x384   : > { %7956 = vmatpush3.msra.mxu1 %v11343_v14 }
 0x385   : > { %7958 = vmatmul.mubr.f32.vlgmr.msra.gmra.mxu1 %v5830_v11 }
 0x425   : > { %v5913_v51 = vpop.f32.mrf.mxu1 }
 0x426   : > { %v5987_v53 = vmul.f32 %v5913_v51, %v5913_v51 }
 0x427   : > { %v7924_v50 = vpop.f32.mrf.mxu1 }
 0x445   : > { %v5983_v18 = vpop.f32.mrf.mxu1 }
 0x446   : > { %v5988_v21 = vsub.f32 %v5983_v18, %v5987_v53 }
 0x447   : > { %v7959_v55 = vpop.f32.mrf.mxu1 }
 0x448   : > { %v5989_v7 = vadd.f32 1e-05, %v5988_v21 }
 0x44a   : > { %8318 = vrsqrt.f32 %v5989_v7 }
 0x457   : > { %v8319_v61 = vpop.eup %8318 }
 0x458   : > { %v5992_v62 = vmul.f32 %v8319_v61, %v5991_v43 }
 0x45a   : > { %v5994_v26 = vmul.f32 %v5992_v62, %v5913_v51  ;;  %v5999_v13 = vrot.slane %v5992_v62, %v5998_v24 }
 0x45c   : > { %v5995_v25 = vsub.f32 %v5993_v20, %v5994_v26  ;;  %v6000_v19 = vmul.f32 %v5999_v13, %v10178_v60  ;;  %v6001_v58 = vmul.f32 %v5999_v13, %v10184_v34  ;;  %v6002_v6 = vmul.f32 %v5999_v13, %v10181_v4 }
 0x45d   : > { %v6003_v56 = vmul.f32 %v5999_v13, %v10195_v57  ;;  %v6004_v48 = vmul.f32 %v5999_v13, %v10206_v49  ;;  %v6005_v10 = vmul.f32 %v5999_v13, %v10223_v42  ;;  %v6006_v15 = vmul.f32 %v5999_v13, %v10217_v54 }
 0x45e   : > { %v6007_v39 = vmul.f32 %v5999_v13, %v10232_v5  ;;  %v6008_v1 = vmul.f32 %v5999_v13, %v10242_v63  ;;  %v6009_v47 = vmul.f32 %v5999_v13, %v10259_v29  ;;  %v6010_v60 = vmul.f32 %v5999_v13, %v10253_v40 }
 0x45f   : > { %v6011_v34 = vmul.f32 %v5999_v13, %v10268_v22  ;;  %v6012_v4 = vmul.f32 %v5999_v13, %v10278_v44  ;;  %v6013_v57 = vmul.f32 %v5999_v13, %v10295_v33  ;;  %v6014_v49 = vmul.f32 %v5999_v13, %v10289_v17 }
 0x460   : > { %v6015_v42 = vmul.f32 %v5999_v13, %v10304_v32  ;;  %v6016_v54 = vmul.f32 %v5999_v13, %v10314_v8  ;;  %v6017_v5 = vmul.f32 %v5999_v13, %v10331_v28  ;;  %v6018_v63 = vmul.f32 %v5999_v13, %v10325_v37 }
 0x461   : > { %v6019_v29 = vmul.f32 %v5999_v13, %v10338_v31  ;;  %v6036_v35 = vrot.slane %v5995_v25, %v5998_v24  ;;  %v6020_v40 = vmul.f32 %v5999_v13, %v10346_v23  ;;  %v6021_v22 = vmul.f32 %v5999_v13, %v10362_v52 }
 0x462   : > { %v6022_v44 = vmul.f32 %v5999_v13, %v10357_v38  ;;  %v6023_v33 = vmul.f32 %v5999_v13, %v10375_v36  ;;  %v6024_v17 = vmul.f32 %v5999_v13, %v10381_v41  ;;  %v6025_v32 = vmul.f32 %v5999_v13, %v10390_v3 }
 0x463   : > { %v6026_v8 = vmul.f32 %v5999_v13, %v10393_v2  ;;  %v6027_v28 = vmul.f32 %v5999_v13, %v10400_v27  ;;  %v6028_v37 = vmul.f32 %v5999_v13, %v10406_v30  ;;  %v6029_v31 = vmul.f32 %v5999_v13, %v10411_v46 }
 0x464   : > { %v6030_v23 = vmul.f32 %v5999_v13, %v10413_v0  ;;  %v6031_v52 = vmul.f32 %v5999_v13, %v10419_v45  ;;  %v10503_v12 = vadd.f32 %v6036_v35, %v6000_v19  ;;  %v10505_v38 = vadd.f32 %v6036_v35, %v6001_v58 }
 0x465   : > { %v10507_v36 = vadd.f32 %v6036_v35, %v6002_v6  ;;  %v10509_v41 = vadd.f32 %v6036_v35, %v6003_v56  ;;  %v10511_v3 = vadd.f32 %v6036_v35, %v6004_v48  ;;  %v10513_v2 = vadd.f32 %v6036_v35, %v6005_v10 }
 0x466   : > { %v10515_v27 = vadd.f32 %v6036_v35, %v6006_v15  ;;  %v10517_v30 = vadd.f32 %v6036_v35, %v6007_v39  ;;  %v10519_v46 = vadd.f32 %v6036_v35, %v6008_v1  ;;  %v10521_v0 = vadd.f32 %v6036_v35, %v6009_v47 }
 0x467   : > { %v10523_v45 = vadd.f32 %v6036_v35, %v6010_v60  ;;  %v10525_v16 = vadd.f32 %v6036_v35, %v6011_v34  ;;  %v10527_v11 = vadd.f32 %v6036_v35, %v6012_v4  ;;  %v10529_v14 = vadd.f32 %v6036_v35, %v6013_v57 }
 0x468   : > { %v10531_v51 = vadd.f32 %v6036_v35, %v6014_v49  ;;  %v10533_v50 = vadd.f32 %v6036_v35, %v6015_v42  ;;  %v10535_v53 = vadd.f32 %v6036_v35, %v6016_v54  ;;  %v10537_v18 = vadd.f32 %v6036_v35, %v6017_v5 }
 0x469   : > { %v10539_v21 = vadd.f32 %v6036_v35, %v6018_v63  ;;  %v10541_v55 = vadd.f32 %v6036_v35, %v6019_v29  ;;  %v10543_v7 = vadd.f32 %v6036_v35, %v6020_v40  ;;  %v10545_v9 = vadd.f32 %v6036_v35, %v6021_v22 }
 0x46a   : > { %v10547_v59 = vadd.f32 %v6036_v35, %v6022_v44  ;;  %v10549_v61 = vadd.f32 %v6036_v35, %v6023_v33  ;;  %v10551_v43 = vadd.f32 %v6036_v35, %v6024_v17  ;;  %v10553_v62 = vadd.f32 %v6036_v35, %v6025_v32 }
 0x46b   : > { %v10555_v24 = vadd.f32 %v6036_v35, %v6026_v8  ;;  %v10557_v26 = vadd.f32 %v6036_v35, %v6027_v28  ;;  %v10559_v13 = vadd.f32 %v6036_v35, %v6028_v37  ;;  %v10561_v20 = vadd.f32 %v6036_v35, %v6029_v31 }
 0x46c   : > { %vm6070_vm15 = vcmp.ge.f32.partialorder %v10503_v12, 0.0  ;;  %vm6071_vm0 = vcmp.ge.f32.partialorder %v10505_v38, 0.0  ;;  %vm6072_vm1 = vcmp.ge.f32.partialorder %v10507_v36, 0.0  ;;  %vm6073_vm2 = vcmp.ge.f32.partialorder %v10509_v41, 0.0 }
 0x46d   : > { %vm6075_vm4 = vcmp.ge.f32.partialorder %v10513_v2, 0.0  ;;  %vm6076_vm5 = vcmp.ge.f32.partialorder %v10515_v27, 0.0  ;;  %v10573_v25 = vadd.f32 %v6036_v35, %v6030_v23  ;;  %v6102_v19 = vmul.f32 0.2, %v10503_v12 }
 0x46e   : > { %v6103_v58 = vmul.f32 0.2, %v10505_v38  ;;  %v6104_v6 = vmul.f32 0.2, %v10507_v36  ;;  %v10582_v56 = vadd.f32 %v6036_v35, %v6031_v52  ;;  %vm6085_vm7 = vcmp.ge.f32.partialorder %v10533_v50, 0.0 }
 0x46f   : > { %vm6086_vm9 = vcmp.ge.f32.partialorder %v10535_v53, 0.0  ;;  %v6105_v48 = vmul.f32 0.2, %v10509_v41  ;;  %v6106_v10 = vmul.f32 0.2, %v10511_v3  ;;  %vm6091_vm8 = vcmp.ge.f32.partialorder %v10545_v9, 0.0 }
 0x470   : > { %v6107_v15 = vmul.f32 0.2, %v10513_v2  ;;  %v6108_v39 = vmul.f32 0.2, %v10515_v27  ;;  %v6109_v1 = vmul.f32 0.2, %v10517_v30  ;;  %v10601_v60 = vsel %vm6070_vm15, %v10503_v12, %v6102_v19 }
 0x471   : > { %v6110_v47 = vmul.f32 0.2, %v10519_v46  ;;  %vm6095_vm6 = vcmp.ge.f32.partialorder %v10553_v62, 0.0  ;;  %v6111_v34 = vmul.f32 0.2, %v10521_v0  ;;  %v6135_v49 = vsel %vm6071_vm0, %v10505_v38, %v6103_v58 }
 0x472   : > { %v6112_v4 = vmul.f32 0.2, %v10523_v45  ;;  %v6113_v57 = vmul.f32 0.2, %v10525_v16  ;;  %vm6097_vm10 = vcmp.ge.f32.partialorder %v10557_v26, 0.0  ;;  %vm6098_vm3 = vcmp.ge.f32.partialorder %v10559_v13, 0.0 }
 0x473   : > { %vm6099_vm14 = vcmp.ge.f32.partialorder %v10561_v20, 0.0  ;;  %v6114_v42 = vmul.f32 0.2, %v10527_v11  ;;  %v6115_v54 = vmul.f32 0.2, %v10529_v14  ;;  %v6136_v63 = vsel %vm6072_vm1, %v10507_v36, %v6104_v6 }
 0x474   : > { %v6116_v5 = vmul.f32 0.2, %v10531_v51  ;;  %v6117_v29 = vmul.f32 0.2, %v10533_v50  ;;  %v6118_v35 = vmul.f32 0.2, %v10535_v53  ;;  %v6137_v22 = vsel %vm6073_vm2, %v10509_v41, %v6105_v48 }
 0x475   : > { %v6119_v40 = vmul.f32 0.2, %v10537_v18  ;;  %v6120_v44 = vmul.f32 0.2, %v10539_v21  ;;  %v6121_v33 = vmul.f32 0.2, %v10541_v55  ;;  %v6139_v31 = vsel %vm6075_vm4, %v10513_v2, %v6107_v15 }
 0x476   : > { %v6122_v17 = vmul.f32 0.2, %v10543_v7  ;;  %vm11344_vm1 = vcmp.ge.f32.partialorder %v10511_v3, 0.0  ;;  %v6123_v8 = vmul.f32 0.2, %v10545_v9  ;;  %v6140_v38 = vsel %vm6076_vm5, %v10515_v27, %v6108_v39 }
 0x477   : > { %v6138_v32 = vsel %vm11344_vm1, %v10511_v3, %v6106_v10  ;;  %v6124_v28 = vmul.f32 0.2, %v10547_v59  ;;  %v6125_v37 = vmul.f32 0.2, %v10549_v61  ;;  %v6126_v23 = vmul.f32 0.2, %v10551_v43 }
 0x478   : > { %v6127_v52 = vmul.f32 0.2, %v10553_v62  ;;  %v6128_v12 = vmul.f32 0.2, %v10555_v24  ;;  %v6129_v36 = vmul.f32 0.2, %v10557_v26  ;;  %v7304_v15 = vpack.c.bf16 %v10601_v60, %v10601_v60 }
 0x479   : > { %v6130_v41 = vmul.f32 0.2, %v10559_v13  ;;  %v6131_v3 = vmul.f32 0.2, %v10561_v20  ;;  %vm11345_vm2 = vcmp.ge.f32.partialorder %v10517_v30, 0.0  ;;  %vm11346_vm4 = vcmp.ge.f32.partialorder %v10519_v46, 0.0 }
 0x47a   : > { %v6141_v2 = vsel %vm11345_vm2, %v10517_v30, %v6109_v1  ;;  %v6132_v19 = vmul.f32 0.2, %v10573_v25  ;;  %v6133_v58 = vmul.f32 0.2, %v10582_v56  ;;  %v6142_v6 = vsel %vm11346_vm4, %v10519_v46, %v6110_v47 }
 0x47b   : > { %vm11347_vm5 = vcmp.ge.f32.partialorder %v10521_v0, 0.0  ;;  %vm11348_vm1 = vcmp.ge.f32.partialorder %v10523_v45, 0.0  ;;  %vm11349_vm15 = vcmp.ge.f32.partialorder %v10525_v16, 0.0  ;;  %vm11350_vm2 = vcmp.ge.f32.partialorder %v10527_v11, 0.0 }
 0x47c   : > { %v6143_v27 = vsel %vm11347_vm5, %v10521_v0, %v6111_v34  ;;  %v6144_v48 = vsel %vm11348_vm1, %v10523_v45, %v6112_v4  ;;  %v6145_v30 = vsel %vm11349_vm15, %v10525_v16, %v6113_v57  ;;  %v6146_v10 = vsel %vm11350_vm2, %v10527_v11, %v6114_v42 }
 0x47d   : > { %vm11351_vm0 = vcmp.ge.f32.partialorder %v10529_v14, 0.0  ;;  %vm11352_vm4 = vcmp.ge.f32.partialorder %v10531_v51, 0.0  ;;  %v6149_v45 = vsel %vm6085_vm7, %v10533_v50, %v6117_v29  ;;  %v6150_v16 = vsel %vm6086_vm9, %v10535_v53, %v6118_v35 }
 0x47e   : > { %v6147_v46 = vsel %vm11351_vm0, %v10529_v14, %v6115_v54  ;;  %v6148_v0 = vsel %vm11352_vm4, %v10531_v51, %v6116_v5  ;;  %vm11353_vm15 = vcmp.ge.f32.partialorder %v10537_v18, 0.0  ;;  %vm11354_vm5 = vcmp.ge.f32.partialorder %v10539_v21, 0.0 }
 0x47f   : > { %v6151_v11 = vsel %vm11353_vm15, %v10537_v18, %v6119_v40  ;;  %v6152_v14 = vsel %vm11354_vm5, %v10539_v21, %v6120_v44  ;;  %vm11355_vm0 = vcmp.ge.f32.partialorder %v10541_v55, 0.0  ;;  %vm11356_vm1 = vcmp.ge.f32.partialorder %v10543_v7, 0.0 }
 0x480   : > { %v6153_v51 = vsel %vm11355_vm0, %v10541_v55, %v6121_v33  ;;  %v6154_v50 = vsel %vm11356_vm1, %v10543_v7, %v6122_v17  ;;  %v6155_v53 = vsel %vm6091_vm8, %v10545_v9, %v6123_v8  ;;  %vm11357_vm7 = vcmp.ge.f32.partialorder %v10547_v59, 0.0 }
 0x481   : > { %v6156_v18 = vsel %vm11357_vm7, %v10547_v59, %v6124_v28  ;;  %vm11358_vm9 = vcmp.ge.f32.partialorder %v10549_v61, 0.0  ;;  %vm11359_vm2 = vcmp.ge.f32.partialorder %v10551_v43, 0.0  ;;  %v6159_v7 = vsel %vm6095_vm6, %v10553_v62, %v6127_v52 }
 0x482   : > { %v6157_v21 = vsel %vm11358_vm9, %v10549_v61, %v6125_v37  ;;  %v6158_v55 = vsel %vm11359_vm2, %v10551_v43, %v6126_v23  ;;  %vm11360_vm4 = vcmp.ge.f32.partialorder %v10555_v24, 0.0  ;;  %v6161_v59 = vsel %vm6097_vm10, %v10557_v26, %v6129_v36 }
 0x483   : > { %v6160_v9 = vsel %vm11360_vm4, %v10555_v24, %v6128_v12  ;;  %v6162_v61 = vsel %vm6098_vm3, %v10559_v13, %v6130_v41  ;;  %v6163_v43 = vsel %vm6099_vm14, %v10561_v20, %v6131_v3  ;;  %vm11361_vm8 = vcmp.ge.f32.partialorder %v10573_v25, 0.0 }
 0x484   : > { %v6164_v62 = vsel %vm11361_vm8, %v10573_v25, %v6132_v19  ;;  %vm11362_vm6 = vcmp.ge.f32.partialorder %v10582_v56, 0.0  ;;  %v7305_v26 = vpack.c.bf16 %v6135_v49, %v6135_v49  ;;  %v7306_v39 = vpack.c.bf16 %v6136_v63, %v6136_v63 }
 0x485   : > { %v6165_v24 = vsel %vm11362_vm6, %v10582_v56, %v6133_v58  ;;  %v7307_v1 = vpack.c.bf16 %v6137_v22, %v6137_v22  ;;  %v7308_v47 = vpack.c.bf16 %v6138_v32, %v6138_v32  ;;  %v10731_v13 = vpack.c.bf16 %v6139_v31, %v6139_v31 }
 0x486   : > { %v10733_v34 = vpack.c.bf16 %v6140_v38, %v6140_v38  ;;  %v10735_v20 = vpack.c.bf16 %v6141_v2, %v6141_v2  ;;  %v10737_v4 = vpack.c.bf16 %v6142_v6, %v6142_v6  ;;  %v10739_v25 = vpack.c.bf16 %v6143_v27, %v6143_v27 }
 0x487   : > { %v10741_v57 = vpack.c.bf16 %v6144_v48, %v6144_v48  ;;  %v10743_v56 = vpack.c.bf16 %v6145_v30, %v6145_v30  ;;  %v10745_v42 = vpack.c.bf16 %v6146_v10, %v6146_v10  ;;  %v10747_v60 = vpack.c.bf16 %v6147_v46, %v6147_v46 }
 0x488   : > { %v10749_v49 = vpack.c.bf16 %v6148_v0, %v6148_v0  ;;  %v10751_v54 = vpack.c.bf16 %v6149_v45, %v6149_v45  ;;  %v10753_v5 = vpack.c.bf16 %v6150_v16, %v6150_v16  ;;  %v10755_v63 = vpack.c.bf16 %v6151_v11, %v6151_v11 }
 0x489   : > { %v10757_v29 = vpack.c.bf16 %v6152_v14, %v6152_v14  ;;  %v10759_v35 = vpack.c.bf16 %v6153_v51, %v6153_v51  ;;  %v10761_v40 = vpack.c.bf16 %v6154_v50, %v6154_v50  ;;  %v10763_v22 = vpack.c.bf16 %v6155_v53, %v6155_v53 }
 0x48a   : > { %v10765_v44 = vpack.c.bf16 %v6156_v18, %v6156_v18  ;;  %v10767_v33 = vpack.c.bf16 %v6157_v21, %v6157_v21  ;;  %v10769_v17 = vpack.c.bf16 %v6158_v55, %v6158_v55  ;;  %v10771_v32 = vpack.c.bf16 %v6159_v7, %v6159_v7 }
 0x48b   : > { %v10773_v8 = vpack.c.bf16 %v6160_v9, %v6160_v9  ;;  %v10775_v28 = vpack.c.bf16 %v6161_v59, %v6161_v59  ;;  %v10777_v37 = vpack.c.bf16 %v6162_v61, %v6162_v61  ;;  %v10779_v31 = vpack.c.bf16 %v6163_v43, %v6163_v43 }
 0x48c   : > { %v10781_v23 = vpack.c.bf16 %v6164_v62, %v6164_v62  ;;  %v10783_v52 = vpack.c.bf16 %v6165_v24, %v6165_v24  ;;  %v6317_v12 = vshrl.u32 %v7304_v15, 16  ;;  %v6320_v38 = vshll.u32 %v7304_v15, 16 }
 0x48d   : > { %v6325_v36 = vshrl.u32 %v7305_v26, 16  ;;  %v6328_v41 = vshll.u32 %v7305_v26, 16  ;;  %v6334_v3 = vshrl.u32 %v7306_v39, 16  ;;  %v6337_v2 = vshll.u32 %v7306_v39, 16 }
 0x48e   : > { %v6319_v19 = vrot.slane %v6317_v12, 7  ;;  %v6342_v58 = vshrl.u32 %v7307_v1, 16  ;;  %v6345_v6 = vshll.u32 %v7307_v1, 16  ;;  %v6351_v27 = vshrl.u32 %v7308_v47, 16 }
 0x48f   : > { %v10785_v48 = vrot.slane %v6325_v36, 7  ;;  %v6336_v30 = vrot.slane %v6334_v3, 7  ;;  %v6354_v10 = vshll.u32 %v7308_v47, 16  ;;  %v6359_v46 = vshrl.u32 %v10731_v13, 16 }
 0x490   : > { %v10788_v0 = vor.u32 %v6320_v38, %v6319_v19  ;;  %v6323_v45 = vrot.slane %v6319_v19, 4  ;;  %v10790_v16 = vrot.slane %v6342_v58, 7  ;;  %v6353_v11 = vrot.slane %v6351_v27, 7 }
 0x491   : > { %v6330_v14 = vor.u32 %v6328_v41, %v10785_v48  ;;  %v6332_v51 = vrot.slane %v10785_v48, 4  ;;  %v10794_v50 = vor.u32 %v6337_v2, %v6336_v30  ;;  %v6340_v53 = vrot.slane %v6336_v30, 4 }
 0x492   : > { %v6347_v18 = vor.u32 %v6345_v6, %v10790_v16  ;;  %v6349_v21 = vrot.slane %v10790_v16, 4  ;;  %v10798_v55 = vor.u32 %v6354_v10, %v6353_v11  ;;  %v6357_v7 = vrot.slane %v6353_v11, 4 }
 0x493   : > { %v6331_v59 = vsel %vm8844_vm11, %v6323_v45, %v6330_v14  ;;  %v10802_v61 = vrot.slane %v6359_v46, 7  ;;  %v6362_v43 = vshll.u32 %v10731_v13, 16  ;;  %v6368_v62 = vshrl.u32 %v10733_v34, 16 }
 0x494   : > { %v6348_v24 = vsel %vm8844_vm11, %v6340_v53, %v6347_v18  ;;  %v6371_v15 = vshll.u32 %v10733_v34, 16  ;;  %v6376_v26 = vshrl.u32 %v10735_v20, 16  ;;  %v6379_v39 = vshll.u32 %v10735_v20, 16  ;;  %7191 = vst [vmem:[%s8718_s28 + $0x10] sm:$0xf] %v6331_v59 }
 0x495   : > { %v6364_v1 = vor.u32 %v6362_v43, %v10802_v61  ;;  %v6366_v47 = vrot.slane %v10802_v61, 4  ;;  %v6370_v12 = vrot.slane %v6368_v62, 7  ;;  %v6385_v13 = vshrl.u32 %v10737_v4, 16  ;;  %7196 = vst [vmem:[%s8718_s28 + $0x1c] sm:$0xf] %v6348_v24 }
 0x496   : > { %v10816_v38 = vrot.slane %v6376_v26, 7  ;;  %v6388_v36 = vshll.u32 %v10737_v4, 16  ;;  %v6393_v34 = vshrl.u32 %v10739_v25, 16  ;;  %v6396_v41 = vshll.u32 %v10739_v25, 16 }
 0x497   : > { %v6365_v20 = vsel %vm8844_vm11, %v6357_v7, %v6364_v1  ;;  %v10823_v3 = vor.u32 %v6371_v15, %v6370_v12  ;;  %v6374_v2 = vrot.slane %v6370_v12, 4  ;;  %v6387_v19 = vrot.slane %v6385_v13, 7 }
 0x498   : > { %v6381_v58 = vor.u32 %v6379_v39, %v10816_v38  ;;  %v6383_v6 = vrot.slane %v10816_v38, 4  ;;  %v10827_v27 = vrot.slane %v6393_v34, 7  ;;  %v6402_v4 = vshrl.u32 %v10741_v57, 16  ;;  %7201 = vst [vmem:[%s8718_s28 + $0x28] sm:$0xf] %v6365_v20 }
 0x499   : > { %v10831_v30 = vor.u32 %v6388_v36, %v6387_v19  ;;  %v6391_v25 = vrot.slane %v6387_v19, 4  ;;  %v6405_v10 = vshll.u32 %v10741_v57, 16  ;;  %v6410_v46 = vshrl.u32 %v10743_v56, 16 }
 0x49a   : > { %v6382_v45 = vsel %vm8844_vm11, %v6374_v2, %v6381_v58  ;;  %v6398_v11 = vor.u32 %v6396_v41, %v10827_v27  ;;  %v6400_v14 = vrot.slane %v10827_v27, 4  ;;  %v6404_v53 = vrot.slane %v6402_v4, 7 }
 0x49b   : > { %v10839_v18 = vrot.slane %v6410_v46, 7  ;;  %v6413_v7 = vshll.u32 %v10743_v56, 16  ;;  %v6419_v59 = vshrl.u32 %v10745_v42, 16  ;;  %v6422_v43 = vshll.u32 %v10745_v42, 16  ;;  %7206 = vst [vmem:[%s8718_s28 + $0x34] sm:$0xf] %v6382_v45 }
 0x49c   : > { %v6399_v57 = vsel %vm8844_vm11, %v6391_v25, %v6398_v11  ;;  %v10847_v62 = vor.u32 %v6405_v10, %v6404_v53  ;;  %v6408_v24 = vrot.slane %v6404_v53, 4  ;;  %v6427_v15 = vshrl.u32 %v10747_v60, 16 }
 0x49d   : > { %v6415_v26 = vor.u32 %v6413_v7, %v10839_v18  ;;  %v6417_v39 = vrot.slane %v10839_v18, 4  ;;  %v6421_v1 = vrot.slane %v6419_v59, 7  ;;  %v6430_v56 = vshll.u32 %v10747_v60, 16  ;;  %7211 = vst [vmem:[%s8718_s28 + $0x40] sm:$0xf] %v6399_v57 }
 0x49e   : > { %v10854_v12 = vrot.slane %v6427_v15, 7  ;;  %v6436_v42 = vshrl.u32 %v10749_v49, 16  ;;  %v6439_v13 = vshll.u32 %v10749_v49, 16  ;;  %v6444_v36 = vshrl.u32 %v10751_v54, 16  ;;  %v7222_v7 = vld [vmem:[%s8718_s28 + $0x5c] sm:$0x1] }
 0x49f   : > { %v6416_v34 = vsel %vm8844_vm11, %v6408_v24, %v6415_v26  ;;  %v10861_v41 = vor.u32 %v6422_v43, %v6421_v1  ;;  %v6425_v20 = vrot.slane %v6421_v1, 4  ;;  %v6447_v2 = vshll.u32 %v10751_v54, 16  ;;  %v7254_v18 = vld [vmem:[%s8718_s28 + $0xa8] sm:$0xf] }
 0x4a0   : > { %v6432_v19 = vor.u32 %v6430_v56, %v10854_v12  ;;  %v6438_v58 = vrot.slane %v6436_v42, 7  ;;  %v10866_v4 = vrot.slane %v6444_v36, 7  ;;  %7216 = vst [vmem:[%s8718_s28 + $0x4c] sm:$0xf] %v6416_v34  ;;  %v6453_v49 = vshrl.u32 %v10753_v5, 16 }
 0x4a1   : > { %v6456_v25 = vshll.u32 %v10753_v5, 16  ;;  %v6461_v10 = vshrl.u32 %v10755_v63, 16  ;;  %v6464_v46 = vshll.u32 %v10755_v63, 16  ;;  %v6470_v5 = vshrl.u32 %v10757_v29, 16 }
 0x4a2   : > { %v6433_v54 = vsel %vm8844_vm11, %v6425_v20, %v6432_v19  ;;  %v10875_v45 = vor.u32 %v6439_v13, %v6438_v58  ;;  %v6442_v11 = vrot.slane %v6438_v58, 4  ;;  %v6449_v53 = vor.u32 %v6447_v2, %v10866_v4 }
 0x4a3   : > { %v6455_v59 = vrot.slane %v6453_v49, 7  ;;  %v10879_v43 = vrot.slane %v6461_v10, 7  ;;  %7221 = vst [vmem:[%s8718_s28 + $0x58] sm:$0xf] %v6433_v54  ;;  %v6473_v57 = vshll.u32 %v10757_v29, 16  ;;  %v6478_v24 = vshrl.u32 %v10759_v35, 16 }
 0x4a4   : > { %v6450_v63 = vsel %vm8844_vm11, %v6442_v11, %v6449_v53  ;;  %v6481_v15 = vshll.u32 %v10759_v35, 16  ;;  %v6472_v13 = vrot.slane %v6470_v5, 7  ;;  %v6487_v34 = vshrl.u32 %v10761_v40, 16  ;;  %v7229_v10 = vld [vmem:[%s8718_s28 + $0x6c] sm:$0xf] }
 0x4a5   : > { %v10888_v26 = vor.u32 %v6456_v25, %v6455_v59  ;;  %v6459_v1 = vrot.slane %v6455_v59, 4  ;;  %v6466_v56 = vor.u32 %v6464_v46, %v10879_v43  ;;  %7226 = vst [vmem:[%s8718_s28 + $0x64] sm:$0xf] %v6450_v63  ;;  %v10893_v36 = vrot.slane %v6478_v24, 7 }
 0x4a6   : > { %v6490_v29 = vshll.u32 %v10761_v40, 16  ;;  %v6495_v35 = vshrl.u32 %v10763_v22, 16  ;;  %v6498_v2 = vshll.u32 %v10763_v22, 16  ;;  %v6504_v19 = vshrl.u32 %v10765_v44, 16 }
 0x4a7   : > { %v6467_v20 = vsel %vm8844_vm11, %v6459_v1, %v6466_v56  ;;  %v10902_v58 = vor.u32 %v6473_v57, %v6472_v13  ;;  %v6476_v49 = vrot.slane %v6472_v13, 4  ;;  %v6483_v25 = vor.u32 %v6481_v15, %v10893_v36  ;;  %v7214_v15 = vld [vmem:[%s8718_s28 + $0x48] sm:$0xf] }
 0x4a8   : > { %7231 = vst [vmem:[%s8718_s28 + $0x70] sm:$0xf] %v6467_v20  ;;  %v6489_v46 = vrot.slane %v6487_v34, 7  ;;  %v10907_v40 = vrot.slane %v6495_v35, 7  ;;  %v6506_v54 = vrot.slane %v6504_v19, 7  ;;  %v6507_v11 = vshll.u32 %v10765_v44, 16 }
 0x4a9   : > { %v6484_v22 = vsel %vm8844_vm11, %v6476_v49, %v6483_v25  ;;  %v6512_v53 = vshrl.u32 %v10767_v33, 16  ;;  %v6515_v59 = vshll.u32 %v10767_v33, 16  ;;  %v6521_v5 = vshrl.u32 %v10769_v17, 16 }
 0x4aa   : > { %v10915_v63 = vor.u32 %v6490_v29, %v6489_v46  ;;  %v6493_v57 = vrot.slane %v6489_v46, 4  ;;  %v6500_v24 = vor.u32 %v6498_v2, %v10907_v40  ;;  %7236 = vst [vmem:[%s8718_s28 + $0x7c] sm:$0xf] %v6484_v22  ;;  %v10920_v1 = vor.u32 %v6507_v11, %v6506_v54  ;;  %v7212_v2 = vld [vmem:[%s8718_s28 + $0x44] sm:$0x1] }
 0x4ab   : > { %v6510_v44 = vrot.slane %v6506_v54, 4  ;;  %v10922_v56 = vrot.slane %v6512_v53, 7  ;;  %v6523_v13 = vrot.slane %v6521_v5, 7  ;;  %v6524_v34 = vshll.u32 %v10769_v17, 16 }
 0x4ac   : > { %v6501_v33 = vsel %vm8844_vm11, %v6493_v57, %v6500_v24  ;;  %v6529_v29 = vshrl.u32 %v10771_v32, 16  ;;  %v6532_v20 = vshll.u32 %v10771_v32, 16  ;;  %v6538_v49 = vshrl.u32 %v10773_v8, 16  ;;  %v7189_v24 = vld [vmem:[%s8718_s28 + $0xc] sm:$0xf] }
 0x4ad   : > { %v6517_v35 = vor.u32 %v6515_v59, %v10922_v56  ;;  %v6527_v19 = vrot.slane %v6523_v13, 4  ;;  %7241 = vst [vmem:[%s8718_s28 + $0x88] sm:$0xf] %v6501_v33  ;;  %v10933_v25 = vor.u32 %v6524_v34, %v6523_v13  ;;  %v6541_v17 = vshll.u32 %v10773_v8, 16  ;;  %v7192_v34 = vld [vmem:[%s8718_s28 + $0x14] sm:$0x1] }
 0x4ae   : > { %v10935_v46 = vrot.slane %v6529_v29, 7  ;;  %v6546_v54 = vshrl.u32 %v10775_v28, 16  ;;  %v6540_v11 = vrot.slane %v6538_v49, 7  ;;  %v6549_v22 = vshll.u32 %v10775_v28, 16  ;;  %v7194_v29 = vld [vmem:[%s8718_s28 + $0x18] sm:$0xf] }
 0x4af   : > { %v6518_v32 = vsel %vm8844_vm11, %v6510_v44, %v6517_v35  ;;  %v6555_v53 = vshrl.u32 %v10777_v37, 16  ;;  %v6558_v8 = vshll.u32 %v10777_v37, 16  ;;  %v6563_v33 = vshrl.u32 %v10779_v31, 16  ;;  %v7209_v37 = vld [vmem:[%s8718_s28 + $0x3c] sm:$0xf] }
 0x4b0   : > { %v6534_v59 = vor.u32 %v6532_v20, %v10935_v46  ;;  %v10945_v57 = vrot.slane %v6546_v54, 7  ;;  %7246 = vst [vmem:[%s8718_s28 + $0x94] sm:$0xf] %v6518_v32  ;;  %v10950_v13 = vor.u32 %v6541_v17, %v6540_v11  ;;  %v6544_v44 = vrot.slane %v6540_v11, 4  ;;  %v7197_v17 = vld [vmem:[%s8718_s28 + $0x20] sm:$0x1] }
 0x4b1   : > { %v6557_v28 = vrot.slane %v6555_v53, 7  ;;  %v6566_v49 = vshll.u32 %v10779_v31, 16  ;;  %v7199_v54 = vld [vmem:[%s8718_s28 + $0x24] sm:$0xf]  ;;  %v10964_v53 = vrot.slane %v6563_v33, 7  ;;  %v6572_v5 = vshrl.u32 %v10781_v23, 16 }
 0x4b2   : > { %v6535_v20 = vsel %vm8844_vm11, %v6527_v19, %v6534_v59  ;;  %v6551_v35 = vor.u32 %v6549_v22, %v10945_v57  ;;  %v7202_v19 = vld [vmem:[%s8718_s28 + $0x2c] sm:$0x1]  ;;  %v7204_v22 = vld [vmem:[%s8718_s28 + $0x30] sm:$0xf]  ;;  %v6575_v59 = vshll.u32 %v10781_v23, 16  ;;  %v6638_v23 = vsel %vm8852_vm12, %v10788_v0, %v7189_v24 }
 0x4b3   : > { %v10962_v32 = vor.u32 %v6558_v8, %v6557_v28  ;;  %v6561_v11 = vrot.slane %v6557_v28, 4  ;;  %7251 = vst [vmem:[%s8718_s28 + $0xa0] sm:$0xf] %v6535_v20  ;;  %v6580_v8 = vshrl.u32 %v10783_v52, 16  ;;  %v6583_v28 = vshll.u32 %v10783_v52, 16 }
 0x4b4   : > { %v6552_v31 = vsel %vm8844_vm11, %v6544_v44, %v6551_v35  ;;  %v7207_v33 = vld [vmem:[%s8718_s28 + $0x38] sm:$0x1]  ;;  %v6568_v20 = vor.u32 %v6566_v49, %v10964_v53  ;;  %v6574_v42 = vrot.slane %v6572_v5, 7  ;;  %v7217_v35 = vld [vmem:[%s8718_s28 + $0x50] sm:$0x1]  ;;  %v6642_v5 = vsel %vm8863_vm13, %v6332_v51, %v7192_v34 }
 0x4b5   : > { %v7219_v52 = vld [vmem:[%s8718_s28 + $0x54] sm:$0xf]  ;;  %7256 = vst [vmem:[%s8718_s28 + $0xac] sm:$0xf] %v6552_v31  ;;  %v10988_v60 = vrot.slane %v6580_v8, 7  ;;  %v6645_v0 = vsel %vm8852_vm12, %v10794_v50, %v7194_v29  ;;  %v6649_v24 = vsel %vm8863_vm13, %v6349_v21, %v7197_v17  ;;  %v6652_v16 = vsel %vm8852_vm12, %v10798_v55, %v7199_v54 }
 0x4b6   : > { %7190 = vst [vmem:[%s8718_s28 + $0xc] sm:$0xf] %v6638_v23  ;;  %v7224_v31 = vld [vmem:[%s8718_s28 + $0x60] sm:$0xf]  ;;  %v7227_v8 = vld [vmem:[%s8718_s28 + $0x68] sm:$0x1]  ;;  %v6569_v48 = vsel %vm8844_vm11, %v6561_v11, %v6568_v20  ;;  %v11007_v51 = vor.u32 %v6575_v59, %v6574_v42  ;;  %v6659_v55 = vsel %vm8852_vm12, %v10823_v3, %v7204_v22  ;;  %v6663_v61 = vsel %vm8863_vm13, %v6383_v6, %v7207_v33 }
 0x4b7   : > { %v6578_v34 = vrot.slane %v6574_v42, 4  ;;  %7193 = vst [vmem:[%s8718_s28 + $0x14] sm:$0x1] %v6642_v5  ;;  %7195 = vst [vmem:[%s8718_s28 + $0x18] sm:$0xf] %v6645_v0  ;;  %v6585_v29 = vor.u32 %v6583_v28, %v10988_v60  ;;  %v6587_v17 = vrot.slane %v10988_v60, 4  ;;  %v6656_v42 = vsel %vm8863_vm13, %v6366_v47, %v7202_v19 }
 0x4b8   : > { %7198 = vst [vmem:[%s8718_s28 + $0x20] sm:$0x1] %v6649_v24  ;;  %v7232_v50 = vld [vmem:[%s8718_s28 + $0x74] sm:$0x1]  ;;  %v7234_v21 = vld [vmem:[%s8718_s28 + $0x78] sm:$0xf]  ;;  %v6666_v47 = vsel %vm8852_vm12, %v10831_v30, %v7209_v37  ;;  %v6670_v3 = vsel %vm8863_vm13, %v6400_v14, %v7212_v2  ;;  %v6673_v38 = vsel %vm8852_vm12, %v10847_v62, %v7214_v15  ;;  %v6677_v27 = vsel %vm8863_vm13, %v6417_v39, %v7217_v35 }
 0x4b9   : > { %7200 = vst [vmem:[%s8718_s28 + $0x24] sm:$0xf] %v6652_v16  ;;  %v7237_v54 = vld [vmem:[%s8718_s28 + $0x80] sm:$0x1]  ;;  %v7239_v11 = vld [vmem:[%s8718_s28 + $0x84] sm:$0xf]  ;;  %v6586_v59 = vsel %vm8844_vm11, %v6578_v34, %v6585_v29  ;;  %v6680_v30 = vsel %vm8852_vm12, %v10861_v41, %v7219_v52  ;;  %v6687_v39 = vsel %vm8852_vm12, %v10875_v45, %v7224_v31 }
 0x4ba   : > { %7261 = vst [vmem:[%s8718_s28 + $0xb8] sm:$0xf] %v6569_v48  ;;  %7203 = vst [vmem:[%s8718_s28 + $0x2c] sm:$0x1] %v6656_v42  ;;  %v7242_v19 = vld [vmem:[%s8718_s28 + $0x8c] sm:$0x1]  ;;  %v6708_v33 = vsel %vm8852_vm12, %v10915_v63, %v7239_v11 }
 0x4bb   : > { %7205 = vst [vmem:[%s8718_s28 + $0x30] sm:$0xf] %v6659_v55  ;;  %v7244_v6 = vld [vmem:[%s8718_s28 + $0x90] sm:$0xf]  ;;  %v7247_v22 = vld [vmem:[%s8718_s28 + $0x98] sm:$0x1] }
 0x4bc   : > { %7208 = vst [vmem:[%s8718_s28 + $0x38] sm:$0x1] %v6663_v61  ;;  %7210 = vst [vmem:[%s8718_s28 + $0x3c] sm:$0xf] %v6666_v47  ;;  %v11366_v9 = vrot.slane %v10854_v12, 4  ;;  %v11367_v41 = vrot.slane %v10866_v4, 4 }
 0x4bd   : > { %7213 = vst [vmem:[%s8718_s28 + $0x44] sm:$0x1] %v6670_v3  ;;  %7215 = vst [vmem:[%s8718_s28 + $0x48] sm:$0xf] %v6673_v38  ;;  %v7249_v62 = vld [vmem:[%s8718_s28 + $0x9c] sm:$0xf] }
 0x4be   : > { %v6684_v14 = vsel %vm8863_vm13, %v11366_v9, %v7222_v7  ;;  %v7252_v15 = vld [vmem:[%s8718_s28 + $0xa4] sm:$0x1]  ;;  %7218 = vst [vmem:[%s8718_s28 + $0x50] sm:$0x1] %v6677_v27  ;;  %7220 = vst [vmem:[%s8718_s28 + $0x54] sm:$0xf] %v6680_v30  ;;  %v6691_v12 = vsel %vm8863_vm13, %v11367_v41, %v7227_v8  ;;  %v6694_v7 = vsel %vm8852_vm12, %v10888_v26, %v7229_v10 }
 0x4bf   : > { %7223 = vst [vmem:[%s8718_s28 + $0x5c] sm:$0x1] %v6684_v14  ;;  %v11368_v2 = vrot.slane %v10879_v43, 4  ;;  %v7257_v28 = vld [vmem:[%s8718_s28 + $0xb0] sm:$0x1]  ;;  %v6701_v43 = vsel %vm8852_vm12, %v10902_v58, %v7234_v21  ;;  %v11369_v26 = vrot.slane %v10893_v36, 4  ;;  %v6715_v36 = vsel %vm8852_vm12, %v10920_v1, %v7244_v6 }
 0x4c0   : > { %v7259_v45 = vld [vmem:[%s8718_s28 + $0xb4] sm:$0xf]  ;;  %v7262_v4 = vld [vmem:[%s8718_s28 + $0xbc] sm:$0x1]  ;;  %7266 = vst [vmem:[%s8718_s28 + $0xc4] sm:$0xf] %v6586_v59  ;;  %v6722_v63 = vsel %vm8852_vm12, %v10933_v25, %v7249_v62  ;;  %v6729_v1 = vsel %vm8852_vm12, %v10950_v13, %v7254_v18 }
 0x4c1   : > { %v6698_v37 = vsel %vm8863_vm13, %v11368_v2, %v7232_v50  ;;  %7225 = vst [vmem:[%s8718_s28 + $0x60] sm:$0xf] %v6687_v39  ;;  %7228 = vst [vmem:[%s8718_s28 + $0x68] sm:$0x1] %v6691_v12  ;;  %v6705_v10 = vsel %vm8863_vm13, %v11369_v26, %v7237_v54  ;;  %v11370_v20 = vrot.slane %v10907_v40, 4  ;;  %v11371_v58 = vrot.slane %v10922_v56, 4 }
 0x4c2   : > { %7230 = vst [vmem:[%s8718_s28 + $0x6c] sm:$0xf] %v6694_v7  ;;  %7233 = vst [vmem:[%s8718_s28 + $0x74] sm:$0x1] %v6698_v37  ;;  %v7264_v35 = vld [vmem:[%s8718_s28 + $0xc0] sm:$0xf] }
 0x4c3   : > { %v6712_v23 = vsel %vm8863_vm13, %v11370_v20, %v7242_v19  ;;  %v7267_v52 = vld [vmem:[%s8718_s28 + $0xc8] sm:$0x1]  ;;  %7235 = vst [vmem:[%s8718_s28 + $0x78] sm:$0xf] %v6701_v43  ;;  %7238 = vst [vmem:[%s8718_s28 + $0x80] sm:$0x1] %v6705_v10  ;;  %v6719_v40 = vsel %vm8863_vm13, %v11371_v58, %v7247_v22 }
 0x4c4   : > { %7240 = vst [vmem:[%s8718_s28 + $0x84] sm:$0xf] %v6708_v33  ;;  %7243 = vst [vmem:[%s8718_s28 + $0x8c] sm:$0x1] %v6712_v23  ;;  %v11372_v5 = vrot.slane %v10935_v46, 4  ;;  %v11373_v56 = vrot.slane %v10945_v57, 4  ;;  %v6736_v46 = vsel %vm8852_vm12, %v10962_v32, %v7259_v45  ;;  %v6743_v57 = vsel %vm8852_vm12, %v11007_v51, %v7264_v35 }
 0x4c5   : > { %7245 = vst [vmem:[%s8718_s28 + $0x90] sm:$0xf] %v6715_v36  ;;  %7248 = vst [vmem:[%s8718_s28 + $0x98] sm:$0x1] %v6719_v40  ;;  %v11374_v24 = vrot.slane %v10964_v53, 4  ;;  %v6747_v13 = vsel %vm8863_vm13, %v6587_v17, %v7267_v52 }
 0x4c6   : > { %v6726_v0 = vsel %vm8863_vm13, %v11372_v5, %v7252_v15  ;;  %7250 = vst [vmem:[%s8718_s28 + $0x9c] sm:$0xf] %v6722_v63  ;;  %v6733_v25 = vsel %vm8863_vm13, %v11373_v56, %v7257_v28  ;;  %7255 = vst [vmem:[%s8718_s28 + $0xa8] sm:$0xf] %v6729_v1 }
 0x4c7   : > { %7253 = vst [vmem:[%s8718_s28 + $0xa4] sm:$0x1] %v6726_v0  ;;  %v6740_v31 = vsel %vm8863_vm13, %v11374_v24, %v7262_v4  ;;  %7258 = vst [vmem:[%s8718_s28 + $0xb0] sm:$0x1] %v6733_v25 }
 0x4c8   : > { %7260 = vst [vmem:[%s8718_s28 + $0xb4] sm:$0xf] %v6736_v46  ;;  %7263 = vst [vmem:[%s8718_s28 + $0xbc] sm:$0x1] %v6740_v31 }
 0x4c9   : > { %7265 = vst [vmem:[%s8718_s28 + $0xc0] sm:$0xf] %v6743_v57  ;;  %7268 = vst [vmem:[%s8718_s28 + $0xc8] sm:$0x1] %v6747_v13 }
 0x4ca PF: > { %p18_p1 = scmp.ge.s32.totalorder %s8591_s8, 4   ;;  %s11375_s21 = smov %s8462_s22 }
 0x4cb   : > { %s11376_s22 = smov %s8466_s23  ;;  %s11377_s23 = smov %s8601_s12 }
 0x4cc   : > { %s11378_s24 = smov %s8591_s8  ;;  %20 = sbr.rel (!%p18_p1) target bundleno = 5 (0x5), region = 99 }
 0x4d1   :  { %6770 = vsyncpa [#allocation5], 1 }
 0x4d2   :  { %6772 = vsyncpa [#allocation5 + $0x1], 1 }
 0x4d3   :  { %6773 = vsyncpa [#allocation7], 1 }
 0x4d4   :  { %6774 = vsyncpa [#allocation10], 1 }

</bundles_post_ra>
